<compile_context>
chip_gen: v7x
topology: tpu7x:2x2x1
jax: 0.10.0
libtpu: 0.0.40
codegen_flags: <defaults>
</compile_context>

<pallas_src>
import functools

import jax
import jax.numpy as jnp
from jax.experimental import pallas as pl
from jax.experimental.pallas import tpu as pltpu


_VMEM_LIMIT = 32 * 1024 * 1024


# ---------------------------------------------------------------------------
# Pallas kernels
# ---------------------------------------------------------------------------
def _conv_kernel(a_ref, w_ref, scale_ref, bias_ref, y_ref):
    """relu((im2col row-block @ W) * scale + bias) for one row block."""
    acc = jnp.dot(a_ref[...], w_ref[...], preferred_element_type=jnp.float32)
    y = jnp.maximum(acc * scale_ref[...] + bias_ref[...], 0.0)
    y_ref[...] = y.astype(y_ref.dtype)


def _conv_pool_kernel(a_ref, w_ref, scale_ref, bias_ref, col_ref,
                      y_ref, pool_ref):
    """Same as _conv_kernel plus fused adaptive_avg_pool3d.

    Grid is (sample, row-block); the pooled output block is resident across
    the row-block axis ("arbitrary") and accumulated in place.
    """
    j = pl.program_id(1)
    acc = jnp.dot(a_ref[...], w_ref[...], preferred_element_type=jnp.float32)
    y = jnp.maximum(acc * scale_ref[...] + bias_ref[...], 0.0)
    y_ref[...] = y.astype(y_ref.dtype)

    @pl.when(j == 0)
    def _():
        pool_ref[...] = jnp.zeros_like(pool_ref)

    # avg-pool as VPU mask-multiply + sublane reduce (keeps the MXU free).
    psum = jnp.sum(col_ref[...] * y, axis=0, keepdims=True)        # (1, Cout)
    pool_ref[...] += psum.reshape(pool_ref.shape)


def _conv_pool_head_kernel(a_ref, w_ref, scale_ref, bias_ref, col_ref,
                           p1_ref, w1_ref, b1_ref, w2_ref, b2_ref,
                           w3_ref, b3_ref, out_ref, pool_sc):
    """conv3+BN+ReLU -> fused avg-pool -> sigmoid gate -> MLP -> softmax.

    One sample per grid row (axis 0, parallel); its row blocks on axis 1
    (arbitrary).  Only the (1, num_classes) probabilities leave the kernel;
    the conv3 activation volume never touches HBM.
    """
    j = pl.program_id(1)
    acc = jnp.dot(a_ref[...], w_ref[...], preferred_element_type=jnp.float32)
    y = jnp.maximum(acc * scale_ref[...] + bias_ref[...], 0.0)

    @pl.when(j == 0)
    def _():
        pool_sc[...] = jnp.zeros_like(pool_sc)

    pool_sc[...] += jnp.sum(col_ref[...] * y, axis=0, keepdims=True)

    @pl.when(j == pl.num_programs(1) - 1)
    def _():
        pooled = pool_sc[...]                                       # (1, 128)
        p1 = p1_ref[...].reshape(1, -1)                             # (1, 32)
        # classify: Linear(32,1)+Sigmoid as mul+reduce (no 1-lane matmul out)
        s = jnp.sum(p1 * w1_ref[...], axis=1, keepdims=True) + b1_ref[...]
        gate = 1.0 / (1.0 + jnp.exp(-s))                            # (1, 1)
        g = pooled * gate                                           # (1, 128)
        h = jnp.dot(g, w2_ref[...], preferred_element_type=jnp.float32)
        h = jnp.maximum(h + b2_ref[...], 0.0)                       # (1, 64)
        logits = jnp.dot(h, w3_ref[...],
                         preferred_element_type=jnp.float32) + b3_ref[...]
        m = jnp.max(logits, axis=1, keepdims=True)
        e = jnp.exp(logits - m)
        probs = e / jnp.sum(e, axis=1, keepdims=True)               # softmax
        out_ref[...] = probs.reshape(out_ref.shape)


# ---------------------------------------------------------------------------
# Glue: im2col operands for one Conv3d(k=3) + BN(eval) + ReLU layer
# ---------------------------------------------------------------------------
def _round_up(v, m):
    return -(-v // m) * m


def _prep_conv(x, w, b, gamma, beta, rmean, rvar, *, stride, pad, rb_pref,
               eps=1e-5):
    """x: (N, D, H, W, Cin).  w: torch layout (Cout, Cin, 3, 3, 3).

    Returns A (N*rs_acc, 27*Cin) bf16, W (27*Cin, Cout) bf16, per-channel
    scale/bias f32, pooling column (N*rs_acc, 1) f32, and meta.
    """
    n, d, h, wd, cin = x.shape
    cout = w.shape[0]
    k, s = 3, stride
    do = (d + 2 * pad - k) // s + 1
    ho = (h + 2 * pad - k) // s + 1
    wo = (wd + 2 * pad - k) // s + 1
    rps = do * ho * wo                          # output rows per sample
    rb = min(rb_pref, _round_up(rps, 8))        # MXU LHS row-block size
    bps = -(-rps // rb)                         # row blocks per sample
    rs_acc = bps * rb
    kdim = k * k * k * cin                      # fully folded contraction dim

    xpad = jnp.pad(x.astype(jnp.bfloat16),
                   ((0, 0), (pad, pad), (pad, pad), (pad, pad), (0, 0)))

    # full K-fold im2col: A column index = ((kd*3 + kh)*3 + kw)*Cin + ci
    cols = []
    for kd in range(k):
        for kh in range(k):
            for kw in range(k):
                sl = xpad[:, kd::s, kh::s, kw::s, :][:, :do, :ho, :wo, :]
                cols.append(sl.reshape(n, rps, cin))
    amat = jnp.concatenate(cols, axis=2)                    # (N, rps, 27*Cin)
    amat = jnp.pad(amat, ((0, 0), (0, rs_acc - rps), (0, 0)))
    amat = amat.reshape(n * rs_acc, kdim)

    # weights: (27*Cin, Cout), row ((kd*3+kh)*3+kw)*Cin+ci <- w[co, ci, kd, kh, kw]
    wmat = jnp.transpose(w, (2, 3, 4, 1, 0)).reshape(kdim, cout)
    wmat = wmat.astype(jnp.bfloat16)

    # fold conv bias + eval-mode BN into per-channel scale / bias (f32 epilogue)
    inv = gamma * jax.lax.rsqrt(rvar + eps)
    scale = inv.reshape(1, cout).astype(jnp.float32)
    bias = (beta + inv * (b - rmean)).reshape(1, cout).astype(jnp.float32)

    # adaptive_avg_pool3d weight per row: 1/(do*ho*wo); zero on rb-padding rows
    col = jnp.concatenate(
        [jnp.full((rps, 1), 1.0 / float(rps), jnp.float32),
         jnp.zeros((rs_acc - rps, 1), jnp.float32)], axis=0)
    col = jnp.tile(col, (n, 1))                             # (N*rs_acc, 1)

    meta = dict(n=n, do=do, ho=ho, wo=wo, cout=cout, rps=rps,
                rb=rb, bps=bps, rs_acc=rs_acc, kdim=kdim)
    return amat, wmat, scale, bias, col, meta


def conv_bn_relu(x, w, b, bn, *, stride, pad, with_pool=False):
    """Conv3d(k=3) + BN(eval) + ReLU (+ optional fused adaptive avg-pool)."""
    gamma, beta, rmean, rvar = bn
    cout = w.shape[0]
    rb_pref = 512 if cout <= 32 else 256
    amat, wmat, scale, bias, col, m = _prep_conv(
        x, w, b, gamma, beta, rmean, rvar, stride=stride, pad=pad,
        rb_pref=rb_pref)
    n, rb, bps, rs_acc, kdim = m['n'], m['rb'], m['bps'], m['rs_acc'], m['kdim']

    cost = pl.CostEstimate(
        flops=int(2 * n * rs_acc * kdim * cout),
        transcendentals=0,
        bytes_accessed=int((amat.size + wmat.size + n * rs_acc * cout) * 2))

    if with_pool:
        y_full, pooled = pl.pallas_call(
            _conv_pool_kernel,
            out_shape=(jax.ShapeDtypeStruct((n * rs_acc, cout), jnp.bfloat16),
                       jax.ShapeDtypeStruct((n, 1, cout), jnp.float32)),
            grid=(n, bps),
            in_specs=[pl.BlockSpec((rb, kdim), lambda ni, j: (ni * bps + j, 0)),
                      pl.BlockSpec((kdim, cout), lambda ni, j: (0, 0)),
                      pl.BlockSpec((1, cout), lambda ni, j: (0, 0)),
                      pl.BlockSpec((1, cout), lambda ni, j: (0, 0)),
                      pl.BlockSpec((rb, 1), lambda ni, j: (ni * bps + j, 0))],
            out_specs=(pl.BlockSpec((rb, cout), lambda ni, j: (ni * bps + j, 0)),
                       pl.BlockSpec((1, 1, cout), lambda ni, j: (ni, 0, 0))),
            compiler_params=pltpu.CompilerParams(
                dimension_semantics=("parallel", "arbitrary"),
                vmem_limit_bytes=_VMEM_LIMIT),
            cost_estimate=cost,
        )(amat, wmat, scale, bias, col)
        pooled = pooled.reshape(n, cout)
    else:
        y_full = pl.pallas_call(
            _conv_kernel,
            out_shape=jax.ShapeDtypeStruct((n * rs_acc, cout), jnp.bfloat16),
            grid=(n * bps,),
            in_specs=[pl.BlockSpec((rb, kdim), lambda i: (i, 0)),
                      pl.BlockSpec((kdim, cout), lambda i: (0, 0)),
                      pl.BlockSpec((1, cout), lambda i: (0, 0)),
                      pl.BlockSpec((1, cout), lambda i: (0, 0))],
            out_specs=pl.BlockSpec((rb, cout), lambda i: (i, 0)),
            compiler_params=pltpu.CompilerParams(
                dimension_semantics=("parallel",),
                vmem_limit_bytes=_VMEM_LIMIT),
            cost_estimate=cost,
        )(amat, wmat, scale, bias)
        pooled = None

    y = y_full.reshape(n, rs_acc, cout)[:, :m['rps']]
    y = y.reshape(n, m['do'], m['ho'], m['wo'], cout)
    return (y, pooled) if with_pool else y


def conv_bn_relu_pool_head(x, w, b, bn, pooled1, head, *, stride, pad):
    """conv3 + BN + ReLU + avg-pool + sigmoid gate + classify_scroe, fused."""
    gamma, beta, rmean, rvar = bn
    w1, b1, w2, b2, w3, b3 = head
    cout = w.shape[0]
    amat, wmat, scale, bias, col, m = _prep_conv(
        x, w, b, gamma, beta, rmean, rvar, stride=stride, pad=pad, rb_pref=256)
    n, rb, bps, rs_acc, kdim = m['n'], m['rb'], m['bps'], m['rs_acc'], m['kdim']
    fd0 = w1.shape[0]        # 32  (w1 stored as (in, out))
    hid = w2.shape[1]        # 64
    ncls = w3.shape[1]       # 2

    cost = pl.CostEstimate(
        flops=int(2 * n * rs_acc * kdim * cout
                  + 2 * n * (cout * hid + hid * ncls)),
        transcendentals=int(4 * n),
        bytes_accessed=int((amat.size + wmat.size) * 2 + n * ncls * 4))

    out = pl.pallas_call(
        _conv_pool_head_kernel,
        out_shape=jax.ShapeDtypeStruct((n, 1, ncls), jnp.float32),
        grid=(n, bps),
        in_specs=[pl.BlockSpec((rb, kdim), lambda ni, j: (ni * bps + j, 0)),
                  pl.BlockSpec((kdim, cout), lambda ni, j: (0, 0)),
                  pl.BlockSpec((1, cout), lambda ni, j: (0, 0)),
                  pl.BlockSpec((1, cout), lambda ni, j: (0, 0)),
                  pl.BlockSpec((rb, 1), lambda ni, j: (ni * bps + j, 0)),
                  pl.BlockSpec((1, 1, fd0), lambda ni, j: (ni, 0, 0)),
                  pl.BlockSpec((1, fd0), lambda ni, j: (0, 0)),
                  pl.BlockSpec((1, 1), lambda ni, j: (0, 0)),
                  pl.BlockSpec((cout, hid), lambda ni, j: (0, 0)),
                  pl.BlockSpec((1, hid), lambda ni, j: (0, 0)),
                  pl.BlockSpec((hid, ncls), lambda ni, j: (0, 0)),
                  pl.BlockSpec((1, ncls), lambda ni, j: (0, 0))],
        out_specs=pl.BlockSpec((1, 1, ncls), lambda ni, j: (ni, 0, 0)),
        scratch_shapes=[pltpu.VMEM((1, cout), jnp.float32)],
        compiler_params=pltpu.CompilerParams(
            dimension_semantics=("parallel", "arbitrary"),
            vmem_limit_bytes=_VMEM_LIMIT),
        cost_estimate=cost,
    )(amat, wmat, scale, bias, col,
      pooled1.reshape(n, 1, fd0).astype(jnp.float32),
      w1.reshape(1, fd0), b1.reshape(1, 1),
      w2, b2.reshape(1, hid), w3, b3.reshape(1, ncls))
    return out.reshape(n, ncls)


# ---------------------------------------------------------------------------
# Parameter init (deterministic, PyTorch-default-style uniform bounds)
# ---------------------------------------------------------------------------
def _conv_init(key, cout, cin, k=3):
    bound = 1.0 / float(cin * k ** 3) ** 0.5
    kw, kb = jax.random.split(key)
    w = jax.random.uniform(kw, (cout, cin, k, k, k), jnp.float32, -bound, bound)
    b = jax.random.uniform(kb, (cout,), jnp.float32, -bound, bound)
    return w, b


def _linear_init(key, fin, fout):
    bound = 1.0 / float(fin) ** 0.5
    kw, kb = jax.random.split(key)
    w = jax.random.uniform(kw, (fin, fout), jnp.float32, -bound, bound)
    b = jax.random.uniform(kb, (fout,), jnp.float32, -bound, bound)
    return w, b


def _bn_init(c):
    return (jnp.ones((c,), jnp.float32), jnp.zeros((c,), jnp.float32),
            jnp.zeros((c,), jnp.float32), jnp.ones((c,), jnp.float32))


def init_params(key, feature_depth=(32, 64, 128, 128)):
    ks = jax.random.split(key, 7)
    fd = feature_depth
    p = {}
    p['w_c1'], p['b_c1'] = _conv_init(ks[0], fd[0], 1)
    p['bn1'] = _bn_init(fd[0])
    p['w_c2'], p['b_c2'] = _conv_init(ks[1], fd[1], fd[0])
    p['bn2'] = _bn_init(fd[1])
    p['w_br1'], p['b_br1'] = _conv_init(ks[2], 64, 64)
    p['bn_br1'] = _bn_init(64)
    p['w_c3'], p['b_c3'] = _conv_init(ks[3], fd[2], fd[1])
    p['bn3'] = _bn_init(fd[2])
    p['w_l1'], p['b_l1'] = _linear_init(ks[4], 32, 1)      # classify
    p['w_l2'], p['b_l2'] = _linear_init(ks[5], 128, 64)    # classify_scroe[0]
    p['w_l3'], p['b_l3'] = _linear_init(ks[6], 64, 2)      # classify_scroe[2]
    return p


# ---------------------------------------------------------------------------
# prun forward (== BaseNet.forward; unused layers conv4/pool1/branch2/3/dense
# are not part of the reference forward pass)
# ---------------------------------------------------------------------------
def prun_forward(x_ncdhw, params):
    p = params
    x = jnp.transpose(x_ncdhw, (0, 2, 3, 4, 1))            # NCDHW -> NDHWC

    # conv1(k=3,s=1,p=0) + BN + ReLU, fused adaptive_avg_pool3d -> pooled1
    x1, pooled1 = conv_bn_relu(x, p['w_c1'], p['b_c1'], p['bn1'],
                               stride=1, pad=0, with_pool=True)
    # conv2(k=3,s=2,p=3) + BN + ReLU
    x2 = conv_bn_relu(x1, p['w_c2'], p['b_c2'], p['bn2'], stride=2, pad=3)
    # branch1(k=3,s=2,p=1) + BN + ReLU
    l1 = conv_bn_relu(x2, p['w_br1'], p['b_br1'], p['bn_br1'], stride=2, pad=1)
    # conv3(k=3,s=2,p=3) + BN + ReLU + avg-pool + sigmoid gate + MLP + softmax
    return conv_bn_relu_pool_head(
        l1, p['w_c3'], p['b_c3'], p['bn3'], pooled1,
        (p['w_l1'], p['b_l1'], p['w_l2'], p['b_l2'], p['w_l3'], p['b_l3']),
        stride=2, pad=3)                                   # (N, 2) softmax probs


if __name__ == "__main__":
    key = jax.random.PRNGKey(0)
    k_in, k_par = jax.random.split(key)
    # inputs: (batch=2, channels=1, D=16, H=16, W=16), PyTorch NCDHW
    inputs = jax.random.normal(k_in, (2, 1, 16, 16, 16), jnp.float32)
    params = init_params(k_par)

    fwd = jax.jit(functools.partial(prun_forward, params=params))
    out = jax.block_until_ready(fwd(inputs))

    assert out.shape == (2, 2)
    assert bool(jnp.all(jnp.isfinite(out)))
    # softmax rows sum to 1 (bf16 MXU operands, f32 accumulate -> small drift
    # vs PyTorch f32 Conv3d is expected; tolerance reflects that)
    assert bool(jnp.allclose(jnp.sum(out, axis=1), 1.0, atol=1e-4))
    print("KERNEL_OK")
</pallas_src>

<mosaic_0001>
module attributes {stable_mosaic.version = 11 : i64} {
  func.func @_conv_pool_kernel(%arg0: i32, %arg1: i32, %arg2: memref<512x27xbf16, #tpu.memory_space<vmem>>, %arg3: memref<27x32xbf16, #tpu.memory_space<vmem>>, %arg4: memref<1x32xf32, #tpu.memory_space<vmem>>, %arg5: memref<1x32xf32, #tpu.memory_space<vmem>>, %arg6: memref<512x1xf32, #tpu.memory_space<vmem>>, %arg7: memref<512x32xbf16, #tpu.memory_space<vmem>>, %arg8: memref<1x1x32xf32, #tpu.memory_space<vmem>>) attributes {dimension_semantics = [#tpu.dimension_semantics<parallel>, #tpu.dimension_semantics<arbitrary>], iteration_bounds = array<i64: 2, 6>, scalar_prefetch = 0 : i64, scratch_operands = 0 : i64, tpu.core_type = #tpu.core_type<tc>, window_params = [{transform_indices = @transform_0, window_bounds = array<i64: 512, 27>}, {pipeline_mode = #tpu.pipeline_mode<synchronous>, transform_indices = @transform_1, window_bounds = array<i64: 27, 32>}, {pipeline_mode = #tpu.pipeline_mode<synchronous>, transform_indices = @transform_2, window_bounds = array<i64: 1, 32>}, {pipeline_mode = #tpu.pipeline_mode<synchronous>, transform_indices = @transform_3, window_bounds = array<i64: 1, 32>}, {transform_indices = @transform_4, window_bounds = array<i64: 512, 1>}, {transform_indices = @transform_5, window_bounds = array<i64: 512, 32>}, {transform_indices = @transform_6, window_bounds = array<i64: 1, 1, 32>}]} {
    %c0 = arith.constant 0 : index
    %c0_0 = arith.constant 0 : index
    %0 = vector.load %arg2[%c0, %c0_0] : memref<512x27xbf16, #tpu.memory_space<vmem>>, vector<512x27xbf16>
    %c0_1 = arith.constant 0 : index
    %c0_2 = arith.constant 0 : index
    %1 = vector.load %arg3[%c0_1, %c0_2] : memref<27x32xbf16, #tpu.memory_space<vmem>>, vector<27x32xbf16>
    %cst = arith.constant dense<0.000000e+00> : vector<512x32xf32>
    %2 = tpu.matmul %0, %1, %cst {dimension_numbers = #tpu.dot_dimension_numbers<[1], [0], [0], [1], [0, 0, 1, 1], [], []>} : vector<512x27xbf16>, vector<27x32xbf16>, vector<512x32xf32> -> vector<512x32xf32>
    %c0_3 = arith.constant 0 : index
    %c0_4 = arith.constant 0 : index
    %3 = vector.load %arg4[%c0_3, %c0_4] : memref<1x32xf32, #tpu.memory_space<vmem>>, vector<1x32xf32>
    %4 = vector.broadcast %3 : vector<1x32xf32> to vector<512x32xf32>
    %5 = arith.mulf %2, %4 : vector<512x32xf32>
    %c0_5 = arith.constant 0 : index
    %c0_6 = arith.constant 0 : index
    %6 = vector.load %arg5[%c0_5, %c0_6] : memref<1x32xf32, #tpu.memory_space<vmem>>, vector<1x32xf32>
    %7 = vector.broadcast %6 : vector<1x32xf32> to vector<512x32xf32>
    %8 = arith.addf %5, %7 : vector<512x32xf32>
    %cst_7 = arith.constant 0.000000e+00 : f32
    %9 = vector.broadcast %cst_7 : f32 to vector<512x32xf32>
    %10 = arith.maximumf %8, %9 : vector<512x32xf32>
    %11 = arith.truncf %10 : vector<512x32xf32> to vector<512x32xbf16>
    %c0_8 = arith.constant 0 : index
    %c0_9 = arith.constant 0 : index
    %12 = vector.load %arg7[%c0_8, %c0_9] : memref<512x32xbf16, #tpu.memory_space<vmem>>, vector<512x32xbf16>
    tpu.vector_store %arg7[%c0_8, %c0_9], %11 {strides = array<i32>} : memref<512x32xbf16, #tpu.memory_space<vmem>>, vector<512x32xbf16>,
    %c0_i32 = arith.constant 0 : i32
    %13 = arith.cmpi eq, %arg1, %c0_i32 : i32
    %14 = arith.extui %13 : i1 to i32
    %c0_i32_10 = arith.constant 0 : i32
    %15 = arith.cmpi ne, %14, %c0_i32_10 : i32
    scf.if %15 {
      %cst_20 = arith.constant 0.000000e+00 : f32
      %25 = vector.broadcast %cst_20 : f32 to vector<1x1x32xf32>
      %c0_21 = arith.constant 0 : index
      %c0_22 = arith.constant 0 : index
      %c0_23 = arith.constant 0 : index
      %26 = vector.load %arg8[%c0_21, %c0_22, %c0_23] : memref<1x1x32xf32, #tpu.memory_space<vmem>>, vector<1x1x32xf32>
      tpu.vector_store %arg8[%c0_21, %c0_22, %c0_23], %25 {strides = array<i32>} : memref<1x1x32xf32, #tpu.memory_space<vmem>>, vector<1x1x32xf32>,
    } else {
    }
    %c0_11 = arith.constant 0 : index
    %c0_12 = arith.constant 0 : index
    %16 = vector.load %arg6[%c0_11, %c0_12] : memref<512x1xf32, #tpu.memory_space<vmem>>, vector<512x1xf32>
    %17 = vector.broadcast %16 : vector<512x1xf32> to vector<512x32xf32>
    %18 = arith.mulf %17, %10 : vector<512x32xf32>
    %cst_13 = arith.constant dense<0.000000e+00> : vector<32xf32>
    %19 = vector.multi_reduction <add>, %18, %cst_13 [0] : vector<512x32xf32> to vector<32xf32>
    %20 = vector.shape_cast %19 : vector<32xf32> to vector<1x32xf32>
    %c0_14 = arith.constant 0 : index
    %c0_15 = arith.constant 0 : index
    %c0_16 = arith.constant 0 : index
    %21 = vector.load %arg8[%c0_14, %c0_15, %c0_16] : memref<1x1x32xf32, #tpu.memory_space<vmem>>, vector<1x1x32xf32>
    %22 = vector.shape_cast %20 : vector<1x32xf32> to vector<1x1x32xf32>
    %23 = arith.addf %21, %22 : vector<1x1x32xf32>
    %c0_17 = arith.constant 0 : index
    %c0_18 = arith.constant 0 : index
    %c0_19 = arith.constant 0 : index
    %24 = vector.load %arg8[%c0_17, %c0_18, %c0_19] : memref<1x1x32xf32, #tpu.memory_space<vmem>>, vector<1x1x32xf32>
    tpu.vector_store %arg8[%c0_17, %c0_18, %c0_19], %23 {strides = array<i32>} : memref<1x1x32xf32, #tpu.memory_space<vmem>>, vector<1x1x32xf32>,
    return
  }
  func.func @transform_0(%arg0: i32, %arg1: i32) -> (i32, i32) {
    %c6_i32 = arith.constant 6 : i32
    %0 = arith.muli %arg0, %c6_i32 : i32
    %1 = arith.addi %0, %arg1 : i32
    %c0_i32 = arith.constant 0 : i32
    %c0_i32_0 = arith.constant 0 : i32
    return %1, %c0_i32 : i32, i32
  }
  func.func @transform_1(%arg0: i32, %arg1: i32) -> (i32, i32) {
    %c0_i32 = arith.constant 0 : i32
    %c0_i32_0 = arith.constant 0 : i32
    %c0_i32_1 = arith.constant 0 : i32
    return %c0_i32, %c0_i32_0 : i32, i32
  }
  func.func @transform_2(%arg0: i32, %arg1: i32) -> (i32, i32) {
    %c0_i32 = arith.constant 0 : i32
    %c0_i32_0 = arith.constant 0 : i32
    %c0_i32_1 = arith.constant 0 : i32
    return %c0_i32, %c0_i32_0 : i32, i32
  }
  func.func @transform_3(%arg0: i32, %arg1: i32) -> (i32, i32) {
    %c0_i32 = arith.constant 0 : i32
    %c0_i32_0 = arith.constant 0 : i32
    %c0_i32_1 = arith.constant 0 : i32
    return %c0_i32, %c0_i32_0 : i32, i32
  }
  func.func @transform_4(%arg0: i32, %arg1: i32) -> (i32, i32) {
    %c6_i32 = arith.constant 6 : i32
    %0 = arith.muli %arg0, %c6_i32 : i32
    %1 = arith.addi %0, %arg1 : i32
    %c0_i32 = arith.constant 0 : i32
    %c0_i32_0 = arith.constant 0 : i32
    return %1, %c0_i32 : i32, i32
  }
  func.func @transform_5(%arg0: i32, %arg1: i32) -> (i32, i32) {
    %c6_i32 = arith.constant 6 : i32
    %0 = arith.muli %arg0, %c6_i32 : i32
    %1 = arith.addi %0, %arg1 : i32
    %c0_i32 = arith.constant 0 : i32
    %c0_i32_0 = arith.constant 0 : i32
    return %1, %c0_i32 : i32, i32
  }
  func.func @transform_6(%arg0: i32, %arg1: i32) -> (i32, i32, i32) {
    %c0_i32 = arith.constant 0 : i32
    %c0_i32_0 = arith.constant 0 : i32
    %c0_i32_1 = arith.constant 0 : i32
    return %arg0, %c0_i32, %c0_i32_0 : i32, i32, i32
  }
}

module attributes {stable_mosaic.version = 11 : i64} {
  func.func @_conv_kernel(%arg0: i32, %arg1: memref<256x864xbf16, #tpu.memory_space<vmem>>, %arg2: memref<864x64xbf16, #tpu.memory_space<vmem>>, %arg3: memref<1x64xf32, #tpu.memory_space<vmem>>, %arg4: memref<1x64xf32, #tpu.memory_space<vmem>>, %arg5: memref<256x64xbf16, #tpu.memory_space<vmem>>) attributes {dimension_semantics = [#tpu.dimension_semantics<parallel>], iteration_bounds = array<i64: 6>, scalar_prefetch = 0 : i64, scratch_operands = 0 : i64, tpu.core_type = #tpu.core_type<tc>, window_params = [{transform_indices = @transform_0, window_bounds = array<i64: 256, 864>}, {pipeline_mode = #tpu.pipeline_mode<synchronous>, transform_indices = @transform_1, window_bounds = array<i64: 864, 64>}, {pipeline_mode = #tpu.pipeline_mode<synchronous>, transform_indices = @transform_2, window_bounds = array<i64: 1, 64>}, {pipeline_mode = #tpu.pipeline_mode<synchronous>, transform_indices = @transform_3, window_bounds = array<i64: 1, 64>}, {transform_indices = @transform_4, window_bounds = array<i64: 256, 64>}]} {
    %c0 = arith.constant 0 : index
    %c0_0 = arith.constant 0 : index
    %0 = vector.load %arg1[%c0, %c0_0] : memref<256x864xbf16, #tpu.memory_space<vmem>>, vector<256x864xbf16>
    %c0_1 = arith.constant 0 : index
    %c0_2 = arith.constant 0 : index
    %1 = vector.load %arg2[%c0_1, %c0_2] : memref<864x64xbf16, #tpu.memory_space<vmem>>, vector<864x64xbf16>
    %cst = arith.constant dense<0.000000e+00> : vector<256x64xf32>
    %2 = tpu.matmul %0, %1, %cst {dimension_numbers = #tpu.dot_dimension_numbers<[1], [0], [0], [1], [0, 0, 1, 1], [], []>} : vector<256x864xbf16>, vector<864x64xbf16>, vector<256x64xf32> -> vector<256x64xf32>
    %c0_3 = arith.constant 0 : index
    %c0_4 = arith.constant 0 : index
    %3 = vector.load %arg3[%c0_3, %c0_4] : memref<1x64xf32, #tpu.memory_space<vmem>>, vector<1x64xf32>
    %4 = vector.broadcast %3 : vector<1x64xf32> to vector<256x64xf32>
    %5 = arith.mulf %2, %4 : vector<256x64xf32>
    %c0_5 = arith.constant 0 : index
    %c0_6 = arith.constant 0 : index
    %6 = vector.load %arg4[%c0_5, %c0_6] : memref<1x64xf32, #tpu.memory_space<vmem>>, vector<1x64xf32>
    %7 = vector.broadcast %6 : vector<1x64xf32> to vector<256x64xf32>
    %8 = arith.addf %5, %7 : vector<256x64xf32>
    %cst_7 = arith.constant 0.000000e+00 : f32
    %9 = vector.broadcast %cst_7 : f32 to vector<256x64xf32>
    %10 = arith.maximumf %8, %9 : vector<256x64xf32>
    %11 = arith.truncf %10 : vector<256x64xf32> to vector<256x64xbf16>
    %c0_8 = arith.constant 0 : index
    %c0_9 = arith.constant 0 : index
    %12 = vector.load %arg5[%c0_8, %c0_9] : memref<256x64xbf16, #tpu.memory_space<vmem>>, vector<256x64xbf16>
    tpu.vector_store %arg5[%c0_8, %c0_9], %11 {strides = array<i32>} : memref<256x64xbf16, #tpu.memory_space<vmem>>, vector<256x64xbf16>,
    return
  }
  func.func @transform_0(%arg0: i32) -> (i32, i32) {
    %c0_i32 = arith.constant 0 : i32
    %c0_i32_0 = arith.constant 0 : i32
    return %arg0, %c0_i32 : i32, i32
  }
  func.func @transform_1(%arg0: i32) -> (i32, i32) {
    %c0_i32 = arith.constant 0 : i32
    %c0_i32_0 = arith.constant 0 : i32
    %c0_i32_1 = arith.constant 0 : i32
    return %c0_i32, %c0_i32_0 : i32, i32
  }
  func.func @transform_2(%arg0: i32) -> (i32, i32) {
    %c0_i32 = arith.constant 0 : i32
    %c0_i32_0 = arith.constant 0 : i32
    %c0_i32_1 = arith.constant 0 : i32
    return %c0_i32, %c0_i32_0 : i32, i32
  }
  func.func @transform_3(%arg0: i32) -> (i32, i32) {
    %c0_i32 = arith.constant 0 : i32
    %c0_i32_0 = arith.constant 0 : i32
    %c0_i32_1 = arith.constant 0 : i32
    return %c0_i32, %c0_i32_0 : i32, i32
  }
  func.func @transform_4(%arg0: i32) -> (i32, i32) {
    %c0_i32 = arith.constant 0 : i32
    %c0_i32_0 = arith.constant 0 : i32
    return %arg0, %c0_i32 : i32, i32
  }
}

module attributes {stable_mosaic.version = 11 : i64} {
  func.func @_conv_kernel(%arg0: i32, %arg1: memref<128x1728xbf16, #tpu.memory_space<vmem>>, %arg2: memref<1728x64xbf16, #tpu.memory_space<vmem>>, %arg3: memref<1x64xf32, #tpu.memory_space<vmem>>, %arg4: memref<1x64xf32, #tpu.memory_space<vmem>>, %arg5: memref<128x64xbf16, #tpu.memory_space<vmem>>) attributes {dimension_semantics = [#tpu.dimension_semantics<parallel>], iteration_bounds = array<i64: 2>, scalar_prefetch = 0 : i64, scratch_operands = 0 : i64, tpu.core_type = #tpu.core_type<tc>, window_params = [{transform_indices = @transform_0, window_bounds = array<i64: 128, 1728>}, {pipeline_mode = #tpu.pipeline_mode<synchronous>, transform_indices = @transform_1, window_bounds = array<i64: 1728, 64>}, {pipeline_mode = #tpu.pipeline_mode<synchronous>, transform_indices = @transform_2, window_bounds = array<i64: 1, 64>}, {pipeline_mode = #tpu.pipeline_mode<synchronous>, transform_indices = @transform_3, window_bounds = array<i64: 1, 64>}, {transform_indices = @transform_4, window_bounds = array<i64: 128, 64>}]} {
    %c0 = arith.constant 0 : index
    %c0_0 = arith.constant 0 : index
    %0 = vector.load %arg1[%c0, %c0_0] : memref<128x1728xbf16, #tpu.memory_space<vmem>>, vector<128x1728xbf16>
    %c0_1 = arith.constant 0 : index
    %c0_2 = arith.constant 0 : index
    %1 = vector.load %arg2[%c0_1, %c0_2] : memref<1728x64xbf16, #tpu.memory_space<vmem>>, vector<1728x64xbf16>
    %cst = arith.constant dense<0.000000e+00> : vector<128x64xf32>
    %2 = tpu.matmul %0, %1, %cst {dimension_numbers = #tpu.dot_dimension_numbers<[1], [0], [0], [1], [0, 0, 1, 1], [], []>} : vector<128x1728xbf16>, vector<1728x64xbf16>, vector<128x64xf32> -> vector<128x64xf32>
    %c0_3 = arith.constant 0 : index
    %c0_4 = arith.constant 0 : index
    %3 = vector.load %arg3[%c0_3, %c0_4] : memref<1x64xf32, #tpu.memory_space<vmem>>, vector<1x64xf32>
    %4 = vector.broadcast %3 : vector<1x64xf32> to vector<128x64xf32>
    %5 = arith.mulf %2, %4 : vector<128x64xf32>
    %c0_5 = arith.constant 0 : index
    %c0_6 = arith.constant 0 : index
    %6 = vector.load %arg4[%c0_5, %c0_6] : memref<1x64xf32, #tpu.memory_space<vmem>>, vector<1x64xf32>
    %7 = vector.broadcast %6 : vector<1x64xf32> to vector<128x64xf32>
    %8 = arith.addf %5, %7 : vector<128x64xf32>
    %cst_7 = arith.constant 0.000000e+00 : f32
    %9 = vector.broadcast %cst_7 : f32 to vector<128x64xf32>
    %10 = arith.maximumf %8, %9 : vector<128x64xf32>
    %11 = arith.truncf %10 : vector<128x64xf32> to vector<128x64xbf16>
    %c0_8 = arith.constant 0 : index
    %c0_9 = arith.constant 0 : index
    %12 = vector.load %arg5[%c0_8, %c0_9] : memref<128x64xbf16, #tpu.memory_space<vmem>>, vector<128x64xbf16>
    tpu.vector_store %arg5[%c0_8, %c0_9], %11 {strides = array<i32>} : memref<128x64xbf16, #tpu.memory_space<vmem>>, vector<128x64xbf16>,
    return
  }
  func.func @transform_0(%arg0: i32) -> (i32, i32) {
    %c0_i32 = arith.constant 0 : i32
    %c0_i32_0 = arith.constant 0 : i32
    return %arg0, %c0_i32 : i32, i32
  }
  func.func @transform_1(%arg0: i32) -> (i32, i32) {
    %c0_i32 = arith.constant 0 : i32
    %c0_i32_0 = arith.constant 0 : i32
    %c0_i32_1 = arith.constant 0 : i32
    return %c0_i32, %c0_i32_0 : i32, i32
  }
  func.func @transform_2(%arg0: i32) -> (i32, i32) {
    %c0_i32 = arith.constant 0 : i32
    %c0_i32_0 = arith.constant 0 : i32
    %c0_i32_1 = arith.constant 0 : i32
    return %c0_i32, %c0_i32_0 : i32, i32
  }
  func.func @transform_3(%arg0: i32) -> (i32, i32) {
    %c0_i32 = arith.constant 0 : i32
    %c0_i32_0 = arith.constant 0 : i32
    %c0_i32_1 = arith.constant 0 : i32
    return %c0_i32, %c0_i32_0 : i32, i32
  }
  func.func @transform_4(%arg0: i32) -> (i32, i32) {
    %c0_i32 = arith.constant 0 : i32
    %c0_i32_0 = arith.constant 0 : i32
    return %arg0, %c0_i32 : i32, i32
  }
}

module attributes {stable_mosaic.version = 11 : i64} {
  func.func @_conv_pool_head_kernel(%arg0: i32, %arg1: i32, %arg2: memref<128x1728xbf16, #tpu.memory_space<vmem>>, %arg3: memref<1728x128xbf16, #tpu.memory_space<vmem>>, %arg4: memref<1x128xf32, #tpu.memory_space<vmem>>, %arg5: memref<1x128xf32, #tpu.memory_space<vmem>>, %arg6: memref<128x1xf32, #tpu.memory_space<vmem>>, %arg7: memref<1x1x32xf32, #tpu.memory_space<vmem>>, %arg8: memref<1x32xf32, #tpu.memory_space<vmem>>, %arg9: memref<1x1xf32, #tpu.memory_space<vmem>>, %arg10: memref<128x64xf32, #tpu.memory_space<vmem>>, %arg11: memref<1x64xf32, #tpu.memory_space<vmem>>, %arg12: memref<64x2xf32, #tpu.memory_space<vmem>>, %arg13: memref<1x2xf32, #tpu.memory_space<vmem>>, %arg14: memref<1x1x2xf32, #tpu.memory_space<vmem>>, %arg15: memref<1x128xf32, #tpu.memory_space<vmem>>) attributes {dimension_semantics = [#tpu.dimension_semantics<parallel>, #tpu.dimension_semantics<arbitrary>], iteration_bounds = array<i64: 2, 1>, scalar_prefetch = 0 : i64, scratch_operands = 1 : i64, tpu.core_type = #tpu.core_type<tc>, window_params = [{transform_indices = @transform_0, window_bounds = array<i64: 128, 1728>}, {pipeline_mode = #tpu.pipeline_mode<synchronous>, transform_indices = @transform_1, window_bounds = array<i64: 1728, 128>}, {pipeline_mode = #tpu.pipeline_mode<synchronous>, transform_indices = @transform_2, window_bounds = array<i64: 1, 128>}, {pipeline_mode = #tpu.pipeline_mode<synchronous>, transform_indices = @transform_3, window_bounds = array<i64: 1, 128>}, {transform_indices = @transform_4, window_bounds = array<i64: 128, 1>}, {transform_indices = @transform_5, window_bounds = array<i64: 1, 1, 32>}, {pipeline_mode = #tpu.pipeline_mode<synchronous>, transform_indices = @transform_6, window_bounds = array<i64: 1, 32>}, {pipeline_mode = #tpu.pipeline_mode<synchronous>, transform_indices = @transform_7, window_bounds = array<i64: 1, 1>}, {pipeline_mode = #tpu.pipeline_mode<synchronous>, transform_indices = @transform_8, window_bounds = array<i64: 128, 64>}, {pipeline_mode = #tpu.pipeline_mode<synchronous>, transform_indices = @transform_9, window_bounds = array<i64: 1, 64>}, {pipeline_mode = #tpu.pipeline_mode<synchronous>, transform_indices = @transform_10, window_bounds = array<i64: 64, 2>}, {pipeline_mode = #tpu.pipeline_mode<synchronous>, transform_indices = @transform_11, window_bounds = array<i64: 1, 2>}, {transform_indices = @transform_12, window_bounds = array<i64: 1, 1, 2>}]} {
    %c0 = arith.constant 0 : index
    %c0_0 = arith.constant 0 : index
    %0 = vector.load %arg2[%c0, %c0_0] : memref<128x1728xbf16, #tpu.memory_space<vmem>>, vector<128x1728xbf16>
    %c0_1 = arith.constant 0 : index
    %c0_2 = arith.constant 0 : index
    %1 = vector.load %arg3[%c0_1, %c0_2] : memref<1728x128xbf16, #tpu.memory_space<vmem>>, vector<1728x128xbf16>
    %cst = arith.constant dense<0.000000e+00> : vector<128x128xf32>
    %2 = tpu.matmul %0, %1, %cst {dimension_numbers = #tpu.dot_dimension_numbers<[1], [0], [0], [1], [0, 0, 1, 1], [], []>} : vector<128x1728xbf16>, vector<1728x128xbf16>, vector<128x128xf32> -> vector<128x128xf32>
    %c0_3 = arith.constant 0 : index
    %c0_4 = arith.constant 0 : index
    %3 = vector.load %arg4[%c0_3, %c0_4] : memref<1x128xf32, #tpu.memory_space<vmem>>, vector<1x128xf32>
    %4 = vector.broadcast %3 : vector<1x128xf32> to vector<128x128xf32>
    %5 = arith.mulf %2, %4 : vector<128x128xf32>
    %c0_5 = arith.constant 0 : index
    %c0_6 = arith.constant 0 : index
    %6 = vector.load %arg5[%c0_5, %c0_6] : memref<1x128xf32, #tpu.memory_space<vmem>>, vector<1x128xf32>
    %7 = vector.broadcast %6 : vector<1x128xf32> to vector<128x128xf32>
    %8 = arith.addf %5, %7 : vector<128x128xf32>
    %cst_7 = arith.constant 0.000000e+00 : f32
    %9 = vector.broadcast %cst_7 : f32 to vector<128x128xf32>
    %10 = arith.maximumf %8, %9 : vector<128x128xf32>
    %c0_i32 = arith.constant 0 : i32
    %11 = arith.cmpi eq, %arg1, %c0_i32 : i32
    %12 = arith.extui %11 : i1 to i32
    %c0_i32_8 = arith.constant 0 : i32
    %13 = arith.cmpi ne, %12, %c0_i32_8 : i32
    scf.if %13 {
      %cst_18 = arith.constant 0.000000e+00 : f32
      %25 = vector.broadcast %cst_18 : f32 to vector<1x128xf32>
      %c0_19 = arith.constant 0 : index
      %c0_20 = arith.constant 0 : index
      %26 = vector.load %arg15[%c0_19, %c0_20] : memref<1x128xf32, #tpu.memory_space<vmem>>, vector<1x128xf32>
      tpu.vector_store %arg15[%c0_19, %c0_20], %25 {strides = array<i32>} : memref<1x128xf32, #tpu.memory_space<vmem>>, vector<1x128xf32>,
    } else {
    }
    %c0_9 = arith.constant 0 : index
    %c0_10 = arith.constant 0 : index
    %14 = vector.load %arg15[%c0_9, %c0_10] : memref<1x128xf32, #tpu.memory_space<vmem>>, vector<1x128xf32>
    %c0_11 = arith.constant 0 : index
    %c0_12 = arith.constant 0 : index
    %15 = vector.load %arg6[%c0_11, %c0_12] : memref<128x1xf32, #tpu.memory_space<vmem>>, vector<128x1xf32>
    %16 = vector.broadcast %15 : vector<128x1xf32> to vector<128x128xf32>
    %17 = arith.mulf %16, %10 : vector<128x128xf32>
    %cst_13 = arith.constant dense<0.000000e+00> : vector<128xf32>
    %18 = vector.multi_reduction <add>, %17, %cst_13 [0] : vector<128x128xf32> to vector<128xf32>
    %19 = vector.shape_cast %18 : vector<128xf32> to vector<1x128xf32>
    %20 = arith.addf %14, %19 : vector<1x128xf32>
    %c0_14 = arith.constant 0 : index
    %c0_15 = arith.constant 0 : index
    %21 = vector.load %arg15[%c0_14, %c0_15] : memref<1x128xf32, #tpu.memory_space<vmem>>, vector<1x128xf32>
    tpu.vector_store %arg15[%c0_14, %c0_15], %20 {strides = array<i32>} : memref<1x128xf32, #tpu.memory_space<vmem>>, vector<1x128xf32>,
    %c0_i32_16 = arith.constant 0 : i32
    %22 = arith.cmpi eq, %arg1, %c0_i32_16 : i32
    %23 = arith.extui %22 : i1 to i32
    %c0_i32_17 = arith.constant 0 : i32
    %24 = arith.cmpi ne, %23, %c0_i32_17 : i32
    scf.if %24 {
      %c0_18 = arith.constant 0 : index
      %c0_19 = arith.constant 0 : index
      %25 = vector.load %arg15[%c0_18, %c0_19] : memref<1x128xf32, #tpu.memory_space<vmem>>, vector<1x128xf32>
      %c0_20 = arith.constant 0 : index
      %c0_21 = arith.constant 0 : index
      %c0_22 = arith.constant 0 : index
      %26 = vector.load %arg7[%c0_20, %c0_21, %c0_22] : memref<1x1x32xf32, #tpu.memory_space<vmem>>, vector<1x1x32xf32>
      %27 = vector.shape_cast %26 : vector<1x1x32xf32> to vector<1x32xf32>
      %c0_23 = arith.constant 0 : index
      %c0_24 = arith.constant 0 : index
      %28 = vector.load %arg8[%c0_23, %c0_24] : memref<1x32xf32, #tpu.memory_space<vmem>>, vector<1x32xf32>
      %29 = arith.mulf %27, %28 : vector<1x32xf32>
      %cst_25 = arith.constant dense<0.000000e+00> : vector<1xf32>
      %30 = vector.multi_reduction <add>, %29, %cst_25 [1] : vector<1x32xf32> to vector<1xf32>
      %31 = vector.shape_cast %30 : vector<1xf32> to vector<1x1xf32>
      %c0_26 = arith.constant 0 : index
      %c0_27 = arith.constant 0 : index
      %32 = vector.load %arg9[%c0_26, %c0_27] : memref<1x1xf32, #tpu.memory_space<vmem>>, vector<1x1xf32>
      %33 = arith.addf %31, %32 : vector<1x1xf32>
      %cst_28 = arith.constant 0.000000e+00 : f32
      %34 = vector.broadcast %cst_28 : f32 to vector<1x1xf32>
      %35 = arith.subf %34, %33 : vector<1x1xf32>
      %36 = math.exp %35 : vector<1x1xf32>
      %cst_29 = arith.constant 1.000000e+00 : f32
      %37 = vector.broadcast %cst_29 : f32 to vector<1x1xf32>
      %38 = arith.addf %37, %36 : vector<1x1xf32>
      %cst_30 = arith.constant 1.000000e+00 : f32
      %39 = vector.broadcast %cst_30 : f32 to vector<1x1xf32>
      %40 = arith.divf %39, %38 : vector<1x1xf32>
      %41 = vector.broadcast %40 : vector<1x1xf32> to vector<1x128xf32>
      %42 = arith.mulf %25, %41 : vector<1x128xf32>
      %c0_31 = arith.constant 0 : index
      %c0_32 = arith.constant 0 : index
      %43 = vector.load %arg10[%c0_31, %c0_32] : memref<128x64xf32, #tpu.memory_space<vmem>>, vector<128x64xf32>
      %cst_33 = arith.constant dense<0.000000e+00> : vector<1x64xf32>
      %44 = tpu.matmul %42, %43, %cst_33 {dimension_numbers = #tpu.dot_dimension_numbers<[1], [0], [0], [1], [0, 0, 1, 1], [], []>} : vector<1x128xf32>, vector<128x64xf32>, vector<1x64xf32> -> vector<1x64xf32>
      %c0_34 = arith.constant 0 : index
      %c0_35 = arith.constant 0 : index
      %45 = vector.load %arg11[%c0_34, %c0_35] : memref<1x64xf32, #tpu.memory_space<vmem>>, vector<1x64xf32>
      %46 = arith.addf %44, %45 : vector<1x64xf32>
      %cst_36 = arith.constant 0.000000e+00 : f32
      %47 = vector.broadcast %cst_36 : f32 to vector<1x64xf32>
      %48 = arith.maximumf %46, %47 : vector<1x64xf32>
      %c0_37 = arith.constant 0 : index
      %c0_38 = arith.constant 0 : index
      %49 = vector.load %arg12[%c0_37, %c0_38] : memref<64x2xf32, #tpu.memory_space<vmem>>, vector<64x2xf32>
      %cst_39 = arith.constant dense<0.000000e+00> : vector<1x2xf32>
      %50 = tpu.matmul %48, %49, %cst_39 {dimension_numbers = #tpu.dot_dimension_numbers<[1], [0], [0], [1], [0, 0, 1, 1], [], []>} : vector<1x64xf32>, vector<64x2xf32>, vector<1x2xf32> -> vector<1x2xf32>
      %c0_40 = arith.constant 0 : index
      %c0_41 = arith.constant 0 : index
      %51 = vector.load %arg13[%c0_40, %c0_41] : memref<1x2xf32, #tpu.memory_space<vmem>>, vector<1x2xf32>
      %52 = arith.addf %50, %51 : vector<1x2xf32>
      %cst_42 = arith.constant dense<0xFF800000> : vector<1xf32>
      %53 = vector.multi_reduction <maximumf>, %52, %cst_42 [1] : vector<1x2xf32> to vector<1xf32>
      %54 = vector.shape_cast %53 : vector<1xf32> to vector<1x1xf32>
      %55 = vector.broadcast %54 : vector<1x1xf32> to vector<1x2xf32>
      %56 = arith.subf %52, %55 : vector<1x2xf32>
      %57 = math.exp %56 : vector<1x2xf32>
      %cst_43 = arith.constant dense<0.000000e+00> : vector<1xf32>
      %58 = vector.multi_reduction <add>, %57, %cst_43 [1] : vector<1x2xf32> to vector<1xf32>
      %59 = vector.shape_cast %58 : vector<1xf32> to vector<1x1xf32>
      %60 = vector.broadcast %59 : vector<1x1xf32> to vector<1x2xf32>
      %61 = arith.divf %57, %60 : vector<1x2xf32>
      %62 = vector.shape_cast %61 : vector<1x2xf32> to vector<1x1x2xf32>
      %c0_44 = arith.constant 0 : index
      %c0_45 = arith.constant 0 : index
      %c0_46 = arith.constant 0 : index
      %63 = vector.load %arg14[%c0_44, %c0_45, %c0_46] : memref<1x1x2xf32, #tpu.memory_space<vmem>>, vector<1x1x2xf32>
      tpu.vector_store %arg14[%c0_44, %c0_45, %c0_46], %62 {strides = array<i32>} : memref<1x1x2xf32, #tpu.memory_space<vmem>>, vector<1x1x2xf32>,
    } else {
    }
    return
  }
  func.func @transform_0(%arg0: i32, %arg1: i32) -> (i32, i32) {
    %c1_i32 = arith.constant 1 : i32
    %0 = arith.muli %arg0, %c1_i32 : i32
    %1 = arith.addi %0, %arg1 : i32
    %c0_i32 = arith.constant 0 : i32
    %c0_i32_0 = arith.constant 0 : i32
    return %1, %c0_i32 : i32, i32
  }
  func.func @transform_1(%arg0: i32, %arg1: i32) -> (i32, i32) {
    %c0_i32 = arith.constant 0 : i32
    %c0_i32_0 = arith.constant 0 : i32
    %c0_i32_1 = arith.constant 0 : i32
    return %c0_i32, %c0_i32_0 : i32, i32
  }
  func.func @transform_2(%arg0: i32, %arg1: i32) -> (i32, i32) {
    %c0_i32 = arith.constant 0 : i32
    %c0_i32_0 = arith.constant 0 : i32
    %c0_i32_1 = arith.constant 0 : i32
    return %c0_i32, %c0_i32_0 : i32, i32
  }
  func.func @transform_3(%arg0: i32, %arg1: i32) -> (i32, i32) {
    %c0_i32 = arith.constant 0 : i32
    %c0_i32_0 = arith.constant 0 : i32
    %c0_i32_1 = arith.constant 0 : i32
    return %c0_i32, %c0_i32_0 : i32, i32
  }
  func.func @transform_4(%arg0: i32, %arg1: i32) -> (i32, i32) {
    %c1_i32 = arith.constant 1 : i32
    %0 = arith.muli %arg0, %c1_i32 : i32
    %1 = arith.addi %0, %arg1 : i32
    %c0_i32 = arith.constant 0 : i32
    %c0_i32_0 = arith.constant 0 : i32
    return %1, %c0_i32 : i32, i32
  }
  func.func @transform_5(%arg0: i32, %arg1: i32) -> (i32, i32, i32) {
    %c0_i32 = arith.constant 0 : i32
    %c0_i32_0 = arith.constant 0 : i32
    %c0_i32_1 = arith.constant 0 : i32
    return %arg0, %c0_i32, %c0_i32_0 : i32, i32, i32
  }
  func.func @transform_6(%arg0: i32, %arg1: i32) -> (i32, i32) {
    %c0_i32 = arith.constant 0 : i32
    %c0_i32_0 = arith.constant 0 : i32
    %c0_i32_1 = arith.constant 0 : i32
    return %c0_i32, %c0_i32_0 : i32, i32
  }
  func.func @transform_7(%arg0: i32, %arg1: i32) -> (i32, i32) {
    %c0_i32 = arith.constant 0 : i32
    %c0_i32_0 = arith.constant 0 : i32
    %c0_i32_1 = arith.constant 0 : i32
    return %c0_i32, %c0_i32_0 : i32, i32
  }
  func.func @transform_8(%arg0: i32, %arg1: i32) -> (i32, i32) {
    %c0_i32 = arith.constant 0 : i32
    %c0_i32_0 = arith.constant 0 : i32
    %c0_i32_1 = arith.constant 0 : i32
    return %c0_i32, %c0_i32_0 : i32, i32
  }
  func.func @transform_9(%arg0: i32, %arg1: i32) -> (i32, i32) {
    %c0_i32 = arith.constant 0 : i32
    %c0_i32_0 = arith.constant 0 : i32
    %c0_i32_1 = arith.constant 0 : i32
    return %c0_i32, %c0_i32_0 : i32, i32
  }
  func.func @transform_10(%arg0: i32, %arg1: i32) -> (i32, i32) {
    %c0_i32 = arith.constant 0 : i32
    %c0_i32_0 = arith.constant 0 : i32
    %c0_i32_1 = arith.constant 0 : i32
    return %c0_i32, %c0_i32_0 : i32, i32
  }
  func.func @transform_11(%arg0: i32, %arg1: i32) -> (i32, i32) {
    %c0_i32 = arith.constant 0 : i32
    %c0_i32_0 = arith.constant 0 : i32
    %c0_i32_1 = arith.constant 0 : i32
    return %c0_i32, %c0_i32_0 : i32, i32
  }
  func.func @transform_12(%arg0: i32, %arg1: i32) -> (i32, i32, i32) {
    %c0_i32 = arith.constant 0 : i32
    %c0_i32_0 = arith.constant 0 : i32
    %c0_i32_1 = arith.constant 0 : i32
    return %arg0, %c0_i32, %c0_i32_0 : i32, i32, i32
  }
}

</mosaic_0001>

<bundles_post_ra>
// kernel: prun_forward.4
= control target key start
LH: loop header
LB: loop body
LE: loop exit
PB: predicated region body
PF: predicated region fallthrough
CT: control target
= control target key end

     0   :  { %s2672_s21 = smov 0   ;;  %s2674_s22 = smov 0   ;;  %s3541_s0 = inlined_call_operand.vmem [shape: bf16[6144,27], index: 0, kind: input, shape index: {}]   ;;  %s3542_s1 = inlined_call_operand.vmem [shape: bf16[27,32], index: 1, kind: input, shape index: {}]   ;;  %s3543_s2 = inlined_call_operand.vmem [shape: f32[1,32], index: 2, kind: input, shape index: {}]   ;;  %s3544_s3 = inlined_call_operand.vmem [shape: f32[1,32], index: 3, kind: input, shape index: {}]   ;;  %s3545_s4 = inlined_call_operand.vmem [shape: f32[6144,1], index: 4, kind: input, shape index: {}]   ;;  %s3546_s5 = inlined_call_operand.vmem [shape: bf16[6144,32], index: 5, kind: output, shape index: {0}]   ;;  %s3547_s6 = inlined_call_operand.vmem [shape: f32[2,1,32], index: 6, kind: output, shape index: {1}]  }
   0x1   :  { %s2676_s23 = smov 0   ;;  %s2678_s24 = smov 0  }
   0x2   :  { %s2680_s25 = smov 0  }
   0x3 LB: > { %s26_s26 = sadd.s32 1, %s2624_s23  ;;  %s29_s27 = sadd.s32 1, %s2628_s24  ;;  %s2632_s25 = sphi %s2680_s25, %s17_s25   ;;  %s2628_s24 = sphi %s2678_s24, %s3596_s24   ;;  %s2624_s23 = sphi %s2676_s23, %s3595_s23   ;;  %s2620_s22 = sphi %s2674_s22, %s3594_s22   ;;  %s2616_s21 = sphi %s2672_s21, %s3593_s21  }
   0x4   : > { %p27_p0 = scmp.ge.s32.totalorder %s26_s26, 6  ;;  %p2203_p1 = scmp.ge.s32.totalorder %s2632_s25, 1 }
   0x5   : > { %p259_p2 = scmp.lt.s32.totalorder %s2632_s25, 13 }
   0x6   : > { %s3598_s26 = smov (%p27_p0, %s26_s26), 0  ;;  %s3600_s27 = smov (!%p27_p0, %s29_s27), %s2628_s24 }
   0x7   : > { %p260_p3 = pnand %p2203_p1, %p259_p2  ;;  %p31_p4 = scmp.ge.s32.totalorder %s3600_s27, 2 }
   0x9   : > { %s3602_s27 = smov (%p31_p4, %s3600_s27), 0  ;;  %263 = sbr.rel (%p260_p3) target bundleno = 592 (0x250), region = 40 }
  0x10   : > { %p333_p5 = scmp.lt.s32.totalorder %s2620_s22, 1  ;;  %v2558_v0 = vld [vmem:[%s3542_s1] sm:$0xff]   ;;  %v2559_v1 = vld [vmem:[%s3542_s1 + $0x8] sm:$0x3f]   ;;  %vm673_vm0 = vcmask 1044480   ;;  %vm674_vm1 = vcmask 1045504  }
  0x11   : > { %2443 = vmatprep.subr.bf16.mxu0 %v2558_v0  ;;  %2511 = vmatprep.subr.bf16.mxu1 %v2558_v0  ;;  %v2634_v2 = vmov 65535   ;;  %s303_s9 = smul.u32 6, %s2620_s22  ;;  %vm576_vm2 = vcmask 220160   ;;  %v2804_v38 = vld [vmem:[%s3543_s2] ss:$0 sm:$0xff]  ;;  %vm1431_vm3 = vcmask 257024  }
  0x12   : > { %s334_s8 = scalar_select %p333_p5, %s2620_s22, 1  ;;  %2444 = vmatpush3.bf16.msra.mxu0 %v2558_v0  ;;  %2513 = vmatpush3.bf16.msra.mxu1 %v2558_v0  ;;  %v675_v3 = vsel %vm673_vm0, 4294967295, %v2634_v2  ;;  %v2809_v40 = vld [vmem:[%s3544_s3] ss:$0 sm:$0xff] }
  0x13   : > { %v676_v4 = vsel %vm674_vm1, %v675_v3, 0  ;;  %s304_s13 = sadd.s32 %s2616_s21, %s303_s9  ;;  %p2342_p7 = scmp.ne.s32.totalorder %s2616_s21, 0 }
  0x14   : > { %s2718_s12 = scalar_lea.vmem %s3547_s6, %s334_s8  ;;  %v678_v5 = vand.u32 %v2559_v1, %v676_v4  ;;  %s2204_s14 = sshll.u32 %s304_s13, 6  ;;  %vm1500_vm4 = vcmask (!%p2342_p7), 253952  }
  0x15   : > { %p306_p6 = scmp.lt.s32.totalorder %s2204_s14, 767 }
  0x16   : > { %2445 = vmatprep.subr.bf16.mxu0 %v678_v5  ;;  %2512 = vmatprep.subr.bf16.mxu1 %v678_v5 }
  0x17   : > { %2446 = vmatpush3.bf16.msra.mxu0 %v678_v5  ;;  %2514 = vmatpush3.bf16.msra.mxu1 %v678_v5  ;;  %s3604_s14 = smov (!%p306_p6, %s2204_s14), 767 }
  0x18   : > { %s2205_s15 = sshll.u32 %s3604_s14, 2  ;;  %s2207_s16 = sshll.u32 %s3604_s14, 3 }
  0x19   : > { %s2730_s19 = scalar_lea.vmem %s3541_s0, %s2205_s15  ;;  %s2735_s28 = scalar_lea.vmem %s3545_s4, %s2207_s16 }
  0x1a   : > { %v2560_v6 = vld [vmem:[%s2730_s19] sm:$0xff]   ;;  %v2562_v8 = vld [vmem:[%s2730_s19 + $0x8] sm:$0xff]   ;;  %v2564_v10 = vld [vmem:[%s2730_s19 + $0x10] sm:$0xff]   ;;  %s2831_s11 = scalar_lea.vmem %s3546_s5, %s2205_s15 }
  0x1b   : > { %v2561_v7 = vld [vmem:[%s2730_s19 + $0x80] sm:$0xff]   ;;  %2447 = vmatprep.mubr.msk.bf16.mxu0 %vm576_vm2, %v2560_v6  ;;  %v2563_v9 = vld [vmem:[%s2730_s19 + $0x88] sm:$0xff]   ;;  %v2565_v11 = vld [vmem:[%s2730_s19 + $0x90] sm:$0xff]  }
  0x1c   : > { %2479 = vmatprep.mubr.msk.bf16.mxu1 %vm576_vm2, %v2561_v7  ;;  %2448 = vmatmul.mubr.msk.bf16.vlgmr.msra.gmra.mrb[0].mxu0 %vm576_vm2, %v2562_v8  ;;  %v2566_v12 = vld [vmem:[%s2730_s19 + $0x18] sm:$0xff]   ;;  %v2568_v14 = vld [vmem:[%s2730_s19 + $0x20] sm:$0xff]   ;;  %v2570_v16 = vld [vmem:[%s2730_s19 + $0x28] sm:$0xff]  }
  0x1d   : > { %2480 = vmatmul.mubr.msk.bf16.vlgmr.msra.gmra.mrb[0].mxu1 %vm576_vm2, %v2563_v9  ;;  %2451 = vmatprep.mubr.msk.bf16.mxu0 %vm576_vm2, %v2564_v10  ;;  %v2567_v13 = vld [vmem:[%s2730_s19 + $0x98] sm:$0xff]   ;;  %v2569_v15 = vld [vmem:[%s2730_s19 + $0xa0] sm:$0xff]   ;;  %v2571_v17 = vld [vmem:[%s2730_s19 + $0xa8] sm:$0xff]  }
  0x1e   : > { %2483 = vmatprep.mubr.msk.bf16.mxu1 %vm576_vm2, %v2565_v11  ;;  %v2572_v18 = vld [vmem:[%s2730_s19 + $0x30] sm:$0xff]   ;;  %v2574_v20 = vld [vmem:[%s2730_s19 + $0x38] sm:$0xff]   ;;  %v2576_v22 = vld [vmem:[%s2730_s19 + $0x40] sm:$0xff]  }
  0x1f   : > { %v2573_v19 = vld [vmem:[%s2730_s19 + $0xb0] sm:$0xff]   ;;  %v2575_v21 = vld [vmem:[%s2730_s19 + $0xb8] sm:$0xff]   ;;  %v2577_v23 = vld [vmem:[%s2730_s19 + $0xc0] sm:$0xff]  }
  0x20   : > { %v2578_v24 = vld [vmem:[%s2730_s19 + $0x48] sm:$0xff]   ;;  %v2580_v26 = vld [vmem:[%s2730_s19 + $0x50] sm:$0xff]   ;;  %v2582_v28 = vld [vmem:[%s2730_s19 + $0x58] sm:$0xff]  }
  0x21   : > { %v2579_v25 = vld [vmem:[%s2730_s19 + $0xc8] sm:$0xff]   ;;  %v2581_v27 = vld [vmem:[%s2730_s19 + $0xd0] sm:$0xff]   ;;  %v2583_v29 = vld [vmem:[%s2730_s19 + $0xd8] sm:$0xff]  }
  0x22   : > { %v2584_v30 = vld [vmem:[%s2730_s19 + $0x60] sm:$0xff]   ;;  %v2586_v32 = vld [vmem:[%s2730_s19 + $0x68] sm:$0xff]   ;;  %v2588_v34 = vld [vmem:[%s2730_s19 + $0x70] sm:$0xff]  }
  0x23   : > { %v2585_v31 = vld [vmem:[%s2730_s19 + $0xe0] sm:$0xff]   ;;  %v2587_v33 = vld [vmem:[%s2730_s19 + $0xe8] sm:$0xff]   ;;  %v2589_v35 = vld [vmem:[%s2730_s19 + $0xf0] sm:$0xff]  }
  0x24   : > { %2452 = vmatmul.mubr.msk.bf16.gmra.mrb[4].mxu0 %vm576_vm2, %v2566_v12  ;;  %v2590_v36 = vld [vmem:[%s2730_s19 + $0x78] sm:$0xff]  }
  0x25   : > { %2484 = vmatmul.mubr.msk.bf16.gmra.mrb[4].mxu1 %vm576_vm2, %v2567_v13  ;;  %2455 = vmatprep.mubr.msk.bf16.mxu0 %vm576_vm2, %v2568_v14  ;;  %v2591_v37 = vld [vmem:[%s2730_s19 + $0xf8] sm:$0xff]  }
  0x26   : > { %2487 = vmatprep.mubr.msk.bf16.mxu1 %vm576_vm2, %v2569_v15 }
  0x2c   : > { %2456 = vmatmul.mubr.msk.bf16.gmra.mrb[8].mxu0 %vm576_vm2, %v2570_v16 }
  0x2d   : > { %2488 = vmatmul.mubr.msk.bf16.gmra.mrb[8].mxu1 %vm576_vm2, %v2571_v17  ;;  %2459 = vmatprep.mubr.msk.bf16.mxu0 %vm576_vm2, %v2572_v18 }
  0x2e   : > { %2491 = vmatprep.mubr.msk.bf16.mxu1 %vm576_vm2, %v2573_v19 }
  0x34   : > { %2460 = vmatmul.mubr.msk.bf16.gmra.mrb[12].mxu0 %vm576_vm2, %v2574_v20 }
  0x35   : > { %2492 = vmatmul.mubr.msk.bf16.gmra.mrb[12].mxu1 %vm576_vm2, %v2575_v21  ;;  %2463 = vmatprep.mubr.msk.bf16.mxu0 %vm576_vm2, %v2576_v22 }
  0x36   : > { %2495 = vmatprep.mubr.msk.bf16.mxu1 %vm576_vm2, %v2577_v23 }
  0x3c   : > { %2464 = vmatmul.mubr.msk.bf16.gmra.mrb[16].mxu0 %vm576_vm2, %v2578_v24 }
  0x3d   : > { %2496 = vmatmul.mubr.msk.bf16.gmra.mrb[16].mxu1 %vm576_vm2, %v2579_v25  ;;  %2467 = vmatprep.mubr.msk.bf16.mxu0 %vm576_vm2, %v2580_v26 }
  0x3e   : > { %2499 = vmatprep.mubr.msk.bf16.mxu1 %vm576_vm2, %v2581_v27 }
  0x44   : > { %2468 = vmatmul.mubr.msk.bf16.gmra.mrb[20].mxu0 %vm576_vm2, %v2582_v28 }
  0x45   : > { %2500 = vmatmul.mubr.msk.bf16.gmra.mrb[20].mxu1 %vm576_vm2, %v2583_v29  ;;  %2471 = vmatprep.mubr.msk.bf16.mxu0 %vm576_vm2, %v2584_v30 }
  0x46   : > { %2503 = vmatprep.mubr.msk.bf16.mxu1 %vm576_vm2, %v2585_v31 }
  0x4c   : > { %2472 = vmatmul.mubr.msk.bf16.gmra.mrb[24].mxu0 %vm576_vm2, %v2586_v32 }
  0x4d   : > { %2504 = vmatmul.mubr.msk.bf16.gmra.mrb[24].mxu1 %vm576_vm2, %v2587_v33  ;;  %2475 = vmatprep.mubr.msk.bf16.mxu0 %vm576_vm2, %v2588_v34 }
  0x4e   : > { %2507 = vmatprep.mubr.msk.bf16.mxu1 %vm576_vm2, %v2589_v35 }
  0x54   : > { %2476 = vmatmul.mubr.msk.bf16.gmra.mrb[28].mxu0 %vm576_vm2, %v2590_v36 }
  0x55   : > { %2508 = vmatmul.mubr.msk.bf16.gmra.mrb[28].mxu1 %vm576_vm2, %v2591_v37 }
  0xef   : > { %v2449_v39 = vpop.f32.mrb[0].mxu0 }
  0xf0   : > { %v978_v41 = vmul.f32 %v2449_v39, %v2804_v38  ;;  %v2481_v42 = vpop.f32.mrb[0].mxu1  ;;  %v714_v43 = vpop.f32.mrb[1].mxu0 }
  0xf1   : > { %v1010_v44 = vmul.f32 %v2481_v42, %v2804_v38  ;;  %v976_v45 = vmul.f32 %v2804_v38, %v714_v43  ;;  %v842_v46 = vpop.f32.mrb[1].mxu1  ;;  %v2450_v47 = vpop.f32.mrb[2].mxu0 }
  0xf2   : > { %v1049_v48 = vadd.f32 %v2809_v40, %v978_v41  ;;  %v1008_v49 = vmul.f32 %v2804_v38, %v842_v46  ;;  %v979_v50 = vmul.f32 %v2450_v47, %v2804_v38  ;;  %v2482_v51 = vpop.f32.mrb[2].mxu1  ;;  %v717_v52 = vpop.f32.mrb[3].mxu0 }
  0xf3   : > { %v1081_v53 = vadd.f32 %v2809_v40, %v1010_v44  ;;  %v1047_v54 = vadd.f32 %v2809_v40, %v976_v45  ;;  %v1011_v55 = vmul.f32 %v2482_v51, %v2804_v38  ;;  %v977_v56 = vmul.f32 %v2804_v38, %v717_v52  ;;  %v845_v57 = vpop.f32.mrb[3].mxu1 }
  0xf4   : > { %v2821_v58 = vmax.f32 %v1049_v48, 0.0  ;;  %v1079_v59 = vadd.f32 %v2809_v40, %v1008_v49  ;;  %v1050_v60 = vadd.f32 %v2809_v40, %v979_v50  ;;  %v1009_v61 = vmul.f32 %v2804_v38, %v845_v57 }
  0xf5   : > { %v2833_v62 = vmax.f32 %v1081_v53, 0.0  ;;  %v2835_v63 = vmax.f32 %v1047_v54, 0.0  ;;  %v1082_v0 = vadd.f32 %v2809_v40, %v1011_v55  ;;  %v1048_v1 = vadd.f32 %v2809_v40, %v977_v56 }
  0xf6   : > { %v2347_v2 = vpack.c.bf16 %v2821_v58, %v2821_v58  ;;  %v2841_v3 = vmax.f32 %v1079_v59, 0.0  ;;  %v2843_v4 = vmax.f32 %v1050_v60, 0.0  ;;  %v1080_v5 = vadd.f32 %v2809_v40, %v1009_v61 }
  0xf7   : > { %v2379_v6 = vpack.c.bf16 %v2833_v62, %v2833_v62  ;;  %v2345_v7 = vpack.c.bf16 %v2835_v63, %v2835_v63  ;;  %v2850_v8 = vmax.f32 %v1082_v0, 0.0  ;;  %v2852_v9 = vmax.f32 %v1048_v1, 0.0  ;;  %v2453_v10 = vpop.f32.mrb[4].mxu0 }
  0xf8   : > { %1434 = vst.msk [vmem:[%s2831_s11 + $0x8] sm:$0xf] %vm1431_vm3, %v2347_v2  ;;  %v2377_v11 = vpack.c.bf16 %v2841_v3, %v2841_v3  ;;  %v2348_v12 = vpack.c.bf16 %v2843_v4, %v2843_v4  ;;  %v2860_v13 = vmax.f32 %v1080_v5, 0.0  ;;  %v982_v14 = vmul.f32 %v2453_v10, %v2804_v38  ;;  %v2485_v15 = vpop.f32.mrb[4].mxu1  ;;  %v730_v16 = vpop.f32.mrb[5].mxu0 }
  0xf9   : > { %1466 = vst.msk [vmem:[%s2831_s11 + $0x88] sm:$0xf] %vm1431_vm3, %v2379_v6  ;;  %1432 = vst.msk [vmem:[%s2831_s11] sm:$0xf] %vm1431_vm3, %v2345_v7  ;;  %v2380_v17 = vpack.c.bf16 %v2850_v8, %v2850_v8  ;;  %v2346_v18 = vpack.c.bf16 %v2852_v9, %v2852_v9  ;;  %v1014_v19 = vmul.f32 %v2485_v15, %v2804_v38  ;;  %v858_v21 = vpop.f32.mrb[5].mxu1  ;;  %v2454_v22 = vpop.f32.mrb[6].mxu0 }
  0xfa   : > { %v980_v20 = vmul.f32 %v2804_v38, %v730_v16  ;;  %1464 = vst.msk [vmem:[%s2831_s11 + $0x80] sm:$0xf] %vm1431_vm3, %v2377_v11  ;;  %1435 = vst.msk [vmem:[%s2831_s11 + $0xc] sm:$0xf] %vm1431_vm3, %v2348_v12  ;;  %v2378_v23 = vpack.c.bf16 %v2860_v13, %v2860_v13  ;;  %v1053_v24 = vadd.f32 %v2809_v40, %v982_v14  ;;  %v2486_v27 = vpop.f32.mrb[6].mxu1  ;;  %v733_v28 = vpop.f32.mrb[7].mxu0 }
  0xfb   : > { %v1012_v25 = vmul.f32 %v2804_v38, %v858_v21  ;;  %v983_v26 = vmul.f32 %v2454_v22, %v2804_v38  ;;  %1467 = vst.msk [vmem:[%s2831_s11 + $0x8c] sm:$0xf] %vm1431_vm3, %v2380_v17  ;;  %1433 = vst.msk [vmem:[%s2831_s11 + $0x4] sm:$0xf] %vm1431_vm3, %v2346_v18  ;;  %v1085_v29 = vadd.f32 %v2809_v40, %v1014_v19  ;;  %v861_v33 = vpop.f32.mrb[7].mxu1 }
  0xfc   : > { %v1051_v30 = vadd.f32 %v2809_v40, %v980_v20  ;;  %v1015_v31 = vmul.f32 %v2486_v27, %v2804_v38  ;;  %v981_v32 = vmul.f32 %v2804_v38, %v733_v28  ;;  %1465 = vst.msk [vmem:[%s2831_s11 + $0x84] sm:$0xf] %vm1431_vm3, %v2378_v23  ;;  %v2892_v34 = vmax.f32 %v1053_v24, 0.0 }
  0xfd   : > { %v1083_v35 = vadd.f32 %v2809_v40, %v1012_v25  ;;  %v1054_v36 = vadd.f32 %v2809_v40, %v983_v26  ;;  %v1013_v37 = vmul.f32 %v2804_v38, %v861_v33  ;;  %v2897_v39 = vmax.f32 %v1085_v29, 0.0 }
  0xfe   : > { %v2899_v41 = vmax.f32 %v1051_v30, 0.0  ;;  %v1086_v42 = vadd.f32 %v2809_v40, %v1015_v31  ;;  %v1052_v43 = vadd.f32 %v2809_v40, %v981_v32  ;;  %v2351_v44 = vpack.c.bf16 %v2892_v34, %v2892_v34 }
  0xff   : > { %v2905_v45 = vmax.f32 %v1083_v35, 0.0  ;;  %v2907_v46 = vmax.f32 %v1054_v36, 0.0  ;;  %v1084_v47 = vadd.f32 %v2809_v40, %v1013_v37  ;;  %v2383_v48 = vpack.c.bf16 %v2897_v39, %v2897_v39  ;;  %v2457_v52 = vpop.f32.mrb[8].mxu0 }
 0x100   : > { %v2349_v49 = vpack.c.bf16 %v2899_v41, %v2899_v41  ;;  %v2914_v50 = vmax.f32 %v1086_v42, 0.0  ;;  %v2916_v51 = vmax.f32 %v1052_v43, 0.0  ;;  %1438 = vst.msk [vmem:[%s2831_s11 + $0x18] sm:$0xf] %vm1431_vm3, %v2351_v44  ;;  %v986_v56 = vmul.f32 %v2457_v52, %v2804_v38  ;;  %v2489_v57 = vpop.f32.mrb[8].mxu1  ;;  %v746_v59 = vpop.f32.mrb[9].mxu0 }
 0x101   : > { %v2381_v53 = vpack.c.bf16 %v2905_v45, %v2905_v45  ;;  %v2352_v54 = vpack.c.bf16 %v2907_v46, %v2907_v46  ;;  %v2924_v55 = vmax.f32 %v1084_v47, 0.0  ;;  %1470 = vst.msk [vmem:[%s2831_s11 + $0x98] sm:$0xf] %vm1431_vm3, %v2383_v48  ;;  %v1018_v0 = vmul.f32 %v2489_v57, %v2804_v38  ;;  %v874_v2 = vpop.f32.mrb[9].mxu1  ;;  %v2458_v5 = vpop.f32.mrb[10].mxu0 }
 0x102   : > { %1436 = vst.msk [vmem:[%s2831_s11 + $0x10] sm:$0xf] %vm1431_vm3, %v2349_v49  ;;  %v2384_v60 = vpack.c.bf16 %v2914_v50, %v2914_v50  ;;  %v2350_v61 = vpack.c.bf16 %v2916_v51, %v2916_v51  ;;  %v984_v1 = vmul.f32 %v2804_v38, %v746_v59  ;;  %v1057_v7 = vadd.f32 %v2809_v40, %v986_v56  ;;  %v2490_v12 = vpop.f32.mrb[10].mxu1  ;;  %v749_v14 = vpop.f32.mrb[11].mxu0 }
 0x103   : > { %1468 = vst.msk [vmem:[%s2831_s11 + $0x90] sm:$0xf] %vm1431_vm3, %v2381_v53  ;;  %1439 = vst.msk [vmem:[%s2831_s11 + $0x1c] sm:$0xf] %vm1431_vm3, %v2352_v54  ;;  %v2382_v6 = vpack.c.bf16 %v2924_v55, %v2924_v55  ;;  %v1016_v10 = vmul.f32 %v2804_v38, %v874_v2  ;;  %v987_v11 = vmul.f32 %v2458_v5, %v2804_v38  ;;  %v877_v19 = vpop.f32.mrb[11].mxu1 }
 0x104   : > { %1471 = vst.msk [vmem:[%s2831_s11 + $0x9c] sm:$0xf] %vm1431_vm3, %v2384_v60  ;;  %1437 = vst.msk [vmem:[%s2831_s11 + $0x14] sm:$0xf] %vm1431_vm3, %v2350_v61  ;;  %v1089_v15 = vadd.f32 %v2809_v40, %v1018_v0  ;;  %v1055_v16 = vadd.f32 %v2809_v40, %v984_v1  ;;  %v1019_v17 = vmul.f32 %v2490_v12, %v2804_v38  ;;  %v2956_v20 = vmax.f32 %v1057_v7, 0.0 }
 0x105   : > { %v985_v18 = vmul.f32 %v2804_v38, %v749_v14  ;;  %1469 = vst.msk [vmem:[%s2831_s11 + $0x94] sm:$0xf] %vm1431_vm3, %v2382_v6  ;;  %v1087_v21 = vadd.f32 %v2809_v40, %v1016_v10  ;;  %v1058_v22 = vadd.f32 %v2809_v40, %v987_v11  ;;  %v1017_v23 = vmul.f32 %v2804_v38, %v877_v19 }
 0x106   : > { %v2961_v24 = vmax.f32 %v1089_v15, 0.0  ;;  %v2963_v25 = vmax.f32 %v1055_v16, 0.0  ;;  %v1090_v26 = vadd.f32 %v2809_v40, %v1019_v17  ;;  %v2355_v28 = vpack.c.bf16 %v2956_v20, %v2956_v20 }
 0x107   : > { %v1056_v27 = vadd.f32 %v2809_v40, %v985_v18  ;;  %v2969_v29 = vmax.f32 %v1087_v21, 0.0  ;;  %v2971_v30 = vmax.f32 %v1058_v22, 0.0  ;;  %v1088_v31 = vadd.f32 %v2809_v40, %v1017_v23  ;;  %v2461_v37 = vpop.f32.mrb[12].mxu0 }
 0x108   : > { %v2387_v32 = vpack.c.bf16 %v2961_v24, %v2961_v24  ;;  %v2353_v33 = vpack.c.bf16 %v2963_v25, %v2963_v25  ;;  %v2978_v35 = vmax.f32 %v1090_v26, 0.0  ;;  %1442 = vst.msk [vmem:[%s2831_s11 + $0x28] sm:$0xf] %vm1431_vm3, %v2355_v28  ;;  %v990_v47 = vmul.f32 %v2461_v37, %v2804_v38  ;;  %v2493_v48 = vpop.f32.mrb[12].mxu1  ;;  %v762_v49 = vpop.f32.mrb[13].mxu0 }
 0x109   : > { %v2980_v36 = vmax.f32 %v1056_v27, 0.0  ;;  %v2385_v42 = vpack.c.bf16 %v2969_v29, %v2969_v29  ;;  %v2356_v43 = vpack.c.bf16 %v2971_v30, %v2971_v30  ;;  %v2988_v44 = vmax.f32 %v1088_v31, 0.0  ;;  %v890_v57 = vpop.f32.mrb[13].mxu1  ;;  %v2462_v59 = vpop.f32.mrb[14].mxu0 }
 0x10a   : > { %1474 = vst.msk [vmem:[%s2831_s11 + $0xa8] sm:$0xf] %vm1431_vm3, %v2387_v32  ;;  %1440 = vst.msk [vmem:[%s2831_s11 + $0x20] sm:$0xf] %vm1431_vm3, %v2353_v33  ;;  %v2388_v52 = vpack.c.bf16 %v2978_v35, %v2978_v35  ;;  %v1022_v54 = vmul.f32 %v2493_v48, %v2804_v38  ;;  %v988_v56 = vmul.f32 %v2804_v38, %v762_v49  ;;  %v2494_v2 = vpop.f32.mrb[14].mxu1  ;;  %v765_v5 = vpop.f32.mrb[15].mxu0 }
 0x10b   : > { %v2354_v53 = vpack.c.bf16 %v2980_v36, %v2980_v36  ;;  %1472 = vst.msk [vmem:[%s2831_s11 + $0xa0] sm:$0xf] %vm1431_vm3, %v2385_v42  ;;  %1443 = vst.msk [vmem:[%s2831_s11 + $0x2c] sm:$0xf] %vm1431_vm3, %v2356_v43  ;;  %v2386_v60 = vpack.c.bf16 %v2988_v44, %v2988_v44  ;;  %v1061_v61 = vadd.f32 %v2809_v40, %v990_v47  ;;  %v893_v12 = vpop.f32.mrb[15].mxu1 }
 0x10c   : > { %v1020_v0 = vmul.f32 %v2804_v38, %v890_v57  ;;  %v991_v1 = vmul.f32 %v2462_v59, %v2804_v38  ;;  %1475 = vst.msk [vmem:[%s2831_s11 + $0xac] sm:$0xf] %vm1431_vm3, %v2388_v52  ;;  %v1093_v6 = vadd.f32 %v2809_v40, %v1022_v54  ;;  %v1059_v7 = vadd.f32 %v2809_v40, %v988_v56 }
 0x10d   : > { %1441 = vst.msk [vmem:[%s2831_s11 + $0x24] sm:$0xf] %vm1431_vm3, %v2354_v53  ;;  %v1023_v10 = vmul.f32 %v2494_v2, %v2804_v38  ;;  %v989_v11 = vmul.f32 %v2804_v38, %v765_v5  ;;  %1473 = vst.msk [vmem:[%s2831_s11 + $0xa4] sm:$0xf] %vm1431_vm3, %v2386_v60  ;;  %v3020_v14 = vmax.f32 %v1061_v61, 0.0  ;;  %v1021_v17 = vmul.f32 %v2804_v38, %v893_v12 }
 0x10e   : > { %v1091_v15 = vadd.f32 %v2809_v40, %v1020_v0  ;;  %v1062_v16 = vadd.f32 %v2809_v40, %v991_v1  ;;  %v3025_v18 = vmax.f32 %v1093_v6, 0.0  ;;  %v3027_v19 = vmax.f32 %v1059_v7, 0.0 }
 0x10f   : > { %v1094_v21 = vadd.f32 %v2809_v40, %v1023_v10  ;;  %v1060_v22 = vadd.f32 %v2809_v40, %v989_v11  ;;  %v2359_v23 = vpack.c.bf16 %v3020_v14, %v3020_v14  ;;  %v1092_v28 = vadd.f32 %v2809_v40, %v1021_v17  ;;  %v2465_v42 = vpop.f32.mrb[16].mxu0 }
 0x110   : > { %v3033_v26 = vmax.f32 %v1091_v15, 0.0  ;;  %v3035_v27 = vmax.f32 %v1062_v16, 0.0  ;;  %v2391_v31 = vpack.c.bf16 %v3025_v18, %v3025_v18  ;;  %v2357_v32 = vpack.c.bf16 %v3027_v19, %v3027_v19  ;;  %v2497_v52 = vpop.f32.mrb[16].mxu1  ;;  %v778_v53 = vpop.f32.mrb[17].mxu0 }
 0x111   : > { %v3042_v33 = vmax.f32 %v1094_v21, 0.0  ;;  %v3044_v37 = vmax.f32 %v1060_v22, 0.0  ;;  %1446 = vst.msk [vmem:[%s2831_s11 + $0x38] sm:$0xf] %vm1431_vm3, %v2359_v23  ;;  %v3052_v48 = vmax.f32 %v1092_v28, 0.0  ;;  %v994_v49 = vmul.f32 %v2465_v42, %v2804_v38  ;;  %v906_v60 = vpop.f32.mrb[17].mxu1 }
 0x112   : > { %v2389_v43 = vpack.c.bf16 %v3033_v26, %v3033_v26  ;;  %v2360_v47 = vpack.c.bf16 %v3035_v27, %v3035_v27  ;;  %1478 = vst.msk [vmem:[%s2831_s11 + $0xb8] sm:$0xf] %vm1431_vm3, %v2391_v31  ;;  %1444 = vst.msk [vmem:[%s2831_s11 + $0x30] sm:$0xf] %vm1431_vm3, %v2357_v32  ;;  %v1026_v57 = vmul.f32 %v2497_v52, %v2804_v38  ;;  %v2466_v61 = vpop.f32.mrb[18].mxu0  ;;  %v2498_v6 = vpop.f32.mrb[18].mxu1 }
 0x113   : > { %v2392_v54 = vpack.c.bf16 %v3042_v33, %v3042_v33  ;;  %v2358_v56 = vpack.c.bf16 %v3044_v37, %v3044_v37  ;;  %v992_v59 = vmul.f32 %v2804_v38, %v778_v53  ;;  %v2390_v0 = vpack.c.bf16 %v3052_v48, %v3052_v48  ;;  %v781_v7 = vpop.f32.mrb[19].mxu0  ;;  %v909_v16 = vpop.f32.mrb[19].mxu1 }
 0x114   : > { %1476 = vst.msk [vmem:[%s2831_s11 + $0xb0] sm:$0xf] %vm1431_vm3, %v2389_v43  ;;  %1447 = vst.msk [vmem:[%s2831_s11 + $0x3c] sm:$0xf] %vm1431_vm3, %v2360_v47  ;;  %v1065_v1 = vadd.f32 %v2809_v40, %v994_v49  ;;  %v1024_v2 = vmul.f32 %v2804_v38, %v906_v60  ;;  %v995_v5 = vmul.f32 %v2466_v61, %v2804_v38 }
 0x115   : > { %1479 = vst.msk [vmem:[%s2831_s11 + $0xbc] sm:$0xf] %vm1431_vm3, %v2392_v54  ;;  %1445 = vst.msk [vmem:[%s2831_s11 + $0x34] sm:$0xf] %vm1431_vm3, %v2358_v56  ;;  %v1097_v10 = vadd.f32 %v2809_v40, %v1026_v57  ;;  %v1063_v11 = vadd.f32 %v2809_v40, %v992_v59  ;;  %v1027_v12 = vmul.f32 %v2498_v6, %v2804_v38 }
 0x116   : > { %v993_v15 = vmul.f32 %v2804_v38, %v781_v7  ;;  %1477 = vst.msk [vmem:[%s2831_s11 + $0xb4] sm:$0xf] %vm1431_vm3, %v2390_v0  ;;  %v3084_v17 = vmax.f32 %v1065_v1, 0.0  ;;  %v1095_v21 = vadd.f32 %v2809_v40, %v1024_v2  ;;  %v1066_v22 = vadd.f32 %v2809_v40, %v995_v5 }
 0x117   : > { %v1025_v23 = vmul.f32 %v2804_v38, %v909_v16  ;;  %v3089_v28 = vmax.f32 %v1097_v10, 0.0  ;;  %v3091_v31 = vmax.f32 %v1063_v11, 0.0  ;;  %v1098_v32 = vadd.f32 %v2809_v40, %v1027_v12  ;;  %v2469_v59 = vpop.f32.mrb[20].mxu0 }
 0x118   : > { %v1064_v42 = vadd.f32 %v2809_v40, %v993_v15  ;;  %v2363_v43 = vpack.c.bf16 %v3084_v17, %v3084_v17  ;;  %v3097_v47 = vmax.f32 %v1095_v21, 0.0  ;;  %v3099_v49 = vmax.f32 %v1066_v22, 0.0  ;;  %v2501_v2 = vpop.f32.mrb[20].mxu1  ;;  %v794_v5 = vpop.f32.mrb[21].mxu0 }
 0x119   : > { %3563 = vst [vmem:[#allocation2_spill] sm:$0xff] %v3089_v28  ;;  %v1096_v52 = vadd.f32 %v2809_v40, %v1025_v23  ;;  %v2395_v53 = vpack.c.bf16 %v3089_v28, %v3089_v28  ;;  %v2361_v54 = vpack.c.bf16 %v3091_v31, %v3091_v31  ;;  %v3106_v56 = vmax.f32 %v1098_v32, 0.0  ;;  %v922_v12 = vpop.f32.mrb[21].mxu1  ;;  %v2470_v15 = vpop.f32.mrb[22].mxu0 }
 0x11a   : > { %3564 = vst [vmem:[#allocation3_spill] sm:$0xff] %v3097_v47  ;;  %v3108_v57 = vmax.f32 %v1064_v42, 0.0  ;;  %1450 = vst.msk [vmem:[%s2831_s11 + $0x48] sm:$0xf] %vm1431_vm3, %v2363_v43  ;;  %v2393_v60 = vpack.c.bf16 %v3097_v47, %v3097_v47  ;;  %v2364_v61 = vpack.c.bf16 %v3099_v49, %v3099_v49  ;;  %v998_v1 = vmul.f32 %v2469_v59, %v2804_v38  ;;  %v2502_v32 = vpop.f32.mrb[22].mxu1  ;;  %v797_v42 = vpop.f32.mrb[23].mxu0 }
 0x11b   : > { %3565 = vst [vmem:[#allocation4_spill] sm:$0xff] %v3106_v56  ;;  %v3116_v0 = vmax.f32 %v1096_v52, 0.0  ;;  %1482 = vst.msk [vmem:[%s2831_s11 + $0xc8] sm:$0xf] %vm1431_vm3, %v2395_v53  ;;  %v2396_v6 = vpack.c.bf16 %v3106_v56, %v3106_v56  ;;  %v1030_v10 = vmul.f32 %v2501_v2, %v2804_v38  ;;  %v996_v11 = vmul.f32 %v2804_v38, %v794_v5  ;;  %v925_v59 = vpop.f32.mrb[23].mxu1 }
 0x11c   : > { %1448 = vst.msk [vmem:[%s2831_s11 + $0x40] sm:$0xf] %vm1431_vm3, %v2361_v54  ;;  %v2362_v7 = vpack.c.bf16 %v3108_v57, %v3108_v57  ;;  %1480 = vst.msk [vmem:[%s2831_s11 + $0xc0] sm:$0xf] %vm1431_vm3, %v2393_v60  ;;  %v1069_v21 = vadd.f32 %v2809_v40, %v998_v1  ;;  %v1028_v22 = vmul.f32 %v2804_v38, %v922_v12 }
 0x11d   : > { %3566 = vst [vmem:[#allocation5_spill] sm:$0xff] %v3116_v0  ;;  %1451 = vst.msk [vmem:[%s2831_s11 + $0x4c] sm:$0xf] %vm1431_vm3, %v2364_v61  ;;  %v2394_v16 = vpack.c.bf16 %v3116_v0, %v3116_v0  ;;  %v999_v23 = vmul.f32 %v2470_v15, %v2804_v38  ;;  %v1101_v43 = vadd.f32 %v2809_v40, %v1030_v10 }
 0x11e   : > { %1483 = vst.msk [vmem:[%s2831_s11 + $0xcc] sm:$0xf] %vm1431_vm3, %v2396_v6  ;;  %1449 = vst.msk [vmem:[%s2831_s11 + $0x44] sm:$0xf] %vm1431_vm3, %v2362_v7  ;;  %v1067_v52 = vadd.f32 %v2809_v40, %v996_v11  ;;  %v1031_v53 = vmul.f32 %v2502_v32, %v2804_v38  ;;  %v997_v54 = vmul.f32 %v2804_v38, %v797_v42  ;;  %v3148_v60 = vmax.f32 %v1069_v21, 0.0 }
 0x11f   : > { %1481 = vst.msk [vmem:[%s2831_s11 + $0xc4] sm:$0xf] %vm1431_vm3, %v2394_v16  ;;  %v1099_v61 = vadd.f32 %v2809_v40, %v1028_v22  ;;  %v1070_v1 = vadd.f32 %v2809_v40, %v999_v23  ;;  %v1029_v2 = vmul.f32 %v2804_v38, %v925_v59  ;;  %v3153_v5 = vmax.f32 %v1101_v43, 0.0  ;;  %v2473_v42 = vpop.f32.mrb[24].mxu0 }
 0x120   : > { %v3155_v6 = vmax.f32 %v1067_v52, 0.0  ;;  %v1102_v7 = vadd.f32 %v2809_v40, %v1031_v53  ;;  %v1068_v10 = vadd.f32 %v2809_v40, %v997_v54  ;;  %v2367_v11 = vpack.c.bf16 %v3148_v60, %v3148_v60  ;;  %v2505_v59 = vpop.f32.mrb[24].mxu1 }
 0x121   : > { %3567 = vst [vmem:[#allocation6_spill] sm:$0xff] %v3153_v5  ;;  %v3161_v12 = vmax.f32 %v1099_v61, 0.0  ;;  %v3163_v15 = vmax.f32 %v1070_v1, 0.0  ;;  %v1100_v16 = vadd.f32 %v2809_v40, %v1029_v2  ;;  %v2399_v21 = vpack.c.bf16 %v3153_v5, %v3153_v5  ;;  %v810_v61 = vpop.f32.mrb[25].mxu0 }
 0x122   : > { %v2365_v22 = vpack.c.bf16 %v3155_v6, %v3155_v6  ;;  %v3170_v23 = vmax.f32 %v1102_v7, 0.0  ;;  %v3172_v32 = vmax.f32 %v1068_v10, 0.0  ;;  %1454 = vst.msk [vmem:[%s2831_s11 + $0x58] sm:$0xf] %vm1431_vm3, %v2367_v11  ;;  %v1002_v54 = vmul.f32 %v2473_v42, %v2804_v38  ;;  %v938_v11 = vpop.f32.mrb[25].mxu1 }
 0x123   : > { %3568 = vst [vmem:[#allocation7_spill] sm:$0xff] %v3161_v12  ;;  %v2397_v43 = vpack.c.bf16 %v3161_v12, %v3161_v12  ;;  %v2368_v52 = vpack.c.bf16 %v3163_v15, %v3163_v15  ;;  %v3180_v53 = vmax.f32 %v1100_v16, 0.0  ;;  %1486 = vst.msk [vmem:[%s2831_s11 + $0xd8] sm:$0xf] %vm1431_vm3, %v2399_v21  ;;  %v1034_v7 = vmul.f32 %v2505_v59, %v2804_v38  ;;  %v2474_v16 = vpop.f32.mrb[26].mxu0  ;;  %v2506_v5 = vpop.f32.mrb[26].mxu1 }
 0x124   : > { %3569 = vst [vmem:[#allocation8_spill] sm:$0xff] %v3170_v23  ;;  %1452 = vst.msk [vmem:[%s2831_s11 + $0x50] sm:$0xf] %vm1431_vm3, %v2365_v22  ;;  %v2400_v1 = vpack.c.bf16 %v3170_v23, %v3170_v23  ;;  %v2366_v2 = vpack.c.bf16 %v3172_v32, %v3172_v32  ;;  %v1000_v10 = vmul.f32 %v2804_v38, %v810_v61  ;;  %v813_v59 = vpop.f32.mrb[27].mxu0  ;;  %v941_v12 = vpop.f32.mrb[27].mxu1 }
 0x125   : > { %3570 = vst [vmem:[#allocation9_spill] sm:$0xff] %v3180_v53  ;;  %1484 = vst.msk [vmem:[%s2831_s11 + $0xd0] sm:$0xf] %vm1431_vm3, %v2397_v43  ;;  %v2398_v21 = vpack.c.bf16 %v3180_v53, %v3180_v53  ;;  %v1073_v22 = vadd.f32 %v2809_v40, %v1002_v54  ;;  %v1032_v42 = vmul.f32 %v2804_v38, %v938_v11 }
 0x126   : > { %1455 = vst.msk [vmem:[%s2831_s11 + $0x5c] sm:$0xf] %vm1431_vm3, %v2368_v52  ;;  %v1003_v23 = vmul.f32 %v2474_v16, %v2804_v38  ;;  %1487 = vst.msk [vmem:[%s2831_s11 + $0xdc] sm:$0xf] %vm1431_vm3, %v2400_v1  ;;  %v1105_v61 = vadd.f32 %v2809_v40, %v1034_v7  ;;  %v1071_v43 = vadd.f32 %v2809_v40, %v1000_v10 }
 0x127   : > { %1453 = vst.msk [vmem:[%s2831_s11 + $0x54] sm:$0xf] %vm1431_vm3, %v2366_v2  ;;  %v1035_v52 = vmul.f32 %v2506_v5, %v2804_v38  ;;  %v1001_v53 = vmul.f32 %v2804_v38, %v813_v59  ;;  %1485 = vst.msk [vmem:[%s2831_s11 + $0xd4] sm:$0xf] %vm1431_vm3, %v2398_v21  ;;  %v3212_v54 = vmax.f32 %v1073_v22, 0.0  ;;  %v1103_v11 = vadd.f32 %v2809_v40, %v1032_v42 }
 0x128   : > { %v1074_v1 = vadd.f32 %v2809_v40, %v1003_v23  ;;  %v1033_v2 = vmul.f32 %v2804_v38, %v941_v12  ;;  %v3217_v16 = vmax.f32 %v1105_v61, 0.0  ;;  %v3219_v7 = vmax.f32 %v1071_v43, 0.0  ;;  %v2477_v43 = vpop.f32.mrb[28].mxu0 }
 0x129   : > { %v1106_v5 = vadd.f32 %v2809_v40, %v1035_v52  ;;  %v1072_v10 = vadd.f32 %v2809_v40, %v1001_v53  ;;  %v2371_v21 = vpack.c.bf16 %v3212_v54, %v3212_v54  ;;  %v3225_v22 = vmax.f32 %v1103_v11, 0.0 }
 0x12a   : > { %3571 = vst [vmem:[#allocation10_spill] sm:$0xff] %v3217_v16  ;;  %v3227_v42 = vmax.f32 %v1074_v1, 0.0  ;;  %v1104_v23 = vadd.f32 %v2809_v40, %v1033_v2  ;;  %v2403_v12 = vpack.c.bf16 %v3217_v16, %v3217_v16  ;;  %v2369_v59 = vpack.c.bf16 %v3219_v7, %v3219_v7  ;;  %v2509_v16 = vpop.f32.mrb[28].mxu1 }
 0x12b   : > { %3572 = vst [vmem:[#allocation11_spill] sm:$0xff] %v3225_v22  ;;  %v3234_v61 = vmax.f32 %v1106_v5, 0.0  ;;  %v3236_v53 = vmax.f32 %v1072_v10, 0.0  ;;  %1458 = vst.msk [vmem:[%s2831_s11 + $0x68] sm:$0xf] %vm1431_vm3, %v2371_v21  ;;  %v2401_v52 = vpack.c.bf16 %v3225_v22, %v3225_v22  ;;  %v1006_v2 = vmul.f32 %v2477_v43, %v2804_v38  ;;  %v826_v5 = vpop.f32.mrb[29].mxu0 }
 0x12c   : > { %v2372_v11 = vpack.c.bf16 %v3227_v42, %v3227_v42  ;;  %v3244_v1 = vmax.f32 %v1104_v23, 0.0  ;;  %1490 = vst.msk [vmem:[%s2831_s11 + $0xe8] sm:$0xf] %vm1431_vm3, %v2403_v12  ;;  %1456 = vst.msk [vmem:[%s2831_s11 + $0x60] sm:$0xf] %vm1431_vm3, %v2369_v59  ;;  %v1038_v22 = vmul.f32 %v2509_v16, %v2804_v38  ;;  %v1004_v23 = vmul.f32 %v2804_v38, %v826_v5  ;;  %v954_v56 = vpop.f32.mrb[29].mxu1 }
 0x12d   : > { %3573 = vst [vmem:[#allocation12_spill] sm:$0xff] %v3234_v61  ;;  %v2404_v10 = vpack.c.bf16 %v3234_v61, %v3234_v61  ;;  %v2370_v21 = vpack.c.bf16 %v3236_v53, %v3236_v53  ;;  %v2478_v43 = vpop.f32.mrb[30].mxu0  ;;  %1488 = vst.msk [vmem:[%s2831_s11 + $0xe0] sm:$0xf] %vm1431_vm3, %v2401_v52  ;;  %v1077_v59 = vadd.f32 %v2809_v40, %v1006_v2  ;;  %v2510_v0 = vpop.f32.mrb[30].mxu1 }
 0x12e   : > { %3574 = vst [vmem:[#allocation13_spill] sm:$0xff] %v3244_v1  ;;  %1459 = vst.msk [vmem:[%s2831_s11 + $0x6c] sm:$0xf] %vm1431_vm3, %v2372_v11  ;;  %v2402_v12 = vpack.c.bf16 %v3244_v1, %v3244_v1  ;;  %v1036_v61 = vmul.f32 %v2804_v38, %v954_v56  ;;  %v1007_v28 = vmul.f32 %v2478_v43, %v2804_v38  ;;  %v829_v16 = vpop.f32.mrb[31].mxu0  ;;  %v957_v47 = vpop.f32.mrb[31].mxu1 }
 0x12f   : > { %1491 = vst.msk [vmem:[%s2831_s11 + $0xec] sm:$0xf] %vm1431_vm3, %v2404_v10  ;;  %1457 = vst.msk [vmem:[%s2831_s11 + $0x64] sm:$0xf] %vm1431_vm3, %v2370_v21  ;;  %v1109_v5 = vadd.f32 %v2809_v40, %v1038_v22  ;;  %v1075_v52 = vadd.f32 %v2809_v40, %v1004_v23  ;;  %v1039_v11 = vmul.f32 %v2510_v0, %v2804_v38  ;;  %v3276_v56 = vmax.f32 %v1077_v59, 0.0 }
 0x130   : > { %v1005_v1 = vmul.f32 %v2804_v38, %v829_v16  ;;  %1489 = vst.msk [vmem:[%s2831_s11 + $0xe4] sm:$0xf] %vm1431_vm3, %v2402_v12  ;;  %v1107_v2 = vadd.f32 %v2809_v40, %v1036_v61  ;;  %v1078_v10 = vadd.f32 %v2809_v40, %v1007_v28  ;;  %v1037_v21 = vmul.f32 %v2804_v38, %v957_v47 }
 0x131   : > { %v3281_v43 = vmax.f32 %v1109_v5, 0.0  ;;  %v3283_v22 = vmax.f32 %v1075_v52, 0.0  ;;  %v1110_v0 = vadd.f32 %v2809_v40, %v1039_v11  ;;  %v2375_v12 = vpack.c.bf16 %v3276_v56, %v3276_v56 }
 0x132   : > { %v1076_v23 = vadd.f32 %v2809_v40, %v1005_v1  ;;  %v3289_v59 = vmax.f32 %v1107_v2, 0.0  ;;  %v3291_v28 = vmax.f32 %v1078_v10, 0.0  ;;  %v1108_v38 = vadd.f32 %v2809_v40, %v1037_v21 }
 0x133   : > { %3575 = vst [vmem:[#allocation14_spill] sm:$0xff] %v3281_v43  ;;  %v2407_v47 = vpack.c.bf16 %v3281_v43, %v3281_v43  ;;  %v2373_v61 = vpack.c.bf16 %v3283_v22, %v3283_v22  ;;  %v3298_v1 = vmax.f32 %v1110_v0, 0.0  ;;  %1462 = vst.msk [vmem:[%s2831_s11 + $0x78] sm:$0xf] %vm1431_vm3, %v2375_v12  ;;  %1499 = sbr.rel (%p2342_p7) target bundleno = 314 (0x13a), region = 44  ;;  %v2635_v21 = vmov (!%p2342_p7), 0.0  }
 0x134   : > { %v3300_v16 = vmax.f32 %v1076_v23, 0.0  ;;  %v2405_v5 = vpack.c.bf16 %v3289_v59, %v3289_v59  ;;  %v2376_v40 = vpack.c.bf16 %v3291_v28, %v3291_v28  ;;  %v3308_v52 = vmax.f32 %v1108_v38, 0.0  ;;  %1501 = vst.msk [vmem:[%s2718_s12] sm:$0x1] (!%p2342_p7), %vm1500_vm4, %v2635_v21 }
 0x135   : > { %3576 = vst [vmem:[#allocation15_spill] sm:$0xff] %v3298_v1  ;;  %1494 = vst.msk [vmem:[%s2831_s11 + $0xf8] sm:$0xf] %vm1431_vm3, %v2407_v47  ;;  %v2408_v11 = vpack.c.bf16 %v3298_v1, %v3298_v1 }
 0x136   : > { %3577 = vst [vmem:[#allocation16_spill] sm:$0xff] %v3308_v52  ;;  %1460 = vst.msk [vmem:[%s2831_s11 + $0x70] sm:$0xf] %vm1431_vm3, %v2373_v61  ;;  %v2374_v2 = vpack.c.bf16 %v3300_v16, %v3300_v16  ;;  %v2406_v10 = vpack.c.bf16 %v3308_v52, %v3308_v52 }
 0x137   : > { %1492 = vst.msk [vmem:[%s2831_s11 + $0xf0] sm:$0xf] %vm1431_vm3, %v2405_v5  ;;  %1463 = vst.msk [vmem:[%s2831_s11 + $0x7c] sm:$0xf] %vm1431_vm3, %v2376_v40 }
 0x138   : > { %1495 = vst.msk [vmem:[%s2831_s11 + $0xfc] sm:$0xf] %vm1431_vm3, %v2408_v11  ;;  %1461 = vst.msk [vmem:[%s2831_s11 + $0x74] sm:$0xf] %vm1431_vm3, %v2374_v2 }
 0x139   : > { %1493 = vst.msk [vmem:[%s2831_s11 + $0xf4] sm:$0xf] %vm1431_vm3, %v2406_v10 }
 0x13a PF: > { %v1504_v0 = vld [vmem:[%s2735_s28 + $0x10] sm:$0xff]  ;;  %v1502_v23 = vld [vmem:[%s2735_s28] sm:$0xff]  ;;  %v2636_v12 = vmov 0   ;;  %v1505_v38 = vld [vmem:[%s2735_s28 + $0x18] sm:$0xff]  ;;  %vm1950_vm5 = vcmask 261120   ;;  %vm2086_vm6 = vcmask 253952  }
 0x13b   : > { %2593 = vset.pattern.permute.xlu1 %v2636_v12  ;;  %2592 = vset.pattern.permute.xlu0 %v2636_v12  ;;  %v1503_v47 = vld [vmem:[%s2735_s28 + $0x8] sm:$0xff]  ;;  %v1506_v5 = vld [vmem:[%s2735_s28 + $0x20] sm:$0xff]  ;;  %v1509_v40 = vld [vmem:[%s2735_s28 + $0x38] sm:$0xff] }
 0x13c   : > { %1578 = vperm.xlu1 %2593, %v1504_v0   ;;  %1568 = vperm.xlu0 %2592, %v1502_v23   ;;  %v1507_v61 = vld [vmem:[%s2735_s28 + $0x28] sm:$0xff]  ;;  %v1508_v11 = vld [vmem:[%s2735_s28 + $0x30] sm:$0xff]  ;;  %v1510_v10 = vld [vmem:[%s2735_s28 + $0x40] sm:$0xff] }
 0x13d   : > { %v1511_v2 = vld [vmem:[%s2735_s28 + $0x48] sm:$0xff]  ;;  %v1513_v21 = vld [vmem:[%s2735_s28 + $0x58] sm:$0xff]  ;;  %v1512_v0 = vld [vmem:[%s2735_s28 + $0x50] sm:$0xff] }
 0x13e   : > { %v1515_v23 = vld [vmem:[%s2735_s28 + $0x68] sm:$0xff]  ;;  %v1514_v12 = vld [vmem:[%s2735_s28 + $0x60] sm:$0xff] }
 0x140   : > { %1583 = vperm.xlu1 %2593, %v1505_v38   ;;  %1573 = vperm.xlu0 %2592, %v1503_v47   ;;  %v1517_v38 = vld [vmem:[%s2735_s28 + $0x78] sm:$0xff]  ;;  %v1516_v47 = vld [vmem:[%s2735_s28 + $0x70] sm:$0xff] }
 0x144   : > { %1593 = vperm.xlu1 %2593, %v1507_v61   ;;  %1588 = vperm.xlu0 %2592, %v1506_v5   ;;  %v1519_v61 = vld [vmem:[%s2735_s28 + $0x88] sm:$0xff]  ;;  %v1518_v5 = vld [vmem:[%s2735_s28 + $0x80] sm:$0xff] }
 0x148   : > { %1603 = vperm.xlu1 %2593, %v1509_v40   ;;  %1598 = vperm.xlu0 %2592, %v1508_v11   ;;  %v1521_v40 = vld [vmem:[%s2735_s28 + $0x98] sm:$0xff]  ;;  %v1520_v11 = vld [vmem:[%s2735_s28 + $0x90] sm:$0xff] }
 0x14c   : > { %1613 = vperm.xlu1 %2593, %v1511_v2   ;;  %1608 = vperm.xlu0 %2592, %v1510_v10   ;;  %v1523_v2 = vld [vmem:[%s2735_s28 + $0xa8] sm:$0xff]  ;;  %v1522_v10 = vld [vmem:[%s2735_s28 + $0xa0] sm:$0xff] }
 0x150   : > { %1623 = vperm.xlu1 %2593, %v1513_v21   ;;  %1618 = vperm.xlu0 %2592, %v1512_v0   ;;  %v1525_v21 = vld [vmem:[%s2735_s28 + $0xb8] sm:$0xff]  ;;  %v1524_v0 = vld [vmem:[%s2735_s28 + $0xb0] sm:$0xff] }
 0x154   : > { %1633 = vperm.xlu1 %2593, %v1515_v23   ;;  %1628 = vperm.xlu0 %2592, %v1514_v12   ;;  %v1527_v23 = vld [vmem:[%s2735_s28 + $0xc8] sm:$0xff]  ;;  %v1526_v12 = vld [vmem:[%s2735_s28 + $0xc0] sm:$0xff] }
 0x158   : > { %1643 = vperm.xlu1 %2593, %v1517_v38   ;;  %1638 = vperm.xlu0 %2592, %v1516_v47   ;;  %v1529_v38 = vld [vmem:[%s2735_s28 + $0xd8] sm:$0xff]  ;;  %v1528_v47 = vld [vmem:[%s2735_s28 + $0xd0] sm:$0xff] }
 0x15c   : > { %1653 = vperm.xlu1 %2593, %v1519_v61   ;;  %1648 = vperm.xlu0 %2592, %v1518_v5   ;;  %v1531_v61 = vld [vmem:[%s2735_s28 + $0xe8] sm:$0xff]  ;;  %v1530_v5 = vld [vmem:[%s2735_s28 + $0xe0] sm:$0xff] }
 0x160   : > { %1663 = vperm.xlu1 %2593, %v1521_v40   ;;  %1658 = vperm.xlu0 %2592, %v1520_v11   ;;  %v1533_v40 = vld [vmem:[%s2735_s28 + $0xf8] sm:$0xff]  ;;  %v1532_v11 = vld [vmem:[%s2735_s28 + $0xf0] sm:$0xff] }
 0x164   : > { %1673 = vperm.xlu1 %2593, %v1523_v2   ;;  %1668 = vperm.xlu0 %2592, %v1522_v10   ;;  %v1535_v2 = vld [vmem:[%s2735_s28 + $0x108] sm:$0xff]  ;;  %v1534_v10 = vld [vmem:[%s2735_s28 + $0x100] sm:$0xff] }
 0x168   : > { %1683 = vperm.xlu1 %2593, %v1525_v21   ;;  %1678 = vperm.xlu0 %2592, %v1524_v0   ;;  %v1537_v21 = vld [vmem:[%s2735_s28 + $0x118] sm:$0xff]  ;;  %v1536_v0 = vld [vmem:[%s2735_s28 + $0x110] sm:$0xff] }
 0x16c   : > { %1693 = vperm.xlu1 %2593, %v1527_v23   ;;  %1688 = vperm.xlu0 %2592, %v1526_v12   ;;  %v1539_v23 = vld [vmem:[%s2735_s28 + $0x128] sm:$0xff]  ;;  %v1538_v12 = vld [vmem:[%s2735_s28 + $0x120] sm:$0xff] }
 0x170   : > { %1703 = vperm.xlu1 %2593, %v1529_v38   ;;  %1698 = vperm.xlu0 %2592, %v1528_v47   ;;  %v1541_v38 = vld [vmem:[%s2735_s28 + $0x138] sm:$0xff]  ;;  %v1540_v47 = vld [vmem:[%s2735_s28 + $0x130] sm:$0xff] }
 0x174   : > { %1713 = vperm.xlu1 %2593, %v1531_v61   ;;  %1708 = vperm.xlu0 %2592, %v1530_v5   ;;  %v1543_v61 = vld [vmem:[%s2735_s28 + $0x148] sm:$0xff]  ;;  %v1542_v5 = vld [vmem:[%s2735_s28 + $0x140] sm:$0xff] }
 0x178   : > { %1723 = vperm.xlu1 %2593, %v1533_v40   ;;  %1718 = vperm.xlu0 %2592, %v1532_v11   ;;  %v1545_v40 = vld [vmem:[%s2735_s28 + $0x158] sm:$0xff]  ;;  %v1544_v11 = vld [vmem:[%s2735_s28 + $0x150] sm:$0xff] }
 0x17c   : > { %1733 = vperm.xlu1 %2593, %v1535_v2   ;;  %1728 = vperm.xlu0 %2592, %v1534_v10   ;;  %v1547_v2 = vld [vmem:[%s2735_s28 + $0x168] sm:$0xff]  ;;  %v1546_v10 = vld [vmem:[%s2735_s28 + $0x160] sm:$0xff] }
 0x180   : > { %1743 = vperm.xlu1 %2593, %v1537_v21   ;;  %1738 = vperm.xlu0 %2592, %v1536_v0   ;;  %v1549_v21 = vld [vmem:[%s2735_s28 + $0x178] sm:$0xff]  ;;  %v1548_v0 = vld [vmem:[%s2735_s28 + $0x170] sm:$0xff] }
 0x184   : > { %1753 = vperm.xlu1 %2593, %v1539_v23   ;;  %1748 = vperm.xlu0 %2592, %v1538_v12   ;;  %v1551_v23 = vld [vmem:[%s2735_s28 + $0x188] sm:$0xff]  ;;  %v1550_v12 = vld [vmem:[%s2735_s28 + $0x180] sm:$0xff] }
 0x188   : > { %1763 = vperm.xlu1 %2593, %v1541_v38   ;;  %1758 = vperm.xlu0 %2592, %v1540_v47   ;;  %v1553_v38 = vld [vmem:[%s2735_s28 + $0x198] sm:$0xff]  ;;  %v1552_v47 = vld [vmem:[%s2735_s28 + $0x190] sm:$0xff] }
 0x18c   : > { %1773 = vperm.xlu1 %2593, %v1543_v61   ;;  %1768 = vperm.xlu0 %2592, %v1542_v5   ;;  %v1555_v61 = vld [vmem:[%s2735_s28 + $0x1a8] sm:$0xff]  ;;  %v1554_v5 = vld [vmem:[%s2735_s28 + $0x1a0] sm:$0xff] }
 0x190   : > { %1783 = vperm.xlu1 %2593, %v1545_v40   ;;  %1778 = vperm.xlu0 %2592, %v1544_v11   ;;  %v1557_v40 = vld [vmem:[%s2735_s28 + $0x1b8] sm:$0xff]  ;;  %v1556_v11 = vld [vmem:[%s2735_s28 + $0x1b0] sm:$0xff] }
 0x194   : > { %1793 = vperm.xlu1 %2593, %v1547_v2   ;;  %1788 = vperm.xlu0 %2592, %v1546_v10   ;;  %v1559_v2 = vld [vmem:[%s2735_s28 + $0x1c8] sm:$0xff]  ;;  %v1558_v10 = vld [vmem:[%s2735_s28 + $0x1c0] sm:$0xff] }
 0x198   : > { %1803 = vperm.xlu1 %2593, %v1549_v21   ;;  %1798 = vperm.xlu0 %2592, %v1548_v0   ;;  %v1561_v21 = vld [vmem:[%s2735_s28 + $0x1d8] sm:$0xff]  ;;  %v1560_v0 = vld [vmem:[%s2735_s28 + $0x1d0] sm:$0xff] }
 0x19c   : > { %1813 = vperm.xlu1 %2593, %v1551_v23   ;;  %1808 = vperm.xlu0 %2592, %v1550_v12   ;;  %v1563_v23 = vld [vmem:[%s2735_s28 + $0x1e8] sm:$0xff]  ;;  %v1562_v12 = vld [vmem:[%s2735_s28 + $0x1e0] sm:$0xff] }
 0x1a0   : > { %1823 = vperm.xlu1 %2593, %v1553_v38   ;;  %1818 = vperm.xlu0 %2592, %v1552_v47   ;;  %v1565_v38 = vld [vmem:[%s2735_s28 + $0x1f8] sm:$0xff]  ;;  %v1564_v47 = vld [vmem:[%s2735_s28 + $0x1f0] sm:$0xff] }
 0x1a4   : > { %1833 = vperm.xlu1 %2593, %v1555_v61   ;;  %1828 = vperm.xlu0 %2592, %v1554_v5  }
 0x1a8   : > { %1843 = vperm.xlu1 %2593, %v1557_v40   ;;  %1838 = vperm.xlu0 %2592, %v1556_v11  }
 0x1ac   : > { %1853 = vperm.xlu1 %2593, %v1559_v2   ;;  %1848 = vperm.xlu0 %2592, %v1558_v10  }
 0x1b0   : > { %1863 = vperm.xlu1 %2593, %v1561_v21   ;;  %1858 = vperm.xlu0 %2592, %v1560_v0  }
 0x1b4   : > { %1873 = vperm.xlu1 %2593, %v1563_v23   ;;  %1868 = vperm.xlu0 %2592, %v1562_v12  }
 0x1b8   : > { %1883 = vperm.xlu1 %2593, %v1565_v38   ;;  %1878 = vperm.xlu0 %2592, %v1564_v47  }
 0x1bb   : > { %v1579_v61 = vpop.permute.xlu1 %1578  ;;  %v1569_v5 = vpop.permute.xlu0 %1568 }
 0x1bc   : > { %v1886_v40 = vmul.f32 %v1569_v5, %v2835_v63  ;;  %v1888_v10 = vmul.f32 %v1579_v61, %v2821_v58 }
 0x1be   : > { %v1951_v0 = vsel %vm1950_vm5, %v1886_v40, 0.0  ;;  %v1954_v43 = vsel %vm1950_vm5, %v1888_v10, 0.0 }
 0x1bf   : > { %v1584_v11 = vpop.permute.xlu1 %1583  ;;  %v1574_v2 = vpop.permute.xlu0 %1573 }
 0x1c0   : > { %v1887_v21 = vmul.f32 %v1574_v2, %v2852_v9  ;;  %v1889_v23 = vmul.f32 %v1584_v11, %v2843_v4 }
 0x1c2   : > { %v1952_v12 = vsel %vm1950_vm5, %v1887_v21, 0.0  ;;  %v1956_v52 = vsel %vm1950_vm5, %v1889_v23, 0.0 }
 0x1c3   : > { %v1953_v1 = vadd.f32 %v1952_v12, %v1951_v0  ;;  %v1594_v38 = vpop.permute.xlu1 %1593  ;;  %v1589_v47 = vpop.permute.xlu0 %1588 }
 0x1c4   : > { %v1890_v63 = vmul.f32 %v1589_v47, %v2899_v41  ;;  %v1891_v58 = vmul.f32 %v1594_v38, %v2916_v51 }
 0x1c5   : > { %v1955_v5 = vadd.f32 %v1954_v43, %v1953_v1 }
 0x1c6   : > { %v1958_v40 = vsel %vm1950_vm5, %v1890_v63, 0.0  ;;  %v1960_v21 = vsel %vm1950_vm5, %v1891_v58, 0.0 }
 0x1c7   : > { %v1957_v61 = vadd.f32 %v1956_v52, %v1955_v5  ;;  %v1604_v9 = vpop.permute.xlu1 %1603  ;;  %v1599_v2 = vpop.permute.xlu0 %1598 }
 0x1c8   : > { %v1892_v4 = vmul.f32 %v1599_v2, %v2892_v34  ;;  %v1893_v0 = vmul.f32 %v1604_v9, %v2907_v46 }
 0x1c9   : > { %v1959_v11 = vadd.f32 %v1958_v40, %v1957_v61 }
 0x1ca   : > { %v1962_v43 = vsel %vm1950_vm5, %v1892_v4, 0.0  ;;  %v1964_v52 = vsel %vm1950_vm5, %v1893_v0, 0.0 }
 0x1cb   : > { %v1961_v10 = vadd.f32 %v1960_v21, %v1959_v11  ;;  %v1614_v12 = vpop.permute.xlu1 %1613  ;;  %v1609_v41 = vpop.permute.xlu0 %1608 }
 0x1cc   : > { %v1894_v1 = vmul.f32 %v1609_v41, %v2963_v25  ;;  %v1895_v23 = vmul.f32 %v1614_v12, %v2980_v36 }
 0x1cd   : > { %v1963_v51 = vadd.f32 %v1962_v43, %v1961_v10 }
 0x1ce   : > { %v1966_v63 = vsel %vm1950_vm5, %v1894_v1, 0.0  ;;  %v1968_v58 = vsel %vm1950_vm5, %v1895_v23, 0.0 }
 0x1cf   : > { %v1965_v38 = vadd.f32 %v1964_v52, %v1963_v51  ;;  %v1624_v47 = vpop.permute.xlu1 %1623  ;;  %v1619_v34 = vpop.permute.xlu0 %1618 }
 0x1d0   : > { %v1896_v5 = vmul.f32 %v1619_v34, %v2956_v20  ;;  %v1897_v61 = vmul.f32 %v1624_v47, %v2971_v30 }
 0x1d1   : > { %v1967_v46 = vadd.f32 %v1966_v63, %v1965_v38 }
 0x1d2   : > { %v1970_v40 = vsel %vm1950_vm5, %v1896_v5, 0.0  ;;  %v1972_v11 = vsel %vm1950_vm5, %v1897_v61, 0.0 }
 0x1d3   : > { %v1969_v9 = vadd.f32 %v1968_v58, %v1967_v46  ;;  %v1634_v2 = vpop.permute.xlu1 %1633  ;;  %v1629_v25 = vpop.permute.xlu0 %1628 }
 0x1d4   : > { %v1898_v4 = vmul.f32 %v1629_v25, %v3027_v19  ;;  %v1899_v21 = vmul.f32 %v1634_v2, %v3044_v37 }
 0x1d5   : > { %v1971_v36 = vadd.f32 %v1970_v40, %v1969_v9 }
 0x1d6   : > { %v1974_v12 = vsel %vm1950_vm5, %v1898_v4, 0.0  ;;  %v1976_v43 = vsel %vm1950_vm5, %v1899_v21, 0.0 }
 0x1d7   : > { %v1973_v0 = vadd.f32 %v1972_v11, %v1971_v36  ;;  %v1644_v10 = vpop.permute.xlu1 %1643  ;;  %v1639_v20 = vpop.permute.xlu0 %1638 }
 0x1d8   : > { %v1900_v41 = vmul.f32 %v1639_v20, %v3020_v14  ;;  %v1901_v1 = vmul.f32 %v1644_v10, %v3035_v27 }
 0x1d9   : > { %v1975_v30 = vadd.f32 %v1974_v12, %v1973_v0 }
 0x1da   : > { %v1978_v23 = vsel %vm1950_vm5, %v1900_v41, 0.0  ;;  %v1980_v47 = vsel %vm1950_vm5, %v1901_v1, 0.0 }
 0x1db   : > { %v1977_v51 = vadd.f32 %v1976_v43, %v1975_v30  ;;  %v1654_v52 = vpop.permute.xlu1 %1653  ;;  %v1649_v19 = vpop.permute.xlu0 %1648 }
 0x1dc   : > { %v1902_v38 = vmul.f32 %v1649_v19, %v3091_v31  ;;  %v1903_v34 = vmul.f32 %v1654_v52, %v3108_v57 }
 0x1dd   : > { %v1979_v37 = vadd.f32 %v1978_v23, %v1977_v51 }
 0x1de   : > { %v1982_v46 = vsel %vm1950_vm5, %v1902_v38, 0.0  ;;  %v1984_v61 = vsel %vm1950_vm5, %v1903_v34, 0.0 }
 0x1df   : > { %v1981_v63 = vadd.f32 %v1980_v47, %v1979_v37  ;;  %v1664_v5 = vpop.permute.xlu1 %1663  ;;  %v1659_v14 = vpop.permute.xlu0 %1658 }
 0x1e0   : > { %v1904_v58 = vmul.f32 %v1659_v14, %v3084_v17  ;;  %v1905_v9 = vmul.f32 %v1664_v5, %v3099_v49 }
 0x1e1   : > { %v1983_v27 = vadd.f32 %v1982_v46, %v1981_v63 }
 0x1e2   : > { %v1986_v40 = vsel %vm1950_vm5, %v1904_v58, 0.0  ;;  %v1988_v36 = vsel %vm1950_vm5, %v1905_v9, 0.0 }
 0x1e3   : > { %v1985_v2 = vadd.f32 %v1984_v61, %v1983_v27  ;;  %v1674_v25 = vpop.permute.xlu1 %1673  ;;  %v1669_v31 = vpop.permute.xlu0 %1668 }
 0x1e4   : > { %v1906_v4 = vmul.f32 %v1669_v31, %v3155_v6  ;;  %v1907_v11 = vmul.f32 %v1674_v25, %v3172_v32 }
 0x1e5   : > { %v1987_v57 = vadd.f32 %v1986_v40, %v1985_v2 }
 0x1e6   : > { %v1990_v10 = vsel %vm1950_vm5, %v1906_v4, 0.0  ;;  %v1992_v12 = vsel %vm1950_vm5, %v1907_v11, 0.0 }
 0x1e7   : > { %v1989_v21 = vadd.f32 %v1988_v36, %v1987_v57  ;;  %v1684_v0 = vpop.permute.xlu1 %1683  ;;  %v1679_v17 = vpop.permute.xlu0 %1678 }
 0x1e8   : > { %v1908_v20 = vmul.f32 %v1679_v17, %v3148_v60  ;;  %v1909_v41 = vmul.f32 %v1684_v0, %v3163_v15 }
 0x1e9   : > { %v1991_v49 = vadd.f32 %v1990_v10, %v1989_v21 }
 0x1ea   : > { %v1994_v1 = vsel %vm1950_vm5, %v1908_v20, 0.0  ;;  %v1996_v52 = vsel %vm1950_vm5, %v1909_v41, 0.0 }
 0x1eb   : > { %v1993_v30 = vadd.f32 %v1992_v12, %v1991_v49  ;;  %v1694_v43 = vpop.permute.xlu1 %1693  ;;  %v1689_v6 = vpop.permute.xlu0 %1688 }
 0x1ec   : > { %v1910_v51 = vmul.f32 %v1689_v6, %v3219_v7  ;;  %v1911_v19 = vmul.f32 %v1694_v43, %v3236_v53 }
 0x1ed   : > { %v1995_v32 = vadd.f32 %v1994_v1, %v1993_v30 }
 0x1ee   : > { %v1998_v37 = vsel %vm1950_vm5, %v1910_v51, 0.0  ;;  %v2000_v34 = vsel %vm1950_vm5, %v1911_v19, 0.0 }
 0x1ef   : > { %v1997_v23 = vadd.f32 %v1996_v52, %v1995_v32  ;;  %v1704_v38 = vpop.permute.xlu1 %1703  ;;  %v1699_v60 = vpop.permute.xlu0 %1698 }
 0x1f0   : > { %v1912_v47 = vmul.f32 %v1699_v60, %v3212_v54  ;;  %v1913_v63 = vmul.f32 %v1704_v38, %v3227_v42 }
 0x1f1   : > { %v1999_v15 = vadd.f32 %v1998_v37, %v1997_v23 }
 0x1f2   : > { %v2002_v46 = vsel %vm1950_vm5, %v1912_v47, 0.0  ;;  %v2004_v27 = vsel %vm1950_vm5, %v1913_v63, 0.0 }
 0x1f3   : > { %v2001_v5 = vadd.f32 %v2000_v34, %v1999_v15  ;;  %v1714_v14 = vpop.permute.xlu1 %1713  ;;  %v1709_v7 = vpop.permute.xlu0 %1708 }
 0x1f4   : > { %v1914_v58 = vmul.f32 %v1709_v7, %v3283_v22  ;;  %v1915_v61 = vmul.f32 %v1714_v14, %v3300_v16 }
 0x1f5   : > { %v2003_v53 = vadd.f32 %v2002_v46, %v2001_v5 }
 0x1f6   : > { %v2006_v25 = vsel %vm1950_vm5, %v1914_v58, 0.0  ;;  %v2008_v40 = vsel %vm1950_vm5, %v1915_v61, 0.0 }
 0x1f7   : > { %v2005_v9 = vadd.f32 %v2004_v27, %v2003_v53  ;;  %v1724_v2 = vpop.permute.xlu1 %1723  ;;  %v1719_v54 = vpop.permute.xlu0 %1718 }
 0x1f8   : > { %v1916_v31 = vmul.f32 %v1719_v54, %v3276_v56  ;;  %v1917_v4 = vmul.f32 %v1724_v2, %v3291_v28 }
 0x1f9   : > { %v2007_v42 = vadd.f32 %v2006_v25, %v2005_v9 }
 0x1fa   : > { %v2010_v11 = vsel %vm1950_vm5, %v1916_v31, 0.0  ;;  %v2012_v0 = vsel %vm1950_vm5, %v1917_v4, 0.0 }
 0x1fb   : > { %v2009_v57 = vadd.f32 %v2008_v40, %v2007_v42  ;;  %v1734_v36 = vpop.permute.xlu1 %1733  ;;  %v1729_v22 = vpop.permute.xlu0 %1728 }
 0x1fc   : > { %v1918_v21 = vmul.f32 %v1729_v22, %v2841_v3  ;;  %v1919_v17 = vmul.f32 %v1734_v36, %v2860_v13 }
 0x1fd   : > { %v2011_v16 = vadd.f32 %v2010_v11, %v2009_v57 }
 0x1fe   : > { %v2014_v49 = vsel %vm1950_vm5, %v1918_v21, 0.0  ;;  %v2016_v41 = vsel %vm1950_vm5, %v1919_v17, 0.0 }
 0x1ff   : > { %v2013_v10 = vadd.f32 %v2012_v0, %v2011_v16  ;;  %v1744_v20 = vpop.permute.xlu1 %1743  ;;  %v1739_v56 = vpop.permute.xlu0 %1738 }
 0x200   : > { %v1920_v12 = vmul.f32 %v1739_v56, %v2833_v62  ;;  %v1921_v30 = vmul.f32 %v1744_v20, %v2850_v8 }
 0x201   : > { %v2015_v28 = vadd.f32 %v2014_v49, %v2013_v10  ;;  %v3578_v10 = vld [vmem:[#allocation3_spill] sm:$0xff]  ;;  %v3579_v49 = vld [vmem:[#allocation5_spill] sm:$0xff] }
 0x202   : > { %v2018_v1 = vsel %vm1950_vm5, %v1920_v12, 0.0  ;;  %v2020_v32 = vsel %vm1950_vm5, %v1921_v30, 0.0 }
 0x203   : > { %v2017_v43 = vadd.f32 %v2016_v41, %v2015_v28  ;;  %v1754_v6 = vpop.permute.xlu1 %1753  ;;  %v1749_v3 = vpop.permute.xlu0 %1748 }
 0x204   : > { %v1922_v51 = vmul.f32 %v1749_v3, %v2905_v45  ;;  %v1923_v52 = vmul.f32 %v1754_v6, %v2924_v55 }
 0x205   : > { %v2019_v13 = vadd.f32 %v2018_v1, %v2017_v43  ;;  %v3580_v43 = vld [vmem:[#allocation2_spill] sm:$0xff]  ;;  %v3581_v1 = vld [vmem:[#allocation4_spill] sm:$0xff] }
 0x206   : > { %v2022_v38 = vsel %vm1950_vm5, %v1922_v51, 0.0  ;;  %v2024_v37 = vsel %vm1950_vm5, %v1923_v52, 0.0 }
 0x207   : > { %v2021_v19 = vadd.f32 %v2020_v32, %v2019_v13  ;;  %v1764_v23 = vpop.permute.xlu1 %1763  ;;  %v1759_v62 = vpop.permute.xlu0 %1758 }
 0x208   : > { %v1924_v60 = vmul.f32 %v1759_v62, %v2897_v39  ;;  %v1925_v47 = vmul.f32 %v1764_v23, %v2914_v50  ;;  %v3582_v23 = vld [vmem:[#allocation7_spill] sm:$0xff] }
 0x209   : > { %v2023_v8 = vadd.f32 %v2022_v38, %v2021_v19 }
 0x20a   : > { %v2026_v63 = vsel %vm1950_vm5, %v1924_v60, 0.0  ;;  %v2028_v14 = vsel %vm1950_vm5, %v1925_v47, 0.0 }
 0x20b   : > { %v2025_v15 = vadd.f32 %v2024_v37, %v2023_v8  ;;  %v1774_v34 = vpop.permute.xlu1 %1773  ;;  %v1769_v45 = vpop.permute.xlu0 %1768  ;;  %v3583_v8 = vld [vmem:[#allocation9_spill] sm:$0xff] }
 0x20c   : > { %v1926_v5 = vmul.f32 %v1769_v45, %v2969_v29  ;;  %v1927_v7 = vmul.f32 %v1774_v34, %v2988_v44 }
 0x20d   : > { %v2027_v55 = vadd.f32 %v2026_v63, %v2025_v15  ;;  %v3584_v63 = vld [vmem:[#allocation6_spill] sm:$0xff] }
 0x20e   : > { %v2030_v53 = vsel %vm1950_vm5, %v1926_v5, 0.0  ;;  %v2032_v61 = vsel %vm1950_vm5, %v1927_v7, 0.0  ;;  %v3585_v7 = vld [vmem:[#allocation8_spill] sm:$0xff] }
 0x20f   : > { %v2029_v46 = vadd.f32 %v2028_v14, %v2027_v55  ;;  %v1784_v58 = vpop.permute.xlu1 %1783  ;;  %v1779_v39 = vpop.permute.xlu0 %1778 }
 0x210   : > { %v1928_v27 = vmul.f32 %v1779_v39, %v2961_v24  ;;  %v1929_v9 = vmul.f32 %v1784_v58, %v2978_v35 }
 0x211   : > { %v2031_v50 = vadd.f32 %v2030_v53, %v2029_v46 }
 0x212   : > { %v2034_v25 = vsel %vm1950_vm5, %v1928_v27, 0.0  ;;  %v2036_v42 = vsel %vm1950_vm5, %v1929_v9, 0.0 }
 0x213   : > { %v2033_v2 = vadd.f32 %v2032_v61, %v2031_v50  ;;  %v1794_v54 = vpop.permute.xlu1 %1793  ;;  %v1789_v29 = vpop.permute.xlu0 %1788  ;;  %v3586_v50 = vld [vmem:[#allocation11_spill] sm:$0xff] }
 0x214   : > { %v1930_v31 = vmul.f32 %v1789_v29, %v3033_v26  ;;  %v1931_v40 = vmul.f32 %v1794_v54, %v3052_v48  ;;  %v3587_v54 = vld [vmem:[#allocation13_spill] sm:$0xff] }
 0x215   : > { %v2035_v44 = vadd.f32 %v2034_v25, %v2033_v2 }
 0x216   : > { %v2038_v36 = vsel %vm1950_vm5, %v1930_v31, 0.0  ;;  %v2040_v11 = vsel %vm1950_vm5, %v1931_v40, 0.0  ;;  %v3588_v40 = vld [vmem:[#allocation10_spill] sm:$0xff] }
 0x217   : > { %v2037_v4 = vadd.f32 %v2036_v42, %v2035_v44  ;;  %v1804_v57 = vpop.permute.xlu1 %1803  ;;  %v1799_v24 = vpop.permute.xlu0 %1798 }
 0x218   : > { %v1932_v22 = vmul.f32 %v1799_v24, %v3025_v18  ;;  %v1933_v21 = vmul.f32 %v1804_v57, %v3042_v33 }
 0x219   : > { %v2039_v35 = vadd.f32 %v2038_v36, %v2037_v4  ;;  %v3589_v36 = vld [vmem:[#allocation12_spill] sm:$0xff] }
 0x21a   : > { %v2042_v17 = vsel %vm1950_vm5, %v1932_v22, 0.0  ;;  %v2044_v56 = vsel %vm1950_vm5, %v1933_v21, 0.0 }
 0x21b   : > { %v2041_v16 = vadd.f32 %v2040_v11, %v2039_v35  ;;  %v1814_v0 = vpop.permute.xlu1 %1813  ;;  %v1809_v26 = vpop.permute.xlu0 %1808 }
 0x21c   : > { %v1934_v20 = vmul.f32 %v1809_v26, %v3578_v10  ;;  %v1935_v12 = vmul.f32 %v1814_v0, %v3579_v49  ;;  %v3590_v10 = vld [vmem:[#allocation16_spill] sm:$0xff] }
 0x21d   : > { %v2043_v48 = vadd.f32 %v2042_v17, %v2041_v16 }
 0x21e   : > { %v2046_v30 = vsel %vm1950_vm5, %v1934_v20, 0.0  ;;  %v2048_v3 = vsel %vm1950_vm5, %v1935_v12, 0.0 }
 0x21f   : > { %v2045_v28 = vadd.f32 %v2044_v56, %v2043_v48  ;;  %v1824_v41 = vpop.permute.xlu1 %1823  ;;  %v1819_v18 = vpop.permute.xlu0 %1818 }
 0x220   : > { %v1936_v6 = vmul.f32 %v1819_v18, %v3580_v43  ;;  %v1937_v51 = vmul.f32 %v1824_v41, %v3581_v1  ;;  %v3592_v43 = vld [vmem:[#allocation15_spill] sm:$0xff] }
 0x221   : > { %v2047_v33 = vadd.f32 %v2046_v30, %v2045_v28  ;;  %v3591_v28 = vld [vmem:[#allocation14_spill] sm:$0xff] }
 0x222   : > { %v2050_v19 = vsel %vm1950_vm5, %v1936_v6, 0.0  ;;  %v2052_v60 = vsel %vm1950_vm5, %v1937_v51, 0.0 }
 0x223   : > { %v2049_v13 = vadd.f32 %v2048_v3, %v2047_v33  ;;  %v1834_v32 = vpop.permute.xlu1 %1833  ;;  %v1829_v52 = vpop.permute.xlu0 %1828 }
 0x224   : > { %v1938_v62 = vmul.f32 %v1829_v52, %v3582_v23  ;;  %v1939_v37 = vmul.f32 %v1834_v32, %v3583_v8 }
 0x225   : > { %v2051_v38 = vadd.f32 %v2050_v19, %v2049_v13 }
 0x226   : > { %v2054_v45 = vsel %vm1950_vm5, %v1938_v62, 0.0  ;;  %v2056_v14 = vsel %vm1950_vm5, %v1939_v37, 0.0  ;;  %v2084_v62 = vld [vmem:[%s2718_s12] sm:$0x1] }
 0x227   : > { %v2053_v47 = vadd.f32 %v2052_v60, %v2051_v38  ;;  %v1844_v15 = vpop.permute.xlu1 %1843  ;;  %v1839_v34 = vpop.permute.xlu0 %1838 }
 0x228   : > { %v1940_v5 = vmul.f32 %v1839_v34, %v3584_v63  ;;  %v1941_v46 = vmul.f32 %v1844_v15, %v3585_v7 }
 0x229   : > { %v2055_v55 = vadd.f32 %v2054_v45, %v2053_v47 }
 0x22a   : > { %v2058_v27 = vsel %vm1950_vm5, %v1940_v5, 0.0  ;;  %v2060_v2 = vsel %vm1950_vm5, %v1941_v46, 0.0 }
 0x22b   : > { %v2057_v58 = vadd.f32 %v2056_v14, %v2055_v55  ;;  %v1854_v39 = vpop.permute.xlu1 %1853  ;;  %v1849_v53 = vpop.permute.xlu0 %1848 }
 0x22c   : > { %v1942_v61 = vmul.f32 %v1849_v53, %v3586_v50  ;;  %v1943_v29 = vmul.f32 %v1854_v39, %v3587_v54 }
 0x22d   : > { %v2059_v9 = vadd.f32 %v2058_v27, %v2057_v58 }
 0x22e   : > { %v2062_v42 = vsel %vm1950_vm5, %v1942_v61, 0.0  ;;  %v2064_v24 = vsel %vm1950_vm5, %v1943_v29, 0.0 }
 0x22f   : > { %v2061_v25 = vadd.f32 %v2060_v2, %v2059_v9  ;;  %v1864_v31 = vpop.permute.xlu1 %1863  ;;  %v1859_v44 = vpop.permute.xlu0 %1858 }
 0x230   : > { %v1944_v4 = vmul.f32 %v1859_v44, %v3588_v40  ;;  %v1945_v22 = vmul.f32 %v1864_v31, %v3589_v36 }
 0x231   : > { %v2063_v57 = vadd.f32 %v2062_v42, %v2061_v25 }
 0x232   : > { %v2066_v16 = vsel %vm1950_vm5, %v1944_v4, 0.0  ;;  %v2068_v17 = vsel %vm1950_vm5, %v1945_v22, 0.0 }
 0x233   : > { %v2065_v35 = vadd.f32 %v2064_v24, %v2063_v57  ;;  %v1874_v11 = vpop.permute.xlu1 %1873  ;;  %v1869_v21 = vpop.permute.xlu0 %1868 }
 0x234   : > { %v1946_v0 = vmul.f32 %v1869_v21, %v3289_v59  ;;  %v1947_v20 = vmul.f32 %v1874_v11, %v3590_v10 }
 0x235   : > { %v2067_v26 = vadd.f32 %v2066_v16, %v2065_v35 }
 0x236   : > { %v2070_v12 = vsel %vm1950_vm5, %v1946_v0, 0.0  ;;  %v2072_v30 = vsel %vm1950_vm5, %v1947_v20, 0.0 }
 0x237   : > { %v2069_v48 = vadd.f32 %v2068_v17, %v2067_v26  ;;  %v1884_v56 = vpop.permute.xlu1 %1883  ;;  %v1879_v49 = vpop.permute.xlu0 %1878 }
 0x238   : > { %v1948_v41 = vmul.f32 %v1879_v49, %v3591_v28  ;;  %v1949_v6 = vmul.f32 %v1884_v56, %v3592_v43 }
 0x239   : > { %v2071_v18 = vadd.f32 %v2070_v12, %v2069_v48 }
 0x23a   : > { %v2074_v33 = vsel %vm1950_vm5, %v1948_v41, 0.0  ;;  %v2076_v1 = vsel %vm1950_vm5, %v1949_v6, 0.0 }
 0x23b   : > { %v2073_v59 = vadd.f32 %v2072_v30, %v2071_v18 }
 0x23d   : > { %v2075_v3 = vadd.f32 %v2074_v33, %v2073_v59 }
 0x23f   : > { %v2077_v51 = vadd.f32 %v2076_v1, %v2075_v3 }
 0x241   : > { %v2078_v13 = vrot.slane %v2077_v51, 4 }
 0x243   : > { %v2079_v32 = vadd.f32 %v2078_v13, %v2077_v51 }
 0x245   : > { %v2080_v52 = vrot.slane %v2079_v32, 2 }
 0x247   : > { %v2081_v19 = vadd.f32 %v2080_v52, %v2079_v32 }
 0x249   : > { %v2082_v23 = vrot.slane %v2081_v19, 1 }
 0x24b   : > { %v2083_v38 = vadd.f32 %v2082_v23, %v2081_v19 }
 0x24d   : > { %v2085_v60 = vadd.f32 %v2084_v62, %v2083_v38 }
 0x24f   : > { %2087 = vst.msk [vmem:[%s2718_s12] sm:$0x1] %vm2086_vm6, %v2085_v60 }
 0x250 PF: > { %s17_s25 = sadd.s32 1, %s2632_s25   ;;  %s3593_s21 = smov %s2624_s23 }
 0x251   : > { %p14_p8 = scmp.ge.s32.totalorder %s17_s25, 14   ;;  %s3594_s22 = smov %s2628_s24 }
 0x252   : > { %s3595_s23 = smov %s3598_s26  ;;  %s3596_s24 = smov %s3602_s27 }
 0x253   :  { %16 = sbr.rel (!%p14_p8) target bundleno = 3 (0x3), region = 89 }

// kernel: prun_forward.5
= control target key start
LH: loop header
LB: loop body
LE: loop exit
PB: predicated region body
PF: predicated region fallthrough
CT: control target
= control target key end

     0   :  { %s3278_s15 = smov 0   ;;  %s3935_s0 = inlined_call_operand.vmem [shape: bf16[1536,864], index: 0, kind: input, shape index: {}]   ;;  %s3936_s1 = inlined_call_operand.vmem [shape: bf16[864,64], index: 1, kind: input, shape index: {}]   ;;  %s3937_s2 = inlined_call_operand.vmem [shape: f32[1,64], index: 2, kind: input, shape index: {}]   ;;  %s3938_s3 = inlined_call_operand.vmem [shape: f32[1,64], index: 3, kind: input, shape index: {}]   ;;  %s3939_s4 = inlined_call_operand.vmem [shape: bf16[1536,64], index: 4, kind: output, shape index: {}]  }
   0x1 LB: > { %s2345_s16 = sadd.s32 4294967295, %s3251_s15   ;;  %p2349_p0 = scmp.ge.s32.totalorder %s3251_s15, 1  ;;  %s3251_s15 = sphi %s3278_s15, %s14_s15  }
   0x2   : > { %p164_p1 = scmp.lt.s32.totalorder %s3251_s15, 7 }
   0x4   : > { %p165_p2 = pnand %p2349_p0, %p164_p1 }
   0x5   : > { %v3031_v0 = vld [vmem:[%s3936_s1 + $0x40] sm:$0xff] (!%p165_p2)   ;;  %s2350_s19 = sshll.u32 (!%p165_p2), %s2345_s16, 5  ;;  %v3033_v2 = vld [vmem:[%s3936_s1 + $0x48] sm:$0xff] (!%p165_p2)   ;;  %v3035_v4 = vld [vmem:[%s3936_s1 + $0x50] sm:$0xff] (!%p165_p2)   ;;  %vm1325_vm0 = vcmask (!%p165_p2), 785408   ;;  %vm2256_vm1 = vcmask (!%p165_p2), 519168  }
   0x6   : > { %168 = sbr.rel (%p165_p2) target bundleno = 484 (0x1e4), region = 36  ;;  %v3032_v1 = vld [vmem:[%s3936_s1] sm:$0xff] (!%p165_p2)   ;;  %2604 = vmatprep.subr.bf16.mxu0 (!%p165_p2), %v3031_v0  ;;  %3006 = vmatprep.subr.bf16.mxu1 (!%p165_p2), %v3031_v0  ;;  %p192_p3 = scmp.lt.s32.totalorder (!%p165_p2), %s2350_s19, 191  ;;  %v3034_v3 = vld [vmem:[%s3936_s1 + $0x8] sm:$0xff] (!%p165_p2)   ;;  %v3036_v5 = vld [vmem:[%s3936_s1 + $0x10] sm:$0xff] (!%p165_p2)  }
   0x7   : > { %2605 = vmatpush3.bf16.msra.mxu0 (!%p165_p2), %v3032_v1  ;;  %3014 = vmatpush3.bf16.msra.mxu1 (!%p165_p2), %v3032_v1  ;;  %v3037_v6 = vld [vmem:[%s3936_s1 + $0x58] sm:$0xff] (!%p165_p2)   ;;  %v3039_v8 = vld [vmem:[%s3936_s1 + $0x60] sm:$0xff] (!%p165_p2)   ;;  %v3041_v10 = vld [vmem:[%s3936_s1 + $0x68] sm:$0xff] (!%p165_p2)  }
   0x8   : > { %2606 = vmatprep.subr.bf16.mxu0 (!%p165_p2), %v3033_v2  ;;  %3007 = vmatprep.subr.bf16.mxu1 (!%p165_p2), %v3033_v2  ;;  %v3038_v7 = vld [vmem:[%s3936_s1 + $0x18] sm:$0xff] (!%p165_p2)   ;;  %v3040_v9 = vld [vmem:[%s3936_s1 + $0x20] sm:$0xff] (!%p165_p2)   ;;  %v3042_v13 = vld [vmem:[%s3936_s1 + $0x28] sm:$0xff] (!%p165_p2)  }
   0x9   : > { %v3043_v14 = vld [vmem:[%s3936_s1 + $0x70] sm:$0xff] (!%p165_p2)   ;;  %v3045_v16 = vld [vmem:[%s3936_s1 + $0x78] sm:$0xff] (!%p165_p2)   ;;  %v3053_v18 = vld [vmem:[%s3936_s1 + $0xc0] sm:$0xff] (!%p165_p2)  }
   0xa   : > { %v3044_v15 = vld [vmem:[%s3936_s1 + $0x30] sm:$0xff] (!%p165_p2)   ;;  %v3046_v17 = vld [vmem:[%s3936_s1 + $0x38] sm:$0xff] (!%p165_p2)   ;;  %v3054_v21 = vld [vmem:[%s3936_s1 + $0x140] sm:$0xff] (!%p165_p2)  }
   0xb   : > { %2607 = vmatpush3.bf16.msra.mxu0 (!%p165_p2), %v3034_v3  ;;  %3015 = vmatpush3.bf16.msra.mxu1 (!%p165_p2), %v3034_v3  ;;  %v3055_v22 = vld [vmem:[%s3936_s1 + $0x80] sm:$0xff] (!%p165_p2)   ;;  %v3057_v24 = vld [vmem:[%s3936_s1 + $0xc8] sm:$0xff] (!%p165_p2)   ;;  %v3065_v32 = vld [vmem:[%s3936_s1 + $0xd0] sm:$0xff] (!%p165_p2)  }
   0xc   : > { %2608 = vmatprep.subr.bf16.mxu0 (!%p165_p2), %v3035_v4  ;;  %3008 = vmatprep.subr.bf16.mxu1 (!%p165_p2), %v3035_v4  ;;  %v3056_v23 = vld [vmem:[%s3936_s1 + $0x100] sm:$0xff] (!%p165_p2)   ;;  %v3068_v27 = vld [vmem:[%s3936_s1 + $0x148] sm:$0xff] (!%p165_p2)   ;;  %v3066_v33 = vld [vmem:[%s3936_s1 + $0x90] sm:$0xff] (!%p165_p2)  }
   0xd   : > { %s3941_s19 = smov (!%p192_p3, %s2350_s19), 191  ;;  %v3058_v28 = vld [vmem:[%s3936_s1 + $0x88] sm:$0xff]   ;;  %v3067_v34 = vld [vmem:[%s3936_s1 + $0xd8] sm:$0xff]   ;;  %v3077_v38 = vld [vmem:[%s3936_s1 + $0xe0] sm:$0xff]  }
   0xe   : > { %s3022_s6 = smul.u32 28, %s3941_s19  ;;  %v3070_v29 = vld [vmem:[%s3936_s1 + $0x108] sm:$0xff]   ;;  %v3069_v37 = vld [vmem:[%s3936_s1 + $0x98] sm:$0xff]   ;;  %v3088_v41 = vld [vmem:[%s3936_s1 + $0x150] sm:$0xff]   ;;  %s2353_s16 = sshll.u32 %s3941_s19, 2 }
   0xf   : > { %2609 = vmatpush3.bf16.msra.mxu0 %v3036_v5  ;;  %3016 = vmatpush3.bf16.msra.mxu1 %v3036_v5  ;;  %v3078_v42 = vld [vmem:[%s3936_s1 + $0xa0] sm:$0xff]   ;;  %v3079_v43 = vld [vmem:[%s3936_s1 + $0xe8] sm:$0xff]   ;;  %v3090_v44 = vld [vmem:[%s3936_s1 + $0x110] sm:$0xff]   ;;  %s3766_s20 = scalar_lea.vmem %s3939_s4, %s2353_s16 }
  0x10   : > { %2610 = vmatprep.subr.bf16.mxu0 %v3037_v6  ;;  %3009 = vmatprep.subr.bf16.mxu1 %v3037_v6  ;;  %s3319_s13 = scalar_lea.vmem %s3935_s0, %s3022_s6  ;;  %v3080_v47 = vld [vmem:[%s3936_s1 + $0xa8] sm:$0xff]   ;;  %v3087_v48 = vld [vmem:[%s3936_s1 + $0xf0] sm:$0xff]   ;;  %v3099_v51 = vld [vmem:[%s3936_s1 + $0x158] sm:$0xff]  }
  0x11   : > { %v3049_v11 = vld [vmem:[%s3319_s13 + $0x4] ss:$28 sps:$4 sm:$0xff]   ;;  %v3059_v25 = vld [vmem:[%s3319_s13 + $0x3c] ss:$28 sps:$4 sm:$0xff]   ;;  %v3071_v35 = vld [vmem:[%s3319_s13 + $0x74] ss:$28 sps:$4 sm:$0xff]  }
  0x12   : > { %v3052_v12 = vld [vmem:[%s3319_s13 + $0x2a4] ss:$28 sps:$4 sm:$0xff]   ;;  %1406 = vmatprep.mubr.bf16.mxu0 %v3049_v11  ;;  %v3061_v26 = vld [vmem:[%s3319_s13 + $0x2dc] ss:$28 sps:$4 sm:$0xff]   ;;  %v3073_v36 = vld [vmem:[%s3319_s13 + $0x314] ss:$28 sps:$4 sm:$0xff]  }
  0x13   : > { %2611 = vmatpush3.bf16.msra.mxu0 %v3038_v7  ;;  %3017 = vmatpush3.bf16.msra.mxu1 %v3038_v7  ;;  %v3047_v19 = vld [vmem:[%s3319_s13] ss:$28 sps:$4 sm:$0xff]   ;;  %v3063_v30 = vld [vmem:[%s3319_s13 + $0x38] ss:$28 sps:$4 sm:$0xff]   ;;  %v3075_v39 = vld [vmem:[%s3319_s13 + $0x70] ss:$28 sps:$4 sm:$0xff]  }
  0x14   : > { %2612 = vmatprep.subr.bf16.mxu0 %v3039_v8  ;;  %3010 = vmatprep.subr.bf16.mxu1 %v3039_v8  ;;  %v3050_v20 = vld [vmem:[%s3319_s13 + $0x2a0] ss:$28 sps:$4 sm:$0xff]   ;;  %v3064_v31 = vld [vmem:[%s3319_s13 + $0x2d8] ss:$28 sps:$4 sm:$0xff]   ;;  %v3076_v40 = vld [vmem:[%s3319_s13 + $0x310] ss:$28 sps:$4 sm:$0xff]  }
  0x15   : > { %1502 = vmatprep.mubr.bf16.mxu1 %v3052_v12  ;;  %v3081_v45 = vld [vmem:[%s3319_s13 + $0xac] ss:$28 sps:$4 sm:$0xff]   ;;  %v3089_v52 = vld [vmem:[%s3936_s1 + $0xb0] sm:$0xff]   ;;  %v3101_v53 = vld [vmem:[%s3936_s1 + $0x118] sm:$0xff]  }
  0x16   : > { %v3083_v46 = vld [vmem:[%s3319_s13 + $0x34c] ss:$28 sps:$4 sm:$0xff]   ;;  %v3093_v54 = vld [vmem:[%s3319_s13 + $0xe4] ss:$28 sps:$4 sm:$0xff]   ;;  %v3091_v55 = vld [vmem:[%s3936_s1 + $0xf8] sm:$0xff]  }
  0x17   : > { %2613 = vmatpush3.bf16.msra.mxu0 %v3040_v9  ;;  %3018 = vmatpush3.bf16.msra.mxu1 %v3040_v9  ;;  %v3085_v49 = vld [vmem:[%s3319_s13 + $0xa8] ss:$28 sps:$4 sm:$0xff]   ;;  %v3092_v57 = vld [vmem:[%s3936_s1 + $0xb8] sm:$0xff]   ;;  %v3108_v6 = vld [vmem:[%s3319_s13 + $0x154] ss:$28 sps:$4 sm:$0xff]  }
  0x18   : > { %2614 = vmatprep.subr.bf16.mxu0 %v3041_v10  ;;  %3011 = vmatprep.subr.bf16.mxu1 %v3041_v10  ;;  %v3086_v50 = vld [vmem:[%s3319_s13 + $0x348] ss:$28 sps:$4 sm:$0xff]   ;;  %v3098_v62 = vld [vmem:[%s3319_s13 + $0xe0] ss:$28 sps:$4 sm:$0xff]   ;;  %v3106_v4 = vld [vmem:[%s3319_s13 + $0x118] ss:$28 sps:$4 sm:$0xff]  }
  0x19   : > { %v3097_v56 = vld [vmem:[%s3319_s13 + $0xc] ss:$28 sps:$4 sm:$0xff]   ;;  %v3100_v58 = vld [vmem:[%s3936_s1 + $0x180] sm:$0xff]   ;;  %v3102_v63 = vld [vmem:[%s3319_s13 + $0x11c] ss:$28 sps:$4 sm:$0xff]  }
  0x1a   : > { %v3095_v59 = vld [vmem:[%s3319_s13 + $0x8] ss:$28 sps:$4 sm:$0xff]   ;;  %v3107_v5 = vld [vmem:[%s3319_s13 + $0x40] ss:$28 sps:$4 sm:$0xff]   ;;  %v3137_v8 = vld [vmem:[%s3936_s1 + $0x170] sm:$0xff]  }
  0x1b   : > { %2615 = vmatpush3.bf16.msra.mxu0 %v3042_v13  ;;  %3019 = vmatpush3.bf16.msra.mxu1 %v3042_v13  ;;  %v3114_v60 = vld [vmem:[%s3936_s1 + $0x160] sm:$0xff]   ;;  %v3122_v1 = vld [vmem:[%s3936_s1 + $0x188] sm:$0xff]   ;;  %v3110_v7 = vld [vmem:[%s3319_s13 + $0x7c] ss:$28 sps:$4 sm:$0xff]  }
  0x1c   : > { %2616 = vmatprep.subr.bf16.mxu0 %v3043_v14  ;;  %3012 = vmatprep.subr.bf16.mxu1 %v3043_v14  ;;  %v3115_v61 = vld [vmem:[%s3936_s1 + $0x120] sm:$0xff]   ;;  %v3123_v2 = vld [vmem:[%s3936_s1 + $0x168] sm:$0xff]   ;;  %v3138_v9 = vld [vmem:[%s3936_s1 + $0x130] sm:$0xff]  }
  0x1d   : > { %v3104_v0 = vld [vmem:[%s3319_s13 + $0x44] ss:$28 sps:$4 sm:$0xff]   ;;  %v3124_v3 = vld [vmem:[%s3936_s1 + $0x128] sm:$0xff]   ;;  %v3113_v11 = vld [vmem:[%s3319_s13 + $0x78] ss:$28 sps:$4 sm:$0xff]  }
  0x1e   : > { %v3112_v10 = vld [vmem:[%s3319_s13 + $0x150] ss:$28 sps:$4 sm:$0xff]  }
  0x1f   : > { %2617 = vmatpush3.bf16.msra.mxu0 %v3044_v15  ;;  %3020 = vmatpush3.bf16.msra.mxu1 %v3044_v15  ;;  %v3116_v12 = vld [vmem:[%s3319_s13 + $0x18c] ss:$28 sps:$4 sm:$0xff]   ;;  %v3143_v13 = vld [vmem:[%s3936_s1 + $0x190] sm:$0xff]   ;;  %v3146_v15 = vld [vmem:[%s3936_s1 + $0x178] sm:$0xff]  }
  0x20   : > { %2618 = vmatprep.subr.bf16.mxu0 %v3045_v16  ;;  %3013 = vmatprep.subr.bf16.mxu1 %v3045_v16  ;;  %v3118_v14 = vld [vmem:[%s3319_s13 + $0xb4] ss:$28 sps:$4 sm:$0xff]   ;;  %v3147_v16 = vld [vmem:[%s3936_s1 + $0x138] sm:$0xff]  }
  0x23   : > { %2619 = vmatpush3.bf16.msra.mxu0 %v3046_v17  ;;  %3021 = vmatpush3.bf16.msra.mxu1 %v3046_v17  ;;  %v3120_v17 = vld [vmem:[%s3319_s13 + $0x188] ss:$28 sps:$4 sm:$0xff]  }
  0x24   : > { %2716 = vmatprep.subr.bf16.mxu1 %v3053_v18  ;;  %2828 = vmatprep.subr.bf16.mxu0 %v3054_v21  ;;  %v3121_v18 = vld [vmem:[%s3319_s13 + $0xb0] ss:$28 sps:$4 sm:$0xff]  }
  0x25   : > { %v3127_v21 = vld [vmem:[%s3319_s13 + $0xec] ss:$28 sps:$4 sm:$0xff]  }
  0x26   : > { %1407 = vmatmul.mubr.bf16.vlgmr.msra.gmra.mrb[0].mxu0 %v3047_v19  ;;  %1503 = vmatmul.mubr.bf16.vlgmr.msra.gmra.mrb[0].mxu1 %v3050_v20  ;;  %v3125_v19 = vld [vmem:[%s3319_s13 + $0x1c4] ss:$28 sps:$4 sm:$0xff]   ;;  %v3160_v20 = vld [vmem:[%s3936_s1 + $0x198] sm:$0xff]  }
  0x27   : > { %2717 = vmatpush3.bf16.msra.mxu1 %v3055_v22  ;;  %2829 = vmatpush3.bf16.msra.mxu0 %v3056_v23  ;;  %v3129_v22 = vld [vmem:[%s3319_s13 + $0x1c0] ss:$28 sps:$4 sm:$0xff]   ;;  %v3130_v23 = vld [vmem:[%s3319_s13 + $0xe8] ss:$28 sps:$4 sm:$0xff]  }
  0x28   : > { %2718 = vmatprep.subr.bf16.mxu1 %v3057_v24  ;;  %1414 = vmatprep.mubr.bf16.mxu0 %v3059_v25  ;;  %v3131_v24 = vld [vmem:[%s3319_s13 + $0x1fc] ss:$28 sps:$4 sm:$0xff]   ;;  %v3133_v25 = vld [vmem:[%s3319_s13 + $0x124] ss:$28 sps:$4 sm:$0xff]  }
  0x29   : > { %1510 = vmatprep.mubr.bf16.mxu1 %v3061_v26  ;;  %2830 = vmatprep.subr.bf16.mxu0 %v3068_v27  ;;  %v3179_v26 = vld [vmem:[%s3936_s1 + $0x1a0] sm:$0xff]   ;;  %v3135_v27 = vld [vmem:[%s3319_s13 + $0x1f8] ss:$28 sps:$4 sm:$0xff]  }
  0x2b   : > { %2719 = vmatpush3.bf16.msra.mxu1 %v3058_v28  ;;  %2831 = vmatpush3.bf16.msra.mxu0 %v3070_v29  ;;  %v3136_v28 = vld [vmem:[%s3319_s13 + $0x120] ss:$28 sps:$4 sm:$0xff]   ;;  %v3139_v29 = vld [vmem:[%s3319_s13 + $0x234] ss:$28 sps:$4 sm:$0xff]  }
  0x2c   : > { %2720 = vmatprep.subr.bf16.mxu1 %v3065_v32  ;;  %2832 = vmatprep.subr.bf16.mxu0 %v3088_v41  ;;  %v3144_v32 = vld [vmem:[%s3319_s13 + $0x230] ss:$28 sps:$4 sm:$0xff]   ;;  %v3159_v41 = vld [vmem:[%s3319_s13 + $0x1c8] ss:$28 sps:$4 sm:$0xff]  }
  0x2e   : > { %1415 = vmatmul.mubr.bf16.gmra.mrb[4].mxu0 %v3063_v30  ;;  %1511 = vmatmul.mubr.bf16.gmra.mrb[4].mxu1 %v3064_v31  ;;  %v3141_v30 = vld [vmem:[%s3319_s13 + $0x15c] ss:$28 sps:$4 sm:$0xff]   ;;  %v3196_v31 = vld [vmem:[%s3936_s1 + $0x1a8] sm:$0xff]  }
  0x2f   : > { %2721 = vmatpush3.bf16.msra.mxu1 %v3066_v33  ;;  %1422 = vmatprep.mubr.bf16.mxu0 %v3071_v35  ;;  %v3145_v33 = vld [vmem:[%s3319_s13 + $0x158] ss:$28 sps:$4 sm:$0xff]  }
  0x30   : > { %2722 = vmatprep.subr.bf16.mxu1 %v3067_v34  ;;  %1518 = vmatprep.mubr.bf16.mxu1 %v3073_v36  ;;  %v3148_v34 = vld [vmem:[%s3319_s13 + $0x26c] ss:$28 sps:$4 sm:$0xff]   ;;  %v3150_v35 = vld [vmem:[%s3319_s13 + $0x194] ss:$28 sps:$4 sm:$0xff]  }
  0x31   : > { %2833 = vmatpush3.bf16.msra.mxu0 %v3090_v44  ;;  %v3152_v36 = vld [vmem:[%s3319_s13 + $0x268] ss:$28 sps:$4 sm:$0xff]   ;;  %v3165_v44 = vld [vmem:[%s3319_s13 + $0x200] ss:$28 sps:$4 sm:$0xff]  }
  0x32   : > { %2834 = vmatprep.subr.bf16.mxu0 %v3099_v51  ;;  %v3175_v51 = vld [vmem:[%s3319_s13 + $0xbc] ss:$28 sps:$4 sm:$0xff]  }
  0x33   : > { %2723 = vmatpush3.bf16.msra.mxu1 %v3069_v37  ;;  %v3153_v37 = vld [vmem:[%s3319_s13 + $0x190] ss:$28 sps:$4 sm:$0xff]  }
  0x34   : > { %2724 = vmatprep.subr.bf16.mxu1 %v3077_v38  ;;  %v3154_v38 = vld [vmem:[%s3319_s13 + $0x1cc] ss:$28 sps:$4 sm:$0xff]  }
  0x35   : > { %2835 = vmatpush3.bf16.msra.mxu0 %v3101_v53  ;;  %v3178_v53 = vld [vmem:[%s3319_s13 + $0xb8] ss:$28 sps:$4 sm:$0xff]  }
  0x36   : > { %1423 = vmatmul.mubr.bf16.gmra.mrb[8].mxu0 %v3075_v39  ;;  %1519 = vmatmul.mubr.bf16.gmra.mrb[8].mxu1 %v3076_v40  ;;  %v3158_v39 = vld [vmem:[%s3319_s13 + $0x14] ss:$28 sps:$4 sm:$0xff]  }
  0x37   : > { %2725 = vmatpush3.bf16.msra.mxu1 %v3078_v42  ;;  %1430 = vmatprep.mubr.bf16.mxu0 %v3081_v45  ;;  %v3156_v40 = vld [vmem:[%s3319_s13 + $0x10] ss:$28 sps:$4 sm:$0xff]   ;;  %v3161_v42 = vld [vmem:[%s3319_s13 + $0x204] ss:$28 sps:$4 sm:$0xff]  }
  0x38   : > { %2726 = vmatprep.subr.bf16.mxu1 %v3079_v43  ;;  %1526 = vmatprep.mubr.bf16.mxu1 %v3083_v46  ;;  %v3163_v43 = vld [vmem:[%s3319_s13 + $0x4c] ss:$28 sps:$4 sm:$0xff]   ;;  %v3167_v46 = vld [vmem:[%s3319_s13 + $0x23c] ss:$28 sps:$4 sm:$0xff]  }
  0x39   : > { %2836 = vmatprep.subr.bf16.mxu0 %v3114_v60  ;;  %v3166_v45 = vld [vmem:[%s3319_s13 + $0x48] ss:$28 sps:$4 sm:$0xff]   ;;  %v3190_v60 = vld [vmem:[%s3319_s13 + $0x2e0] ss:$28 sps:$4 sm:$0xff]  }
  0x3a   : > { %2837 = vmatpush3.bf16.msra.mxu0 %v3115_v61  ;;  %v3191_v61 = vld [vmem:[%s3319_s13 + $0x128] ss:$28 sps:$4 sm:$0xff]  }
  0x3b   : > { %2727 = vmatpush3.bf16.msra.mxu1 %v3080_v47  ;;  %2838 = vmatprep.subr.bf16.mxu0 %v3123_v2  ;;  %v3169_v47 = vld [vmem:[%s3319_s13 + $0x84] ss:$28 sps:$4 sm:$0xff]   ;;  %v3199_v2 = vld [vmem:[%s3319_s13 + $0x354] ss:$28 sps:$4 sm:$0xff]  }
  0x3c   : > { %2728 = vmatprep.subr.bf16.mxu1 %v3087_v48  ;;  %v3171_v48 = vld [vmem:[%s3319_s13 + $0x238] ss:$28 sps:$4 sm:$0xff]  }
  0x3e   : > { %1431 = vmatmul.mubr.bf16.gmra.mrb[12].mxu0 %v3085_v49  ;;  %1527 = vmatmul.mubr.bf16.gmra.mrb[12].mxu1 %v3086_v50  ;;  %v3172_v49 = vld [vmem:[%s3319_s13 + $0x80] ss:$28 sps:$4 sm:$0xff]   ;;  %v3173_v50 = vld [vmem:[%s3319_s13 + $0x274] ss:$28 sps:$4 sm:$0xff]  }
  0x3f   : > { %2729 = vmatpush3.bf16.msra.mxu1 %v3089_v52  ;;  %1438 = vmatprep.mubr.bf16.mxu0 %v3093_v54  ;;  %v3177_v52 = vld [vmem:[%s3319_s13 + $0x270] ss:$28 sps:$4 sm:$0xff]  }
  0x40   : > { %2730 = vmatprep.subr.bf16.mxu1 %v3091_v55  ;;  %1567 = vmatprep.mubr.bf16.mxu1 %v3097_v56  ;;  %v3180_v54 = vld [vmem:[%s3319_s13 + $0x2ac] ss:$28 sps:$4 sm:$0xff]   ;;  %v3182_v55 = vld [vmem:[%s3319_s13 + $0xf4] ss:$28 sps:$4 sm:$0xff]  }
  0x41   : > { %2839 = vmatpush3.bf16.msra.mxu0 %v3124_v3  ;;  %v3184_v56 = vld [vmem:[%s3319_s13 + $0x2a8] ss:$28 sps:$4 sm:$0xff]   ;;  %v3201_v3 = vld [vmem:[%s3319_s13 + $0x19c] ss:$28 sps:$4 sm:$0xff]  }
  0x42   : > { %2840 = vmatprep.subr.bf16.mxu0 %v3137_v8  ;;  %v3208_v8 = vld [vmem:[%s3319_s13 + $0x1d0] ss:$28 sps:$4 sm:$0xff]  }
  0x43   : > { %2731 = vmatpush3.bf16.msra.mxu1 %v3092_v57  ;;  %v3185_v57 = vld [vmem:[%s3319_s13 + $0xf0] ss:$28 sps:$4 sm:$0xff]  }
  0x44   : > { %2962 = vmatprep.subr.bf16.mxu1 %v3100_v58 }
  0x45   : > { %2841 = vmatpush3.bf16.msra.mxu0 %v3138_v9  ;;  %v3209_v9 = vld [vmem:[%s3319_s13 + $0x50] ss:$28 sps:$4 sm:$0xff]  }
  0x46   : > { %1439 = vmatmul.mubr.bf16.gmra.mrb[16].mxu0 %v3098_v62  ;;  %1568 = vmatmul.mubr.bf16.vlgmr.msra.gmra.mrb[16].mxu1 %v3095_v59  ;;  %v3188_v59 = vld [vmem:[%s3319_s13 + $0x12c] ss:$28 sps:$4 sm:$0xff]   ;;  %v3192_v62 = vld [vmem:[%s3319_s13 + $0x31c] ss:$28 sps:$4 sm:$0xff]  }
  0x47   : > { %2963 = vmatpush3.bf16.msra.mxu1 %v3100_v58  ;;  %1446 = vmatprep.mubr.bf16.mxu0 %v3102_v63  ;;  %v3186_v58 = vld [vmem:[%s3319_s13 + $0x2e4] ss:$28 sps:$4 sm:$0xff]  }
  0x48   : > { %1575 = vmatprep.mubr.bf16.mxu1 %v3104_v0  ;;  %2964 = vmatprep.subr.bf16.mxu1 %v3122_v1  ;;  %v3194_v63 = vld [vmem:[%s3319_s13 + $0x164] ss:$28 sps:$4 sm:$0xff]   ;;  %v3197_v0 = vld [vmem:[%s3319_s13 + $0x318] ss:$28 sps:$4 sm:$0xff]  }
  0x49   : > { %2842 = vmatprep.subr.bf16.mxu0 %v3146_v15  ;;  %v3217_v15 = vld [vmem:[%s3319_s13 + $0xf8] ss:$28 sps:$4 sm:$0xff]  }
  0x4a   : > { %2843 = vmatpush3.bf16.msra.mxu0 %v3147_v16  ;;  %v3218_v16 = vld [vmem:[%s3319_s13 + $0x240] ss:$28 sps:$4 sm:$0xff]  }
  0x4b   : > { %2965 = vmatpush3.bf16.msra.mxu1 %v3122_v1  ;;  %v3198_v1 = vld [vmem:[%s3319_s13 + $0x160] ss:$28 sps:$4 sm:$0xff]  }
  0x4c   : > { %2966 = vmatprep.subr.bf16.mxu1 %v3143_v13 }
  0x4e   : > { %1447 = vmatmul.mubr.bf16.gmra.mrb[20].mxu0 %v3106_v4  ;;  %1576 = vmatmul.mubr.bf16.gmra.mrb[20].mxu1 %v3107_v5  ;;  %v3203_v4 = vld [vmem:[%s3319_s13 + $0x350] ss:$28 sps:$4 sm:$0xff]   ;;  %v3204_v5 = vld [vmem:[%s3319_s13 + $0x198] ss:$28 sps:$4 sm:$0xff]  }
  0x4f   : > { %1454 = vmatprep.mubr.bf16.mxu0 %v3108_v6  ;;  %1583 = vmatprep.mubr.bf16.mxu1 %v3110_v7  ;;  %v3205_v6 = vld [vmem:[%s3319_s13 + $0x1d4] ss:$28 sps:$4 sm:$0xff]  }
  0x50   : > { %2967 = vmatpush3.bf16.msra.mxu1 %v3143_v13  ;;  %v3207_v7 = vld [vmem:[%s3319_s13 + $0x18] ss:$28 sps:$4 sm:$0xff]   ;;  %v3214_v13 = vld [vmem:[%s3319_s13 + $0xc0] ss:$28 sps:$4 sm:$0xff]  }
  0x51   : > { %2968 = vmatprep.subr.bf16.mxu1 %v3160_v20 }
  0x54   : > { %2969 = vmatpush3.bf16.msra.mxu1 %v3160_v20  ;;  %v3223_v20 = vld [vmem:[%s3319_s13 + $0x278] ss:$28 sps:$4 sm:$0xff]  }
  0x55   : > { %2970 = vmatprep.subr.bf16.mxu1 %v3179_v26 }
  0x56   : > { %1455 = vmatmul.mubr.bf16.gmra.mrb[24].mxu0 %v3112_v10  ;;  %1584 = vmatmul.mubr.bf16.gmra.mrb[24].mxu1 %v3113_v11  ;;  %v3210_v10 = vld [vmem:[%s3319_s13 + $0x20c] ss:$28 sps:$4 sm:$0xff]  }
  0x57   : > { %1462 = vmatprep.mubr.bf16.mxu0 %v3116_v12  ;;  %1591 = vmatprep.mubr.bf16.mxu1 %v3118_v14  ;;  %v3212_v11 = vld [vmem:[%s3319_s13 + $0x88] ss:$28 sps:$4 sm:$0xff]  }
  0x58   : > { %2971 = vmatpush3.bf16.msra.mxu1 %v3179_v26  ;;  %v3213_v12 = vld [vmem:[%s3319_s13 + $0x208] ss:$28 sps:$4 sm:$0xff]  }
  0x59   : > { %2972 = vmatprep.subr.bf16.mxu1 %v3196_v31  ;;  %v3215_v14 = vld [vmem:[%s3319_s13 + $0x244] ss:$28 sps:$4 sm:$0xff]   ;;  %v3230_v26 = vld [vmem:[%s3319_s13 + $0x2ec] ss:$28 sps:$4 sm:$0xff]  }
  0x5c   : > { %2973 = vmatpush3.bf16.msra.mxu1 %v3196_v31  ;;  %v3237_v31 = vld [vmem:[%s3319_s13 + $0x2b8] ss:$28 sps:$4 sm:$0xff]  }
  0x5e   : > { %1463 = vmatmul.mubr.bf16.gmra.mrb[28].mxu0 %v3120_v17  ;;  %1592 = vmatmul.mubr.bf16.gmra.mrb[28].mxu1 %v3121_v18  ;;  %v3219_v17 = vld [vmem:[%s3319_s13 + $0x130] ss:$28 sps:$4 sm:$0xff]   ;;  %v3220_v18 = vld [vmem:[%s3319_s13 + $0x27c] ss:$28 sps:$4 sm:$0xff]  }
  0x5f   : > { %1470 = vmatprep.mubr.bf16.mxu0 %v3125_v19  ;;  %1599 = vmatprep.mubr.bf16.mxu1 %v3127_v21  ;;  %v3222_v19 = vld [vmem:[%s3319_s13 + $0x168] ss:$28 sps:$4 sm:$0xff]   ;;  %v3224_v21 = vld [vmem:[%s3319_s13 + $0x1a0] ss:$28 sps:$4 sm:$0xff]  }
  0x66   : > { %1471 = vmatmul.mubr.bf16.gmra.mrb[32].mxu0 %v3129_v22  ;;  %1600 = vmatmul.mubr.bf16.gmra.mrb[32].mxu1 %v3130_v23  ;;  %v3225_v22 = vld [vmem:[%s3319_s13 + $0x2b4] ss:$28 sps:$4 sm:$0xff]  }
  0x67   : > { %1478 = vmatprep.mubr.bf16.mxu0 %v3131_v24  ;;  %1607 = vmatprep.mubr.bf16.mxu1 %v3133_v25  ;;  %v3227_v23 = vld [vmem:[%s3319_s13 + $0x1d8] ss:$28 sps:$4 sm:$0xff]   ;;  %v3228_v24 = vld [vmem:[%s3319_s13 + $0x2b0] ss:$28 sps:$4 sm:$0xff]  }
  0x68   : > { %v3229_v25 = vld [vmem:[%s3319_s13 + $0x210] ss:$28 sps:$4 sm:$0xff]  }
  0x6e   : > { %1479 = vmatmul.mubr.bf16.gmra.mrb[36].mxu0 %v3135_v27  ;;  %1608 = vmatmul.mubr.bf16.gmra.mrb[36].mxu1 %v3136_v28  ;;  %v3232_v27 = vld [vmem:[%s3319_s13 + $0x248] ss:$28 sps:$4 sm:$0xff]  }
  0x6f   : > { %1486 = vmatprep.mubr.bf16.mxu0 %v3139_v29  ;;  %1615 = vmatprep.mubr.bf16.mxu1 %v3141_v30  ;;  %v3233_v28 = vld [vmem:[%s3319_s13 + $0x2e8] ss:$28 sps:$4 sm:$0xff]   ;;  %v3234_v29 = vld [vmem:[%s3319_s13 + $0x280] ss:$28 sps:$4 sm:$0xff]  }
  0x70   : > { %v3235_v30 = vld [vmem:[%s3319_s13 + $0x324] ss:$28 sps:$4 sm:$0xff]  }
  0x76   : > { %1487 = vmatmul.mubr.bf16.gmra.mrb[40].mxu0 %v3144_v32  ;;  %1616 = vmatmul.mubr.bf16.gmra.mrb[40].mxu1 %v3145_v33  ;;  %v3238_v32 = vld [vmem:[%s3319_s13 + $0x320] ss:$28 sps:$4 sm:$0xff]   ;;  %v3239_v33 = vld [vmem:[%s3319_s13 + $0x2f0] ss:$28 sps:$4 sm:$0xff]  }
  0x77   : > { %1494 = vmatprep.mubr.bf16.mxu0 %v3148_v34  ;;  %1623 = vmatprep.mubr.bf16.mxu1 %v3150_v35  ;;  %v3240_v34 = vld [vmem:[%s3319_s13 + $0x35c] ss:$28 sps:$4 sm:$0xff]   ;;  %v3242_v35 = vld [vmem:[%s3319_s13 + $0x328] ss:$28 sps:$4 sm:$0xff]  }
  0x7e   : > { %1495 = vmatmul.mubr.bf16.gmra.mrb[44].mxu0 %v3152_v36  ;;  %1624 = vmatmul.mubr.bf16.gmra.mrb[44].mxu1 %v3153_v37 }
  0x7f   : > { %1631 = vmatprep.mubr.bf16.mxu1 %v3154_v38  ;;  %1728 = vmatprep.mubr.bf16.mxu0 %v3158_v39 }
  0x86   : > { %1632 = vmatmul.mubr.bf16.gmra.mrb[48].mxu1 %v3159_v41  ;;  %1729 = vmatmul.mubr.bf16.vlgmr.msra.gmra.mrb[48].mxu0 %v3156_v40  ;;  %v3243_v40 = vld [vmem:[%s3319_s13 + $0x358] ss:$28 sps:$4 sm:$0xff]   ;;  %v3244_v41 = vld [vmem:[%s3319_s13 + $0x360] ss:$28 sps:$4 sm:$0xff]  }
  0x87   : > { %1639 = vmatprep.mubr.bf16.mxu1 %v3161_v42  ;;  %1736 = vmatprep.mubr.bf16.mxu0 %v3163_v43 }
  0x8e   : > { %1640 = vmatmul.mubr.bf16.gmra.mrb[52].mxu1 %v3165_v44  ;;  %1737 = vmatmul.mubr.bf16.gmra.mrb[52].mxu0 %v3166_v45 }
  0x8f   : > { %1647 = vmatprep.mubr.bf16.mxu1 %v3167_v46  ;;  %1744 = vmatprep.mubr.bf16.mxu0 %v3169_v47 }
  0x96   : > { %1648 = vmatmul.mubr.bf16.gmra.mrb[56].mxu1 %v3171_v48  ;;  %1745 = vmatmul.mubr.bf16.gmra.mrb[56].mxu0 %v3172_v49 }
  0x97   : > { %1655 = vmatprep.mubr.bf16.mxu1 %v3173_v50  ;;  %1752 = vmatprep.mubr.bf16.mxu0 %v3175_v51 }
  0x9e   : > { %1656 = vmatmul.mubr.bf16.gmra.mrb[60].mxu1 %v3177_v52  ;;  %1753 = vmatmul.mubr.bf16.gmra.mrb[60].mxu0 %v3178_v53 }
  0x9f   : > { %1663 = vmatprep.mubr.bf16.mxu1 %v3180_v54  ;;  %1760 = vmatprep.mubr.bf16.mxu0 %v3182_v55 }
  0xa6   : > { %1664 = vmatmul.mubr.bf16.gmra.mrb[64].mxu1 %v3184_v56  ;;  %1761 = vmatmul.mubr.bf16.gmra.mrb[64].mxu0 %v3185_v57 }
  0xa7   : > { %1671 = vmatprep.mubr.bf16.mxu1 %v3186_v58  ;;  %1768 = vmatprep.mubr.bf16.mxu0 %v3188_v59 }
  0xae   : > { %1672 = vmatmul.mubr.bf16.gmra.mrb[68].mxu1 %v3190_v60  ;;  %1769 = vmatmul.mubr.bf16.gmra.mrb[68].mxu0 %v3191_v61 }
  0xaf   : > { %1679 = vmatprep.mubr.bf16.mxu1 %v3192_v62  ;;  %1776 = vmatprep.mubr.bf16.mxu0 %v3194_v63 }
  0xb6   : > { %1680 = vmatmul.mubr.bf16.gmra.mrb[72].mxu1 %v3197_v0  ;;  %1777 = vmatmul.mubr.bf16.gmra.mrb[72].mxu0 %v3198_v1 }
  0xb7   : > { %1687 = vmatprep.mubr.bf16.mxu1 %v3199_v2  ;;  %1784 = vmatprep.mubr.bf16.mxu0 %v3201_v3 }
  0xbe   : > { %1688 = vmatmul.mubr.bf16.gmra.mrb[76].mxu1 %v3203_v4  ;;  %1785 = vmatmul.mubr.bf16.gmra.mrb[76].mxu0 %v3204_v5 }
  0xbf   : > { %1792 = vmatprep.mubr.bf16.mxu0 %v3205_v6  ;;  %2974 = vmatprep.mubr.msk.bf16.mxu1 %vm1325_vm0, %v3207_v7 }
  0xc6   : > { %1793 = vmatmul.mubr.bf16.gmra.mrb[80].mxu0 %v3208_v8  ;;  %2975 = vmatmul.mubr.msk.bf16.vlgmr.msra.gmra.mrb[80].mxu1 %vm1325_vm0, %v3209_v9 }
  0xc7   : > { %1800 = vmatprep.mubr.bf16.mxu0 %v3210_v10  ;;  %2978 = vmatprep.mubr.msk.bf16.mxu1 %vm1325_vm0, %v3212_v11 }
  0xce   : > { %1801 = vmatmul.mubr.bf16.gmra.mrb[84].mxu0 %v3213_v12  ;;  %2979 = vmatmul.mubr.msk.bf16.gmra.mrb[84].mxu1 %vm1325_vm0, %v3214_v13 }
  0xcf   : > { %1808 = vmatprep.mubr.bf16.mxu0 %v3215_v14  ;;  %2982 = vmatprep.mubr.msk.bf16.mxu1 %vm1325_vm0, %v3217_v15 }
  0xd6   : > { %1809 = vmatmul.mubr.bf16.gmra.mrb[88].mxu0 %v3218_v16  ;;  %2983 = vmatmul.mubr.msk.bf16.gmra.mrb[88].mxu1 %vm1325_vm0, %v3219_v17 }
  0xd7   : > { %1816 = vmatprep.mubr.bf16.mxu0 %v3220_v18  ;;  %2986 = vmatprep.mubr.msk.bf16.mxu1 %vm1325_vm0, %v3222_v19 }
  0xde   : > { %1817 = vmatmul.mubr.bf16.gmra.mrb[92].mxu0 %v3223_v20  ;;  %2987 = vmatmul.mubr.msk.bf16.gmra.mrb[92].mxu1 %vm1325_vm0, %v3224_v21 }
  0xdf   : > { %1824 = vmatprep.mubr.bf16.mxu0 %v3225_v22  ;;  %2990 = vmatprep.mubr.msk.bf16.mxu1 %vm1325_vm0, %v3227_v23 }
  0xe6   : > { %1825 = vmatmul.mubr.bf16.gmra.mrb[96].mxu0 %v3228_v24  ;;  %2991 = vmatmul.mubr.msk.bf16.gmra.mrb[96].mxu1 %vm1325_vm0, %v3229_v25 }
  0xe7   : > { %1832 = vmatprep.mubr.bf16.mxu0 %v3230_v26  ;;  %2994 = vmatprep.mubr.msk.bf16.mxu1 %vm1325_vm0, %v3232_v27 }
  0xee   : > { %1833 = vmatmul.mubr.bf16.gmra.mrb[100].mxu0 %v3233_v28  ;;  %2995 = vmatmul.mubr.msk.bf16.gmra.mrb[100].mxu1 %vm1325_vm0, %v3234_v29 }
  0xef   : > { %1840 = vmatprep.mubr.bf16.mxu0 %v3235_v30  ;;  %2998 = vmatprep.mubr.msk.bf16.mxu1 %vm1325_vm0, %v3237_v31 }
  0xf6   : > { %1841 = vmatmul.mubr.bf16.gmra.mrb[104].mxu0 %v3238_v32  ;;  %2999 = vmatmul.mubr.msk.bf16.gmra.mrb[104].mxu1 %vm1325_vm0, %v3239_v33 }
  0xf7   : > { %1848 = vmatprep.mubr.bf16.mxu0 %v3240_v34  ;;  %3002 = vmatprep.mubr.msk.bf16.mxu1 %vm1325_vm0, %v3242_v35 }
  0xf9   : > { %v2620_v36 = vpop.f32.mrb[0].mxu0  ;;  %v2692_v37 = vpop.f32.mrb[0].mxu1 }
  0xfa   : > { %v2621_v38 = vpop.f32.mrb[1].mxu0  ;;  %v2693_v39 = vpop.f32.mrb[1].mxu1 }
  0xfb   : > { %v2622_v42 = vadd.f32 %v2621_v38, %v2620_v36  ;;  %v2623_v43 = vpop.f32.mrb[2].mxu0  ;;  %v3583_v44 = vadd.f32 %v2693_v39, %v2692_v37  ;;  %v2695_v45 = vpop.f32.mrb[2].mxu1 }
  0xfc   : > { %v2624_v46 = vpop.f32.mrb[3].mxu0  ;;  %v2696_v47 = vpop.f32.mrb[3].mxu1 }
  0xfd   : > { %v2625_v48 = vadd.f32 %v2624_v46, %v2623_v43  ;;  %v3585_v49 = vadd.f32 %v2696_v47, %v2695_v45 }
  0xfe   : > { %1849 = vmatmul.mubr.bf16.gmra.mrb[108].mxu0 %v3243_v40  ;;  %3003 = vmatmul.mubr.msk.bf16.gmra.mrb[108].mxu1 %vm1325_vm0, %v3244_v41 }
 0x101   : > { %v2626_v50 = vpop.f32.mrb[4].mxu0  ;;  %v2698_v51 = vpop.f32.mrb[4].mxu1 }
 0x102   : > { %v2627_v52 = vpop.f32.mrb[5].mxu0  ;;  %v2699_v53 = vpop.f32.mrb[5].mxu1 }
 0x103   : > { %v2628_v54 = vadd.f32 %v2627_v52, %v2626_v50  ;;  %v2629_v55 = vpop.f32.mrb[6].mxu0  ;;  %v3588_v56 = vadd.f32 %v2699_v53, %v2698_v51  ;;  %v2701_v57 = vpop.f32.mrb[6].mxu1 }
 0x104   : > { %v2630_v58 = vpop.f32.mrb[7].mxu0  ;;  %v2702_v59 = vpop.f32.mrb[7].mxu1 }
 0x105   : > { %v2631_v60 = vadd.f32 %v2630_v58, %v2629_v55  ;;  %v3590_v61 = vadd.f32 %v2702_v59, %v2701_v57 }
 0x109   : > { %v2632_v62 = vpop.f32.mrb[8].mxu0  ;;  %v2704_v63 = vpop.f32.mrb[8].mxu1 }
 0x10a   : > { %v2633_v0 = vpop.f32.mrb[9].mxu0  ;;  %v2705_v1 = vpop.f32.mrb[9].mxu1 }
 0x10b   : > { %v2634_v2 = vadd.f32 %v2633_v0, %v2632_v62  ;;  %v2635_v3 = vpop.f32.mrb[10].mxu0  ;;  %v3592_v4 = vadd.f32 %v2705_v1, %v2704_v63  ;;  %v2707_v5 = vpop.f32.mrb[10].mxu1 }
 0x10c   : > { %v2636_v6 = vpop.f32.mrb[11].mxu0  ;;  %v2708_v7 = vpop.f32.mrb[11].mxu1 }
 0x10d   : > { %v2637_v8 = vadd.f32 %v2636_v6, %v2635_v3  ;;  %v3594_v9 = vadd.f32 %v2708_v7, %v2707_v5 }
 0x111   : > { %v2638_v10 = vpop.f32.mrb[12].mxu0  ;;  %v2710_v11 = vpop.f32.mrb[12].mxu1 }
 0x112   : > { %v2639_v12 = vpop.f32.mrb[13].mxu0  ;;  %v2711_v13 = vpop.f32.mrb[13].mxu1 }
 0x113   : > { %v2640_v14 = vadd.f32 %v2639_v12, %v2638_v10  ;;  %v2641_v15 = vpop.f32.mrb[14].mxu0  ;;  %v3596_v16 = vadd.f32 %v2711_v13, %v2710_v11  ;;  %v2713_v17 = vpop.f32.mrb[14].mxu1 }
 0x114   : > { %v2642_v18 = vpop.f32.mrb[15].mxu0  ;;  %v2714_v19 = vpop.f32.mrb[15].mxu1 }
 0x115   : > { %v2643_v20 = vadd.f32 %v2642_v18, %v2641_v15  ;;  %v3598_v21 = vadd.f32 %v2714_v19, %v2713_v17 }
 0x119   : > { %v2644_v22 = vpop.f32.mrb[16].mxu0  ;;  %v2732_v23 = vpop.f32.mrb[16].mxu1 }
 0x11a   : > { %v2645_v24 = vpop.f32.mrb[17].mxu0  ;;  %v2733_v25 = vpop.f32.mrb[17].mxu1 }
 0x11b   : > { %v2646_v26 = vadd.f32 %v2645_v24, %v2644_v22  ;;  %v2734_v27 = vadd.f32 %v2733_v25, %v2732_v23  ;;  %v2647_v28 = vpop.f32.mrb[18].mxu0  ;;  %v2735_v29 = vpop.f32.mrb[18].mxu1 }
 0x11c   : > { %v2648_v30 = vpop.f32.mrb[19].mxu0  ;;  %v2736_v31 = vpop.f32.mrb[19].mxu1 }
 0x11d   : > { %v3600_v32 = vadd.f32 %v2734_v27, %v2622_v42  ;;  %v2649_v33 = vadd.f32 %v2648_v30, %v2647_v28  ;;  %v2737_v34 = vadd.f32 %v2736_v31, %v2735_v29 }
 0x11f   : > { %v3602_v35 = vadd.f32 %v2737_v34, %v2625_v48 }
 0x121   : > { %v2650_v36 = vpop.f32.mrb[20].mxu0  ;;  %v2738_v37 = vpop.f32.mrb[20].mxu1 }
 0x122   : > { %v2651_v38 = vpop.f32.mrb[21].mxu0  ;;  %v2739_v39 = vpop.f32.mrb[21].mxu1 }
 0x123   : > { %v2652_v40 = vadd.f32 %v2651_v38, %v2650_v36  ;;  %v2740_v41 = vadd.f32 %v2739_v39, %v2738_v37  ;;  %v2653_v43 = vpop.f32.mrb[22].mxu0  ;;  %v2741_v45 = vpop.f32.mrb[22].mxu1 }
 0x124   : > { %v2654_v46 = vpop.f32.mrb[23].mxu0  ;;  %v2742_v47 = vpop.f32.mrb[23].mxu1 }
 0x125   : > { %v3604_v50 = vadd.f32 %v2740_v41, %v2628_v54  ;;  %v2655_v51 = vadd.f32 %v2654_v46, %v2653_v43  ;;  %v2743_v52 = vadd.f32 %v2742_v47, %v2741_v45 }
 0x127   : > { %v3606_v42 = vadd.f32 %v2743_v52, %v2631_v60 }
 0x129   : > { %v2656_v53 = vpop.f32.mrb[24].mxu0  ;;  %v2744_v55 = vpop.f32.mrb[24].mxu1 }
 0x12a   : > { %v2657_v48 = vpop.f32.mrb[25].mxu0  ;;  %v2745_v57 = vpop.f32.mrb[25].mxu1 }
 0x12b   : > { %v2658_v58 = vadd.f32 %v2657_v48, %v2656_v53  ;;  %v2746_v59 = vadd.f32 %v2745_v57, %v2744_v55  ;;  %v2659_v62 = vpop.f32.mrb[26].mxu0  ;;  %v2747_v63 = vpop.f32.mrb[26].mxu1 }
 0x12c   : > { %v2660_v0 = vpop.f32.mrb[27].mxu0  ;;  %v2748_v1 = vpop.f32.mrb[27].mxu1 }
 0x12d   : > { %v3608_v3 = vadd.f32 %v2746_v59, %v2634_v2  ;;  %v2661_v5 = vadd.f32 %v2660_v0, %v2659_v62  ;;  %v2749_v6 = vadd.f32 %v2748_v1, %v2747_v63 }
 0x12f   : > { %v3610_v54 = vadd.f32 %v2749_v6, %v2637_v8 }
 0x131   : > { %v2662_v7 = vpop.f32.mrb[28].mxu0  ;;  %v2750_v10 = vpop.f32.mrb[28].mxu1 }
 0x132   : > { %v2663_v60 = vpop.f32.mrb[29].mxu0  ;;  %v2751_v11 = vpop.f32.mrb[29].mxu1 }
 0x133   : > { %v2664_v12 = vadd.f32 %v2663_v60, %v2662_v7  ;;  %v2752_v13 = vadd.f32 %v2751_v11, %v2750_v10  ;;  %v2665_v15 = vpop.f32.mrb[30].mxu0  ;;  %v2753_v17 = vpop.f32.mrb[30].mxu1 }
 0x134   : > { %v2666_v18 = vpop.f32.mrb[31].mxu0  ;;  %v2754_v19 = vpop.f32.mrb[31].mxu1 }
 0x135   : > { %v3612_v22 = vadd.f32 %v2752_v13, %v2640_v14  ;;  %v2667_v23 = vadd.f32 %v2666_v18, %v2665_v15  ;;  %v2755_v24 = vadd.f32 %v2754_v19, %v2753_v17 }
 0x137   : > { %v3614_v2 = vadd.f32 %v2755_v24, %v2643_v20 }
 0x139   : > { %v2668_v25 = vpop.f32.mrb[32].mxu0  ;;  %v2756_v27 = vpop.f32.mrb[32].mxu1 }
 0x13a   : > { %v2669_v8 = vpop.f32.mrb[33].mxu0  ;;  %v2757_v28 = vpop.f32.mrb[33].mxu1 }
 0x13b   : > { %v2670_v29 = vadd.f32 %v2669_v8, %v2668_v25  ;;  %v2758_v30 = vadd.f32 %v2757_v28, %v2756_v27  ;;  %v2671_v31 = vpop.f32.mrb[34].mxu0  ;;  %v2759_v34 = vpop.f32.mrb[34].mxu1 }
 0x13c   : > { %v2672_v36 = vpop.f32.mrb[35].mxu0  ;;  %v2760_v37 = vpop.f32.mrb[35].mxu1 }
 0x13d   : > { %v3616_v38 = vadd.f32 %v2758_v30, %v2646_v26  ;;  %v2673_v39 = vadd.f32 %v2672_v36, %v2671_v31  ;;  %v2761_v41 = vadd.f32 %v2760_v37, %v2759_v34 }
 0x13f   : > { %v3618_v14 = vadd.f32 %v2761_v41, %v2649_v33 }
 0x141   : > { %v2674_v43 = vpop.f32.mrb[36].mxu0  ;;  %v2762_v45 = vpop.f32.mrb[36].mxu1 }
 0x142   : > { %v2675_v20 = vpop.f32.mrb[37].mxu0  ;;  %v2763_v46 = vpop.f32.mrb[37].mxu1 }
 0x143   : > { %v3620_v47 = vadd.f32 %v2675_v20, %v2674_v43  ;;  %v2764_v52 = vadd.f32 %v2763_v46, %v2762_v45  ;;  %v2677_v53 = vpop.f32.mrb[38].mxu0  ;;  %v2765_v55 = vpop.f32.mrb[38].mxu1 }
 0x144   : > { %v2678_v48 = vpop.f32.mrb[39].mxu0  ;;  %v2766_v57 = vpop.f32.mrb[39].mxu1 }
 0x145   : > { %v3622_v59 = vadd.f32 %v2764_v52, %v2652_v40  ;;  %v2679_v62 = vadd.f32 %v2678_v48, %v2677_v53  ;;  %v2767_v26 = vadd.f32 %v2766_v57, %v2765_v55 }
 0x147   : > { %v3624_v63 = vadd.f32 %v2767_v26, %v2655_v51 }
 0x149   : > { %v2680_v0 = vpop.f32.mrb[40].mxu0  ;;  %v2768_v33 = vpop.f32.mrb[40].mxu1 }
 0x14a   : > { %v2681_v1 = vpop.f32.mrb[41].mxu0  ;;  %v2769_v6 = vpop.f32.mrb[41].mxu1 }
 0x14b   : > { %v3626_v7 = vadd.f32 %v2681_v1, %v2680_v0  ;;  %v2770_v10 = vadd.f32 %v2769_v6, %v2768_v33  ;;  %v2683_v60 = vpop.f32.mrb[42].mxu0  ;;  %v2771_v11 = vpop.f32.mrb[42].mxu1 }
 0x14c   : > { %v2684_v13 = vpop.f32.mrb[43].mxu0  ;;  %v2772_v15 = vpop.f32.mrb[43].mxu1 }
 0x14d   : > { %v3628_v17 = vadd.f32 %v2770_v10, %v2658_v58  ;;  %v3630_v18 = vadd.f32 %v2684_v13, %v2683_v60  ;;  %v2773_v40 = vadd.f32 %v2772_v15, %v2771_v11 }
 0x14f   : > { %v3632_v19 = vadd.f32 %v2773_v40, %v2661_v5 }
 0x151   : > { %v2686_v51 = vpop.f32.mrb[44].mxu0  ;;  %v2774_v24 = vpop.f32.mrb[44].mxu1 }
 0x152   : > { %v2687_v25 = vpop.f32.mrb[45].mxu0  ;;  %v2775_v27 = vpop.f32.mrb[45].mxu1 }
 0x153   : > { %v3634_v8 = vadd.f32 %v2687_v25, %v2686_v51  ;;  %v2776_v28 = vadd.f32 %v2775_v27, %v2774_v24  ;;  %v2689_v30 = vpop.f32.mrb[46].mxu0  ;;  %v2777_v31 = vpop.f32.mrb[46].mxu1 }
 0x154   : > { %v2690_v34 = vpop.f32.mrb[47].mxu0  ;;  %v2778_v36 = vpop.f32.mrb[47].mxu1 }
 0x155   : > { %v3636_v37 = vadd.f32 %v2776_v28, %v2664_v12  ;;  %v3638_v58 = vadd.f32 %v2690_v34, %v2689_v30  ;;  %v2779_v41 = vadd.f32 %v2778_v36, %v2777_v31 }
 0x157   : > { %v3640_v43 = vadd.f32 %v2779_v41, %v2667_v23 }
 0x159   : > { %v2780_v5 = vpop.f32.mrb[48].mxu1  ;;  %v2844_v45 = vpop.f32.mrb[48].mxu0 }
 0x15a   : > { %v2781_v20 = vpop.f32.mrb[49].mxu1  ;;  %v2845_v46 = vpop.f32.mrb[49].mxu0 }
 0x15b   : > { %v2782_v52 = vadd.f32 %v2781_v20, %v2780_v5  ;;  %v2846_v53 = vadd.f32 %v2845_v46, %v2844_v45  ;;  %v2783_v55 = vpop.f32.mrb[50].mxu1  ;;  %v2847_v48 = vpop.f32.mrb[50].mxu0 }
 0x15c   : > { %v2784_v57 = vpop.f32.mrb[51].mxu1  ;;  %v2848_v26 = vpop.f32.mrb[51].mxu0 }
 0x15d   : > { %v3642_v0 = vadd.f32 %v2782_v52, %v2670_v29  ;;  %v2785_v33 = vadd.f32 %v2784_v57, %v2783_v55  ;;  %v2849_v12 = vadd.f32 %v2848_v26, %v2847_v48  ;;  %v3645_v1 = vadd.f32 %v2846_v53, %v3600_v32 }
 0x15f   : > { %v3647_v6 = vadd.f32 %v2785_v33, %v2673_v39  ;;  %v3650_v23 = vadd.f32 %v2849_v12, %v3602_v35 }
 0x161   : > { %v2786_v10 = vpop.f32.mrb[52].mxu1  ;;  %v2850_v60 = vpop.f32.mrb[52].mxu0 }
 0x162   : > { %v2787_v11 = vpop.f32.mrb[53].mxu1  ;;  %v2851_v13 = vpop.f32.mrb[53].mxu0 }
 0x163   : > { %v2788_v15 = vadd.f32 %v2787_v11, %v2786_v10  ;;  %v2852_v40 = vadd.f32 %v2851_v13, %v2850_v60  ;;  %v2789_v51 = vpop.f32.mrb[54].mxu1  ;;  %v2853_v24 = vpop.f32.mrb[54].mxu0 }
 0x164   : > { %v2790_v29 = vpop.f32.mrb[55].mxu1  ;;  %v2854_v25 = vpop.f32.mrb[55].mxu0 }
 0x165   : > { %v3653_v27 = vadd.f32 %v2788_v15, %v3620_v47  ;;  %v2791_v32 = vadd.f32 %v2790_v29, %v2789_v51  ;;  %v2855_v28 = vadd.f32 %v2854_v25, %v2853_v24  ;;  %v3656_v39 = vadd.f32 %v2852_v40, %v3604_v50 }
 0x167   : > { %v3658_v35 = vadd.f32 %v2791_v32, %v2679_v62  ;;  %v3661_v30 = vadd.f32 %v2855_v28, %v3606_v42 }
 0x169   : > { %v2792_v31 = vpop.f32.mrb[56].mxu1  ;;  %v2856_v34 = vpop.f32.mrb[56].mxu0 }
 0x16a   : > { %v2793_v36 = vpop.f32.mrb[57].mxu1  ;;  %v2857_v41 = vpop.f32.mrb[57].mxu0 }
 0x16b   : > { %v2794_v5 = vadd.f32 %v2793_v36, %v2792_v31  ;;  %v2858_v45 = vadd.f32 %v2857_v41, %v2856_v34  ;;  %v2795_v20 = vpop.f32.mrb[58].mxu1  ;;  %v2859_v46 = vpop.f32.mrb[58].mxu0 }
 0x16c   : > { %v2796_v47 = vpop.f32.mrb[59].mxu1  ;;  %v2860_v52 = vpop.f32.mrb[59].mxu0 }
 0x16d   : > { %v3664_v53 = vadd.f32 %v2794_v5, %v3626_v7  ;;  %v2797_v50 = vadd.f32 %v2796_v47, %v2795_v20  ;;  %v2861_v55 = vadd.f32 %v2860_v52, %v2859_v46  ;;  %v3667_v62 = vadd.f32 %v2858_v45, %v3608_v3 }
 0x16f   : > { %v3670_v42 = vadd.f32 %v2797_v50, %v3630_v18  ;;  %v3673_v48 = vadd.f32 %v2861_v55, %v3610_v54 }
 0x171   : > { %v2798_v57 = vpop.f32.mrb[60].mxu1  ;;  %v2862_v26 = vpop.f32.mrb[60].mxu0 }
 0x172   : > { %v2799_v33 = vpop.f32.mrb[61].mxu1  ;;  %v2863_v12 = vpop.f32.mrb[61].mxu0 }
 0x173   : > { %v2800_v10 = vadd.f32 %v2799_v33, %v2798_v57  ;;  %v2864_v60 = vadd.f32 %v2863_v12, %v2862_v26  ;;  %v2801_v11 = vpop.f32.mrb[62].mxu1  ;;  %v2865_v7 = vpop.f32.mrb[62].mxu0 }
 0x174   : > { %v2802_v13 = vpop.f32.mrb[63].mxu1  ;;  %v2866_v15 = vpop.f32.mrb[63].mxu0 }
 0x175   : > { %v3676_v40 = vadd.f32 %v2800_v10, %v3634_v8  ;;  %v2803_v3 = vadd.f32 %v2802_v13, %v2801_v11  ;;  %v2867_v51 = vadd.f32 %v2866_v15, %v2865_v7  ;;  %v3679_v18 = vadd.f32 %v2864_v60, %v3612_v22 }
 0x177   : > { %v3682_v54 = vadd.f32 %v2803_v3, %v3638_v58  ;;  %v3685_v24 = vadd.f32 %v2867_v51, %v3614_v2 }
 0x179   : > { %v2804_v29 = vpop.f32.mrb[64].mxu1  ;;  %v2868_v25 = vpop.f32.mrb[64].mxu0 }
 0x17a   : > { %v2805_v32 = vpop.f32.mrb[65].mxu1  ;;  %v2869_v28 = vpop.f32.mrb[65].mxu0 }
 0x17b   : > { %v2806_v31 = vadd.f32 %v2805_v32, %v2804_v29  ;;  %v2870_v34 = vadd.f32 %v2869_v28, %v2868_v25  ;;  %v2807_v36 = vpop.f32.mrb[66].mxu1  ;;  %v2871_v8 = vpop.f32.mrb[66].mxu0 }
 0x17c   : > { %v2808_v41 = vpop.f32.mrb[67].mxu1  ;;  %v2872_v5 = vpop.f32.mrb[67].mxu0 }
 0x17d   : > { %v3688_v45 = vadd.f32 %v2806_v31, %v3583_v44  ;;  %v2809_v22 = vadd.f32 %v2808_v41, %v2807_v36  ;;  %v2873_v20 = vadd.f32 %v2872_v5, %v2871_v8  ;;  %v3691_v58 = vadd.f32 %v2870_v34, %v3616_v38 }
 0x17f   : > { %v3694_v2 = vadd.f32 %v2809_v22, %v3585_v49  ;;  %v3697_v46 = vadd.f32 %v2873_v20, %v3618_v14 }
 0x181   : > { %v2810_v47 = vpop.f32.mrb[68].mxu1  ;;  %v2874_v52 = vpop.f32.mrb[68].mxu0 }
 0x182   : > { %v2811_v50 = vpop.f32.mrb[69].mxu1  ;;  %v2875_v55 = vpop.f32.mrb[69].mxu0 }
 0x183   : > { %v2812_v57 = vadd.f32 %v2811_v50, %v2810_v47  ;;  %v2876_v26 = vadd.f32 %v2875_v55, %v2874_v52  ;;  %v2813_v33 = vpop.f32.mrb[70].mxu1  ;;  %v2877_v44 = vpop.f32.mrb[70].mxu0 }
 0x184   : > { %v2814_v12 = vpop.f32.mrb[71].mxu1  ;;  %v2878_v10 = vpop.f32.mrb[71].mxu0 }
 0x185   : > { %v3700_v60 = vadd.f32 %v2812_v57, %v3588_v56  ;;  %v2815_v38 = vadd.f32 %v2814_v12, %v2813_v33  ;;  %v2879_v11 = vadd.f32 %v2878_v10, %v2877_v44  ;;  %v3703_v49 = vadd.f32 %v2876_v26, %v3622_v59 }
 0x187   : > { %v3706_v14 = vadd.f32 %v2815_v38, %v3590_v61  ;;  %v3709_v7 = vadd.f32 %v2879_v11, %v3624_v63  ;;  %v3738_v38 = vld [vmem:[%s3937_s2] ss:$0 sm:$0xff] }
 0x189   : > { %v2816_v13 = vpop.f32.mrb[72].mxu1  ;;  %v2880_v15 = vpop.f32.mrb[72].mxu0 }
 0x18a   : > { %v2817_v3 = vpop.f32.mrb[73].mxu1  ;;  %v2881_v51 = vpop.f32.mrb[73].mxu0 }
 0x18b   : > { %v2818_v29 = vadd.f32 %v2817_v3, %v2816_v13  ;;  %v2882_v25 = vadd.f32 %v2881_v51, %v2880_v15  ;;  %v2819_v32 = vpop.f32.mrb[74].mxu1  ;;  %v2883_v56 = vpop.f32.mrb[74].mxu0 }
 0x18c   : > { %v2820_v28 = vpop.f32.mrb[75].mxu1  ;;  %v2884_v31 = vpop.f32.mrb[75].mxu0 }
 0x18d   : > { %v3712_v34 = vadd.f32 %v2818_v29, %v3592_v4  ;;  %v2821_v59 = vadd.f32 %v2820_v28, %v2819_v32  ;;  %v2885_v36 = vadd.f32 %v2884_v31, %v2883_v56  ;;  %v3715_v61 = vadd.f32 %v2882_v25, %v3628_v17 }
 0x18f   : > { %v3718_v63 = vadd.f32 %v2821_v59, %v3594_v9  ;;  %v3721_v8 = vadd.f32 %v2885_v36, %v3632_v19 }
 0x191   : > { %v2822_v41 = vpop.f32.mrb[76].mxu1  ;;  %v2886_v5 = vpop.f32.mrb[76].mxu0 }
 0x192   : > { %v2823_v22 = vpop.f32.mrb[77].mxu1  ;;  %v2887_v20 = vpop.f32.mrb[77].mxu0 }
 0x193   : > { %v2824_v47 = vadd.f32 %v2823_v22, %v2822_v41  ;;  %v2888_v52 = vadd.f32 %v2887_v20, %v2886_v5  ;;  %v2825_v50 = vpop.f32.mrb[78].mxu1  ;;  %v2889_v4 = vpop.f32.mrb[78].mxu0 }
 0x194   : > { %v2826_v55 = vpop.f32.mrb[79].mxu1  ;;  %v2890_v57 = vpop.f32.mrb[79].mxu0 }
 0x195   : > { %v3724_v26 = vadd.f32 %v2824_v47, %v3596_v16  ;;  %v2827_v17 = vadd.f32 %v2826_v55, %v2825_v50  ;;  %v2891_v33 = vadd.f32 %v2890_v57, %v2889_v4  ;;  %v3727_v9 = vadd.f32 %v2888_v52, %v3636_v37 }
 0x197   : > { %v3730_v19 = vadd.f32 %v2827_v17, %v3598_v21  ;;  %v3733_v44 = vadd.f32 %v2891_v33, %v3640_v43  ;;  %v3744_v21 = vld [vmem:[%s3938_s3] ss:$0 sm:$0xff] }
 0x199   : > { %v2892_v12 = vpop.f32.mrb[80].mxu0  ;;  %v2976_v10 = vpop.f32.mrb[80].mxu1 }
 0x19a   : > { %v1900_v16 = vadd.f32 %v2976_v10, %v3656_v39  ;;  %v2893_v11 = vpop.f32.mrb[81].mxu0  ;;  %v1891_v13 = vpop.f32.mrb[81].mxu1 }
 0x19b   : > { %v2894_v37 = vadd.f32 %v2893_v11, %v2892_v12  ;;  %v1892_v43 = vadd.f32 %v1891_v13, %v3645_v1  ;;  %v2895_v15 = vpop.f32.mrb[82].mxu0  ;;  %v2977_v3 = vpop.f32.mrb[82].mxu1 }
 0x19c   : > { %v2027_v51 = vmul.f32 %v3738_v38, %v1900_v16  ;;  %v1903_v29 = vadd.f32 %v2977_v3, %v3661_v30  ;;  %v2896_v25 = vpop.f32.mrb[83].mxu0  ;;  %v1894_v32 = vpop.f32.mrb[83].mxu1 }
 0x19d   : > { %v2025_v39 = vmul.f32 %v3738_v38, %v1892_v43  ;;  %v2897_v56 = vadd.f32 %v2896_v25, %v2895_v15  ;;  %v1895_v28 = vadd.f32 %v1894_v32, %v3650_v23  ;;  %v3752_v31 = vadd.f32 %v2894_v37, %v3642_v0 }
 0x19e   : > { %v2066_v59 = vadd.f32 %v3744_v21, %v2027_v51  ;;  %v2028_v1 = vmul.f32 %v3738_v38, %v1903_v29 }
 0x19f   : > { %v2064_v36 = vadd.f32 %v3744_v21, %v2025_v39  ;;  %v2026_v41 = vmul.f32 %v3738_v38, %v1895_v28  ;;  %v3760_v30 = vadd.f32 %v2897_v56, %v3647_v6 }
 0x1a0   : > { %v2098_v5 = vmax.f32 %v2066_v59, 0.0  ;;  %v2067_v22 = vadd.f32 %v3744_v21, %v2028_v1 }
 0x1a1   : > { %v2096_v0 = vmax.f32 %v2064_v36, 0.0  ;;  %v2065_v23 = vadd.f32 %v3744_v21, %v2026_v41  ;;  %v2898_v20 = vpop.f32.mrb[84].mxu0  ;;  %v2980_v47 = vpop.f32.mrb[84].mxu1 }
 0x1a2   : > { %v2574_v52 = vpack.c.bf16 %v2098_v5, %v2098_v5  ;;  %v2099_v50 = vmax.f32 %v2067_v22, 0.0  ;;  %v1916_v6 = vadd.f32 %v2980_v47, %v3679_v18  ;;  %v2899_v4 = vpop.f32.mrb[85].mxu0  ;;  %v1907_v55 = vpop.f32.mrb[85].mxu1 }
 0x1a3   : > { %v2572_v57 = vpack.c.bf16 %v2096_v0, %v2096_v0  ;;  %v2097_v17 = vmax.f32 %v2065_v23, 0.0  ;;  %v2900_v33 = vadd.f32 %v2899_v4, %v2898_v20  ;;  %v1908_v12 = vadd.f32 %v1907_v55, %v3667_v62  ;;  %v2901_v10 = vpop.f32.mrb[86].mxu0  ;;  %v2981_v16 = vpop.f32.mrb[86].mxu1 }
 0x1a4   : > { %2259 = vst.msk [vmem:[%s3766_s20 + $0x8] sm:$0xf] %vm2256_vm1, %v2574_v52  ;;  %v2575_v11 = vpack.c.bf16 %v2099_v50, %v2099_v50  ;;  %v2031_v13 = vmul.f32 %v3738_v38, %v1916_v6  ;;  %v1919_v37 = vadd.f32 %v2981_v16, %v3685_v24  ;;  %v2902_v43 = vpop.f32.mrb[87].mxu0  ;;  %v1910_v18 = vpop.f32.mrb[87].mxu1 }
 0x1a5   : > { %2257 = vst.msk [vmem:[%s3766_s20] sm:$0xf] %vm2256_vm1, %v2572_v57  ;;  %v2573_v15 = vpack.c.bf16 %v2097_v17, %v2097_v17  ;;  %v2029_v3 = vmul.f32 %v3738_v38, %v1908_v12  ;;  %v2903_v51 = vadd.f32 %v2902_v43, %v2901_v10  ;;  %v1911_v62 = vadd.f32 %v1910_v18, %v3673_v48 }
 0x1a6   : > { %2260 = vst.msk [vmem:[%s3766_s20 + $0xc] sm:$0xf] %vm2256_vm1, %v2575_v11  ;;  %v2070_v29 = vadd.f32 %v3744_v21, %v2031_v13  ;;  %v2032_v25 = vmul.f32 %v3738_v38, %v1919_v37  ;;  %v3784_v32 = vadd.f32 %v2900_v33, %v3653_v27 }
 0x1a7   : > { %2258 = vst.msk [vmem:[%s3766_s20 + $0x4] sm:$0xf] %vm2256_vm1, %v2573_v15  ;;  %v2068_v24 = vadd.f32 %v3744_v21, %v2029_v3  ;;  %v2030_v39 = vmul.f32 %v3738_v38, %v1911_v62  ;;  %v3791_v56 = vadd.f32 %v2903_v51, %v3658_v35 }
 0x1a8   : > { %v2102_v28 = vmax.f32 %v2070_v29, 0.0  ;;  %v2071_v48 = vadd.f32 %v3744_v21, %v2032_v25 }
 0x1a9   : > { %v2100_v59 = vmax.f32 %v2068_v24, 0.0  ;;  %v2069_v1 = vadd.f32 %v3744_v21, %v2030_v39  ;;  %v2904_v36 = vpop.f32.mrb[88].mxu0  ;;  %v2984_v41 = vpop.f32.mrb[88].mxu1 }
 0x1aa   : > { %v2578_v27 = vpack.c.bf16 %v2102_v28, %v2102_v28  ;;  %v2103_v5 = vmax.f32 %v2071_v48, 0.0  ;;  %v1932_v22 = vadd.f32 %v2984_v41, %v3703_v49  ;;  %v2905_v0 = vpop.f32.mrb[89].mxu0  ;;  %v1923_v23 = vpop.f32.mrb[89].mxu1 }
 0x1ab   : > { %v2576_v20 = vpack.c.bf16 %v2100_v59, %v2100_v59  ;;  %v2101_v47 = vmax.f32 %v2069_v1, 0.0  ;;  %v2906_v35 = vadd.f32 %v2905_v0, %v2904_v36  ;;  %v1924_v52 = vadd.f32 %v1923_v23, %v3691_v58  ;;  %v2907_v50 = vpop.f32.mrb[90].mxu0  ;;  %v2985_v6 = vpop.f32.mrb[90].mxu1 }
 0x1ac   : > { %2263 = vst.msk [vmem:[%s3766_s20 + $0x18] sm:$0xf] %vm2256_vm1, %v2578_v27  ;;  %v2579_v4 = vpack.c.bf16 %v2103_v5, %v2103_v5  ;;  %v2035_v55 = vmul.f32 %v3738_v38, %v1932_v22  ;;  %v1935_v57 = vadd.f32 %v2985_v6, %v3709_v7  ;;  %v2908_v17 = vpop.f32.mrb[91].mxu0  ;;  %v1926_v49 = vpop.f32.mrb[91].mxu1 }
 0x1ad   : > { %2261 = vst.msk [vmem:[%s3766_s20 + $0x10] sm:$0xf] %vm2256_vm1, %v2576_v20  ;;  %v2577_v33 = vpack.c.bf16 %v2101_v47, %v2101_v47  ;;  %v2033_v12 = vmul.f32 %v3738_v38, %v1924_v52  ;;  %v2909_v10 = vadd.f32 %v2908_v17, %v2907_v50  ;;  %v1927_v58 = vadd.f32 %v1926_v49, %v3697_v46 }
 0x1ae   : > { %2264 = vst.msk [vmem:[%s3766_s20 + $0x1c] sm:$0xf] %vm2256_vm1, %v2579_v4  ;;  %v2074_v16 = vadd.f32 %v3744_v21, %v2035_v55  ;;  %v2036_v11 = vmul.f32 %v3738_v38, %v1935_v57  ;;  %v3810_v13 = vadd.f32 %v2906_v35, %v3664_v53 }
 0x1af   : > { %2262 = vst.msk [vmem:[%s3766_s20 + $0x14] sm:$0xf] %vm2256_vm1, %v2577_v33  ;;  %v2072_v7 = vadd.f32 %v3744_v21, %v2033_v12  ;;  %v2034_v37 = vmul.f32 %v3738_v38, %v1927_v58  ;;  %v3817_v43 = vadd.f32 %v2909_v10, %v3670_v42 }
 0x1b0   : > { %v2106_v18 = vmax.f32 %v2074_v16, 0.0  ;;  %v2075_v46 = vadd.f32 %v3744_v21, %v2036_v11 }
 0x1b1   : > { %v2104_v15 = vmax.f32 %v2072_v7, 0.0  ;;  %v2073_v3 = vadd.f32 %v3744_v21, %v2034_v37  ;;  %v2910_v51 = vpop.f32.mrb[92].mxu0  ;;  %v2988_v62 = vpop.f32.mrb[92].mxu1 }
 0x1b2   : > { %v2582_v53 = vpack.c.bf16 %v2106_v18, %v2106_v18  ;;  %v2107_v29 = vmax.f32 %v2075_v46, 0.0  ;;  %v1948_v25 = vadd.f32 %v2988_v62, %v3727_v9  ;;  %v2911_v24 = vpop.f32.mrb[93].mxu0  ;;  %v1939_v39 = vpop.f32.mrb[93].mxu1 }
 0x1b3   : > { %v2580_v28 = vpack.c.bf16 %v2104_v15, %v2104_v15  ;;  %v2105_v48 = vmax.f32 %v2073_v3, 0.0  ;;  %v2912_v42 = vadd.f32 %v2911_v24, %v2910_v51  ;;  %v1940_v59 = vadd.f32 %v1939_v39, %v3715_v61  ;;  %v2913_v1 = vpop.f32.mrb[94].mxu0  ;;  %v2989_v36 = vpop.f32.mrb[94].mxu1 }
 0x1b4   : > { %2267 = vst.msk [vmem:[%s3766_s20 + $0x28] sm:$0xf] %vm2256_vm1, %v2582_v53  ;;  %v2583_v41 = vpack.c.bf16 %v2107_v29, %v2107_v29  ;;  %v2039_v27 = vmul.f32 %v3738_v38, %v1948_v25  ;;  %v1951_v5 = vadd.f32 %v2989_v36, %v3733_v44  ;;  %v2914_v22 = vpop.f32.mrb[95].mxu0  ;;  %v1942_v9 = vpop.f32.mrb[95].mxu1 }
 0x1b5   : > { %2265 = vst.msk [vmem:[%s3766_s20 + $0x20] sm:$0xf] %vm2256_vm1, %v2580_v28  ;;  %v2581_v0 = vpack.c.bf16 %v2105_v48, %v2105_v48  ;;  %v2037_v23 = vmul.f32 %v3738_v38, %v1940_v59  ;;  %v2915_v20 = vadd.f32 %v2914_v22, %v2913_v1  ;;  %v1943_v61 = vadd.f32 %v1942_v9, %v3721_v8 }
 0x1b6   : > { %2268 = vst.msk [vmem:[%s3766_s20 + $0x2c] sm:$0xf] %vm2256_vm1, %v2583_v41  ;;  %v2078_v47 = vadd.f32 %v3744_v21, %v2039_v27  ;;  %v2040_v35 = vmul.f32 %v3738_v38, %v1951_v5  ;;  %v1819_v52 = vadd.f32 %v2912_v42, %v3676_v40 }
 0x1b7   : > { %2266 = vst.msk [vmem:[%s3766_s20 + $0x24] sm:$0xf] %vm2256_vm1, %v2581_v0  ;;  %v2076_v44 = vadd.f32 %v3744_v21, %v2037_v23  ;;  %v2038_v50 = vmul.f32 %v3738_v38, %v1943_v61  ;;  %v1822_v6 = vadd.f32 %v2915_v20, %v3682_v54 }
 0x1b8   : > { %v2110_v4 = vmax.f32 %v2078_v47, 0.0  ;;  %v2079_v55 = vadd.f32 %v3744_v21, %v2040_v35 }
 0x1b9   : > { %v2108_v8 = vmax.f32 %v2076_v44, 0.0  ;;  %v2077_v57 = vadd.f32 %v3744_v21, %v2038_v50  ;;  %v2916_v17 = vpop.f32.mrb[96].mxu0  ;;  %v2992_v49 = vpop.f32.mrb[96].mxu1 }
 0x1ba   : > { %v2586_v33 = vpack.c.bf16 %v2110_v4, %v2110_v4  ;;  %v2111_v12 = vmax.f32 %v2079_v55, 0.0  ;;  %v1964_v40 = vadd.f32 %v2992_v49, %v3784_v32  ;;  %v2917_v10 = vpop.f32.mrb[97].mxu0  ;;  %v1955_v58 = vpop.f32.mrb[97].mxu1 }
 0x1bb   : > { %v2584_v16 = vpack.c.bf16 %v2108_v8, %v2108_v8  ;;  %v2109_v11 = vmax.f32 %v2077_v57, 0.0  ;;  %v2918_v54 = vadd.f32 %v2917_v10, %v2916_v17  ;;  %v1956_v7 = vadd.f32 %v1955_v58, %v3752_v31  ;;  %v2919_v37 = vpop.f32.mrb[98].mxu0  ;;  %v2993_v18 = vpop.f32.mrb[98].mxu1 }
 0x1bc   : > { %2271 = vst.msk [vmem:[%s3766_s20 + $0x38] sm:$0xf] %vm2256_vm1, %v2586_v33  ;;  %v2587_v46 = vpack.c.bf16 %v2111_v12, %v2111_v12  ;;  %v2043_v15 = vmul.f32 %v3738_v38, %v1964_v40  ;;  %v1967_v3 = vadd.f32 %v2993_v18, %v3791_v56  ;;  %v2920_v51 = vpop.f32.mrb[99].mxu0  ;;  %v1958_v32 = vpop.f32.mrb[99].mxu1 }
 0x1bd   : > { %2269 = vst.msk [vmem:[%s3766_s20 + $0x30] sm:$0xf] %vm2256_vm1, %v2584_v16  ;;  %v2585_v62 = vpack.c.bf16 %v2109_v11, %v2109_v11  ;;  %v2041_v53 = vmul.f32 %v3738_v38, %v1956_v7  ;;  %v2921_v29 = vadd.f32 %v2920_v51, %v2919_v37  ;;  %v1959_v31 = vadd.f32 %v1958_v32, %v3760_v30 }
 0x1be   : > { %2272 = vst.msk [vmem:[%s3766_s20 + $0x3c] sm:$0xf] %vm2256_vm1, %v2587_v46  ;;  %v2082_v25 = vadd.f32 %v3744_v21, %v2043_v15  ;;  %v2044_v24 = vmul.f32 %v3738_v38, %v1967_v3  ;;  %v1827_v39 = vadd.f32 %v2918_v54, %v3688_v45 }
 0x1bf   : > { %2270 = vst.msk [vmem:[%s3766_s20 + $0x34] sm:$0xf] %vm2256_vm1, %v2585_v62  ;;  %v2080_v56 = vadd.f32 %v3744_v21, %v2041_v53  ;;  %v2042_v28 = vmul.f32 %v3738_v38, %v1959_v31  ;;  %v3863_v48 = vadd.f32 %v2921_v29, %v3694_v2 }
 0x1c0   : > { %v2114_v42 = vmax.f32 %v2082_v25, 0.0  ;;  %v2083_v30 = vadd.f32 %v3744_v21, %v2044_v24 }
 0x1c1   : > { %v2112_v59 = vmax.f32 %v2080_v56, 0.0  ;;  %v2081_v1 = vadd.f32 %v3744_v21, %v2042_v28  ;;  %v2922_v36 = vpop.f32.mrb[100].mxu0  ;;  %v2996_v41 = vpop.f32.mrb[100].mxu1 }
 0x1c2   : > { %v2590_v27 = vpack.c.bf16 %v2114_v42, %v2114_v42  ;;  %v2115_v45 = vmax.f32 %v2083_v30, 0.0  ;;  %v1980_v5 = vadd.f32 %v2996_v41, %v1819_v52  ;;  %v2923_v22 = vpop.f32.mrb[101].mxu0  ;;  %v1971_v9 = vpop.f32.mrb[101].mxu1 }
 0x1c3   : > { %v2588_v0 = vpack.c.bf16 %v2112_v59, %v2112_v59  ;;  %v2113_v23 = vmax.f32 %v2081_v1, 0.0  ;;  %v2924_v2 = vadd.f32 %v2923_v22, %v2922_v36  ;;  %v1972_v20 = vadd.f32 %v1971_v9, %v3810_v13  ;;  %v2925_v61 = vpop.f32.mrb[102].mxu0  ;;  %v2997_v47 = vpop.f32.mrb[102].mxu1 }
 0x1c4   : > { %2275 = vst.msk [vmem:[%s3766_s20 + $0x48] sm:$0xf] %vm2256_vm1, %v2590_v27  ;;  %v2591_v35 = vpack.c.bf16 %v2115_v45, %v2115_v45  ;;  %v2047_v44 = vmul.f32 %v3738_v38, %v1980_v5  ;;  %v1983_v50 = vadd.f32 %v2997_v47, %v1822_v6  ;;  %v2926_v4 = vpop.f32.mrb[103].mxu0  ;;  %v1974_v55 = vpop.f32.mrb[103].mxu1 }
 0x1c5   : > { %2273 = vst.msk [vmem:[%s3766_s20 + $0x40] sm:$0xf] %vm2256_vm1, %v2588_v0  ;;  %v2589_v52 = vpack.c.bf16 %v2113_v23, %v2113_v23  ;;  %v2045_v8 = vmul.f32 %v3738_v38, %v1972_v20  ;;  %v2927_v57 = vadd.f32 %v2926_v4, %v2925_v61  ;;  %v1975_v17 = vadd.f32 %v1974_v55, %v3817_v43 }
 0x1c6   : > { %2276 = vst.msk [vmem:[%s3766_s20 + $0x4c] sm:$0xf] %vm2256_vm1, %v2591_v35  ;;  %v2086_v13 = vadd.f32 %v3744_v21, %v2047_v44  ;;  %v2048_v49 = vmul.f32 %v3738_v38, %v1983_v50  ;;  %v1835_v33 = vadd.f32 %v2924_v2, %v3700_v60 }
 0x1c7   : > { %2274 = vst.msk [vmem:[%s3766_s20 + $0x44] sm:$0xf] %vm2256_vm1, %v2589_v52  ;;  %v2084_v6 = vadd.f32 %v3744_v21, %v2045_v8  ;;  %v2046_v12 = vmul.f32 %v3738_v38, %v1975_v17  ;;  %v1838_v40 = vadd.f32 %v2927_v57, %v3706_v14 }
 0x1c8   : > { %v2118_v10 = vmax.f32 %v2086_v13, 0.0  ;;  %v2087_v58 = vadd.f32 %v3744_v21, %v2048_v49 }
 0x1c9   : > { %v2116_v43 = vmax.f32 %v2084_v6, 0.0  ;;  %v2085_v16 = vadd.f32 %v3744_v21, %v2046_v12  ;;  %v2928_v11 = vpop.f32.mrb[104].mxu0  ;;  %v3000_v54 = vpop.f32.mrb[104].mxu1 }
 0x1ca   : > { %v2594_v7 = vpack.c.bf16 %v2118_v10, %v2118_v10  ;;  %v2119_v37 = vmax.f32 %v2087_v58, 0.0  ;;  %v1996_v60 = vadd.f32 %v3000_v54, %v1835_v33  ;;  %v2929_v18 = vpop.f32.mrb[105].mxu0  ;;  %v1987_v46 = vpop.f32.mrb[105].mxu1 }
 0x1cb   : > { %v2592_v15 = vpack.c.bf16 %v2116_v43, %v2116_v43  ;;  %v2117_v3 = vmax.f32 %v2085_v16, 0.0  ;;  %v2930_v51 = vadd.f32 %v2929_v18, %v2928_v11  ;;  %v1988_v14 = vadd.f32 %v1987_v46, %v1827_v39  ;;  %v2931_v32 = vpop.f32.mrb[106].mxu0  ;;  %v3001_v62 = vpop.f32.mrb[106].mxu1 }
 0x1cc   : > { %2279 = vst.msk [vmem:[%s3766_s20 + $0x58] sm:$0xf] %vm2256_vm1, %v2594_v7  ;;  %v2595_v53 = vpack.c.bf16 %v2119_v37, %v2119_v37  ;;  %v2051_v29 = vmul.f32 %v3738_v38, %v1996_v60  ;;  %v1999_v31 = vadd.f32 %v3001_v62, %v1838_v40  ;;  %v2932_v25 = vpop.f32.mrb[107].mxu0  ;;  %v1990_v24 = vpop.f32.mrb[107].mxu1 }
 0x1cd   : > { %2277 = vst.msk [vmem:[%s3766_s20 + $0x50] sm:$0xf] %vm2256_vm1, %v2592_v15  ;;  %v2593_v56 = vpack.c.bf16 %v2117_v3, %v2117_v3  ;;  %v2049_v28 = vmul.f32 %v3738_v38, %v1988_v14  ;;  %v2933_v42 = vadd.f32 %v2932_v25, %v2931_v32  ;;  %v1991_v30 = vadd.f32 %v1990_v24, %v3863_v48 }
 0x1ce   : > { %2280 = vst.msk [vmem:[%s3766_s20 + $0x5c] sm:$0xf] %vm2256_vm1, %v2595_v53  ;;  %v2090_v39 = vadd.f32 %v3744_v21, %v2051_v29  ;;  %v2052_v59 = vmul.f32 %v3738_v38, %v1999_v31  ;;  %v1843_v1 = vadd.f32 %v2930_v51, %v3712_v34 }
 0x1cf   : > { %2278 = vst.msk [vmem:[%s3766_s20 + $0x54] sm:$0xf] %vm2256_vm1, %v2593_v56  ;;  %v2088_v36 = vadd.f32 %v3744_v21, %v2049_v28  ;;  %v2050_v41 = vmul.f32 %v3738_v38, %v1991_v30  ;;  %v1846_v27 = vadd.f32 %v2933_v42, %v3718_v63 }
 0x1d0   : > { %v2122_v45 = vmax.f32 %v2090_v39, 0.0  ;;  %v2091_v48 = vadd.f32 %v3744_v21, %v2052_v59 }
 0x1d1   : > { %v2120_v5 = vmax.f32 %v2088_v36, 0.0  ;;  %v2089_v22 = vadd.f32 %v3744_v21, %v2050_v41  ;;  %v2934_v9 = vpop.f32.mrb[108].mxu0  ;;  %v3004_v0 = vpop.f32.mrb[108].mxu1 }
 0x1d2   : > { %v2598_v23 = vpack.c.bf16 %v2122_v45, %v2122_v45  ;;  %v2123_v34 = vmax.f32 %v2091_v48, 0.0  ;;  %v2935_v2 = vpop.f32.mrb[109].mxu0  ;;  %v2003_v20 = vpop.f32.mrb[109].mxu1 }
 0x1d3   : > { %v2596_v61 = vpack.c.bf16 %v2120_v5, %v2120_v5  ;;  %v2121_v47 = vmax.f32 %v2089_v22, 0.0  ;;  %v2936_v35 = vadd.f32 %v2935_v2, %v2934_v9  ;;  %v2004_v63 = vadd.f32 %v2003_v20, %v1843_v1  ;;  %v2937_v44 = vpop.f32.mrb[110].mxu0  ;;  %v3005_v50 = vpop.f32.mrb[110].mxu1 }
 0x1d4   : > { %2283 = vst.msk [vmem:[%s3766_s20 + $0x68] sm:$0xf] %vm2256_vm1, %v2598_v23  ;;  %v2599_v4 = vpack.c.bf16 %v2123_v34, %v2123_v34  ;;  %v2938_v55 = vpop.f32.mrb[111].mxu0  ;;  %v2006_v52 = vpop.f32.mrb[111].mxu1 }
 0x1d5   : > { %2281 = vst.msk [vmem:[%s3766_s20 + $0x60] sm:$0xf] %vm2256_vm1, %v2596_v61  ;;  %v2597_v8 = vpack.c.bf16 %v2121_v47, %v2121_v47  ;;  %v1851_v57 = vadd.f32 %v2936_v35, %v3724_v26  ;;  %v2053_v17 = vmul.f32 %v3738_v38, %v2004_v63  ;;  %v2939_v13 = vadd.f32 %v2938_v55, %v2937_v44 }
 0x1d6   : > { %2284 = vst.msk [vmem:[%s3766_s20 + $0x6c] sm:$0xf] %vm2256_vm1, %v2599_v4  ;;  %v2007_v49 = vadd.f32 %v2006_v52, %v1846_v27 }
 0x1d7   : > { %2282 = vst.msk [vmem:[%s3766_s20 + $0x64] sm:$0xf] %vm2256_vm1, %v2597_v8  ;;  %v2012_v33 = vadd.f32 %v3004_v0, %v1851_v57  ;;  %v2092_v6 = vadd.f32 %v3744_v21, %v2053_v17  ;;  %v1854_v12 = vadd.f32 %v2939_v13, %v3730_v19 }
 0x1d8   : > { %v2054_v40 = vmul.f32 %v3738_v38, %v2007_v49 }
 0x1d9   : > { %v2055_v26 = vmul.f32 %v3738_v38, %v2012_v33  ;;  %v2124_v10 = vmax.f32 %v2092_v6, 0.0  ;;  %v2015_v58 = vadd.f32 %v3005_v50, %v1854_v12 }
 0x1da   : > { %v2093_v43 = vadd.f32 %v3744_v21, %v2054_v40 }
 0x1db   : > { %v2094_v16 = vadd.f32 %v3744_v21, %v2055_v26  ;;  %v2600_v11 = vpack.c.bf16 %v2124_v10, %v2124_v10  ;;  %v2056_v54 = vmul.f32 %v3738_v38, %v2015_v58 }
 0x1dc   : > { %v2125_v7 = vmax.f32 %v2093_v43, 0.0 }
 0x1dd   : > { %v2126_v37 = vmax.f32 %v2094_v16, 0.0  ;;  %2285 = vst.msk [vmem:[%s3766_s20 + $0x70] sm:$0xf] %vm2256_vm1, %v2600_v11  ;;  %v2095_v19 = vadd.f32 %v3744_v21, %v2056_v54 }
 0x1de   : > { %v2601_v60 = vpack.c.bf16 %v2125_v7, %v2125_v7 }
 0x1df   : > { %v2602_v18 = vpack.c.bf16 %v2126_v37, %v2126_v37  ;;  %v2127_v46 = vmax.f32 %v2095_v19, 0.0 }
 0x1e0   : > { %2286 = vst.msk [vmem:[%s3766_s20 + $0x74] sm:$0xf] %vm2256_vm1, %v2601_v60 }
 0x1e1   : > { %2287 = vst.msk [vmem:[%s3766_s20 + $0x78] sm:$0xf] %vm2256_vm1, %v2602_v18  ;;  %v2603_v15 = vpack.c.bf16 %v2127_v46, %v2127_v46 }
 0x1e3   : > { %2288 = vst.msk [vmem:[%s3766_s20 + $0x7c] sm:$0xf] %vm2256_vm1, %v2603_v15 }
 0x1e4 PF: > { %s14_s15 = sadd.s32 1, %s3251_s15  }
 0x1e5   : > { %p11_p4 = scmp.ge.s32.totalorder %s14_s15, 8  }
 0x1e7   :  { %13 = sbr.rel (!%p11_p4) target bundleno = 1 (0x1), region = 66 }

// kernel: prun_forward.6
= control target key start
LH: loop header
LB: loop body
LE: loop exit
PB: predicated region body
PF: predicated region fallthrough
CT: control target
= control target key end

     0   :  { %s3629_s15 = smov 0   ;;  %s4307_s0 = inlined_call_operand.vmem [shape: bf16[256,1728], index: 0, kind: input, shape index: {}]   ;;  %s4308_s1 = inlined_call_operand.vmem [shape: bf16[1728,64], index: 1, kind: input, shape index: {}]   ;;  %s4309_s2 = inlined_call_operand.vmem [shape: f32[1,64], index: 2, kind: input, shape index: {}]   ;;  %s4310_s3 = inlined_call_operand.vmem [shape: f32[1,64], index: 3, kind: input, shape index: {}]   ;;  %s4311_s4 = inlined_call_operand.vmem [shape: bf16[256,64], index: 4, kind: output, shape index: {}]  }
   0x1 LB: > { %s2636_s16 = sadd.s32 4294967295, %s3601_s15   ;;  %p2640_p0 = scmp.ge.s32.totalorder %s3601_s15, 1  ;;  %s3601_s15 = sphi %s3629_s15, %s14_s15  }
   0x2   : > { %p164_p1 = scmp.lt.s32.totalorder %s3601_s15, 3 }
   0x4   : > { %p165_p2 = pnand %p2640_p0, %p164_p1 }
   0x5   : > { %v3319_v0 = vld [vmem:[%s4308_s1 + $0x40] sm:$0xff] (!%p165_p2)   ;;  %s2641_s19 = sshll.u32 (!%p165_p2), %s2636_s16, 4  ;;  %v3321_v2 = vld [vmem:[%s4308_s1 + $0x48] sm:$0xff] (!%p165_p2)   ;;  %v3323_v4 = vld [vmem:[%s4308_s1 + $0x50] sm:$0xff] (!%p165_p2)   ;;  %vm1733_vm0 = vcmask (!%p165_p2), 523264   ;;  %vm2563_vm1 = vcmask (!%p165_p2), 519168  }
   0x6   : > { %168 = sbr.rel (%p165_p2) target bundleno = 484 (0x1e4), region = 36  ;;  %v3320_v1 = vld [vmem:[%s4308_s1] sm:$0xff] (!%p165_p2)   ;;  %3293 = vmatprep.subr.bf16.mxu1 (!%p165_p2), %v3319_v0  ;;  %2909 = vmatprep.subr.bf16.mxu0 (!%p165_p2), %v3319_v0  ;;  %p192_p3 = scmp.lt.s32.totalorder (!%p165_p2), %s2641_s19, 31  ;;  %v3322_v3 = vld [vmem:[%s4308_s1 + $0x8] sm:$0xff] (!%p165_p2)   ;;  %v3324_v5 = vld [vmem:[%s4308_s1 + $0x10] sm:$0xff] (!%p165_p2)  }
   0x7   : > { %3301 = vmatpush3.bf16.msra.mxu1 (!%p165_p2), %v3320_v1  ;;  %2910 = vmatpush3.bf16.msra.mxu0 (!%p165_p2), %v3320_v1  ;;  %v3325_v6 = vld [vmem:[%s4308_s1 + $0x58] sm:$0xff] (!%p165_p2)   ;;  %v3327_v8 = vld [vmem:[%s4308_s1 + $0x60] sm:$0xff] (!%p165_p2)   ;;  %v3329_v10 = vld [vmem:[%s4308_s1 + $0x68] sm:$0xff] (!%p165_p2)  }
   0x8   : > { %3294 = vmatprep.subr.bf16.mxu1 (!%p165_p2), %v3321_v2  ;;  %2911 = vmatprep.subr.bf16.mxu0 (!%p165_p2), %v3321_v2  ;;  %v3326_v7 = vld [vmem:[%s4308_s1 + $0x18] sm:$0xff] (!%p165_p2)   ;;  %v3328_v9 = vld [vmem:[%s4308_s1 + $0x20] sm:$0xff] (!%p165_p2)   ;;  %v3330_v12 = vld [vmem:[%s4308_s1 + $0x28] sm:$0xff] (!%p165_p2)  }
   0x9   : > { %v3331_v14 = vld [vmem:[%s4308_s1 + $0x70] sm:$0xff] (!%p165_p2)   ;;  %v3333_v16 = vld [vmem:[%s4308_s1 + $0x78] sm:$0xff] (!%p165_p2)   ;;  %v3338_v18 = vld [vmem:[%s4308_s1 + $0xc0] sm:$0xff] (!%p165_p2)  }
   0xa   : > { %v3332_v15 = vld [vmem:[%s4308_s1 + $0x30] sm:$0xff] (!%p165_p2)   ;;  %v3334_v17 = vld [vmem:[%s4308_s1 + $0x38] sm:$0xff] (!%p165_p2)   ;;  %v3343_v21 = vld [vmem:[%s4308_s1 + $0x140] sm:$0xff] (!%p165_p2)  }
   0xb   : > { %3302 = vmatpush3.bf16.msra.mxu1 (!%p165_p2), %v3322_v3  ;;  %2912 = vmatpush3.bf16.msra.mxu0 (!%p165_p2), %v3322_v3  ;;  %v3342_v22 = vld [vmem:[%s4308_s1 + $0x80] sm:$0xff] (!%p165_p2)   ;;  %v3345_v24 = vld [vmem:[%s4308_s1 + $0xc8] sm:$0xff] (!%p165_p2)   ;;  %v3352_v30 = vld [vmem:[%s4308_s1 + $0xd0] sm:$0xff] (!%p165_p2)  }
   0xc   : > { %3295 = vmatprep.subr.bf16.mxu1 (!%p165_p2), %v3323_v4  ;;  %2913 = vmatprep.subr.bf16.mxu0 (!%p165_p2), %v3323_v4  ;;  %v3344_v23 = vld [vmem:[%s4308_s1 + $0x100] sm:$0xff] (!%p165_p2)   ;;  %v3347_v25 = vld [vmem:[%s4308_s1 + $0x148] sm:$0xff] (!%p165_p2)   ;;  %v3357_v32 = vld [vmem:[%s4308_s1 + $0x150] sm:$0xff] (!%p165_p2)  }
   0xd   : > { %s4313_s19 = smov (!%p192_p3, %s2641_s19), 31  ;;  %v3346_v27 = vld [vmem:[%s4308_s1 + $0x88] sm:$0xff]   ;;  %v3355_v33 = vld [vmem:[%s4308_s1 + $0x90] sm:$0xff]   ;;  %v3359_v36 = vld [vmem:[%s4308_s1 + $0xd8] sm:$0xff]  }
   0xe   : > { %s3309_s6 = smul.u32 56, %s4313_s19  ;;  %v3350_v29 = vld [vmem:[%s4308_s1 + $0x108] sm:$0xff]   ;;  %v3358_v35 = vld [vmem:[%s4308_s1 + $0x110] sm:$0xff]   ;;  %v3361_v37 = vld [vmem:[%s4308_s1 + $0x158] sm:$0xff]   ;;  %s2644_s7 = sshll.u32 %s4313_s19, 2 }
   0xf   : > { %3303 = vmatpush3.bf16.msra.mxu1 %v3324_v5  ;;  %2914 = vmatpush3.bf16.msra.mxu0 %v3324_v5  ;;  %v3360_v38 = vld [vmem:[%s4308_s1 + $0x98] sm:$0xff]   ;;  %v3366_v42 = vld [vmem:[%s4308_s1 + $0xe0] sm:$0xff]   ;;  %v3373_v48 = vld [vmem:[%s4308_s1 + $0xe8] sm:$0xff]   ;;  %s4229_s10 = scalar_lea.vmem %s4311_s4, %s2644_s7 }
  0x10   : > { %3296 = vmatprep.subr.bf16.mxu1 %v3325_v6  ;;  %2915 = vmatprep.subr.bf16.mxu0 %v3325_v6  ;;  %s3670_s13 = scalar_lea.vmem %s4307_s0, %s3309_s6  ;;  %v3364_v41 = vld [vmem:[%s4308_s1 + $0x118] sm:$0xff]   ;;  %v3371_v44 = vld [vmem:[%s4308_s1 + $0x160] sm:$0xff]   ;;  %v3375_v49 = vld [vmem:[%s4308_s1 + $0x168] sm:$0xff]  }
  0x11   : > { %v3337_v11 = vld [vmem:[%s3670_s13 + $0x1c4] ss:$56 sps:$4 sm:$0xff]   ;;  %v3335_v19 = vld [vmem:[%s3670_s13 + $0x1c0] ss:$56 sps:$4 sm:$0xff]   ;;  %v3348_v26 = vld [vmem:[%s3670_s13 + $0x234] ss:$56 sps:$4 sm:$0xff]  }
  0x12   : > { %v3341_v13 = vld [vmem:[%s3670_s13 + $0x4] ss:$56 sps:$4 sm:$0xff]   ;;  %1822 = vmatprep.mubr.bf16.mxu1 %v3337_v11  ;;  %v3339_v20 = vld [vmem:[%s3670_s13] ss:$56 sps:$4 sm:$0xff]   ;;  %v3353_v28 = vld [vmem:[%s3670_s13 + $0x74] ss:$56 sps:$4 sm:$0xff]  }
  0x13   : > { %3304 = vmatpush3.bf16.msra.mxu1 %v3326_v7  ;;  %2916 = vmatpush3.bf16.msra.mxu0 %v3326_v7  ;;  %v3351_v31 = vld [vmem:[%s3670_s13 + $0x230] ss:$56 sps:$4 sm:$0xff]   ;;  %v3362_v39 = vld [vmem:[%s3670_s13 + $0x2a4] ss:$56 sps:$4 sm:$0xff]   ;;  %v3365_v43 = vld [vmem:[%s3670_s13 + $0x2a0] ss:$56 sps:$4 sm:$0xff]  }
  0x14   : > { %3297 = vmatprep.subr.bf16.mxu1 %v3327_v8  ;;  %2917 = vmatprep.subr.bf16.mxu0 %v3327_v8  ;;  %v3356_v34 = vld [vmem:[%s3670_s13 + $0x70] ss:$56 sps:$4 sm:$0xff]   ;;  %v3367_v40 = vld [vmem:[%s3670_s13 + $0xe4] ss:$56 sps:$4 sm:$0xff]   ;;  %v3370_v46 = vld [vmem:[%s3670_s13 + $0xe0] ss:$56 sps:$4 sm:$0xff]  }
  0x15   : > { %1790 = vmatprep.mubr.bf16.mxu0 %v3341_v13  ;;  %v3369_v45 = vld [vmem:[%s4308_s1 + $0xa0] sm:$0xff]   ;;  %v3374_v50 = vld [vmem:[%s4308_s1 + $0xa8] sm:$0xff]   ;;  %v3380_v55 = vld [vmem:[%s4308_s1 + $0xf0] sm:$0xff]  }
  0x16   : > { %v3372_v47 = vld [vmem:[%s4308_s1 + $0x120] sm:$0xff]   ;;  %v3376_v51 = vld [vmem:[%s3670_s13 + $0x314] ss:$56 sps:$4 sm:$0xff]   ;;  %v3379_v54 = vld [vmem:[%s3670_s13 + $0x310] ss:$56 sps:$4 sm:$0xff]  }
  0x17   : > { %3305 = vmatpush3.bf16.msra.mxu1 %v3328_v9  ;;  %2918 = vmatpush3.bf16.msra.mxu0 %v3328_v9  ;;  %v3378_v52 = vld [vmem:[%s4308_s1 + $0x128] sm:$0xff]   ;;  %v3383_v56 = vld [vmem:[%s4308_s1 + $0xb0] sm:$0xff]   ;;  %v3387_v60 = vld [vmem:[%s4308_s1 + $0xf8] sm:$0xff]  }
  0x18   : > { %3298 = vmatprep.subr.bf16.mxu1 %v3329_v10  ;;  %2919 = vmatprep.subr.bf16.mxu0 %v3329_v10  ;;  %v3381_v53 = vld [vmem:[%s3670_s13 + $0x154] ss:$56 sps:$4 sm:$0xff]   ;;  %v3384_v58 = vld [vmem:[%s3670_s13 + $0x150] ss:$56 sps:$4 sm:$0xff]   ;;  %v3389_v61 = vld [vmem:[%s4308_s1 + $0x178] sm:$0xff]  }
  0x19   : > { %v3385_v57 = vld [vmem:[%s4308_s1 + $0x170] sm:$0xff]   ;;  %v3388_v62 = vld [vmem:[%s4308_s1 + $0xb8] sm:$0xff]   ;;  %v3392_v63 = vld [vmem:[%s3670_s13 + $0xc] ss:$56 sps:$4 sm:$0xff]  }
  0x1a   : > { %v3386_v59 = vld [vmem:[%s4308_s1 + $0x130] sm:$0xff]   ;;  %v3393_v0 = vld [vmem:[%s4308_s1 + $0x138] sm:$0xff]   ;;  %v3390_v1 = vld [vmem:[%s3670_s13 + $0x8] ss:$56 sps:$4 sm:$0xff]  }
  0x1b   : > { %3306 = vmatpush3.bf16.msra.mxu1 %v3330_v12  ;;  %2920 = vmatpush3.bf16.msra.mxu0 %v3330_v12  ;;  %v3394_v2 = vld [vmem:[%s4308_s1 + $0x1c0] sm:$0xff]   ;;  %v3395_v3 = vld [vmem:[%s3670_s13 + $0x10] ss:$56 sps:$4 sm:$0xff]   ;;  %v3397_v4 = vld [vmem:[%s3670_s13 + $0x14] ss:$56 sps:$4 sm:$0xff]  }
  0x1c   : > { %3299 = vmatprep.subr.bf16.mxu1 %v3331_v14  ;;  %2921 = vmatprep.subr.bf16.mxu0 %v3331_v14  ;;  %v3398_v5 = vld [vmem:[%s4308_s1 + $0x180] sm:$0xff]   ;;  %v3401_v8 = vld [vmem:[%s3670_s13 + $0x7c] ss:$56 sps:$4 sm:$0xff]   ;;  %v3404_v9 = vld [vmem:[%s4308_s1 + $0x1c8] sm:$0xff]  }
  0x1d   : > { %v3399_v6 = vld [vmem:[%s4308_s1 + $0x240] sm:$0xff]   ;;  %v3403_v10 = vld [vmem:[%s3670_s13 + $0x78] ss:$56 sps:$4 sm:$0xff]   ;;  %v3407_v12 = vld [vmem:[%s4308_s1 + $0x188] sm:$0xff]  }
  0x1e   : > { %v3400_v7 = vld [vmem:[%s4308_s1 + $0x200] sm:$0xff]   ;;  %v3409_v14 = vld [vmem:[%s4308_s1 + $0x248] sm:$0xff]  }
  0x1f   : > { %3307 = vmatpush3.bf16.msra.mxu1 %v3332_v15  ;;  %2922 = vmatpush3.bf16.msra.mxu0 %v3332_v15  ;;  %v3405_v11 = vld [vmem:[%s3670_s13 + $0x84] ss:$56 sps:$4 sm:$0xff]   ;;  %v3408_v13 = vld [vmem:[%s3670_s13 + $0x80] ss:$56 sps:$4 sm:$0xff]   ;;  %v3410_v15 = vld [vmem:[%s4308_s1 + $0x208] sm:$0xff]  }
  0x20   : > { %3300 = vmatprep.subr.bf16.mxu1 %v3333_v16  ;;  %2923 = vmatprep.subr.bf16.mxu0 %v3333_v16  ;;  %v3411_v16 = vld [vmem:[%s3670_s13 + $0xec] ss:$56 sps:$4 sm:$0xff]  }
  0x23   : > { %3308 = vmatpush3.bf16.msra.mxu1 %v3334_v17  ;;  %2924 = vmatpush3.bf16.msra.mxu0 %v3334_v17  ;;  %v3414_v17 = vld [vmem:[%s4308_s1 + $0x1d0] sm:$0xff]  }
  0x24   : > { %2973 = vmatprep.subr.bf16.mxu1 %v3338_v18  ;;  %3037 = vmatprep.subr.bf16.mxu0 %v3343_v21  ;;  %v3415_v18 = vld [vmem:[%s3670_s13 + $0xf4] ss:$56 sps:$4 sm:$0xff]   ;;  %v3418_v21 = vld [vmem:[%s3670_s13 + $0xf0] ss:$56 sps:$4 sm:$0xff]  }
  0x26   : > { %1823 = vmatmul.mubr.bf16.vlgmr.msra.gmra.mrb[0].mxu1 %v3335_v19  ;;  %1791 = vmatmul.mubr.bf16.vlgmr.msra.gmra.mrb[0].mxu0 %v3339_v20  ;;  %v3413_v19 = vld [vmem:[%s3670_s13 + $0xe8] ss:$56 sps:$4 sm:$0xff]   ;;  %v3417_v20 = vld [vmem:[%s4308_s1 + $0x190] sm:$0xff]  }
  0x27   : > { %2974 = vmatpush3.bf16.msra.mxu1 %v3342_v22  ;;  %3038 = vmatpush3.bf16.msra.mxu0 %v3344_v23  ;;  %v3419_v22 = vld [vmem:[%s4308_s1 + $0x250] sm:$0xff]  }
  0x28   : > { %2975 = vmatprep.subr.bf16.mxu1 %v3345_v24  ;;  %3039 = vmatprep.subr.bf16.mxu0 %v3347_v25  ;;  %v3420_v23 = vld [vmem:[%s4308_s1 + $0x210] sm:$0xff]   ;;  %v3424_v25 = vld [vmem:[%s4308_s1 + $0x1d8] sm:$0xff]  }
  0x29   : > { %1830 = vmatprep.mubr.bf16.mxu1 %v3348_v26  ;;  %1798 = vmatprep.mubr.bf16.mxu0 %v3353_v28  ;;  %v3421_v24 = vld [vmem:[%s3670_s13 + $0x15c] ss:$56 sps:$4 sm:$0xff]   ;;  %v3423_v28 = vld [vmem:[%s3670_s13 + $0x158] ss:$56 sps:$4 sm:$0xff]  }
  0x2a   : > { %v3425_v26 = vld [vmem:[%s3670_s13 + $0x164] ss:$56 sps:$4 sm:$0xff]  }
  0x2b   : > { %2976 = vmatpush3.bf16.msra.mxu1 %v3346_v27  ;;  %3040 = vmatpush3.bf16.msra.mxu0 %v3350_v29  ;;  %v3427_v27 = vld [vmem:[%s4308_s1 + $0x198] sm:$0xff]  }
  0x2c   : > { %2977 = vmatprep.subr.bf16.mxu1 %v3352_v30  ;;  %3041 = vmatprep.subr.bf16.mxu0 %v3357_v32  ;;  %v3429_v29 = vld [vmem:[%s4308_s1 + $0x258] sm:$0xff]   ;;  %v3431_v32 = vld [vmem:[%s3670_s13 + $0x1cc] ss:$56 sps:$4 sm:$0xff]  }
  0x2d   : > { %v3430_v30 = vld [vmem:[%s4308_s1 + $0x218] sm:$0xff]  }
  0x2e   : > { %1831 = vmatmul.mubr.bf16.gmra.mrb[4].mxu1 %v3351_v31  ;;  %1799 = vmatmul.mubr.bf16.gmra.mrb[4].mxu0 %v3356_v34  ;;  %v3428_v31 = vld [vmem:[%s3670_s13 + $0x160] ss:$56 sps:$4 sm:$0xff]   ;;  %v3435_v34 = vld [vmem:[%s3670_s13 + $0x1d4] ss:$56 sps:$4 sm:$0xff]  }
  0x2f   : > { %2978 = vmatpush3.bf16.msra.mxu1 %v3355_v33  ;;  %3042 = vmatpush3.bf16.msra.mxu0 %v3358_v35  ;;  %v3434_v33 = vld [vmem:[%s4308_s1 + $0x1e0] sm:$0xff]  }
  0x30   : > { %2979 = vmatprep.subr.bf16.mxu1 %v3359_v36  ;;  %3043 = vmatprep.subr.bf16.mxu0 %v3361_v37  ;;  %v3437_v35 = vld [vmem:[%s4308_s1 + $0x1a0] sm:$0xff]  }
  0x31   : > { %1838 = vmatprep.mubr.bf16.mxu1 %v3362_v39  ;;  %1806 = vmatprep.mubr.bf16.mxu0 %v3367_v40  ;;  %v3439_v36 = vld [vmem:[%s4308_s1 + $0x260] sm:$0xff]   ;;  %v3438_v39 = vld [vmem:[%s3670_s13 + $0x1d0] ss:$56 sps:$4 sm:$0xff]   ;;  %v3441_v40 = vld [vmem:[%s3670_s13 + $0x23c] ss:$56 sps:$4 sm:$0xff]  }
  0x32   : > { %v3440_v37 = vld [vmem:[%s4308_s1 + $0x220] sm:$0xff]  }
  0x33   : > { %2980 = vmatpush3.bf16.msra.mxu1 %v3360_v38  ;;  %3044 = vmatpush3.bf16.msra.mxu0 %v3364_v41  ;;  %v3433_v38 = vld [vmem:[%s3670_s13 + $0x1c8] ss:$56 sps:$4 sm:$0xff]  }
  0x34   : > { %2981 = vmatprep.subr.bf16.mxu1 %v3366_v42  ;;  %3045 = vmatprep.subr.bf16.mxu0 %v3371_v44  ;;  %v3444_v41 = vld [vmem:[%s4308_s1 + $0x1e8] sm:$0xff]   ;;  %v3445_v42 = vld [vmem:[%s3670_s13 + $0x244] ss:$56 sps:$4 sm:$0xff]  }
  0x35   : > { %v3449_v44 = vld [vmem:[%s4308_s1 + $0x268] sm:$0xff]  }
  0x36   : > { %1839 = vmatmul.mubr.bf16.gmra.mrb[8].mxu1 %v3365_v43  ;;  %1807 = vmatmul.mubr.bf16.gmra.mrb[8].mxu0 %v3370_v46  ;;  %v3447_v43 = vld [vmem:[%s4308_s1 + $0x1a8] sm:$0xff]   ;;  %v3443_v46 = vld [vmem:[%s3670_s13 + $0x238] ss:$56 sps:$4 sm:$0xff]  }
  0x37   : > { %2982 = vmatpush3.bf16.msra.mxu1 %v3369_v45  ;;  %3046 = vmatpush3.bf16.msra.mxu0 %v3372_v47  ;;  %v3450_v45 = vld [vmem:[%s4308_s1 + $0x228] sm:$0xff]   ;;  %v3448_v47 = vld [vmem:[%s3670_s13 + $0x240] ss:$56 sps:$4 sm:$0xff]  }
  0x38   : > { %2983 = vmatprep.subr.bf16.mxu1 %v3373_v48  ;;  %3047 = vmatprep.subr.bf16.mxu0 %v3375_v49  ;;  %v3454_v48 = vld [vmem:[%s4308_s1 + $0x1f0] sm:$0xff]   ;;  %v3451_v49 = vld [vmem:[%s3670_s13 + $0x2ac] ss:$56 sps:$4 sm:$0xff]  }
  0x39   : > { %1846 = vmatprep.mubr.bf16.mxu1 %v3376_v51  ;;  %1814 = vmatprep.mubr.bf16.mxu0 %v3381_v53  ;;  %v3455_v51 = vld [vmem:[%s3670_s13 + $0x2b4] ss:$56 sps:$4 sm:$0xff]  }
  0x3a   : > { %v3460_v53 = vld [vmem:[%s4308_s1 + $0x230] sm:$0xff]  }
  0x3b   : > { %2984 = vmatpush3.bf16.msra.mxu1 %v3374_v50  ;;  %3048 = vmatpush3.bf16.msra.mxu0 %v3378_v52  ;;  %v3457_v50 = vld [vmem:[%s4308_s1 + $0x1b0] sm:$0xff]  }
  0x3c   : > { %2985 = vmatprep.subr.bf16.mxu1 %v3380_v55  ;;  %3049 = vmatprep.subr.bf16.mxu0 %v3385_v57  ;;  %v3459_v52 = vld [vmem:[%s4308_s1 + $0x270] sm:$0xff]   ;;  %v3453_v55 = vld [vmem:[%s3670_s13 + $0x2a8] ss:$56 sps:$4 sm:$0xff]  }
  0x3d   : > { %v3461_v57 = vld [vmem:[%s3670_s13 + $0x31c] ss:$56 sps:$4 sm:$0xff]  }
  0x3e   : > { %1847 = vmatmul.mubr.bf16.gmra.mrb[12].mxu1 %v3379_v54  ;;  %1815 = vmatmul.mubr.bf16.gmra.mrb[12].mxu0 %v3384_v58  ;;  %v3464_v54 = vld [vmem:[%s4308_s1 + $0x1f8] sm:$0xff]  }
  0x3f   : > { %2986 = vmatpush3.bf16.msra.mxu1 %v3383_v56  ;;  %3050 = vmatpush3.bf16.msra.mxu0 %v3386_v59  ;;  %v3458_v56 = vld [vmem:[%s3670_s13 + $0x2b0] ss:$56 sps:$4 sm:$0xff]   ;;  %v3465_v58 = vld [vmem:[%s3670_s13 + $0x324] ss:$56 sps:$4 sm:$0xff]  }
  0x40   : > { %2987 = vmatprep.subr.bf16.mxu1 %v3387_v60  ;;  %3051 = vmatprep.subr.bf16.mxu0 %v3389_v61  ;;  %v3467_v59 = vld [vmem:[%s4308_s1 + $0x1b8] sm:$0xff]  }
  0x41   : > { %1887 = vmatprep.mubr.bf16.mxu1 %v3392_v63  ;;  %1984 = vmatprep.mubr.bf16.mxu0 %v3397_v4  ;;  %v3469_v60 = vld [vmem:[%s4308_s1 + $0x278] sm:$0xff]   ;;  %v3603_v63 = vmov 0  }
  0x42   : > { %v3470_v61 = vld [vmem:[%s4308_s1 + $0x238] sm:$0xff]  }
  0x43   : > { %2988 = vmatpush3.bf16.msra.mxu1 %v3388_v62  ;;  %3052 = vmatpush3.bf16.msra.mxu0 %v3393_v0  ;;  %v3474_v62 = vld [vmem:[%s4308_s1 + $0x2c0] sm:$0xff]   ;;  %v3463_v0 = vld [vmem:[%s3670_s13 + $0x318] ss:$56 sps:$4 sm:$0xff]  }
  0x44   : > { %3101 = vmatprep.subr.bf16.mxu1 %v3394_v2  ;;  %3165 = vmatprep.subr.bf16.mxu0 %v3399_v6  ;;  %v3473_v2 = vld [vmem:[%s3670_s13 + $0x1c] ss:$56 sps:$4 sm:$0xff]   ;;  %v3471_v4 = vld [vmem:[%s3670_s13 + $0x18] ss:$56 sps:$4 sm:$0xff]   ;;  %v3478_v6 = vld [vmem:[%s4308_s1 + $0x280] sm:$0xff]  }
  0x46   : > { %1888 = vmatmul.mubr.bf16.vlgmr.msra.gmra.mrb[16].mxu1 %v3390_v1  ;;  %1985 = vmatmul.mubr.bf16.vlgmr.msra.gmra.mrb[16].mxu0 %v3395_v3  ;;  %v3468_v1 = vld [vmem:[%s3670_s13 + $0x320] ss:$56 sps:$4 sm:$0xff]   ;;  %v3477_v3 = vld [vmem:[%s3670_s13 + $0x24] ss:$56 sps:$4 sm:$0xff]  }
  0x47   : > { %3102 = vmatpush3.bf16.msra.mxu1 %v3398_v5  ;;  %3166 = vmatpush3.bf16.msra.mxu0 %v3400_v7  ;;  %v3475_v5 = vld [vmem:[%s3670_s13 + $0x20] ss:$56 sps:$4 sm:$0xff]  }
  0x48   : > { %1895 = vmatprep.mubr.bf16.mxu1 %v3401_v8  ;;  %3103 = vmatprep.subr.bf16.mxu1 %v3404_v9  ;;  %v3479_v7 = vld [vmem:[%s4308_s1 + $0x300] sm:$0xff]   ;;  %v3483_v9 = vld [vmem:[%s4308_s1 + $0x2c8] sm:$0xff]  }
  0x49   : > { %1992 = vmatprep.mubr.bf16.mxu0 %v3405_v11  ;;  %3167 = vmatprep.subr.bf16.mxu0 %v3409_v14  ;;  %v3480_v8 = vld [vmem:[%s3670_s13 + $0x8c] ss:$56 sps:$4 sm:$0xff]   ;;  %v3482_v14 = vld [vmem:[%s3670_s13 + $0x88] ss:$56 sps:$4 sm:$0xff]  }
  0x4a   : > { %v3486_v11 = vld [vmem:[%s4308_s1 + $0x288] sm:$0xff]  }
  0x4b   : > { %3104 = vmatpush3.bf16.msra.mxu1 %v3407_v12  ;;  %3168 = vmatpush3.bf16.msra.mxu0 %v3410_v15  ;;  %v3488_v12 = vld [vmem:[%s4308_s1 + $0x308] sm:$0xff]  }
  0x4c   : > { %3105 = vmatprep.subr.bf16.mxu1 %v3414_v17  ;;  %3169 = vmatprep.subr.bf16.mxu0 %v3419_v22  ;;  %v3487_v15 = vld [vmem:[%s3670_s13 + $0x90] ss:$56 sps:$4 sm:$0xff]   ;;  %v3493_v17 = vld [vmem:[%s3670_s13 + $0x104] ss:$56 sps:$4 sm:$0xff]  }
  0x4d   : > { %v3491_v22 = vld [vmem:[%s3670_s13 + $0xf8] ss:$56 sps:$4 sm:$0xff]  }
  0x4e   : > { %1896 = vmatmul.mubr.bf16.gmra.mrb[20].mxu1 %v3403_v10  ;;  %1993 = vmatmul.mubr.bf16.gmra.mrb[20].mxu0 %v3408_v13  ;;  %v3484_v10 = vld [vmem:[%s3670_s13 + $0x94] ss:$56 sps:$4 sm:$0xff]  }
  0x4f   : > { %1903 = vmatprep.mubr.bf16.mxu1 %v3411_v16  ;;  %2000 = vmatprep.mubr.bf16.mxu0 %v3415_v18  ;;  %v3492_v13 = vld [vmem:[%s4308_s1 + $0x2d0] sm:$0xff]  }
  0x50   : > { %3106 = vmatpush3.bf16.msra.mxu1 %v3417_v20  ;;  %3170 = vmatpush3.bf16.msra.mxu0 %v3420_v23  ;;  %v3489_v16 = vld [vmem:[%s3670_s13 + $0xfc] ss:$56 sps:$4 sm:$0xff]   ;;  %v3497_v23 = vld [vmem:[%s3670_s13 + $0x100] ss:$56 sps:$4 sm:$0xff]  }
  0x51   : > { %3107 = vmatprep.subr.bf16.mxu1 %v3424_v25  ;;  %3171 = vmatprep.subr.bf16.mxu0 %v3429_v29  ;;  %v3495_v18 = vld [vmem:[%s4308_s1 + $0x290] sm:$0xff]   ;;  %v3502_v20 = vld [vmem:[%s4308_s1 + $0x2d8] sm:$0xff]   ;;  %v3511_v25 = vld [vmem:[%s4308_s1 + $0x2e0] sm:$0xff]  }
  0x52   : > { %v3514_v29 = vld [vmem:[%s4308_s1 + $0x2a0] sm:$0xff]  }
  0x54   : > { %3108 = vmatpush3.bf16.msra.mxu1 %v3427_v27  ;;  %3172 = vmatpush3.bf16.msra.mxu0 %v3430_v30  ;;  %v3503_v27 = vld [vmem:[%s3670_s13 + $0x174] ss:$56 sps:$4 sm:$0xff]  }
  0x55   : > { %3109 = vmatprep.subr.bf16.mxu1 %v3434_v33  ;;  %3173 = vmatprep.subr.bf16.mxu0 %v3439_v36  ;;  %v3521_v30 = vld [vmem:[%s4308_s1 + $0x2e8] sm:$0xff]   ;;  %v3512_v36 = vld [vmem:[%s3670_s13 + $0x1e4] ss:$56 sps:$4 sm:$0xff]  }
  0x56   : > { %1904 = vmatmul.mubr.bf16.gmra.mrb[24].mxu1 %v3413_v19  ;;  %2001 = vmatmul.mubr.bf16.gmra.mrb[24].mxu0 %v3418_v21  ;;  %v3496_v19 = vld [vmem:[%s4308_s1 + $0x310] sm:$0xff]   ;;  %v3498_v21 = vld [vmem:[%s4308_s1 + $0x318] sm:$0xff]  }
  0x57   : > { %1911 = vmatprep.mubr.bf16.mxu1 %v3421_v24  ;;  %2008 = vmatprep.mubr.bf16.mxu0 %v3425_v26  ;;  %v3505_v24 = vld [vmem:[%s4308_s1 + $0x298] sm:$0xff]   ;;  %v3499_v26 = vld [vmem:[%s3670_s13 + $0x16c] ss:$56 sps:$4 sm:$0xff]   ;;  %v3506_v33 = vld [vmem:[%s3670_s13 + $0x170] ss:$56 sps:$4 sm:$0xff]  }
  0x58   : > { %3110 = vmatpush3.bf16.msra.mxu1 %v3437_v35  ;;  %3174 = vmatpush3.bf16.msra.mxu0 %v3440_v37  ;;  %v3508_v35 = vld [vmem:[%s3670_s13 + $0x1dc] ss:$56 sps:$4 sm:$0xff]  }
  0x59   : > { %3111 = vmatprep.subr.bf16.mxu1 %v3444_v41  ;;  %3175 = vmatprep.subr.bf16.mxu0 %v3449_v44  ;;  %v3530_v37 = vld [vmem:[%s4308_s1 + $0x2f0] sm:$0xff]   ;;  %v3518_v44 = vld [vmem:[%s3670_s13 + $0x24c] ss:$56 sps:$4 sm:$0xff]  }
  0x5a   : > { %v3510_v41 = vld [vmem:[%s3670_s13 + $0x1d8] ss:$56 sps:$4 sm:$0xff]  }
  0x5c   : > { %3112 = vmatpush3.bf16.msra.mxu1 %v3447_v43  ;;  %3176 = vmatpush3.bf16.msra.mxu0 %v3450_v45  ;;  %v3540_v43 = vld [vmem:[%s4308_s1 + $0x2f8] sm:$0xff]  }
  0x5d   : > { %3113 = vmatprep.subr.bf16.mxu1 %v3454_v48  ;;  %3177 = vmatprep.subr.bf16.mxu0 %v3459_v52  ;;  %v3543_v45 = vld [vmem:[%s4308_s1 + $0x2b8] sm:$0xff]   ;;  %v3536_v48 = vld [vmem:[%s4308_s1 + $0x348] sm:$0xff]  }
  0x5e   : > { %1912 = vmatmul.mubr.bf16.gmra.mrb[28].mxu1 %v3423_v28  ;;  %2009 = vmatmul.mubr.bf16.gmra.mrb[28].mxu0 %v3428_v31  ;;  %v3507_v28 = vld [vmem:[%s4308_s1 + $0x320] sm:$0xff]   ;;  %v3515_v31 = vld [vmem:[%s4308_s1 + $0x328] sm:$0xff]  }
  0x5f   : > { %1919 = vmatprep.mubr.bf16.mxu1 %v3431_v32  ;;  %2016 = vmatprep.mubr.bf16.mxu0 %v3435_v34  ;;  %v3501_v32 = vld [vmem:[%s3670_s13 + $0x168] ss:$56 sps:$4 sm:$0xff]   ;;  %v3531_v52 = vld [vmem:[%s3670_s13 + $0x2c4] ss:$56 sps:$4 sm:$0xff]  }
  0x60   : > { %3114 = vmatpush3.bf16.msra.mxu1 %v3457_v50  ;;  %3178 = vmatpush3.bf16.msra.mxu0 %v3460_v53  ;;  %v3524_v34 = vld [vmem:[%s4308_s1 + $0x2a8] sm:$0xff]   ;;  %v3545_v53 = vld [vmem:[%s4308_s1 + $0x350] sm:$0xff]  }
  0x61   : > { %3115 = vmatprep.subr.bf16.mxu1 %v3464_v54  ;;  %3179 = vmatprep.subr.bf16.mxu0 %v3469_v60  ;;  %v3525_v50 = vld [vmem:[%s3670_s13 + $0x250] ss:$56 sps:$4 sm:$0xff]   ;;  %v3549_v54 = vld [vmem:[%s4308_s1 + $0x358] sm:$0xff]  }
  0x62   : > { %v3544_v60 = vld [vmem:[%s3670_s13 + $0x330] ss:$56 sps:$4 sm:$0xff]  }
  0x64   : > { %3116 = vmatpush3.bf16.msra.mxu1 %v3467_v59  ;;  %3180 = vmatpush3.bf16.msra.mxu0 %v3470_v61  ;;  %v3539_v59 = vld [vmem:[%s3670_s13 + $0x328] ss:$56 sps:$4 sm:$0xff]   ;;  %v3548_v61 = vld [vmem:[%s3670_s13 + $0x2c] ss:$56 sps:$4 sm:$0xff]  }
  0x65   : > { %3229 = vmatprep.subr.bf16.mxu1 %v3474_v62  ;;  %2340 = vmatprep.subr.bf16.mxu0 %v3603_v63  ;;  %v3552_v62 = vld [vmem:[%s3670_s13 + $0x34] ss:$56 sps:$4 sm:$0xff]  }
  0x66   : > { %1920 = vmatmul.mubr.bf16.gmra.mrb[32].mxu1 %v3433_v38  ;;  %2017 = vmatmul.mubr.bf16.gmra.mrb[32].mxu0 %v3438_v39  ;;  %v3517_v38 = vld [vmem:[%s4308_s1 + $0x330] sm:$0xff]  }
  0x67   : > { %1927 = vmatprep.mubr.bf16.mxu1 %v3441_v40  ;;  %2024 = vmatprep.mubr.bf16.mxu0 %v3445_v42  ;;  %v3533_v39 = vld [vmem:[%s4308_s1 + $0x2b0] sm:$0xff]   ;;  %v3526_v40 = vld [vmem:[%s4308_s1 + $0x338] sm:$0xff]  }
  0x68   : > { %v3516_v42 = vld [vmem:[%s3670_s13 + $0x1e0] ss:$56 sps:$4 sm:$0xff]  }
  0x6e   : > { %1928 = vmatmul.mubr.bf16.gmra.mrb[36].mxu1 %v3443_v46  ;;  %2025 = vmatmul.mubr.bf16.gmra.mrb[36].mxu0 %v3448_v47  ;;  %v3522_v46 = vld [vmem:[%s3670_s13 + $0x254] ss:$56 sps:$4 sm:$0xff]   ;;  %v3534_v47 = vld [vmem:[%s4308_s1 + $0x340] sm:$0xff]  }
  0x6f   : > { %1935 = vmatprep.mubr.bf16.mxu1 %v3451_v49  ;;  %2032 = vmatprep.mubr.bf16.mxu0 %v3455_v51  ;;  %v3520_v49 = vld [vmem:[%s3670_s13 + $0x248] ss:$56 sps:$4 sm:$0xff]   ;;  %v3527_v51 = vld [vmem:[%s3670_s13 + $0x2bc] ss:$56 sps:$4 sm:$0xff]  }
  0x76   : > { %1936 = vmatmul.mubr.bf16.gmra.mrb[40].mxu1 %v3453_v55  ;;  %2033 = vmatmul.mubr.bf16.gmra.mrb[40].mxu0 %v3458_v56  ;;  %v3529_v55 = vld [vmem:[%s3670_s13 + $0x2b8] ss:$56 sps:$4 sm:$0xff]  }
  0x77   : > { %1943 = vmatprep.mubr.bf16.mxu1 %v3461_v57  ;;  %2040 = vmatprep.mubr.bf16.mxu0 %v3465_v58  ;;  %v3535_v56 = vld [vmem:[%s3670_s13 + $0x2c0] ss:$56 sps:$4 sm:$0xff]   ;;  %v3537_v57 = vld [vmem:[%s3670_s13 + $0x32c] ss:$56 sps:$4 sm:$0xff]  }
  0x78   : > { %v3541_v58 = vld [vmem:[%s3670_s13 + $0x334] ss:$56 sps:$4 sm:$0xff]  }
  0x7e   : > { %1944 = vmatmul.mubr.bf16.gmra.mrb[44].mxu1 %v3463_v0  ;;  %2041 = vmatmul.mubr.bf16.gmra.mrb[44].mxu0 %v3468_v1  ;;  %v3550_v0 = vld [vmem:[%s3670_s13 + $0x30] ss:$56 sps:$4 sm:$0xff]   ;;  %v3553_v1 = vld [vmem:[%s3670_s13 + $0x9c] ss:$56 sps:$4 sm:$0xff]  }
  0x7f   : > { %2081 = vmatprep.mubr.bf16.mxu1 %v3473_v2  ;;  %2178 = vmatprep.mubr.bf16.mxu0 %v3477_v3  ;;  %v3556_v2 = vld [vmem:[%s3670_s13 + $0xa4] ss:$56 sps:$4 sm:$0xff]   ;;  %v3555_v3 = vld [vmem:[%s3670_s13 + $0x98] ss:$56 sps:$4 sm:$0xff]  }
  0x86   : > { %2082 = vmatmul.mubr.bf16.vlgmr.msra.gmra.mrb[48].mxu1 %v3471_v4  ;;  %2179 = vmatmul.mubr.bf16.vlgmr.msra.gmra.mrb[48].mxu0 %v3475_v5  ;;  %v3558_v4 = vld [vmem:[%s3670_s13 + $0xa0] ss:$56 sps:$4 sm:$0xff]   ;;  %v3559_v5 = vld [vmem:[%s3670_s13 + $0x10c] ss:$56 sps:$4 sm:$0xff]  }
  0x87   : > { %3230 = vmatpush3.bf16.msra.mxu1 %v3478_v6  ;;  %2341 = vmatpush1.bf16.msra.mxu0 %v3479_v7  ;;  %v3562_v6 = vld [vmem:[%s3670_s13 + $0x114] ss:$56 sps:$4 sm:$0xff]   ;;  %v3561_v7 = vld [vmem:[%s3670_s13 + $0x108] ss:$56 sps:$4 sm:$0xff]  }
  0x88   : > { %2089 = vmatprep.mubr.bf16.mxu1 %v3480_v8  ;;  %3231 = vmatprep.subr.bf16.mxu1 %v3483_v9  ;;  %v3564_v8 = vld [vmem:[%s3670_s13 + $0x110] ss:$56 sps:$4 sm:$0xff]   ;;  %v3565_v9 = vld [vmem:[%s3670_s13 + $0x17c] ss:$56 sps:$4 sm:$0xff]  }
  0x89   : > { %2186 = vmatprep.mubr.bf16.mxu0 %v3484_v10  ;;  %2342 = vmatprep.subr.bf16.mxu0 %v3603_v63  ;;  %v3568_v10 = vld [vmem:[%s3670_s13 + $0x184] ss:$56 sps:$4 sm:$0xff]  }
  0x8b   : > { %3232 = vmatpush3.bf16.msra.mxu1 %v3486_v11  ;;  %2343 = vmatpush1.bf16.msra.mxu0 %v3488_v12  ;;  %v3567_v11 = vld [vmem:[%s3670_s13 + $0x178] ss:$56 sps:$4 sm:$0xff]  }
  0x8c   : > { %3233 = vmatprep.subr.bf16.mxu1 %v3492_v13  ;;  %2344 = vmatprep.subr.bf16.mxu0 %v3603_v63  ;;  %v3570_v12 = vld [vmem:[%s3670_s13 + $0x180] ss:$56 sps:$4 sm:$0xff]   ;;  %v3571_v13 = vld [vmem:[%s3670_s13 + $0x1ec] ss:$56 sps:$4 sm:$0xff]  }
  0x8e   : > { %2090 = vmatmul.mubr.bf16.gmra.mrb[52].mxu1 %v3482_v14  ;;  %2187 = vmatmul.mubr.bf16.gmra.mrb[52].mxu0 %v3487_v15  ;;  %v3574_v14 = vld [vmem:[%s3670_s13 + $0x1f4] ss:$56 sps:$4 sm:$0xff]   ;;  %v3573_v15 = vld [vmem:[%s3670_s13 + $0x1e8] ss:$56 sps:$4 sm:$0xff]  }
  0x8f   : > { %2097 = vmatprep.mubr.bf16.mxu1 %v3489_v16  ;;  %2194 = vmatprep.mubr.bf16.mxu0 %v3493_v17  ;;  %v3576_v16 = vld [vmem:[%s3670_s13 + $0x1f0] ss:$56 sps:$4 sm:$0xff]   ;;  %v3577_v17 = vld [vmem:[%s3670_s13 + $0x25c] ss:$56 sps:$4 sm:$0xff]  }
  0x90   : > { %3234 = vmatpush3.bf16.msra.mxu1 %v3495_v18  ;;  %2345 = vmatpush1.bf16.msra.mxu0 %v3496_v19  ;;  %v3580_v18 = vld [vmem:[%s3670_s13 + $0x264] ss:$56 sps:$4 sm:$0xff]   ;;  %v3579_v19 = vld [vmem:[%s3670_s13 + $0x258] ss:$56 sps:$4 sm:$0xff]  }
  0x91   : > { %2346 = vmatprep.subr.bf16.mxu0 %v3603_v63  ;;  %3235 = vmatprep.subr.bf16.mxu1 %v3502_v20  ;;  %v3582_v20 = vld [vmem:[%s3670_s13 + $0x260] ss:$56 sps:$4 sm:$0xff]  }
  0x94   : > { %2347 = vmatpush1.bf16.msra.mxu0 %v3498_v21  ;;  %3236 = vmatpush3.bf16.msra.mxu1 %v3505_v24  ;;  %v3583_v21 = vld [vmem:[%s3670_s13 + $0x2cc] ss:$56 sps:$4 sm:$0xff]   ;;  %v3588_v24 = vld [vmem:[%s3670_s13 + $0x2d0] ss:$56 sps:$4 sm:$0xff]  }
  0x95   : > { %2348 = vmatprep.subr.bf16.mxu0 %v3603_v63  ;;  %3237 = vmatprep.subr.bf16.mxu1 %v3511_v25  ;;  %v3589_v25 = vld [vmem:[%s3670_s13 + $0x33c] ss:$56 sps:$4 sm:$0xff]  }
  0x96   : > { %2098 = vmatmul.mubr.bf16.gmra.mrb[56].mxu1 %v3491_v22  ;;  %2195 = vmatmul.mubr.bf16.gmra.mrb[56].mxu0 %v3497_v23  ;;  %v3586_v22 = vld [vmem:[%s3670_s13 + $0x2d4] ss:$56 sps:$4 sm:$0xff]   ;;  %v3585_v23 = vld [vmem:[%s3670_s13 + $0x2c8] ss:$56 sps:$4 sm:$0xff]  }
  0x97   : > { %2105 = vmatprep.mubr.bf16.mxu1 %v3499_v26  ;;  %2202 = vmatprep.mubr.bf16.mxu0 %v3503_v27  ;;  %v3592_v26 = vld [vmem:[%s3670_s13 + $0x344] ss:$56 sps:$4 sm:$0xff]  }
  0x98   : > { %2349 = vmatpush1.bf16.msra.mxu0 %v3507_v28  ;;  %3238 = vmatpush3.bf16.msra.mxu1 %v3514_v29 }
  0x99   : > { %2350 = vmatprep.subr.bf16.mxu0 %v3603_v63  ;;  %3239 = vmatprep.subr.bf16.mxu1 %v3521_v30 }
  0x9c   : > { %2351 = vmatpush1.bf16.msra.mxu0 %v3515_v31  ;;  %3240 = vmatpush3.bf16.msra.mxu1 %v3524_v34  ;;  %v3591_v31 = vld [vmem:[%s3670_s13 + $0x338] ss:$56 sps:$4 sm:$0xff]  }
  0x9d   : > { %2352 = vmatprep.subr.bf16.mxu0 %v3603_v63  ;;  %3241 = vmatprep.subr.bf16.mxu1 %v3530_v37 }
  0x9e   : > { %2106 = vmatmul.mubr.bf16.gmra.mrb[60].mxu1 %v3501_v32  ;;  %2203 = vmatmul.mubr.bf16.gmra.mrb[60].mxu0 %v3506_v33  ;;  %v3594_v32 = vld [vmem:[%s3670_s13 + $0x340] ss:$56 sps:$4 sm:$0xff]  }
  0x9f   : > { %2113 = vmatprep.mubr.bf16.mxu1 %v3508_v35  ;;  %2210 = vmatprep.mubr.bf16.mxu0 %v3512_v36 }
  0xa0   : > { %2353 = vmatpush1.bf16.msra.mxu0 %v3517_v38  ;;  %3242 = vmatpush3.bf16.msra.mxu1 %v3533_v39 }
  0xa1   : > { %2354 = vmatprep.subr.bf16.mxu0 %v3603_v63  ;;  %3243 = vmatprep.subr.bf16.mxu1 %v3540_v43 }
  0xa4   : > { %2355 = vmatpush1.bf16.msra.mxu0 %v3526_v40  ;;  %3244 = vmatpush3.bf16.msra.mxu1 %v3543_v45 }
  0xa5   : > { %2356 = vmatprep.subr.bf16.mxu0 %v3603_v63 }
  0xa6   : > { %2114 = vmatmul.mubr.bf16.gmra.mrb[64].mxu1 %v3510_v41  ;;  %2211 = vmatmul.mubr.bf16.gmra.mrb[64].mxu0 %v3516_v42 }
  0xa7   : > { %2121 = vmatprep.mubr.bf16.mxu1 %v3518_v44  ;;  %2218 = vmatprep.mubr.bf16.mxu0 %v3522_v46 }
  0xa8   : > { %2357 = vmatpush1.bf16.msra.mxu0 %v3534_v47 }
  0xa9   : > { %2358 = vmatprep.subr.bf16.mxu0 %v3603_v63 }
  0xac   : > { %2359 = vmatpush1.bf16.msra.mxu0 %v3536_v48 }
  0xad   : > { %2360 = vmatprep.subr.bf16.mxu0 %v3603_v63 }
  0xae   : > { %2122 = vmatmul.mubr.bf16.gmra.mrb[68].mxu1 %v3520_v49  ;;  %2219 = vmatmul.mubr.bf16.gmra.mrb[68].mxu0 %v3525_v50 }
  0xaf   : > { %2129 = vmatprep.mubr.bf16.mxu1 %v3527_v51  ;;  %2226 = vmatprep.mubr.bf16.mxu0 %v3531_v52 }
  0xb0   : > { %2361 = vmatpush1.bf16.msra.mxu0 %v3545_v53 }
  0xb1   : > { %2362 = vmatprep.subr.bf16.mxu0 %v3603_v63  ;;  %v3546_v63 = vld [vmem:[%s3670_s13 + $0x28] ss:$56 sps:$4 sm:$0xff]  }
  0xb4   : > { %2363 = vmatpush1.bf16.msra.mxu0 %v3549_v54 }
  0xb6   : > { %2130 = vmatmul.mubr.bf16.gmra.mrb[72].mxu1 %v3529_v55  ;;  %2227 = vmatmul.mubr.bf16.gmra.mrb[72].mxu0 %v3535_v56 }
  0xb7   : > { %2137 = vmatprep.mubr.bf16.mxu1 %v3537_v57  ;;  %2234 = vmatprep.mubr.bf16.mxu0 %v3541_v58 }
  0xbe   : > { %2138 = vmatmul.mubr.bf16.gmra.mrb[76].mxu1 %v3539_v59  ;;  %2235 = vmatmul.mubr.bf16.gmra.mrb[76].mxu0 %v3544_v60 }
  0xbf   : > { %2275 = vmatprep.mubr.bf16.mxu1 %v3548_v61  ;;  %2865 = vmatprep.mubr.msk.bf16.mxu0 %vm1733_vm0, %v3552_v62 }
  0xc6   : > { %2276 = vmatmul.mubr.bf16.vlgmr.msra.gmra.mrb[80].mxu1 %v3546_v63  ;;  %2373 = vmatmul.mubr.bf16.vlgmr.msra.gmra.mrb[80].mxu0 %v3550_v0 }
  0xc7   : > { %2283 = vmatprep.mubr.bf16.mxu1 %v3553_v1  ;;  %2866 = vmatprep.mubr.msk.bf16.mxu0 %vm1733_vm0, %v3556_v2 }
  0xce   : > { %2284 = vmatmul.mubr.bf16.gmra.mrb[84].mxu1 %v3555_v3  ;;  %2381 = vmatmul.mubr.bf16.gmra.mrb[84].mxu0 %v3558_v4 }
  0xcf   : > { %2291 = vmatprep.mubr.bf16.mxu1 %v3559_v5  ;;  %2867 = vmatprep.mubr.msk.bf16.mxu0 %vm1733_vm0, %v3562_v6 }
  0xd6   : > { %2292 = vmatmul.mubr.bf16.gmra.mrb[88].mxu1 %v3561_v7  ;;  %2389 = vmatmul.mubr.bf16.gmra.mrb[88].mxu0 %v3564_v8 }
  0xd7   : > { %2299 = vmatprep.mubr.bf16.mxu1 %v3565_v9  ;;  %2868 = vmatprep.mubr.msk.bf16.mxu0 %vm1733_vm0, %v3568_v10 }
  0xde   : > { %2300 = vmatmul.mubr.bf16.gmra.mrb[92].mxu1 %v3567_v11  ;;  %2397 = vmatmul.mubr.bf16.gmra.mrb[92].mxu0 %v3570_v12 }
  0xdf   : > { %2307 = vmatprep.mubr.bf16.mxu1 %v3571_v13  ;;  %2869 = vmatprep.mubr.msk.bf16.mxu0 %vm1733_vm0, %v3574_v14 }
  0xe6   : > { %2308 = vmatmul.mubr.bf16.gmra.mrb[96].mxu1 %v3573_v15  ;;  %2405 = vmatmul.mubr.bf16.gmra.mrb[96].mxu0 %v3576_v16 }
  0xe7   : > { %2315 = vmatprep.mubr.bf16.mxu1 %v3577_v17  ;;  %2870 = vmatprep.mubr.msk.bf16.mxu0 %vm1733_vm0, %v3580_v18 }
  0xee   : > { %2316 = vmatmul.mubr.bf16.gmra.mrb[100].mxu1 %v3579_v19  ;;  %2413 = vmatmul.mubr.bf16.gmra.mrb[100].mxu0 %v3582_v20 }
  0xef   : > { %2323 = vmatprep.mubr.bf16.mxu1 %v3583_v21  ;;  %2871 = vmatprep.mubr.msk.bf16.mxu0 %vm1733_vm0, %v3586_v22 }
  0xf6   : > { %2324 = vmatmul.mubr.bf16.gmra.mrb[104].mxu1 %v3585_v23  ;;  %2421 = vmatmul.mubr.bf16.gmra.mrb[104].mxu0 %v3588_v24 }
  0xf7   : > { %2331 = vmatprep.mubr.bf16.mxu1 %v3589_v25  ;;  %2872 = vmatprep.mubr.msk.bf16.mxu0 %vm1733_vm0, %v3592_v26 }
  0xf9   : > { %v2949_v27 = vpop.f32.mrb[0].mxu1  ;;  %v2925_v28 = vpop.f32.mrb[0].mxu0 }
  0xfa   : > { %v2950_v29 = vpop.f32.mrb[1].mxu1  ;;  %v2926_v30 = vpop.f32.mrb[1].mxu0 }
  0xfb   : > { %v4101_v33 = vadd.f32 %v2950_v29, %v2949_v27  ;;  %v2952_v34 = vpop.f32.mrb[2].mxu1  ;;  %v2927_v35 = vadd.f32 %v2926_v30, %v2925_v28  ;;  %v2928_v36 = vpop.f32.mrb[2].mxu0 }
  0xfc   : > { %v2953_v37 = vpop.f32.mrb[3].mxu1  ;;  %v2929_v38 = vpop.f32.mrb[3].mxu0 }
  0xfd   : > { %v4103_v39 = vadd.f32 %v2953_v37, %v2952_v34  ;;  %v2930_v40 = vadd.f32 %v2929_v38, %v2928_v36 }
  0xfe   : > { %2332 = vmatmul.mubr.bf16.gmra.mrb[108].mxu1 %v3591_v31  ;;  %2429 = vmatmul.mubr.bf16.gmra.mrb[108].mxu0 %v3594_v32 }
 0x101   : > { %v2955_v41 = vpop.f32.mrb[4].mxu1  ;;  %v2931_v42 = vpop.f32.mrb[4].mxu0 }
 0x102   : > { %v2956_v43 = vpop.f32.mrb[5].mxu1  ;;  %v2932_v44 = vpop.f32.mrb[5].mxu0 }
 0x103   : > { %v4105_v45 = vadd.f32 %v2956_v43, %v2955_v41  ;;  %v2958_v46 = vpop.f32.mrb[6].mxu1  ;;  %v2933_v47 = vadd.f32 %v2932_v44, %v2931_v42  ;;  %v2934_v48 = vpop.f32.mrb[6].mxu0 }
 0x104   : > { %v2959_v49 = vpop.f32.mrb[7].mxu1  ;;  %v2935_v50 = vpop.f32.mrb[7].mxu0 }
 0x105   : > { %v4107_v51 = vadd.f32 %v2959_v49, %v2958_v46  ;;  %v2936_v52 = vadd.f32 %v2935_v50, %v2934_v48 }
 0x109   : > { %v2961_v53 = vpop.f32.mrb[8].mxu1  ;;  %v2937_v54 = vpop.f32.mrb[8].mxu0 }
 0x10a   : > { %v2962_v55 = vpop.f32.mrb[9].mxu1  ;;  %v2938_v56 = vpop.f32.mrb[9].mxu0 }
 0x10b   : > { %v4109_v57 = vadd.f32 %v2962_v55, %v2961_v53  ;;  %v2964_v58 = vpop.f32.mrb[10].mxu1  ;;  %v2939_v59 = vadd.f32 %v2938_v56, %v2937_v54  ;;  %v2940_v60 = vpop.f32.mrb[10].mxu0 }
 0x10c   : > { %v2965_v61 = vpop.f32.mrb[11].mxu1  ;;  %v2941_v62 = vpop.f32.mrb[11].mxu0 }
 0x10d   : > { %v4111_v63 = vadd.f32 %v2965_v61, %v2964_v58  ;;  %v2942_v0 = vadd.f32 %v2941_v62, %v2940_v60 }
 0x111   : > { %v2967_v1 = vpop.f32.mrb[12].mxu1  ;;  %v2943_v2 = vpop.f32.mrb[12].mxu0 }
 0x112   : > { %v2968_v3 = vpop.f32.mrb[13].mxu1  ;;  %v2944_v4 = vpop.f32.mrb[13].mxu0 }
 0x113   : > { %v4113_v5 = vadd.f32 %v2968_v3, %v2967_v1  ;;  %v2970_v6 = vpop.f32.mrb[14].mxu1  ;;  %v4115_v7 = vadd.f32 %v2944_v4, %v2943_v2  ;;  %v2946_v8 = vpop.f32.mrb[14].mxu0 }
 0x114   : > { %v2971_v9 = vpop.f32.mrb[15].mxu1  ;;  %v2947_v10 = vpop.f32.mrb[15].mxu0 }
 0x115   : > { %v4117_v11 = vadd.f32 %v2971_v9, %v2970_v6  ;;  %v2948_v12 = vadd.f32 %v2947_v10, %v2946_v8 }
 0x119   : > { %v2989_v13 = vpop.f32.mrb[16].mxu1  ;;  %v3053_v14 = vpop.f32.mrb[16].mxu0 }
 0x11a   : > { %v2990_v15 = vpop.f32.mrb[17].mxu1  ;;  %v3054_v16 = vpop.f32.mrb[17].mxu0 }
 0x11b   : > { %v2991_v17 = vadd.f32 %v2990_v15, %v2989_v13  ;;  %v2992_v18 = vpop.f32.mrb[18].mxu1  ;;  %v3055_v19 = vadd.f32 %v3054_v16, %v3053_v14  ;;  %v3056_v20 = vpop.f32.mrb[18].mxu0 }
 0x11c   : > { %v2993_v21 = vpop.f32.mrb[19].mxu1  ;;  %v3057_v22 = vpop.f32.mrb[19].mxu0 }
 0x11d   : > { %v1890_v23 = vadd.f32 %v2991_v17, %v2927_v35  ;;  %v2994_v24 = vadd.f32 %v2993_v21, %v2992_v18  ;;  %v3058_v25 = vadd.f32 %v3057_v22, %v3056_v20 }
 0x11f   : > { %v1893_v26 = vadd.f32 %v2994_v24, %v2930_v40  ;;  %v4119_v27 = vadd.f32 %v3055_v19, %v1890_v23 }
 0x121   : > { %v4121_v28 = vadd.f32 %v3058_v25, %v1893_v26  ;;  %v2995_v29 = vpop.f32.mrb[20].mxu1  ;;  %v3059_v30 = vpop.f32.mrb[20].mxu0 }
 0x122   : > { %v2996_v31 = vpop.f32.mrb[21].mxu1  ;;  %v3060_v32 = vpop.f32.mrb[21].mxu0 }
 0x123   : > { %v2997_v34 = vadd.f32 %v2996_v31, %v2995_v29  ;;  %v2998_v36 = vpop.f32.mrb[22].mxu1  ;;  %v3061_v37 = vadd.f32 %v3060_v32, %v3059_v30  ;;  %v3062_v38 = vpop.f32.mrb[22].mxu0 }
 0x124   : > { %v2999_v41 = vpop.f32.mrb[23].mxu1  ;;  %v3063_v42 = vpop.f32.mrb[23].mxu0 }
 0x125   : > { %v1898_v43 = vadd.f32 %v2997_v34, %v2933_v47  ;;  %v3000_v44 = vadd.f32 %v2999_v41, %v2998_v36  ;;  %v3064_v35 = vadd.f32 %v3063_v42, %v3062_v38 }
 0x127   : > { %v1901_v46 = vadd.f32 %v3000_v44, %v2936_v52  ;;  %v4123_v48 = vadd.f32 %v3061_v37, %v1898_v43 }
 0x129   : > { %v4125_v40 = vadd.f32 %v3064_v35, %v1901_v46  ;;  %v3001_v49 = vpop.f32.mrb[24].mxu1  ;;  %v3065_v50 = vpop.f32.mrb[24].mxu0 }
 0x12a   : > { %v3002_v53 = vpop.f32.mrb[25].mxu1  ;;  %v3066_v54 = vpop.f32.mrb[25].mxu0 }
 0x12b   : > { %v3003_v55 = vadd.f32 %v3002_v53, %v3001_v49  ;;  %v3004_v56 = vpop.f32.mrb[26].mxu1  ;;  %v3067_v58 = vadd.f32 %v3066_v54, %v3065_v50  ;;  %v3068_v60 = vpop.f32.mrb[26].mxu0 }
 0x12c   : > { %v3005_v61 = vpop.f32.mrb[27].mxu1  ;;  %v3069_v62 = vpop.f32.mrb[27].mxu0 }
 0x12d   : > { %v1906_v1 = vadd.f32 %v3003_v55, %v2939_v59  ;;  %v3006_v2 = vadd.f32 %v3005_v61, %v3004_v56  ;;  %v3070_v47 = vadd.f32 %v3069_v62, %v3068_v60 }
 0x12f   : > { %v1909_v3 = vadd.f32 %v3006_v2, %v2942_v0  ;;  %v4127_v4 = vadd.f32 %v3067_v58, %v1906_v1 }
 0x131   : > { %v4129_v52 = vadd.f32 %v3070_v47, %v1909_v3  ;;  %v3007_v6 = vpop.f32.mrb[28].mxu1  ;;  %v3071_v8 = vpop.f32.mrb[28].mxu0 }
 0x132   : > { %v3008_v9 = vpop.f32.mrb[29].mxu1  ;;  %v3072_v10 = vpop.f32.mrb[29].mxu0 }
 0x133   : > { %v3009_v13 = vadd.f32 %v3008_v9, %v3007_v6  ;;  %v3010_v14 = vpop.f32.mrb[30].mxu1  ;;  %v3073_v15 = vadd.f32 %v3072_v10, %v3071_v8  ;;  %v3074_v16 = vpop.f32.mrb[30].mxu0 }
 0x134   : > { %v3011_v17 = vpop.f32.mrb[31].mxu1  ;;  %v3075_v18 = vpop.f32.mrb[31].mxu0 }
 0x135   : > { %v1914_v19 = vadd.f32 %v3009_v13, %v4115_v7  ;;  %v3012_v59 = vadd.f32 %v3011_v17, %v3010_v14  ;;  %v3076_v20 = vadd.f32 %v3075_v18, %v3074_v16 }
 0x137   : > { %v1917_v21 = vadd.f32 %v3012_v59, %v2948_v12  ;;  %v4132_v0 = vadd.f32 %v3073_v15, %v1914_v19 }
 0x139   : > { %v4134_v22 = vadd.f32 %v3076_v20, %v1917_v21  ;;  %v3013_v23 = vpop.f32.mrb[32].mxu1  ;;  %v3077_v24 = vpop.f32.mrb[32].mxu0 }
 0x13a   : > { %v3014_v25 = vpop.f32.mrb[33].mxu1  ;;  %v3078_v26 = vpop.f32.mrb[33].mxu0 }
 0x13b   : > { %v3015_v29 = vadd.f32 %v3014_v25, %v3013_v23  ;;  %v3016_v30 = vpop.f32.mrb[34].mxu1  ;;  %v3079_v31 = vadd.f32 %v3078_v26, %v3077_v24  ;;  %v3080_v32 = vpop.f32.mrb[34].mxu0 }
 0x13c   : > { %v3017_v34 = vpop.f32.mrb[35].mxu1  ;;  %v3081_v36 = vpop.f32.mrb[35].mxu0 }
 0x13d   : > { %v1922_v37 = vadd.f32 %v3015_v29, %v4101_v33  ;;  %v3018_v7 = vadd.f32 %v3017_v34, %v3016_v30  ;;  %v3082_v38 = vadd.f32 %v3081_v36, %v3080_v32 }
 0x13f   : > { %v1925_v12 = vadd.f32 %v3018_v7, %v4103_v39  ;;  %v4138_v41 = vadd.f32 %v3079_v31, %v1922_v37 }
 0x141   : > { %v4140_v42 = vadd.f32 %v3082_v38, %v1925_v12  ;;  %v3019_v43 = vpop.f32.mrb[36].mxu1  ;;  %v3083_v44 = vpop.f32.mrb[36].mxu0 }
 0x142   : > { %v3020_v35 = vpop.f32.mrb[37].mxu1  ;;  %v3084_v46 = vpop.f32.mrb[37].mxu0 }
 0x143   : > { %v3021_v49 = vadd.f32 %v3020_v35, %v3019_v43  ;;  %v3022_v50 = vpop.f32.mrb[38].mxu1  ;;  %v3085_v53 = vadd.f32 %v3084_v46, %v3083_v44  ;;  %v3086_v54 = vpop.f32.mrb[38].mxu0 }
 0x144   : > { %v3023_v55 = vpop.f32.mrb[39].mxu1  ;;  %v3087_v56 = vpop.f32.mrb[39].mxu0 }
 0x145   : > { %v1930_v33 = vadd.f32 %v3021_v49, %v4105_v45  ;;  %v3024_v58 = vadd.f32 %v3023_v55, %v3022_v50  ;;  %v3088_v60 = vadd.f32 %v3087_v56, %v3086_v54 }
 0x147   : > { %v1933_v39 = vadd.f32 %v3024_v58, %v4107_v51  ;;  %v4144_v61 = vadd.f32 %v3085_v53, %v1930_v33 }
 0x149   : > { %v4146_v62 = vadd.f32 %v3088_v60, %v1933_v39  ;;  %v3025_v1 = vpop.f32.mrb[40].mxu1  ;;  %v3089_v2 = vpop.f32.mrb[40].mxu0 }
 0x14a   : > { %v3026_v47 = vpop.f32.mrb[41].mxu1  ;;  %v3090_v3 = vpop.f32.mrb[41].mxu0 }
 0x14b   : > { %v3027_v6 = vadd.f32 %v3026_v47, %v3025_v1  ;;  %v3028_v8 = vpop.f32.mrb[42].mxu1  ;;  %v3091_v9 = vadd.f32 %v3090_v3, %v3089_v2  ;;  %v3092_v10 = vpop.f32.mrb[42].mxu0 }
 0x14c   : > { %v3029_v13 = vpop.f32.mrb[43].mxu1  ;;  %v3093_v14 = vpop.f32.mrb[43].mxu0 }
 0x14d   : > { %v1938_v45 = vadd.f32 %v3027_v6, %v4109_v57  ;;  %v3030_v15 = vadd.f32 %v3029_v13, %v3028_v8  ;;  %v3094_v16 = vadd.f32 %v3093_v14, %v3092_v10 }
 0x14f   : > { %v1941_v51 = vadd.f32 %v3030_v15, %v4111_v63  ;;  %v4150_v17 = vadd.f32 %v3091_v9, %v1938_v45 }
 0x151   : > { %v4152_v18 = vadd.f32 %v3094_v16, %v1941_v51  ;;  %v3031_v19 = vpop.f32.mrb[44].mxu1  ;;  %v3095_v59 = vpop.f32.mrb[44].mxu0 }
 0x152   : > { %v3032_v20 = vpop.f32.mrb[45].mxu1  ;;  %v3096_v21 = vpop.f32.mrb[45].mxu0 }
 0x153   : > { %v3033_v23 = vadd.f32 %v3032_v20, %v3031_v19  ;;  %v3034_v24 = vpop.f32.mrb[46].mxu1  ;;  %v3097_v25 = vadd.f32 %v3096_v21, %v3095_v59  ;;  %v3098_v26 = vpop.f32.mrb[46].mxu0 }
 0x154   : > { %v3035_v29 = vpop.f32.mrb[47].mxu1  ;;  %v3099_v30 = vpop.f32.mrb[47].mxu0 }
 0x155   : > { %v1946_v57 = vadd.f32 %v3033_v23, %v4113_v5  ;;  %v3036_v31 = vadd.f32 %v3035_v29, %v3034_v24  ;;  %v3100_v32 = vadd.f32 %v3099_v30, %v3098_v26 }
 0x157   : > { %v1949_v63 = vadd.f32 %v3036_v31, %v4117_v11  ;;  %v4156_v34 = vadd.f32 %v3097_v25, %v1946_v57 }
 0x159   : > { %v4158_v36 = vadd.f32 %v3100_v32, %v1949_v63  ;;  %v3117_v37 = vpop.f32.mrb[48].mxu1  ;;  %v3181_v7 = vpop.f32.mrb[48].mxu0 }
 0x15a   : > { %v3118_v38 = vpop.f32.mrb[49].mxu1  ;;  %v3182_v12 = vpop.f32.mrb[49].mxu0 }
 0x15b   : > { %v3119_v43 = vadd.f32 %v3118_v38, %v3117_v37  ;;  %v3120_v44 = vpop.f32.mrb[50].mxu1  ;;  %v3183_v35 = vadd.f32 %v3182_v12, %v3181_v7  ;;  %v3184_v46 = vpop.f32.mrb[50].mxu0 }
 0x15c   : > { %v3121_v49 = vpop.f32.mrb[51].mxu1  ;;  %v3185_v50 = vpop.f32.mrb[51].mxu0 }
 0x15d   : > { %v2084_v5 = vadd.f32 %v3119_v43, %v4119_v27  ;;  %v3122_v53 = vadd.f32 %v3121_v49, %v3120_v44  ;;  %v3186_v54 = vadd.f32 %v3185_v50, %v3184_v46 }
 0x15f   : > { %v2087_v11 = vadd.f32 %v3122_v53, %v4121_v28  ;;  %v4162_v55 = vadd.f32 %v3183_v35, %v2084_v5 }
 0x161   : > { %v4164_v56 = vadd.f32 %v3186_v54, %v2087_v11  ;;  %v3123_v33 = vpop.f32.mrb[52].mxu1  ;;  %v3187_v58 = vpop.f32.mrb[52].mxu0 }
 0x162   : > { %v3124_v60 = vpop.f32.mrb[53].mxu1  ;;  %v3188_v39 = vpop.f32.mrb[53].mxu0 }
 0x163   : > { %v3125_v1 = vadd.f32 %v3124_v60, %v3123_v33  ;;  %v3126_v2 = vpop.f32.mrb[54].mxu1  ;;  %v3189_v47 = vadd.f32 %v3188_v39, %v3187_v58  ;;  %v3190_v3 = vpop.f32.mrb[54].mxu0 }
 0x164   : > { %v3127_v6 = vpop.f32.mrb[55].mxu1  ;;  %v3191_v8 = vpop.f32.mrb[55].mxu0 }
 0x165   : > { %v2092_v27 = vadd.f32 %v3125_v1, %v4123_v48  ;;  %v3128_v9 = vadd.f32 %v3127_v6, %v3126_v2  ;;  %v3192_v10 = vadd.f32 %v3191_v8, %v3190_v3 }
 0x167   : > { %v2095_v28 = vadd.f32 %v3128_v9, %v4125_v40  ;;  %v4168_v13 = vadd.f32 %v3189_v47, %v2092_v27 }
 0x169   : > { %v4170_v14 = vadd.f32 %v3192_v10, %v2095_v28  ;;  %v3129_v45 = vpop.f32.mrb[56].mxu1  ;;  %v3193_v15 = vpop.f32.mrb[56].mxu0 }
 0x16a   : > { %v3130_v16 = vpop.f32.mrb[57].mxu1  ;;  %v3194_v51 = vpop.f32.mrb[57].mxu0 }
 0x16b   : > { %v3131_v19 = vadd.f32 %v3130_v16, %v3129_v45  ;;  %v3132_v59 = vpop.f32.mrb[58].mxu1  ;;  %v3195_v20 = vadd.f32 %v3194_v51, %v3193_v15  ;;  %v3196_v21 = vpop.f32.mrb[58].mxu0 }
 0x16c   : > { %v3133_v23 = vpop.f32.mrb[59].mxu1  ;;  %v3197_v24 = vpop.f32.mrb[59].mxu0 }
 0x16d   : > { %v2100_v48 = vadd.f32 %v3131_v19, %v4127_v4  ;;  %v3134_v25 = vadd.f32 %v3133_v23, %v3132_v59  ;;  %v3198_v26 = vadd.f32 %v3197_v24, %v3196_v21 }
 0x16f   : > { %v2103_v40 = vadd.f32 %v3134_v25, %v4129_v52  ;;  %v4174_v29 = vadd.f32 %v3195_v20, %v2100_v48 }
 0x171   : > { %v4176_v30 = vadd.f32 %v3198_v26, %v2103_v40  ;;  %v3135_v57 = vpop.f32.mrb[60].mxu1  ;;  %v3199_v31 = vpop.f32.mrb[60].mxu0 }
 0x172   : > { %v3136_v32 = vpop.f32.mrb[61].mxu1  ;;  %v3200_v63 = vpop.f32.mrb[61].mxu0 }
 0x173   : > { %v3137_v37 = vadd.f32 %v3136_v32, %v3135_v57  ;;  %v3138_v7 = vpop.f32.mrb[62].mxu1  ;;  %v3201_v38 = vadd.f32 %v3200_v63, %v3199_v31  ;;  %v3202_v12 = vpop.f32.mrb[62].mxu0 }
 0x174   : > { %v3139_v43 = vpop.f32.mrb[63].mxu1  ;;  %v3203_v44 = vpop.f32.mrb[63].mxu0 }
 0x175   : > { %v2108_v4 = vadd.f32 %v3137_v37, %v4132_v0  ;;  %v3140_v35 = vadd.f32 %v3139_v43, %v3138_v7  ;;  %v3204_v46 = vadd.f32 %v3203_v44, %v3202_v12 }
 0x177   : > { %v2111_v52 = vadd.f32 %v3140_v35, %v4134_v22  ;;  %v4180_v49 = vadd.f32 %v3201_v38, %v2108_v4 }
 0x179   : > { %v4182_v50 = vadd.f32 %v3204_v46, %v2111_v52  ;;  %v3141_v5 = vpop.f32.mrb[64].mxu1  ;;  %v3205_v53 = vpop.f32.mrb[64].mxu0 }
 0x17a   : > { %v3142_v54 = vpop.f32.mrb[65].mxu1  ;;  %v3206_v11 = vpop.f32.mrb[65].mxu0 }
 0x17b   : > { %v3143_v33 = vadd.f32 %v3142_v54, %v3141_v5  ;;  %v3144_v58 = vpop.f32.mrb[66].mxu1  ;;  %v3207_v60 = vadd.f32 %v3206_v11, %v3205_v53  ;;  %v3208_v39 = vpop.f32.mrb[66].mxu0 }
 0x17c   : > { %v3145_v1 = vpop.f32.mrb[67].mxu1  ;;  %v3209_v2 = vpop.f32.mrb[67].mxu0 }
 0x17d   : > { %v2116_v0 = vadd.f32 %v3143_v33, %v4138_v41  ;;  %v3146_v47 = vadd.f32 %v3145_v1, %v3144_v58  ;;  %v3210_v3 = vadd.f32 %v3209_v2, %v3208_v39 }
 0x17f   : > { %v2119_v22 = vadd.f32 %v3146_v47, %v4140_v42  ;;  %v4186_v6 = vadd.f32 %v3207_v60, %v2116_v0 }
 0x181   : > { %v4188_v8 = vadd.f32 %v3210_v3, %v2119_v22  ;;  %v3147_v27 = vpop.f32.mrb[68].mxu1  ;;  %v3211_v9 = vpop.f32.mrb[68].mxu0 }
 0x182   : > { %v3148_v10 = vpop.f32.mrb[69].mxu1  ;;  %v3212_v28 = vpop.f32.mrb[69].mxu0 }
 0x183   : > { %v3149_v45 = vadd.f32 %v3148_v10, %v3147_v27  ;;  %v3150_v15 = vpop.f32.mrb[70].mxu1  ;;  %v3213_v16 = vadd.f32 %v3212_v28, %v3211_v9  ;;  %v3214_v51 = vpop.f32.mrb[70].mxu0 }
 0x184   : > { %v3151_v19 = vpop.f32.mrb[71].mxu1  ;;  %v3215_v59 = vpop.f32.mrb[71].mxu0 }
 0x185   : > { %v2124_v41 = vadd.f32 %v3149_v45, %v4144_v61  ;;  %v3152_v20 = vadd.f32 %v3151_v19, %v3150_v15  ;;  %v3216_v21 = vadd.f32 %v3215_v59, %v3214_v51  ;;  %v4218_v19 = vld [vmem:[%s4310_s3] ss:$0 sm:$0xff] }
 0x187   : > { %v2127_v42 = vadd.f32 %v3152_v20, %v4146_v62  ;;  %v4192_v23 = vadd.f32 %v3213_v16, %v2124_v41 }
 0x189   : > { %v4194_v24 = vadd.f32 %v3216_v21, %v2127_v42  ;;  %v3153_v48 = vpop.f32.mrb[72].mxu1  ;;  %v3217_v25 = vpop.f32.mrb[72].mxu0 }
 0x18a   : > { %v3154_v26 = vpop.f32.mrb[73].mxu1  ;;  %v3218_v40 = vpop.f32.mrb[73].mxu0 }
 0x18b   : > { %v3155_v57 = vadd.f32 %v3154_v26, %v3153_v48  ;;  %v3156_v31 = vpop.f32.mrb[74].mxu1  ;;  %v3219_v32 = vadd.f32 %v3218_v40, %v3217_v25  ;;  %v3220_v63 = vpop.f32.mrb[74].mxu0 }
 0x18c   : > { %v3157_v37 = vpop.f32.mrb[75].mxu1  ;;  %v3221_v7 = vpop.f32.mrb[75].mxu0 }
 0x18d   : > { %v2132_v61 = vadd.f32 %v3155_v57, %v4150_v17  ;;  %v3158_v38 = vadd.f32 %v3157_v37, %v3156_v31  ;;  %v3222_v12 = vadd.f32 %v3221_v7, %v3220_v63 }
 0x18f   : > { %v2135_v62 = vadd.f32 %v3158_v38, %v4152_v18  ;;  %v4198_v43 = vadd.f32 %v3219_v32, %v2132_v61 }
 0x191   : > { %v4200_v44 = vadd.f32 %v3222_v12, %v2135_v62  ;;  %v3159_v4 = vpop.f32.mrb[76].mxu1  ;;  %v3223_v35 = vpop.f32.mrb[76].mxu0 }
 0x192   : > { %v3160_v46 = vpop.f32.mrb[77].mxu1  ;;  %v3224_v52 = vpop.f32.mrb[77].mxu0 }
 0x193   : > { %v3161_v5 = vadd.f32 %v3160_v46, %v3159_v4  ;;  %v3162_v53 = vpop.f32.mrb[78].mxu1  ;;  %v3225_v54 = vadd.f32 %v3224_v52, %v3223_v35  ;;  %v3226_v11 = vpop.f32.mrb[78].mxu0 }
 0x194   : > { %v3163_v33 = vpop.f32.mrb[79].mxu1  ;;  %v3227_v58 = vpop.f32.mrb[79].mxu0 }
 0x195   : > { %v2140_v17 = vadd.f32 %v3161_v5, %v4156_v34  ;;  %v3164_v60 = vadd.f32 %v3163_v33, %v3162_v53  ;;  %v3228_v39 = vadd.f32 %v3227_v58, %v3226_v11 }
 0x197   : > { %v2143_v18 = vadd.f32 %v3164_v60, %v4158_v36  ;;  %v4204_v1 = vadd.f32 %v3225_v54, %v2140_v17  ;;  %v4212_v36 = vld [vmem:[%s4309_s2] ss:$0 sm:$0xff] }
 0x199   : > { %v4206_v2 = vadd.f32 %v3228_v39, %v2143_v18  ;;  %v3245_v0 = vpop.f32.mrb[80].mxu1  ;;  %v2374_v47 = vpop.f32.mrb[80].mxu0 }
 0x19a   : > { %v3246_v3 = vpop.f32.mrb[81].mxu1  ;;  %v2376_v22 = vpop.f32.mrb[81].mxu0 }
 0x19b   : > { %v3247_v27 = vadd.f32 %v3246_v3, %v3245_v0  ;;  %v3248_v9 = vpop.f32.mrb[82].mxu1  ;;  %v2377_v10 = vpop.f32.mrb[82].mxu0 }
 0x19c   : > { %v3249_v28 = vpop.f32.mrb[83].mxu1  ;;  %v2379_v45 = vpop.f32.mrb[83].mxu0 }
 0x19d   : > { %v3250_v15 = vadd.f32 %v3249_v28, %v3248_v9  ;;  %v2278_v34 = vadd.f32 %v3247_v27, %v4162_v55 }
 0x19f   : > { %v2375_v16 = vadd.f32 %v2374_v47, %v2278_v34  ;;  %v2281_v51 = vadd.f32 %v3250_v15, %v4164_v56 }
 0x1a1   : > { %v2444_v59 = vmul.f32 %v4212_v36, %v2375_v16  ;;  %v2378_v41 = vadd.f32 %v2377_v10, %v2281_v51  ;;  %v3251_v20 = vpop.f32.mrb[84].mxu1  ;;  %v2382_v21 = vpop.f32.mrb[84].mxu0 }
 0x1a2   : > { %v3252_v42 = vpop.f32.mrb[85].mxu1  ;;  %v2384_v55 = vpop.f32.mrb[85].mxu0 }
 0x1a3   : > { %v2467_v48 = vadd.f32 %v4218_v19, %v2444_v59  ;;  %v2445_v25 = vmul.f32 %v4212_v36, %v2378_v41  ;;  %v3253_v26 = vadd.f32 %v3252_v42, %v3251_v20  ;;  %v3254_v40 = vpop.f32.mrb[86].mxu1  ;;  %v2385_v56 = vpop.f32.mrb[86].mxu0 }
 0x1a4   : > { %v3255_v57 = vpop.f32.mrb[87].mxu1  ;;  %v2387_v31 = vpop.f32.mrb[87].mxu0 }
 0x1a5   : > { %v2483_v32 = vmax.f32 %v2467_v48, 0.0  ;;  %v2468_v63 = vadd.f32 %v4218_v19, %v2445_v25  ;;  %v3256_v37 = vadd.f32 %v3255_v57, %v3254_v40  ;;  %v2286_v7 = vadd.f32 %v3253_v26, %v4168_v13 }
 0x1a7   : > { %v2893_v61 = vpack.c.bf16 %v2483_v32, %v2483_v32  ;;  %v2484_v38 = vmax.f32 %v2468_v63, 0.0  ;;  %v2383_v12 = vadd.f32 %v2382_v21, %v2286_v7  ;;  %v2289_v62 = vadd.f32 %v3256_v37, %v4170_v14 }
 0x1a9   : > { %2564 = vst.msk [vmem:[%s4229_s10] sm:$0xf] %vm2563_vm1, %v2893_v61  ;;  %v2894_v4 = vpack.c.bf16 %v2484_v38, %v2484_v38  ;;  %v2446_v35 = vmul.f32 %v4212_v36, %v2383_v12  ;;  %v2386_v46 = vadd.f32 %v2385_v56, %v2289_v62  ;;  %v3257_v13 = vpop.f32.mrb[88].mxu1  ;;  %v2390_v52 = vpop.f32.mrb[88].mxu0 }
 0x1aa   : > { %v3258_v5 = vpop.f32.mrb[89].mxu1  ;;  %v2392_v53 = vpop.f32.mrb[89].mxu0 }
 0x1ab   : > { %2565 = vst.msk [vmem:[%s4229_s10 + $0x4] sm:$0xf] %vm2563_vm1, %v2894_v4  ;;  %v2469_v54 = vadd.f32 %v4218_v19, %v2446_v35  ;;  %v2447_v11 = vmul.f32 %v4212_v36, %v2386_v46  ;;  %v3259_v33 = vadd.f32 %v3258_v5, %v3257_v13  ;;  %v3260_v58 = vpop.f32.mrb[90].mxu1  ;;  %v2393_v14 = vpop.f32.mrb[90].mxu0 }
 0x1ac   : > { %v3261_v17 = vpop.f32.mrb[91].mxu1  ;;  %v2395_v60 = vpop.f32.mrb[91].mxu0 }
 0x1ad   : > { %v2485_v39 = vmax.f32 %v2469_v54, 0.0  ;;  %v2470_v18 = vadd.f32 %v4218_v19, %v2447_v11  ;;  %v3262_v0 = vadd.f32 %v3261_v17, %v3260_v58  ;;  %v2294_v47 = vadd.f32 %v3259_v33, %v4174_v29 }
 0x1af   : > { %v2895_v3 = vpack.c.bf16 %v2485_v39, %v2485_v39  ;;  %v2486_v22 = vmax.f32 %v2470_v18, 0.0  ;;  %v2391_v27 = vadd.f32 %v2390_v52, %v2294_v47  ;;  %v2297_v9 = vadd.f32 %v3262_v0, %v4176_v30 }
 0x1b1   : > { %2566 = vst.msk [vmem:[%s4229_s10 + $0x8] sm:$0xf] %vm2563_vm1, %v2895_v3  ;;  %v2896_v10 = vpack.c.bf16 %v2486_v22, %v2486_v22  ;;  %v2448_v28 = vmul.f32 %v4212_v36, %v2391_v27  ;;  %v2394_v45 = vadd.f32 %v2393_v14, %v2297_v9  ;;  %v3263_v15 = vpop.f32.mrb[92].mxu1  ;;  %v2398_v34 = vpop.f32.mrb[92].mxu0 }
 0x1b2   : > { %v3264_v16 = vpop.f32.mrb[93].mxu1  ;;  %v2400_v51 = vpop.f32.mrb[93].mxu0 }
 0x1b3   : > { %2567 = vst.msk [vmem:[%s4229_s10 + $0xc] sm:$0xf] %vm2563_vm1, %v2896_v10  ;;  %v2471_v29 = vadd.f32 %v4218_v19, %v2448_v28  ;;  %v2449_v59 = vmul.f32 %v4212_v36, %v2394_v45  ;;  %v3265_v41 = vadd.f32 %v3264_v16, %v3263_v15  ;;  %v3266_v20 = vpop.f32.mrb[94].mxu1  ;;  %v2401_v30 = vpop.f32.mrb[94].mxu0 }
 0x1b4   : > { %v3267_v21 = vpop.f32.mrb[95].mxu1  ;;  %v2403_v42 = vpop.f32.mrb[95].mxu0 }
 0x1b5   : > { %v2487_v55 = vmax.f32 %v2471_v29, 0.0  ;;  %v2472_v48 = vadd.f32 %v4218_v19, %v2449_v59  ;;  %v3268_v25 = vadd.f32 %v3267_v21, %v3266_v20  ;;  %v2302_v26 = vadd.f32 %v3265_v41, %v4180_v49 }
 0x1b7   : > { %v2897_v40 = vpack.c.bf16 %v2487_v55, %v2487_v55  ;;  %v2488_v56 = vmax.f32 %v2472_v48, 0.0  ;;  %v2399_v57 = vadd.f32 %v2398_v34, %v2302_v26  ;;  %v2305_v31 = vadd.f32 %v3268_v25, %v4182_v50 }
 0x1b9   : > { %2568 = vst.msk [vmem:[%s4229_s10 + $0x10] sm:$0xf] %vm2563_vm1, %v2897_v40  ;;  %v2898_v32 = vpack.c.bf16 %v2488_v56, %v2488_v56  ;;  %v2450_v63 = vmul.f32 %v4212_v36, %v2399_v57  ;;  %v2402_v37 = vadd.f32 %v2401_v30, %v2305_v31  ;;  %v3269_v7 = vpop.f32.mrb[96].mxu1  ;;  %v2406_v61 = vpop.f32.mrb[96].mxu0 }
 0x1ba   : > { %v3270_v38 = vpop.f32.mrb[97].mxu1  ;;  %v2408_v12 = vpop.f32.mrb[97].mxu0 }
 0x1bb   : > { %2569 = vst.msk [vmem:[%s4229_s10 + $0x14] sm:$0xf] %vm2563_vm1, %v2898_v32  ;;  %v2473_v49 = vadd.f32 %v4218_v19, %v2450_v63  ;;  %v2451_v62 = vmul.f32 %v4212_v36, %v2402_v37  ;;  %v3271_v4 = vadd.f32 %v3270_v38, %v3269_v7  ;;  %v3272_v35 = vpop.f32.mrb[98].mxu1  ;;  %v2409_v50 = vpop.f32.mrb[98].mxu0 }
 0x1bc   : > { %v3273_v46 = vpop.f32.mrb[99].mxu1  ;;  %v2411_v13 = vpop.f32.mrb[99].mxu0 }
 0x1bd   : > { %v2489_v52 = vmax.f32 %v2473_v49, 0.0  ;;  %v2474_v5 = vadd.f32 %v4218_v19, %v2451_v62  ;;  %v3274_v53 = vadd.f32 %v3273_v46, %v3272_v35  ;;  %v2310_v54 = vadd.f32 %v3271_v4, %v4186_v6 }
 0x1bf   : > { %v2899_v11 = vpack.c.bf16 %v2489_v52, %v2489_v52  ;;  %v2490_v33 = vmax.f32 %v2474_v5, 0.0  ;;  %v2407_v58 = vadd.f32 %v2406_v61, %v2310_v54  ;;  %v2313_v14 = vadd.f32 %v3274_v53, %v4188_v8 }
 0x1c1   : > { %2570 = vst.msk [vmem:[%s4229_s10 + $0x18] sm:$0xf] %vm2563_vm1, %v2899_v11  ;;  %v2900_v17 = vpack.c.bf16 %v2490_v33, %v2490_v33  ;;  %v2452_v60 = vmul.f32 %v4212_v36, %v2407_v58  ;;  %v2410_v39 = vadd.f32 %v2409_v50, %v2313_v14  ;;  %v3275_v18 = vpop.f32.mrb[100].mxu1  ;;  %v2414_v0 = vpop.f32.mrb[100].mxu0 }
 0x1c2   : > { %v3276_v47 = vpop.f32.mrb[101].mxu1  ;;  %v2416_v3 = vpop.f32.mrb[101].mxu0 }
 0x1c3   : > { %2571 = vst.msk [vmem:[%s4229_s10 + $0x1c] sm:$0xf] %vm2563_vm1, %v2900_v17  ;;  %v2475_v6 = vadd.f32 %v4218_v19, %v2452_v60  ;;  %v2453_v22 = vmul.f32 %v4212_v36, %v2410_v39  ;;  %v3277_v27 = vadd.f32 %v3276_v47, %v3275_v18  ;;  %v3278_v9 = vpop.f32.mrb[102].mxu1  ;;  %v2417_v8 = vpop.f32.mrb[102].mxu0 }
 0x1c4   : > { %v3279_v10 = vpop.f32.mrb[103].mxu1  ;;  %v2419_v28 = vpop.f32.mrb[103].mxu0 }
 0x1c5   : > { %v2491_v45 = vmax.f32 %v2475_v6, 0.0  ;;  %v2476_v15 = vadd.f32 %v4218_v19, %v2453_v22  ;;  %v3280_v34 = vadd.f32 %v3279_v10, %v3278_v9  ;;  %v2318_v16 = vadd.f32 %v3277_v27, %v4192_v23 }
 0x1c7   : > { %v2901_v51 = vpack.c.bf16 %v2491_v45, %v2491_v45  ;;  %v2492_v29 = vmax.f32 %v2476_v15, 0.0  ;;  %v2415_v59 = vadd.f32 %v2414_v0, %v2318_v16  ;;  %v2321_v41 = vadd.f32 %v3280_v34, %v4194_v24 }
 0x1c9   : > { %2572 = vst.msk [vmem:[%s4229_s10 + $0x20] sm:$0xf] %vm2563_vm1, %v2901_v51  ;;  %v2902_v20 = vpack.c.bf16 %v2492_v29, %v2492_v29  ;;  %v2454_v30 = vmul.f32 %v4212_v36, %v2415_v59  ;;  %v2418_v21 = vadd.f32 %v2417_v8, %v2321_v41  ;;  %v3281_v42 = vpop.f32.mrb[104].mxu1  ;;  %v2422_v55 = vpop.f32.mrb[104].mxu0 }
 0x1ca   : > { %v3282_v48 = vpop.f32.mrb[105].mxu1  ;;  %v2424_v25 = vpop.f32.mrb[105].mxu0 }
 0x1cb   : > { %2573 = vst.msk [vmem:[%s4229_s10 + $0x24] sm:$0xf] %vm2563_vm1, %v2902_v20  ;;  %v2477_v23 = vadd.f32 %v4218_v19, %v2454_v30  ;;  %v2455_v26 = vmul.f32 %v4212_v36, %v2418_v21  ;;  %v3283_v40 = vadd.f32 %v3282_v48, %v3281_v42  ;;  %v3284_v56 = vpop.f32.mrb[106].mxu1  ;;  %v2425_v24 = vpop.f32.mrb[106].mxu0 }
 0x1cc   : > { %v3285_v57 = vpop.f32.mrb[107].mxu1  ;;  %v2427_v31 = vpop.f32.mrb[107].mxu0 }
 0x1cd   : > { %v2493_v32 = vmax.f32 %v2477_v23, 0.0  ;;  %v2478_v63 = vadd.f32 %v4218_v19, %v2455_v26  ;;  %v3286_v37 = vadd.f32 %v3285_v57, %v3284_v56  ;;  %v2326_v7 = vadd.f32 %v3283_v40, %v4198_v43 }
 0x1cf   : > { %v2903_v61 = vpack.c.bf16 %v2493_v32, %v2493_v32  ;;  %v2494_v38 = vmax.f32 %v2478_v63, 0.0  ;;  %v2423_v12 = vadd.f32 %v2422_v55, %v2326_v7  ;;  %v2329_v49 = vadd.f32 %v3286_v37, %v4200_v44 }
 0x1d1   : > { %2574 = vst.msk [vmem:[%s4229_s10 + $0x28] sm:$0xf] %vm2563_vm1, %v2903_v61  ;;  %v2904_v62 = vpack.c.bf16 %v2494_v38, %v2494_v38  ;;  %v2456_v4 = vmul.f32 %v4212_v36, %v2423_v12  ;;  %v2426_v35 = vadd.f32 %v2425_v24, %v2329_v49  ;;  %v3287_v50 = vpop.f32.mrb[108].mxu1  ;;  %v2430_v46 = vpop.f32.mrb[108].mxu0 }
 0x1d2   : > { %v3288_v13 = vpop.f32.mrb[109].mxu1  ;;  %v2432_v52 = vpop.f32.mrb[109].mxu0 }
 0x1d3   : > { %2575 = vst.msk [vmem:[%s4229_s10 + $0x2c] sm:$0xf] %vm2563_vm1, %v2904_v62  ;;  %v2479_v43 = vadd.f32 %v4218_v19, %v2456_v4  ;;  %v2457_v5 = vmul.f32 %v4212_v36, %v2426_v35  ;;  %v3289_v53 = vadd.f32 %v3288_v13, %v3287_v50  ;;  %v3290_v54 = vpop.f32.mrb[110].mxu1  ;;  %v2433_v44 = vpop.f32.mrb[110].mxu0 }
 0x1d4   : > { %v3291_v11 = vpop.f32.mrb[111].mxu1  ;;  %v2435_v33 = vpop.f32.mrb[111].mxu0 }
 0x1d5   : > { %v2495_v58 = vmax.f32 %v2479_v43, 0.0  ;;  %v2480_v14 = vadd.f32 %v4218_v19, %v2457_v5  ;;  %v3292_v17 = vadd.f32 %v3291_v11, %v3290_v54  ;;  %v2334_v60 = vadd.f32 %v3289_v53, %v4204_v1 }
 0x1d7   : > { %v2905_v39 = vpack.c.bf16 %v2495_v58, %v2495_v58  ;;  %v2496_v18 = vmax.f32 %v2480_v14, 0.0  ;;  %v2431_v0 = vadd.f32 %v2430_v46, %v2334_v60  ;;  %v2337_v47 = vadd.f32 %v3292_v17, %v4206_v2 }
 0x1d9   : > { %2576 = vst.msk [vmem:[%s4229_s10 + $0x30] sm:$0xf] %vm2563_vm1, %v2905_v39  ;;  %v2906_v3 = vpack.c.bf16 %v2496_v18, %v2496_v18  ;;  %v2458_v6 = vmul.f32 %v4212_v36, %v2431_v0  ;;  %v2434_v22 = vadd.f32 %v2433_v44, %v2337_v47 }
 0x1db   : > { %2577 = vst.msk [vmem:[%s4229_s10 + $0x34] sm:$0xf] %vm2563_vm1, %v2906_v3  ;;  %v2481_v27 = vadd.f32 %v4218_v19, %v2458_v6  ;;  %v2459_v9 = vmul.f32 %v4212_v36, %v2434_v22 }
 0x1dd   : > { %v2497_v1 = vmax.f32 %v2481_v27, 0.0  ;;  %v2482_v8 = vadd.f32 %v4218_v19, %v2459_v9 }
 0x1df   : > { %v2907_v10 = vpack.c.bf16 %v2497_v1, %v2497_v1  ;;  %v2498_v28 = vmax.f32 %v2482_v8, 0.0 }
 0x1e1   : > { %2578 = vst.msk [vmem:[%s4229_s10 + $0x38] sm:$0xf] %vm2563_vm1, %v2907_v10  ;;  %v2908_v2 = vpack.c.bf16 %v2498_v28, %v2498_v28 }
 0x1e3   : > { %2579 = vst.msk [vmem:[%s4229_s10 + $0x3c] sm:$0xf] %vm2563_vm1, %v2908_v2 }
 0x1e4 PF: > { %s14_s15 = sadd.s32 1, %s3601_s15  }
 0x1e5   : > { %p11_p4 = scmp.ge.s32.totalorder %s14_s15, 4  }
 0x1e7   :  { %13 = sbr.rel (!%p11_p4) target bundleno = 1 (0x1), region = 66 }

// kernel: prun_forward.7
= control target key start
LH: loop header
LB: loop body
LE: loop exit
PB: predicated region body
PF: predicated region fallthrough
CT: control target
= control target key end

     0   :  { %s5382_s0 = inlined_call_operand.vmem [shape: bf16[256,1728], index: 0, kind: input, shape index: {}]   ;;  %s5383_s1 = inlined_call_operand.vmem [shape: bf16[1728,128], index: 1, kind: input, shape index: {}]   ;;  %s5384_s2 = inlined_call_operand.vmem [shape: f32[1,128], index: 2, kind: input, shape index: {}]   ;;  %s5385_s3 = inlined_call_operand.vmem [shape: f32[1,128], index: 3, kind: input, shape index: {}]   ;;  %s5386_s4 = inlined_call_operand.vmem [shape: f32[256,1], index: 4, kind: input, shape index: {}]   ;;  %s5387_s5 = inlined_call_operand.vmem [shape: f32[2,1,32], index: 5, kind: input, shape index: {}]   ;;  %s5388_s6 = inlined_call_operand.vmem [shape: f32[1,32], index: 6, kind: input, shape index: {}]   ;;  %s5389_s7 = inlined_call_operand.<no memory space> [shape: f32[1,1], index: 7, kind: input, shape index: {}]   ;;  %s5390_s8 = inlined_call_operand.vmem [shape: f32[128,64], index: 8, kind: input, shape index: {}]   ;;  %s5391_s9 = inlined_call_operand.vmem [shape: f32[1,64], index: 9, kind: input, shape index: {}]   ;;  %s5392_s10 = inlined_call_operand.vmem [shape: f32[64,2], index: 10, kind: input, shape index: {}]   ;;  %s5393_s11 = inlined_call_operand.vmem [shape: f32[1,2], index: 11, kind: input, shape index: {}]   ;;  %s5394_s12 = inlined_call_operand.hbm [shape: f32[2,1,2], index: 12, kind: output, shape index: {}]  }
   0x1   :  { %5397 = sst [smem:[#allocation10_spill]] %s5382_s0  ;;  %v17_v0 = vstv %s5389_s7 }
   0x2   :  { %18 = vst [vmem:[#allocation3] sm:$0x1] %v17_v0 }
   0x3   :  { %19 = vsyncpa [#allocation5], 0 }
   0x4   :  { %21 = vsyncpa [#allocation5 + $0x1], 0  ;;  %s4479_s23 = smov 0   ;;  %s4481_s24 = smov 0  }
   0x5   :  { %s4483_s25 = smov 0   ;;  %s4485_s26 = smov 0  }
   0x6   :  { %s4487_s27 = smov 0   ;;  %s4489_s28 = smov 0  }
   0x7 LB: > { %5398 = sst [smem:[#allocation7_spill]] %s4400_s27  ;;  %s3221_s7 = sadd.s32 4294967295, %s4404_s28   ;;  %s4404_s28 = sphi %s4489_s28, %s27_s28   ;;  %s4400_s27 = sphi %s4487_s27, %s5406_s27   ;;  %s4396_s26 = sphi %s4485_s26, %s5405_s26   ;;  %s4392_s25 = sphi %s4483_s25, %s5409_s25   ;;  %s4388_s24 = sphi %s4481_s24, %s5408_s24   ;;  %s4384_s23 = sphi %s4479_s23, %s5407_s23  }
   0x8   : > { %s3222_s29 = sadd.s32 4294967294, %s4404_s28   ;;  %s39_s30 = sadd.s32 1, %s4400_s27 }
   0x9   : > { %s317_s13 = sadd.s32 1, %s4392_s25  ;;  %p41_p0 = scmp.ge.s32.totalorder %s39_s30, 2 }
   0xa   : > { %p327_p1 = scmp.ne.s32.totalorder %s4392_s25, %s4388_s24  ;;  %p328_p2 = scmp.eq.s32.totalorder %s3221_s7, 1 }
   0xb   : > { %p333_p3 = scmp.ne.s32.totalorder %s4388_s24, %s4384_s23  ;;  %s5411_s30 = smov (%p41_p0, %s39_s30), 0 }
   0xc   : > { %5399 = sst [smem:[#allocation8_spill]] %s5411_s30  ;;  %p4519_p4 = por %p328_p2, %p327_p1 }
   0xd   : > { %p334_p5 = scmp.eq.s32.totalorder %s3222_s29, 1  ;;  %s314_s15 = ssub.s32 %s4400_s27, %s5411_s30 }
   0xe   : > { %p3225_p6 = scmp.ge.s32.totalorder %s4404_s28, 1  ;;  %p315_p7 = scmp.eq.s32.totalorder %s314_s15, 0 }
   0xf   : > { %p4526_p8 = por %p334_p5, %p333_p3  ;;  %p408_p9 = scmp.lt.s32.totalorder %s4404_s28, 3 }
  0x10   : > { %s4532_s17 = scalar_select %p315_p7, %s4392_s25, %s317_s13  }
  0x11   : > { %p409_p10 = pnand %p3225_p6, %p408_p9 }
  0x12   : > { %5402 = sst [smem:[#allocation9_spill]] %s4532_s17  ;;  %v4042_v1 = vld [vmem:[%s5383_s1 + $0x40] sm:$0xff] (!%p409_p10)   ;;  %s4538_s20 = sshll.u32 (!%p409_p10), %s4396_s26, 4  ;;  %v4044_v3 = vld [vmem:[%s5383_s1 + $0x48] sm:$0xff] (!%p409_p10)   ;;  %v4046_v5 = vld [vmem:[%s5383_s1 + $0x50] sm:$0xff] (!%p409_p10)   ;;  %v4406_v8 = vmov (!%p409_p10), 0  }
  0x13   : > { %412 = sbr.rel (%p409_p10) target bundleno = 1280 (0x500), region = 68  ;;  %v4043_v2 = vld [vmem:[%s5383_s1] sm:$0xff] (!%p409_p10)   ;;  %3964 = vmatprep.subr.bf16.mxu1 (!%p409_p10), %v4042_v1  ;;  %3464 = vmatprep.subr.bf16.mxu0 (!%p409_p10), %v4042_v1  ;;  %p462_p11 = scmp.lt.s32.totalorder (!%p409_p10), %s4538_s20, 31  ;;  %v4045_v4 = vld [vmem:[%s5383_s1 + $0x8] sm:$0xff] (!%p409_p10)   ;;  %v4047_v6 = vld [vmem:[%s5383_s1 + $0x10] sm:$0xff] (!%p409_p10)   ;;  %vm2923_vm0 = vcmask (!%p409_p10), 253952  }
  0x14   : > { %3972 = vmatpush3.bf16.msra.mxu1 (!%p409_p10), %v4043_v2  ;;  %3465 = vmatpush3.bf16.msra.mxu0 (!%p409_p10), %v4043_v2  ;;  %v4048_v7 = vld [vmem:[%s5383_s1 + $0x58] sm:$0xff] (!%p409_p10)   ;;  %v4050_v10 = vld [vmem:[%s5383_s1 + $0x60] sm:$0xff] (!%p409_p10)   ;;  %s5403_s0 = sld [smem:[#allocation10_spill]] (!%p409_p10)  ;;  %v4052_v12 = vld [vmem:[%s5383_s1 + $0x68] sm:$0xff] (!%p409_p10)   ;;  %p477_p12 = scmp.lt.s32.totalorder (!%p409_p10), %s4396_s26, 1  ;;  %vm2009_vm1 = vcmask (!%p409_p10), 523264  }
  0x15   : > { %3965 = vmatprep.subr.bf16.mxu1 (!%p409_p10), %v4044_v3  ;;  %3466 = vmatprep.subr.bf16.mxu0 (!%p409_p10), %v4044_v3  ;;  %v4049_v9 = vld [vmem:[%s5383_s1 + $0x18] sm:$0xff] (!%p409_p10)   ;;  %v4051_v11 = vld [vmem:[%s5383_s1 + $0x20] sm:$0xff] (!%p409_p10)   ;;  %v4053_v14 = vld [vmem:[%s5383_s1 + $0x28] sm:$0xff] (!%p409_p10)   ;;  %vm4409_vm2 = vmmov (!%p409_p10), 0   ;;  %vm3111_vm3 = vcmask (!%p409_p10), 8192   ;;  %s458_s22 = sand.u32 (!%p409_p10), 1, %s4388_s24  }
  0x16   : > { %4041 = vset.pattern.permute.xlu1 (!%p409_p10), %v4406_v8  ;;  %4040 = vset.pattern.permute.xlu0 (!%p409_p10), %v4406_v8  ;;  %v4054_v16 = vld [vmem:[%s5383_s1 + $0x70] sm:$0xff] (!%p409_p10)   ;;  %v4056_v18 = vld [vmem:[%s5383_s1 + $0x78] sm:$0xff] (!%p409_p10)   ;;  %v4061_v20 = vld [vmem:[%s5383_s1 + $0xc0] sm:$0xff] (!%p409_p10)  }
  0x17   : > { %v4055_v17 = vld [vmem:[%s5383_s1 + $0x30] sm:$0xff] (!%p409_p10)   ;;  %v4057_v19 = vld [vmem:[%s5383_s1 + $0x38] sm:$0xff] (!%p409_p10)   ;;  %v4066_v23 = vld [vmem:[%s5383_s1 + $0x140] sm:$0xff] (!%p409_p10)  }
  0x18   : > { %3973 = vmatpush3.bf16.msra.mxu1 (!%p409_p10), %v4045_v4  ;;  %3467 = vmatpush3.bf16.msra.mxu0 (!%p409_p10), %v4045_v4  ;;  %v4065_v24 = vld [vmem:[%s5383_s1 + $0x80] sm:$0xff] (!%p409_p10)   ;;  %v4068_v26 = vld [vmem:[%s5383_s1 + $0xc8] sm:$0xff] (!%p409_p10)   ;;  %v4075_v32 = vld [vmem:[%s5383_s1 + $0xd0] sm:$0xff] (!%p409_p10)  }
  0x19   : > { %3966 = vmatprep.subr.bf16.mxu1 (!%p409_p10), %v4046_v5  ;;  %3468 = vmatprep.subr.bf16.mxu0 (!%p409_p10), %v4046_v5  ;;  %v4067_v25 = vld [vmem:[%s5383_s1 + $0x100] sm:$0xff] (!%p409_p10)   ;;  %v4070_v27 = vld [vmem:[%s5383_s1 + $0x148] sm:$0xff] (!%p409_p10)   ;;  %v4080_v34 = vld [vmem:[%s5383_s1 + $0x150] sm:$0xff] (!%p409_p10)  }
  0x1a   : > { %s4554_s21 = scalar_select %p462_p11, %s4538_s20, 31  ;;  %v4069_v29 = vld [vmem:[%s5383_s1 + $0x88] sm:$0xff]   ;;  %v4078_v35 = vld [vmem:[%s5383_s1 + $0x90] sm:$0xff]   ;;  %v4082_v38 = vld [vmem:[%s5383_s1 + $0xd8] sm:$0xff]  }
  0x1b   : > { %v4073_v31 = vld [vmem:[%s5383_s1 + $0x108] sm:$0xff]   ;;  %v4081_v37 = vld [vmem:[%s5383_s1 + $0x110] sm:$0xff]   ;;  %v4084_v39 = vld [vmem:[%s5383_s1 + $0x158] sm:$0xff]   ;;  %s5413_s26 = smov (!%p477_p12, %s4396_s26), 1 }
  0x1c   : > { %s3980_s15 = smul.u32 56, %s4554_s21  ;;  %3974 = vmatpush3.bf16.msra.mxu1 %v4047_v6  ;;  %3469 = vmatpush3.bf16.msra.mxu0 %v4047_v6  ;;  %v4083_v40 = vld [vmem:[%s5383_s1 + $0x98] sm:$0xff]   ;;  %v4089_v44 = vld [vmem:[%s5383_s1 + $0xe0] sm:$0xff]   ;;  %v4096_v50 = vld [vmem:[%s5383_s1 + $0xe8] sm:$0xff]   ;;  %s479_s17 = scalar_lea.vmem %s5387_s5, %s5413_s26 }
  0x1d   : > { %3967 = vmatprep.subr.bf16.mxu1 %v4048_v7  ;;  %3470 = vmatprep.subr.bf16.mxu0 %v4048_v7  ;;  %v4087_v43 = vld [vmem:[%s5383_s1 + $0x118] sm:$0xff]   ;;  %v4094_v46 = vld [vmem:[%s5383_s1 + $0x160] sm:$0xff]   ;;  %v4098_v51 = vld [vmem:[%s5383_s1 + $0x168] sm:$0xff]   ;;  %s3229_s27 = sshll.u32 %s4554_s21, 3 }
  0x1e   : > { %s4574_s30 = scalar_lea.vmem %s5403_s0, %s3980_s15  ;;  %v4092_v47 = vld [vmem:[%s5383_s1 + $0xa0] sm:$0xff]   ;;  %v4097_v52 = vld [vmem:[%s5383_s1 + $0xa8] sm:$0xff]   ;;  %v4103_v57 = vld [vmem:[%s5383_s1 + $0xf0] sm:$0xff]   ;;  %s4975_s18 = scalar_lea.vmem %s5386_s4, %s3229_s27 }
  0x1f   : > { %v4060_v13 = vld [vmem:[%s4574_s30 + $0x1c4] ss:$56 sps:$4 sm:$0xff]   ;;  %v4058_v21 = vld [vmem:[%s4574_s30 + $0x1c0] ss:$56 sps:$4 sm:$0xff]   ;;  %v4071_v28 = vld [vmem:[%s4574_s30 + $0x234] ss:$56 sps:$4 sm:$0xff]   ;;  %s5334_s27 = scalar_lea.hbm %s5394_s12, %s4538_s20 }
  0x20   : > { %3975 = vmatpush3.bf16.msra.mxu1 %v4049_v9  ;;  %3471 = vmatpush3.bf16.msra.mxu0 %v4049_v9  ;;  %v4064_v15 = vld [vmem:[%s4574_s30 + $0x4] ss:$56 sps:$4 sm:$0xff]   ;;  %v4062_v22 = vld [vmem:[%s4574_s30] ss:$56 sps:$4 sm:$0xff]   ;;  %v4076_v30 = vld [vmem:[%s4574_s30 + $0x74] ss:$56 sps:$4 sm:$0xff]  }
  0x21   : > { %3968 = vmatprep.subr.bf16.mxu1 %v4050_v10  ;;  %3472 = vmatprep.subr.bf16.mxu0 %v4050_v10  ;;  %v4074_v33 = vld [vmem:[%s4574_s30 + $0x230] ss:$56 sps:$4 sm:$0xff]   ;;  %v4085_v41 = vld [vmem:[%s4574_s30 + $0x2a4] ss:$56 sps:$4 sm:$0xff]   ;;  %v4088_v45 = vld [vmem:[%s4574_s30 + $0x2a0] ss:$56 sps:$4 sm:$0xff]  }
  0x22   : > { %2098 = vmatprep.mubr.bf16.mxu1 %v4060_v13  ;;  %2066 = vmatprep.mubr.bf16.mxu0 %v4064_v15  ;;  %v4079_v36 = vld [vmem:[%s4574_s30 + $0x70] ss:$56 sps:$4 sm:$0xff]   ;;  %v4090_v42 = vld [vmem:[%s4574_s30 + $0xe4] ss:$56 sps:$4 sm:$0xff]   ;;  %v4093_v48 = vld [vmem:[%s4574_s30 + $0xe0] ss:$56 sps:$4 sm:$0xff]  }
  0x23   : > { %v4095_v49 = vld [vmem:[%s5383_s1 + $0x120] sm:$0xff]   ;;  %v4099_v53 = vld [vmem:[%s4574_s30 + $0x314] ss:$56 sps:$4 sm:$0xff]   ;;  %v4102_v56 = vld [vmem:[%s4574_s30 + $0x310] ss:$56 sps:$4 sm:$0xff]   ;;  %s459_s15 = scalar_lea.vmem [#allocation4], %s458_s22 }
  0x24   : > { %3976 = vmatpush3.bf16.msra.mxu1 %v4051_v11  ;;  %3473 = vmatpush3.bf16.msra.mxu0 %v4051_v11  ;;  %v4101_v54 = vld [vmem:[%s5383_s1 + $0x128] sm:$0xff]   ;;  %v4106_v58 = vld [vmem:[%s5383_s1 + $0xb0] sm:$0xff]   ;;  %v4110_v62 = vld [vmem:[%s5383_s1 + $0xf8] sm:$0xff]   ;;  %s3137_s26 = sshll.u32 %s459_s15, 4  ;;  %s5336_s26 = int_to_ptr.vmem [resolvable:$true] %s3137_s26 }
  0x25   : > { %3969 = vmatprep.subr.bf16.mxu1 %v4052_v12  ;;  %3474 = vmatprep.subr.bf16.mxu0 %v4052_v12  ;;  %v4104_v55 = vld [vmem:[%s4574_s30 + $0x154] ss:$56 sps:$4 sm:$0xff]   ;;  %v4107_v60 = vld [vmem:[%s4574_s30 + $0x150] ss:$56 sps:$4 sm:$0xff]   ;;  %v4112_v63 = vld [vmem:[%s5383_s1 + $0x178] sm:$0xff]   ;;  %s4326_s13 = scalar_lea.vmem %s5336_s26, 16 }
  0x26   : > { %v4108_v59 = vld [vmem:[%s5383_s1 + $0x170] sm:$0xff]   ;;  %v4111_v0 = vld [vmem:[%s5383_s1 + $0xb8] sm:$0xff]   ;;  %v4115_v1 = vld [vmem:[%s4574_s30 + $0xc] ss:$56 sps:$4 sm:$0xff]   ;;  %p4327_p13 = scmp.ne.s32.totalorder %s5336_s26, %s4326_s13 }
  0x27   : > { %v4109_v61 = vld [vmem:[%s5383_s1 + $0x130] sm:$0xff]   ;;  %v4116_v2 = vld [vmem:[%s5383_s1 + $0x138] sm:$0xff]   ;;  %v4113_v3 = vld [vmem:[%s4574_s30 + $0x8] ss:$56 sps:$4 sm:$0xff]  }
  0x28   : > { %3977 = vmatpush3.bf16.msra.mxu1 %v4053_v14  ;;  %3475 = vmatpush3.bf16.msra.mxu0 %v4053_v14  ;;  %v4117_v4 = vld [vmem:[%s5383_s1 + $0x1c0] sm:$0xff]   ;;  %v4118_v5 = vld [vmem:[%s4574_s30 + $0x10] ss:$56 sps:$4 sm:$0xff]   ;;  %v4120_v6 = vld [vmem:[%s4574_s30 + $0x14] ss:$56 sps:$4 sm:$0xff]   ;;  %p4328_p0 = pnand %p4327_p13, %p4519_p4 }
  0x29   : > { %3970 = vmatprep.subr.bf16.mxu1 %v4054_v16  ;;  %3476 = vmatprep.subr.bf16.mxu0 %v4054_v16  ;;  %v4121_v7 = vld [vmem:[%s5383_s1 + $0x180] sm:$0xff]   ;;  %v4124_v11 = vld [vmem:[%s4574_s30 + $0x7c] ss:$56 sps:$4 sm:$0xff]   ;;  %v4127_v12 = vld [vmem:[%s5383_s1 + $0x1c8] sm:$0xff]  }
  0x2a   : > { %v4122_v9 = vld [vmem:[%s5383_s1 + $0x240] sm:$0xff]   ;;  %v4126_v13 = vld [vmem:[%s4574_s30 + $0x78] ss:$56 sps:$4 sm:$0xff]   ;;  %v4130_v15 = vld [vmem:[%s5383_s1 + $0x188] sm:$0xff]   ;;  %p4329_p1 = pneg %p4328_p0 }
  0x2b   : > { %v4123_v10 = vld [vmem:[%s5383_s1 + $0x200] sm:$0xff]  }
  0x2c   : > { %3978 = vmatpush3.bf16.msra.mxu1 %v4055_v17  ;;  %3477 = vmatpush3.bf16.msra.mxu0 %v4055_v17  ;;  %v4128_v14 = vld [vmem:[%s4574_s30 + $0x84] ss:$56 sps:$4 sm:$0xff]   ;;  %v4131_v16 = vld [vmem:[%s4574_s30 + $0x80] ss:$56 sps:$4 sm:$0xff]   ;;  %v4132_v17 = vld [vmem:[%s5383_s1 + $0x248] sm:$0xff]  }
  0x2d   : > { %3971 = vmatprep.subr.bf16.mxu1 %v4056_v18  ;;  %3478 = vmatprep.subr.bf16.mxu0 %v4056_v18  ;;  %v4133_v18 = vld [vmem:[%s5383_s1 + $0x208] sm:$0xff]  }
  0x30   : > { %3979 = vmatpush3.bf16.msra.mxu1 %v4057_v19  ;;  %3479 = vmatpush3.bf16.msra.mxu0 %v4057_v19  ;;  %v4134_v19 = vld [vmem:[%s4574_s30 + $0xec] ss:$56 sps:$4 sm:$0xff]  }
  0x31   : > { %3528 = vmatprep.subr.bf16.mxu1 %v4061_v20  ;;  %3592 = vmatprep.subr.bf16.mxu0 %v4066_v23  ;;  %v4137_v20 = vld [vmem:[%s5383_s1 + $0x1d0] sm:$0xff]  }
  0x32   : > { %v4140_v23 = vld [vmem:[%s5383_s1 + $0x190] sm:$0xff]  }
  0x33   : > { %2099 = vmatmul.mubr.bf16.vlgmr.msra.gmra.mrb[0].mxu1 %v4058_v21  ;;  %2067 = vmatmul.mubr.bf16.vlgmr.msra.gmra.mrb[0].mxu0 %v4062_v22  ;;  %v4138_v21 = vld [vmem:[%s4574_s30 + $0xf4] ss:$56 sps:$4 sm:$0xff]   ;;  %v4136_v22 = vld [vmem:[%s4574_s30 + $0xe8] ss:$56 sps:$4 sm:$0xff]  }
  0x34   : > { %3529 = vmatpush3.bf16.msra.mxu1 %v4065_v24  ;;  %3593 = vmatpush3.bf16.msra.mxu0 %v4067_v25  ;;  %v4141_v24 = vld [vmem:[%s4574_s30 + $0xf0] ss:$56 sps:$4 sm:$0xff]  }
  0x35   : > { %3530 = vmatprep.subr.bf16.mxu1 %v4068_v26  ;;  %3594 = vmatprep.subr.bf16.mxu0 %v4070_v27  ;;  %v4142_v25 = vld [vmem:[%s5383_s1 + $0x250] sm:$0xff]  }
  0x36   : > { %2106 = vmatprep.mubr.bf16.mxu1 %v4071_v28  ;;  %2074 = vmatprep.mubr.bf16.mxu0 %v4076_v30  ;;  %v4143_v26 = vld [vmem:[%s5383_s1 + $0x210] sm:$0xff]   ;;  %v4147_v28 = vld [vmem:[%s5383_s1 + $0x1d8] sm:$0xff]  }
  0x37   : > { %v4144_v27 = vld [vmem:[%s4574_s30 + $0x15c] ss:$56 sps:$4 sm:$0xff]  }
  0x38   : > { %3531 = vmatpush3.bf16.msra.mxu1 %v4069_v29  ;;  %3595 = vmatpush3.bf16.msra.mxu0 %v4073_v31  ;;  %v4148_v29 = vld [vmem:[%s4574_s30 + $0x164] ss:$56 sps:$4 sm:$0xff]   ;;  %v4146_v31 = vld [vmem:[%s4574_s30 + $0x158] ss:$56 sps:$4 sm:$0xff]  }
  0x39   : > { %3532 = vmatprep.subr.bf16.mxu1 %v4075_v32  ;;  %3596 = vmatprep.subr.bf16.mxu0 %v4080_v34  ;;  %v4150_v30 = vld [vmem:[%s5383_s1 + $0x198] sm:$0xff]  }
  0x3a   : > { %v4152_v32 = vld [vmem:[%s5383_s1 + $0x258] sm:$0xff]  }
  0x3b   : > { %2107 = vmatmul.mubr.bf16.gmra.mrb[4].mxu1 %v4074_v33  ;;  %2075 = vmatmul.mubr.bf16.gmra.mrb[4].mxu0 %v4079_v36  ;;  %v4153_v33 = vld [vmem:[%s5383_s1 + $0x218] sm:$0xff]   ;;  %v4157_v36 = vld [vmem:[%s5383_s1 + $0x1e0] sm:$0xff]  }
  0x3c   : > { %3533 = vmatpush3.bf16.msra.mxu1 %v4078_v35  ;;  %3597 = vmatpush3.bf16.msra.mxu0 %v4081_v37  ;;  %v4151_v34 = vld [vmem:[%s4574_s30 + $0x160] ss:$56 sps:$4 sm:$0xff]   ;;  %v4154_v35 = vld [vmem:[%s4574_s30 + $0x1cc] ss:$56 sps:$4 sm:$0xff]  }
  0x3d   : > { %3534 = vmatprep.subr.bf16.mxu1 %v4082_v38  ;;  %3598 = vmatprep.subr.bf16.mxu0 %v4084_v39  ;;  %v4158_v37 = vld [vmem:[%s4574_s30 + $0x1d4] ss:$56 sps:$4 sm:$0xff]   ;;  %v4160_v38 = vld [vmem:[%s5383_s1 + $0x1a0] sm:$0xff]  }
  0x3e   : > { %2114 = vmatprep.mubr.bf16.mxu1 %v4085_v41  ;;  %2082 = vmatprep.mubr.bf16.mxu0 %v4090_v42  ;;  %v4162_v39 = vld [vmem:[%s5383_s1 + $0x260] sm:$0xff]   ;;  %v4161_v42 = vld [vmem:[%s4574_s30 + $0x1d0] ss:$56 sps:$4 sm:$0xff]  }
  0x3f   : > { %v4156_v41 = vld [vmem:[%s4574_s30 + $0x1c8] ss:$56 sps:$4 sm:$0xff]  }
  0x40   : > { %3535 = vmatpush3.bf16.msra.mxu1 %v4083_v40  ;;  %3599 = vmatpush3.bf16.msra.mxu0 %v4087_v43  ;;  %v4163_v40 = vld [vmem:[%s5383_s1 + $0x220] sm:$0xff]   ;;  %v4164_v43 = vld [vmem:[%s4574_s30 + $0x23c] ss:$56 sps:$4 sm:$0xff]  }
  0x41   : > { %3536 = vmatprep.subr.bf16.mxu1 %v4089_v44  ;;  %3600 = vmatprep.subr.bf16.mxu0 %v4094_v46  ;;  %v4167_v44 = vld [vmem:[%s5383_s1 + $0x1e8] sm:$0xff]  }
  0x42   : > { %v4170_v46 = vld [vmem:[%s5383_s1 + $0x1a8] sm:$0xff]  }
  0x43   : > { %2115 = vmatmul.mubr.bf16.gmra.mrb[8].mxu1 %v4088_v45  ;;  %2083 = vmatmul.mubr.bf16.gmra.mrb[8].mxu0 %v4093_v48  ;;  %v4168_v45 = vld [vmem:[%s4574_s30 + $0x244] ss:$56 sps:$4 sm:$0xff]   ;;  %v4173_v48 = vld [vmem:[%s5383_s1 + $0x228] sm:$0xff]  }
  0x44   : > { %3537 = vmatpush3.bf16.msra.mxu1 %v4092_v47  ;;  %3601 = vmatpush3.bf16.msra.mxu0 %v4095_v49  ;;  %v4172_v47 = vld [vmem:[%s5383_s1 + $0x268] sm:$0xff]   ;;  %v4166_v49 = vld [vmem:[%s4574_s30 + $0x238] ss:$56 sps:$4 sm:$0xff]  }
  0x45   : > { %3538 = vmatprep.subr.bf16.mxu1 %v4096_v50  ;;  %3602 = vmatprep.subr.bf16.mxu0 %v4098_v51  ;;  %v4171_v50 = vld [vmem:[%s4574_s30 + $0x240] ss:$56 sps:$4 sm:$0xff]   ;;  %v4177_v51 = vld [vmem:[%s5383_s1 + $0x1f0] sm:$0xff]  }
  0x46   : > { %2122 = vmatprep.mubr.bf16.mxu1 %v4099_v53  ;;  %2090 = vmatprep.mubr.bf16.mxu0 %v4104_v55  ;;  %v4180_v53 = vld [vmem:[%s5383_s1 + $0x1b0] sm:$0xff]  }
  0x47   : > { %v4182_v55 = vld [vmem:[%s5383_s1 + $0x270] sm:$0xff]  }
  0x48   : > { %3539 = vmatpush3.bf16.msra.mxu1 %v4097_v52  ;;  %3603 = vmatpush3.bf16.msra.mxu0 %v4101_v54  ;;  %v4174_v52 = vld [vmem:[%s4574_s30 + $0x2ac] ss:$56 sps:$4 sm:$0xff]  }
  0x49   : > { %3540 = vmatprep.subr.bf16.mxu1 %v4103_v57  ;;  %3604 = vmatprep.subr.bf16.mxu0 %v4108_v59  ;;  %v4178_v54 = vld [vmem:[%s4574_s30 + $0x2b4] ss:$56 sps:$4 sm:$0xff]   ;;  %v4187_v57 = vld [vmem:[%s5383_s1 + $0x1f8] sm:$0xff]   ;;  %v4181_v59 = vld [vmem:[%s4574_s30 + $0x2b0] ss:$56 sps:$4 sm:$0xff]  }
  0x4b   : > { %2123 = vmatmul.mubr.bf16.gmra.mrb[12].mxu1 %v4102_v56  ;;  %2091 = vmatmul.mubr.bf16.gmra.mrb[12].mxu0 %v4107_v60  ;;  %v4183_v56 = vld [vmem:[%s5383_s1 + $0x230] sm:$0xff]  }
  0x4c   : > { %3541 = vmatpush3.bf16.msra.mxu1 %v4106_v58  ;;  %3605 = vmatpush3.bf16.msra.mxu0 %v4109_v61  ;;  %v4176_v58 = vld [vmem:[%s4574_s30 + $0x2a8] ss:$56 sps:$4 sm:$0xff]   ;;  %v4184_v60 = vld [vmem:[%s4574_s30 + $0x31c] ss:$56 sps:$4 sm:$0xff]  }
  0x4d   : > { %3542 = vmatprep.subr.bf16.mxu1 %v4110_v62  ;;  %3606 = vmatprep.subr.bf16.mxu0 %v4112_v63  ;;  %v4188_v61 = vld [vmem:[%s4574_s30 + $0x324] ss:$56 sps:$4 sm:$0xff]  }
  0x4e   : > { %2163 = vmatprep.mubr.bf16.mxu1 %v4115_v1  ;;  %2260 = vmatprep.mubr.bf16.mxu0 %v4120_v6  ;;  %v4190_v62 = vld [vmem:[%s5383_s1 + $0x1b8] sm:$0xff]   ;;  %v2921_v1 = vld [vmem:[%s5388_s6] sm:$0x1] }
  0x4f   : > { %v4192_v63 = vld [vmem:[%s5383_s1 + $0x278] sm:$0xff]  }
  0x50   : > { %3543 = vmatpush3.bf16.msra.mxu1 %v4111_v0  ;;  %3607 = vmatpush3.bf16.msra.mxu0 %v4116_v2  ;;  %v2920_v0 = vld [vmem:[%s479_s17] sm:$0x1]  ;;  %v4186_v6 = vld [vmem:[%s4574_s30 + $0x318] ss:$56 sps:$4 sm:$0xff]   ;;  %s3125_s17 = scalar_lea.sflag [#allocation5], %s458_s22 }
  0x51   : > { %3656 = vmatprep.subr.bf16.mxu1 %v4117_v4  ;;  %3720 = vmatprep.subr.bf16.mxu0 %v4122_v9  ;;  %v2922_v2 = vmul.f32 %v2921_v1, %v2920_v0  ;;  %v4196_v9 = vld [vmem:[%s4574_s30 + $0x1c] ss:$56 sps:$4 sm:$0xff]   ;;  %v4260_v0 = vld [vmem:[%s4574_s30 + $0x32c] ss:$56 sps:$4 sm:$0xff]  }
  0x52   : > { %v4264_v1 = vld [vmem:[%s4574_s30 + $0x334] ss:$56 sps:$4 sm:$0xff]  }
  0x53   : > { %2164 = vmatmul.mubr.bf16.vlgmr.msra.gmra.mrb[16].mxu1 %v4113_v3  ;;  %2261 = vmatmul.mubr.bf16.vlgmr.msra.gmra.mrb[16].mxu0 %v4118_v5  ;;  %v4193_v3 = vld [vmem:[%s5383_s1 + $0x238] sm:$0xff]   ;;  %v2924_v4 = vsel %vm2923_vm0, %v2922_v2, 0.0  ;;  %v4197_v5 = vld [vmem:[%s5383_s1 + $0x2c0] sm:$0xff]   ;;  %v2782_v2 = vld [vmem:[%s4975_s18 + $0x8] sm:$0xff] }
  0x54   : > { %3657 = vmatpush3.bf16.msra.mxu1 %v4121_v7  ;;  %3721 = vmatpush3.bf16.msra.mxu0 %v4123_v10  ;;  %v4191_v7 = vld [vmem:[%s4574_s30 + $0x320] ss:$56 sps:$4 sm:$0xff]   ;;  %v4200_v10 = vld [vmem:[%s4574_s30 + $0x24] ss:$56 sps:$4 sm:$0xff]  }
  0x55   : > { %2171 = vmatprep.mubr.bf16.mxu1 %v4124_v11  ;;  %3658 = vmatprep.subr.bf16.mxu1 %v4127_v12  ;;  %v4194_v11 = vld [vmem:[%s4574_s30 + $0x18] ss:$56 sps:$4 sm:$0xff]  }
  0x56   : > { %2268 = vmatprep.mubr.bf16.mxu0 %v4128_v14  ;;  %3722 = vmatprep.subr.bf16.mxu0 %v4132_v17  ;;  %v4198_v12 = vld [vmem:[%s4574_s30 + $0x20] ss:$56 sps:$4 sm:$0xff]   ;;  %v4207_v17 = vld [vmem:[%s4574_s30 + $0x94] ss:$56 sps:$4 sm:$0xff]  }
  0x57   : > { %2925 = vadd.xlane.f32.xlu0 %v2924_v4  ;;  %v4202_v14 = vld [vmem:[%s5383_s1 + $0x300] sm:$0xff]   ;;  %2804 = vperm.xlu1 %4041, %v2782_v2   ;;  %v2783_v4 = vld [vmem:[%s4975_s18 + $0x10] sm:$0xff] }
  0x58   : > { %3659 = vmatpush3.bf16.msra.mxu1 %v4130_v15  ;;  %3723 = vmatpush3.bf16.msra.mxu0 %v4133_v18  ;;  %v4203_v15 = vld [vmem:[%s4574_s30 + $0x8c] ss:$56 sps:$4 sm:$0xff]  }
  0x59   : > { %3660 = vmatprep.subr.bf16.mxu1 %v4137_v20  ;;  %3724 = vmatprep.subr.bf16.mxu0 %v4142_v25  ;;  %v4209_v18 = vld [vmem:[%s5383_s1 + $0x288] sm:$0xff]   ;;  %v4218_v25 = vld [vmem:[%s5383_s1 + $0x290] sm:$0xff]  }
  0x5a   : > { %v4205_v20 = vld [vmem:[%s4574_s30 + $0x88] ss:$56 sps:$4 sm:$0xff]  }
  0x5b   : > { %2172 = vmatmul.mubr.bf16.gmra.mrb[20].mxu1 %v4126_v13  ;;  %2269 = vmatmul.mubr.bf16.gmra.mrb[20].mxu0 %v4131_v16  ;;  %v4201_v13 = vld [vmem:[%s5383_s1 + $0x280] sm:$0xff]   ;;  %v4206_v16 = vld [vmem:[%s5383_s1 + $0x2c8] sm:$0xff]  }
  0x5c   : > { %2179 = vmatprep.mubr.bf16.mxu1 %v4134_v19  ;;  %2276 = vmatprep.mubr.bf16.mxu0 %v4138_v21  ;;  %v4211_v19 = vld [vmem:[%s5383_s1 + $0x308] sm:$0xff]  }
  0x5d   : > { %3661 = vmatpush3.bf16.msra.mxu1 %v4140_v23  ;;  %3725 = vmatpush3.bf16.msra.mxu0 %v4143_v26  ;;  %v4210_v21 = vld [vmem:[%s4574_s30 + $0x90] ss:$56 sps:$4 sm:$0xff]   ;;  %v4212_v23 = vld [vmem:[%s4574_s30 + $0xfc] ss:$56 sps:$4 sm:$0xff]  }
  0x5e   : > { %3662 = vmatprep.subr.bf16.mxu1 %v4147_v28  ;;  %3726 = vmatprep.subr.bf16.mxu0 %v4152_v32  ;;  %v4219_v26 = vld [vmem:[%s5383_s1 + $0x310] sm:$0xff]   ;;  %v4221_v28 = vld [vmem:[%s5383_s1 + $0x318] sm:$0xff]   ;;  %v4222_v32 = vld [vmem:[%s4574_s30 + $0x16c] ss:$56 sps:$4 sm:$0xff]  }
  0x5f   : > { %2809 = vperm.xlu1 %4041, %v2783_v4  }
  0x61   : > { %3663 = vmatpush3.bf16.msra.mxu1 %v4150_v30  ;;  %3727 = vmatpush3.bf16.msra.mxu0 %v4153_v33  ;;  %v4220_v30 = vld [vmem:[%s4574_s30 + $0x100] ss:$56 sps:$4 sm:$0xff]  }
  0x62   : > { %3664 = vmatprep.subr.bf16.mxu1 %v4157_v36  ;;  %3728 = vmatprep.subr.bf16.mxu0 %v4162_v39  ;;  %v4234_v33 = vld [vmem:[%s5383_s1 + $0x2e0] sm:$0xff]  }
  0x63   : > { %2180 = vmatmul.mubr.bf16.gmra.mrb[24].mxu1 %v4136_v22  ;;  %2277 = vmatmul.mubr.bf16.gmra.mrb[24].mxu0 %v4141_v24  ;;  %v4215_v22 = vld [vmem:[%s5383_s1 + $0x2d0] sm:$0xff]   ;;  %v4216_v24 = vld [vmem:[%s4574_s30 + $0x104] ss:$56 sps:$4 sm:$0xff]   ;;  %v4224_v39 = vld [vmem:[%s4574_s30 + $0x168] ss:$56 sps:$4 sm:$0xff]  }
  0x64   : > { %2187 = vmatprep.mubr.bf16.mxu1 %v4144_v27  ;;  %2284 = vmatprep.mubr.bf16.mxu0 %v4148_v29  ;;  %v4225_v27 = vld [vmem:[%s5383_s1 + $0x2d8] sm:$0xff]   ;;  %v4237_v36 = vld [vmem:[%s5383_s1 + $0x2a0] sm:$0xff]  }
  0x65   : > { %3665 = vmatpush3.bf16.msra.mxu1 %v4160_v38  ;;  %3729 = vmatpush3.bf16.msra.mxu0 %v4163_v40  ;;  %v4214_v29 = vld [vmem:[%s4574_s30 + $0xf8] ss:$56 sps:$4 sm:$0xff]   ;;  %v4238_v38 = vld [vmem:[%s5383_s1 + $0x328] sm:$0xff]  }
  0x66   : > { %3666 = vmatprep.subr.bf16.mxu1 %v4167_v44  ;;  %3730 = vmatprep.subr.bf16.mxu0 %v4172_v47  ;;  %v4229_v40 = vld [vmem:[%s4574_s30 + $0x170] ss:$56 sps:$4 sm:$0xff]  }
  0x67   : > { %v4253_v44 = vld [vmem:[%s5383_s1 + $0x2f0] sm:$0xff]  }
  0x68   : > { %v4233_v47 = vld [vmem:[%s4574_s30 + $0x1d8] ss:$56 sps:$4 sm:$0xff]  }
  0x69   : > { %3667 = vmatpush3.bf16.msra.mxu1 %v4170_v46  ;;  %3731 = vmatpush3.bf16.msra.mxu0 %v4173_v48  ;;  %v4256_v46 = vld [vmem:[%s5383_s1 + $0x2b0] sm:$0xff]   ;;  %v4239_v48 = vld [vmem:[%s4574_s30 + $0x1e0] ss:$56 sps:$4 sm:$0xff]  }
  0x6a   : > { %3668 = vmatprep.subr.bf16.mxu1 %v4177_v51  ;;  %3732 = vmatprep.subr.bf16.mxu0 %v4182_v55  ;;  %v4241_v51 = vld [vmem:[%s4574_s30 + $0x24c] ss:$56 sps:$4 sm:$0xff]  }
  0x6b   : > { %2188 = vmatmul.mubr.bf16.gmra.mrb[28].mxu1 %v4146_v31  ;;  %2285 = vmatmul.mubr.bf16.gmra.mrb[28].mxu0 %v4151_v34  ;;  %v4228_v31 = vld [vmem:[%s5383_s1 + $0x298] sm:$0xff]   ;;  %v4226_v34 = vld [vmem:[%s4574_s30 + $0x174] ss:$56 sps:$4 sm:$0xff]  }
  0x6c   : > { %2195 = vmatprep.mubr.bf16.mxu1 %v4154_v35  ;;  %2292 = vmatprep.mubr.bf16.mxu0 %v4158_v37  ;;  %v4230_v35 = vld [vmem:[%s5383_s1 + $0x320] sm:$0xff]   ;;  %v4244_v37 = vld [vmem:[%s5383_s1 + $0x2e8] sm:$0xff]  }
  0x6d   : > { %3669 = vmatpush3.bf16.msra.mxu1 %v4180_v53  ;;  %3733 = vmatpush3.bf16.msra.mxu0 %v4183_v56  ;;  %v4266_v53 = vld [vmem:[%s5383_s1 + $0x2b8] sm:$0xff]   ;;  %v4259_v55 = vld [vmem:[%s5383_s1 + $0x348] sm:$0xff]  }
  0x6e   : > { %3670 = vmatprep.subr.bf16.mxu1 %v4187_v57  ;;  %3734 = vmatprep.subr.bf16.mxu0 %v4192_v63  ;;  %v4243_v56 = vld [vmem:[%s4574_s30 + $0x248] ss:$56 sps:$4 sm:$0xff]  }
  0x6f   : > { %v4248_v57 = vld [vmem:[%s4574_s30 + $0x250] ss:$56 sps:$4 sm:$0xff]   ;;  %v4258_v63 = vld [vmem:[%s4574_s30 + $0x2c0] ss:$56 sps:$4 sm:$0xff]  }
  0x71   : > { %3671 = vmatpush3.bf16.msra.mxu1 %v4190_v62  ;;  %3735 = vmatpush3.bf16.msra.mxu0 %v4193_v3  ;;  %v4252_v62 = vld [vmem:[%s4574_s30 + $0x2b8] ss:$56 sps:$4 sm:$0xff]  }
  0x72   : > { %3784 = vmatprep.subr.bf16.mxu1 %v4197_v5  ;;  %2616 = vmatprep.subr.bf16.mxu0 %v4406_v8  ;;  %v4267_v3 = vld [vmem:[%s4574_s30 + $0x330] ss:$56 sps:$4 sm:$0xff]   ;;  %v4271_v5 = vld [vmem:[%s4574_s30 + $0x2c] ss:$56 sps:$4 sm:$0xff]  }
  0x73   : > { %2196 = vmatmul.mubr.bf16.gmra.mrb[32].mxu1 %v4156_v41  ;;  %2293 = vmatmul.mubr.bf16.gmra.mrb[32].mxu0 %v4161_v42  ;;  %v4247_v41 = vld [vmem:[%s5383_s1 + $0x2a8] sm:$0xff]   ;;  %v4231_v42 = vld [vmem:[%s4574_s30 + $0x1dc] ss:$56 sps:$4 sm:$0xff]  }
  0x74   : > { %2203 = vmatprep.mubr.bf16.mxu1 %v4164_v43  ;;  %2300 = vmatprep.mubr.bf16.mxu0 %v4168_v45  ;;  %v4235_v43 = vld [vmem:[%s4574_s30 + $0x1e4] ss:$56 sps:$4 sm:$0xff]   ;;  %v4240_v45 = vld [vmem:[%s5383_s1 + $0x330] sm:$0xff]  }
  0x7b   : > { %2204 = vmatmul.mubr.bf16.gmra.mrb[36].mxu1 %v4166_v49  ;;  %2301 = vmatmul.mubr.bf16.gmra.mrb[36].mxu0 %v4171_v50  ;;  %v4249_v49 = vld [vmem:[%s5383_s1 + $0x338] sm:$0xff]  }
  0x7c   : > { %2211 = vmatprep.mubr.bf16.mxu1 %v4174_v52  ;;  %2308 = vmatprep.mubr.bf16.mxu0 %v4178_v54  ;;  %v4263_v50 = vld [vmem:[%s5383_s1 + $0x2f8] sm:$0xff]   ;;  %v4245_v52 = vld [vmem:[%s4574_s30 + $0x254] ss:$56 sps:$4 sm:$0xff]   ;;  %v4257_v54 = vld [vmem:[%s5383_s1 + $0x340] sm:$0xff]  }
  0x83   : > { %2212 = vmatmul.mubr.bf16.gmra.mrb[40].mxu1 %v4176_v58  ;;  %2309 = vmatmul.mubr.bf16.gmra.mrb[40].mxu0 %v4181_v59  ;;  %v4250_v58 = vld [vmem:[%s4574_s30 + $0x2bc] ss:$56 sps:$4 sm:$0xff]  }
  0x84   : > { %2219 = vmatprep.mubr.bf16.mxu1 %v4184_v60  ;;  %2316 = vmatprep.mubr.bf16.mxu0 %v4188_v61  ;;  %v4254_v59 = vld [vmem:[%s4574_s30 + $0x2c4] ss:$56 sps:$4 sm:$0xff]   ;;  %v4268_v60 = vld [vmem:[%s5383_s1 + $0x350] sm:$0xff]  }
  0x85   : > { %v4272_v61 = vld [vmem:[%s5383_s1 + $0x358] sm:$0xff]  }
  0x8b   : > { %2220 = vmatmul.mubr.bf16.gmra.mrb[44].mxu1 %v4186_v6  ;;  %2317 = vmatmul.mubr.bf16.gmra.mrb[44].mxu0 %v4191_v7  ;;  %v4275_v6 = vld [vmem:[%s4574_s30 + $0x34] ss:$56 sps:$4 sm:$0xff]   ;;  %v2784_v7 = vld [vmem:[%s4975_s18 + $0x18] sm:$0xff] }
  0x8c   : > { %2357 = vmatprep.mubr.bf16.mxu1 %v4196_v9  ;;  %2454 = vmatprep.mubr.bf16.mxu0 %v4200_v10  ;;  %v2781_v9 = vld [vmem:[%s4975_s18] sm:$0xff]  ;;  %v2794_v10 = vld [vmem:[%s4975_s18 + $0x68] sm:$0xff] }
  0x8d   : > { %2799 = vperm.xlu0 %4040, %v2781_v9   ;;  %2814 = vperm.xlu1 %4041, %v2784_v7   ;;  %v2927_v7 = vld [vmem:[#allocation3] sm:$0x1] }
  0x91   : > { %2864 = vperm.xlu0 %4040, %v2794_v10  }
  0x93   : > { %2358 = vmatmul.mubr.bf16.vlgmr.msra.gmra.mrb[48].mxu1 %v4194_v11  ;;  %2455 = vmatmul.mubr.bf16.vlgmr.msra.gmra.mrb[48].mxu0 %v4198_v12  ;;  %v4269_v11 = vld [vmem:[%s4574_s30 + $0x28] ss:$56 sps:$4 sm:$0xff]  }
  0x94   : > { %3785 = vmatpush3.bf16.msra.mxu1 %v4201_v13  ;;  %2617 = vmatpush1.bf16.msra.mxu0 %v4202_v14  ;;  %v4273_v12 = vld [vmem:[%s4574_s30 + $0x30] ss:$56 sps:$4 sm:$0xff]   ;;  %v2785_v13 = vld [vmem:[%s4975_s18 + $0x20] sm:$0xff]  ;;  %v4276_v14 = vld [vmem:[%s4574_s30 + $0x9c] ss:$56 sps:$4 sm:$0xff]  }
  0x95   : > { %2365 = vmatprep.mubr.bf16.mxu1 %v4203_v15  ;;  %3786 = vmatprep.subr.bf16.mxu1 %v4206_v16  ;;  %v4279_v15 = vld [vmem:[%s4574_s30 + $0xa4] ss:$56 sps:$4 sm:$0xff]  }
  0x96   : > { %2462 = vmatprep.mubr.bf16.mxu0 %v4207_v17  ;;  %2618 = vmatprep.subr.bf16.mxu0 %v4406_v8  ;;  %v2796_v16 = vld [vmem:[%s4975_s18 + $0x78] sm:$0xff]  ;;  %v2786_v17 = vld [vmem:[%s4975_s18 + $0x28] sm:$0xff] }
  0x97   : > { %2819 = vperm.xlu1 %4041, %v2785_v13   ;;  %2874 = vperm.xlu0 %4040, %v2796_v16  }
  0x98   : > { %3787 = vmatpush3.bf16.msra.mxu1 %v4209_v18  ;;  %2619 = vmatpush1.bf16.msra.mxu0 %v4211_v19  ;;  %v4278_v18 = vld [vmem:[%s4574_s30 + $0x98] ss:$56 sps:$4 sm:$0xff]  }
  0x99   : > { %3788 = vmatprep.subr.bf16.mxu1 %v4215_v22  ;;  %2620 = vmatprep.subr.bf16.mxu0 %v4406_v8  ;;  %v4281_v19 = vld [vmem:[%s4574_s30 + $0xa0] ss:$56 sps:$4 sm:$0xff]   ;;  %v4285_v22 = vld [vmem:[%s4574_s30 + $0x114] ss:$56 sps:$4 sm:$0xff]  }
  0x9b   : > { %2366 = vmatmul.mubr.bf16.gmra.mrb[52].mxu1 %v4205_v20  ;;  %2463 = vmatmul.mubr.bf16.gmra.mrb[52].mxu0 %v4210_v21  ;;  %v2787_v20 = vld [vmem:[%s4975_s18 + $0x30] sm:$0xff]  ;;  %v4282_v21 = vld [vmem:[%s4574_s30 + $0x10c] ss:$56 sps:$4 sm:$0xff]  }
  0x9c   : > { %2373 = vmatprep.mubr.bf16.mxu1 %v4212_v23  ;;  %2470 = vmatprep.mubr.bf16.mxu0 %v4216_v24  ;;  %v2788_v23 = vld [vmem:[%s4975_s18 + $0x38] sm:$0xff]  ;;  %v4284_v24 = vld [vmem:[%s4574_s30 + $0x108] ss:$56 sps:$4 sm:$0xff]  }
  0x9d   : > { %3789 = vmatpush3.bf16.msra.mxu1 %v4218_v25  ;;  %2621 = vmatpush1.bf16.msra.mxu0 %v4219_v26  ;;  %v4287_v25 = vld [vmem:[%s4574_s30 + $0x110] ss:$56 sps:$4 sm:$0xff]   ;;  %v2789_v26 = vld [vmem:[%s4975_s18 + $0x40] sm:$0xff] }
  0x9e   : > { %2622 = vmatprep.subr.bf16.mxu0 %v4406_v8  ;;  %3790 = vmatprep.subr.bf16.mxu1 %v4225_v27  ;;  %v4288_v27 = vld [vmem:[%s4574_s30 + $0x17c] ss:$56 sps:$4 sm:$0xff]  }
  0x9f   : > { %2824 = vperm.xlu1 %4041, %v2786_v17  }
  0xa1   : > { %2623 = vmatpush1.bf16.msra.mxu0 %v4221_v28  ;;  %3791 = vmatpush3.bf16.msra.mxu1 %v4228_v31  ;;  %v4291_v28 = vld [vmem:[%s4574_s30 + $0x184] ss:$56 sps:$4 sm:$0xff]   ;;  %v4293_v31 = vld [vmem:[%s4574_s30 + $0x180] ss:$56 sps:$4 sm:$0xff]  }
  0xa2   : > { %2624 = vmatprep.subr.bf16.mxu0 %v4406_v8  ;;  %3792 = vmatprep.subr.bf16.mxu1 %v4234_v33  ;;  %v4294_v33 = vld [vmem:[%s4574_s30 + $0x1ec] ss:$56 sps:$4 sm:$0xff]  }
  0xa3   : > { %2374 = vmatmul.mubr.bf16.gmra.mrb[56].mxu1 %v4214_v29  ;;  %2471 = vmatmul.mubr.bf16.gmra.mrb[56].mxu0 %v4220_v30  ;;  %v2790_v29 = vld [vmem:[%s4975_s18 + $0x48] sm:$0xff]  ;;  %v4290_v30 = vld [vmem:[%s4574_s30 + $0x178] ss:$56 sps:$4 sm:$0xff]  }
  0xa4   : > { %2381 = vmatprep.mubr.bf16.mxu1 %v4222_v32  ;;  %2478 = vmatprep.mubr.bf16.mxu0 %v4226_v34  ;;  %v2791_v32 = vld [vmem:[%s4975_s18 + $0x50] sm:$0xff] }
  0xa5   : > { %2625 = vmatpush1.bf16.msra.mxu0 %v4230_v35  ;;  %3793 = vmatpush3.bf16.msra.mxu1 %v4237_v36  ;;  %v4297_v34 = vld [vmem:[%s4574_s30 + $0x1f4] ss:$56 sps:$4 sm:$0xff]   ;;  %v2792_v35 = vld [vmem:[%s4975_s18 + $0x58] sm:$0xff]  ;;  %v4296_v36 = vld [vmem:[%s4574_s30 + $0x1e8] ss:$56 sps:$4 sm:$0xff]  }
  0xa6   : > { %2626 = vmatprep.subr.bf16.mxu0 %v4406_v8  ;;  %3794 = vmatprep.subr.bf16.mxu1 %v4244_v37  ;;  %v4299_v37 = vld [vmem:[%s4574_s30 + $0x1f0] ss:$56 sps:$4 sm:$0xff]  }
  0xa7   : > { %2829 = vperm.xlu1 %4041, %v2787_v20  }
  0xa9   : > { %2627 = vmatpush1.bf16.msra.mxu0 %v4238_v38  ;;  %3795 = vmatpush3.bf16.msra.mxu1 %v4247_v41  ;;  %v2793_v38 = vld [vmem:[%s4975_s18 + $0x60] sm:$0xff]  ;;  %v2795_v41 = vld [vmem:[%s4975_s18 + $0x70] sm:$0xff]  ;;  %s4410_s18 = smov [#allocation4]  }
  0xaa   : > { %2628 = vmatprep.subr.bf16.mxu0 %v4406_v8  ;;  %3796 = vmatprep.subr.bf16.mxu1 %v4253_v44  ;;  %v4306_v44 = vld [vmem:[%s4574_s30 + $0x2cc] ss:$56 sps:$4 sm:$0xff]  }
  0xab   : > { %2382 = vmatmul.mubr.bf16.gmra.mrb[60].mxu1 %v4224_v39  ;;  %2479 = vmatmul.mubr.bf16.gmra.mrb[60].mxu0 %v4229_v40  ;;  %v4300_v39 = vld [vmem:[%s4574_s30 + $0x25c] ss:$56 sps:$4 sm:$0xff]  }
  0xac   : > { %2389 = vmatprep.mubr.bf16.mxu1 %v4231_v42  ;;  %2486 = vmatprep.mubr.bf16.mxu0 %v4235_v43  ;;  %v4303_v40 = vld [vmem:[%s4574_s30 + $0x264] ss:$56 sps:$4 sm:$0xff]   ;;  %v4302_v42 = vld [vmem:[%s4574_s30 + $0x258] ss:$56 sps:$4 sm:$0xff]  }
  0xad   : > { %2629 = vmatpush1.bf16.msra.mxu0 %v4240_v45  ;;  %3797 = vmatpush3.bf16.msra.mxu1 %v4256_v46  ;;  %v4305_v43 = vld [vmem:[%s4574_s30 + $0x260] ss:$56 sps:$4 sm:$0xff]   ;;  %v4309_v45 = vld [vmem:[%s4574_s30 + $0x2d4] ss:$56 sps:$4 sm:$0xff]  }
  0xae   : > { %2630 = vmatprep.subr.bf16.mxu0 %v4406_v8  ;;  %3798 = vmatprep.subr.bf16.mxu1 %v4263_v50  ;;  %v4308_v46 = vld [vmem:[%s4574_s30 + $0x2c8] ss:$56 sps:$4 sm:$0xff]  }
  0xaf   : > { %2834 = vperm.xlu1 %4041, %v2788_v23  }
  0xb1   : > { %2631 = vmatpush1.bf16.msra.mxu0 %v4249_v49  ;;  %3799 = vmatpush3.bf16.msra.mxu1 %v4266_v53  ;;  %v4315_v49 = vld [vmem:[%s4574_s30 + $0x344] ss:$56 sps:$4 sm:$0xff]  }
  0xb2   : > { %2632 = vmatprep.subr.bf16.mxu0 %v4406_v8 }
  0xb3   : > { %2390 = vmatmul.mubr.bf16.gmra.mrb[64].mxu1 %v4233_v47  ;;  %2487 = vmatmul.mubr.bf16.gmra.mrb[64].mxu0 %v4239_v48  ;;  %v4311_v47 = vld [vmem:[%s4574_s30 + $0x2d0] ss:$56 sps:$4 sm:$0xff]   ;;  %v4312_v48 = vld [vmem:[%s4574_s30 + $0x33c] ss:$56 sps:$4 sm:$0xff]  }
  0xb4   : > { %2397 = vmatprep.mubr.bf16.mxu1 %v4241_v51  ;;  %2494 = vmatprep.mubr.bf16.mxu0 %v4245_v52 }
  0xb5   : > { %2633 = vmatpush1.bf16.msra.mxu0 %v4257_v54  ;;  %2839 = vperm.xlu1 %4041, %v2789_v26   ;;  %v4314_v54 = vld [vmem:[%s4574_s30 + $0x338] ss:$56 sps:$4 sm:$0xff]  }
  0xb6   : > { %2634 = vmatprep.subr.bf16.mxu0 %v4406_v8 }
  0xb9   : > { %2635 = vmatpush1.bf16.msra.mxu0 %v4259_v55  ;;  %2844 = vperm.xlu1 %4041, %v2790_v29   ;;  %v4317_v55 = vld [vmem:[%s4574_s30 + $0x340] ss:$56 sps:$4 sm:$0xff]  }
  0xba   : > { %2636 = vmatprep.subr.bf16.mxu0 %v4406_v8 }
  0xbb   : > { %2398 = vmatmul.mubr.bf16.gmra.mrb[68].mxu1 %v4243_v56  ;;  %2495 = vmatmul.mubr.bf16.gmra.mrb[68].mxu0 %v4248_v57 }
  0xbc   : > { %2405 = vmatprep.mubr.bf16.mxu1 %v4250_v58  ;;  %2502 = vmatprep.mubr.bf16.mxu0 %v4254_v59 }
  0xbd   : > { %2637 = vmatpush1.bf16.msra.mxu0 %v4268_v60  ;;  %2849 = vperm.xlu1 %4041, %v2791_v32  }
  0xbe   : > { %2638 = vmatprep.subr.bf16.mxu0 %v4406_v8  ;;  %v4262_v8 = vld [vmem:[%s4574_s30 + $0x328] ss:$56 sps:$4 sm:$0xff]   ;;  %s4330_s30 = sshll.u32 %s4410_s18, 4  ;;  %s4331_s30 = int_to_ptr.vmem [resolvable:$false] %s4330_s30 }
  0xbf   : > { %s4332_s21 = scalar_lea.vmem %s4331_s30, 32  ;;  %p4333_p2 = scmp.lt.s32.totalorder %s5336_s26, %s4331_s30 }
  0xc0   : > { %p4334_p3 = scmp.lt.s32.totalorder %s4332_s21, %s4326_s13 }
  0xc1   : > { %2639 = vmatpush1.bf16.msra.mxu0 %v4272_v61  ;;  %2854 = vperm.xlu1 %4041, %v2792_v35  }
  0xc2   : > { %p4335_p5 = por %p4334_p3, %p4333_p2 }
  0xc3   : > { %2406 = vmatmul.mubr.bf16.gmra.mrb[72].mxu1 %v4252_v62  ;;  %2503 = vmatmul.mubr.bf16.gmra.mrb[72].mxu0 %v4258_v63 }
  0xc4   : > { %2413 = vmatprep.mubr.bf16.mxu1 %v4260_v0  ;;  %2510 = vmatprep.mubr.bf16.mxu0 %v4264_v1  ;;  %p4336_p6 = pnand %p4335_p5, %p4329_p1 }
  0xc5   : > { %2859 = vperm.xlu1 %4041, %v2793_v38  }
  0xc9   : > { %2869 = vperm.xlu1 %4041, %v2795_v41  }
  0xcb   : > { %2414 = vmatmul.mubr.bf16.gmra.mrb[76].mxu1 %v4262_v8  ;;  %2511 = vmatmul.mubr.bf16.gmra.mrb[76].mxu0 %v4267_v3 }
  0xcc   : > { %2551 = vmatprep.mubr.bf16.mxu1 %v4271_v5  ;;  %3450 = vmatprep.mubr.msk.bf16.mxu0 %vm2009_vm1, %v4275_v6 }
  0xd3   : > { %2552 = vmatmul.mubr.bf16.vlgmr.msra.gmra.mrb[80].mxu1 %v4269_v11  ;;  %2649 = vmatmul.mubr.bf16.vlgmr.msra.gmra.mrb[80].mxu0 %v4273_v12 }
  0xd4   : > { %2559 = vmatprep.mubr.bf16.mxu1 %v4276_v14  ;;  %3451 = vmatprep.mubr.msk.bf16.mxu0 %vm2009_vm1, %v4279_v15 }
  0xdb   : > { %2560 = vmatmul.mubr.bf16.gmra.mrb[84].mxu1 %v4278_v18  ;;  %2657 = vmatmul.mubr.bf16.gmra.mrb[84].mxu0 %v4281_v19 }
  0xdc   : > { %2567 = vmatprep.mubr.bf16.mxu1 %v4282_v21  ;;  %3452 = vmatprep.mubr.msk.bf16.mxu0 %vm2009_vm1, %v4285_v22 }
  0xe3   : > { %2568 = vmatmul.mubr.bf16.gmra.mrb[88].mxu1 %v4284_v24  ;;  %2665 = vmatmul.mubr.bf16.gmra.mrb[88].mxu0 %v4287_v25 }
  0xe4   : > { %2575 = vmatprep.mubr.bf16.mxu1 %v4288_v27  ;;  %3453 = vmatprep.mubr.msk.bf16.mxu0 %vm2009_vm1, %v4291_v28  ;;  %v2926_v13 = vpop.xlane.xlu0 %2925 }
  0xe5   : > { %v2928_v14 = vadd.f32 %v2927_v7, %v2926_v13 }
  0xe7   : > { %v2929_v15 = vsub.f32 0.0, %v2928_v14 }
  0xe9   : > { %v2930_v20 = vmul.f32 1.442695, %v2929_v15 }
  0xeb   : > { %2576 = vmatmul.mubr.bf16.gmra.mrb[92].mxu1 %v4290_v30  ;;  %2673 = vmatmul.mubr.bf16.gmra.mrb[92].mxu0 %v4293_v31  ;;  %4318 = vpow2.f32 %v2930_v20 }
  0xec   : > { %2583 = vmatprep.mubr.bf16.mxu1 %v4294_v33  ;;  %3454 = vmatprep.mubr.msk.bf16.mxu0 %vm2009_vm1, %v4297_v34 }
  0xf3   : > { %2584 = vmatmul.mubr.bf16.gmra.mrb[96].mxu1 %v4296_v36  ;;  %2681 = vmatmul.mubr.bf16.gmra.mrb[96].mxu0 %v4299_v37 }
  0xf4   : > { %2591 = vmatprep.mubr.bf16.mxu1 %v4300_v39  ;;  %3455 = vmatprep.mubr.msk.bf16.mxu0 %vm2009_vm1, %v4303_v40 }
  0xf5   : > { %v4319_v41 = vpop.eup %4318 }
  0xfb   : > { %2592 = vmatmul.mubr.bf16.gmra.mrb[100].mxu1 %v4302_v42  ;;  %2689 = vmatmul.mubr.bf16.gmra.mrb[100].mxu0 %v4305_v43  ;;  %v2932_v42 = vadd.f32 1.0, %v4319_v41 }
  0xfc   : > { %2599 = vmatprep.mubr.bf16.mxu1 %v4306_v44  ;;  %3456 = vmatprep.mubr.msk.bf16.mxu0 %vm2009_vm1, %v4309_v45 }
  0xfd   : > { %4320 = vrcp.f32 %v2932_v42 }
 0x103   : > { %2600 = vmatmul.mubr.bf16.gmra.mrb[104].mxu1 %v4308_v46  ;;  %2697 = vmatmul.mubr.bf16.gmra.mrb[104].mxu0 %v4311_v47 }
 0x104   : > { %2607 = vmatprep.mubr.bf16.mxu1 %v4312_v48  ;;  %3457 = vmatprep.mubr.msk.bf16.mxu0 %vm2009_vm1, %v4315_v49 }
 0x106   : > { %v3504_v50 = vpop.f32.mrb[0].mxu1  ;;  %v3480_v51 = vpop.f32.mrb[0].mxu0 }
 0x107   : > { %v3505_v52 = vpop.f32.mrb[1].mxu1  ;;  %v3481_v53 = vpop.f32.mrb[1].mxu0 }
 0x108   : > { %v5035_v56 = vadd.f32 %v3505_v52, %v3504_v50  ;;  %v3507_v57 = vpop.f32.mrb[2].mxu1  ;;  %v5037_v58 = vadd.f32 %v3481_v53, %v3480_v51  ;;  %v3483_v59 = vpop.f32.mrb[2].mxu0 }
 0x109   : > { %v3508_v60 = vpop.f32.mrb[3].mxu1  ;;  %v3484_v61 = vpop.f32.mrb[3].mxu0 }
 0x10a   : > { %v5039_v62 = vadd.f32 %v3508_v60, %v3507_v57  ;;  %v3485_v63 = vadd.f32 %v3484_v61, %v3483_v59 }
 0x10b   : > { %2608 = vmatmul.mubr.bf16.gmra.mrb[108].mxu1 %v4314_v54  ;;  %2705 = vmatmul.mubr.bf16.gmra.mrb[108].mxu0 %v4317_v55 }
 0x10e   : > { %v3510_v0 = vpop.f32.mrb[4].mxu1  ;;  %v3486_v1 = vpop.f32.mrb[4].mxu0 }
 0x10f   : > { %v3511_v2 = vpop.f32.mrb[5].mxu1  ;;  %v3487_v8 = vpop.f32.mrb[5].mxu0 }
 0x110   : > { %v5041_v3 = vadd.f32 %v3511_v2, %v3510_v0  ;;  %v3513_v4 = vpop.f32.mrb[6].mxu1  ;;  %v5043_v5 = vadd.f32 %v3487_v8, %v3486_v1  ;;  %v3489_v6 = vpop.f32.mrb[6].mxu0 }
 0x111   : > { %v3514_v9 = vpop.f32.mrb[7].mxu1  ;;  %v3490_v10 = vpop.f32.mrb[7].mxu0 }
 0x112   : > { %v5045_v11 = vadd.f32 %v3514_v9, %v3513_v4  ;;  %v5047_v12 = vadd.f32 %v3490_v10, %v3489_v6  ;;  %v4321_v8 = vpop.eup %4320 }
 0x113   : > { %2937 = vperm.xlu1 %4041, %v4321_v8  }
 0x116   : > { %v3516_v16 = vpop.f32.mrb[8].mxu1  ;;  %v3492_v17 = vpop.f32.mrb[8].mxu0 }
 0x117   : > { %v3517_v18 = vpop.f32.mrb[9].mxu1  ;;  %v3493_v19 = vpop.f32.mrb[9].mxu0 }
 0x118   : > { %v5049_v21 = vadd.f32 %v3517_v18, %v3516_v16  ;;  %v3519_v22 = vpop.f32.mrb[10].mxu1  ;;  %v5051_v23 = vadd.f32 %v3493_v19, %v3492_v17  ;;  %v3495_v24 = vpop.f32.mrb[10].mxu0 }
 0x119   : > { %v3520_v25 = vpop.f32.mrb[11].mxu1  ;;  %v3496_v26 = vpop.f32.mrb[11].mxu0 }
 0x11a   : > { %v5053_v27 = vadd.f32 %v3520_v25, %v3519_v22  ;;  %v5055_v28 = vadd.f32 %v3496_v26, %v3495_v24 }
 0x11e   : > { %v3522_v29 = vpop.f32.mrb[12].mxu1  ;;  %v3498_v30 = vpop.f32.mrb[12].mxu0 }
 0x11f   : > { %v3523_v31 = vpop.f32.mrb[13].mxu1  ;;  %v3499_v32 = vpop.f32.mrb[13].mxu0 }
 0x120   : > { %v5057_v33 = vadd.f32 %v3523_v31, %v3522_v29  ;;  %v3525_v34 = vpop.f32.mrb[14].mxu1  ;;  %v5059_v35 = vadd.f32 %v3499_v32, %v3498_v30  ;;  %v3501_v36 = vpop.f32.mrb[14].mxu0 }
 0x121   : > { %v3526_v37 = vpop.f32.mrb[15].mxu1  ;;  %v3502_v38 = vpop.f32.mrb[15].mxu0 }
 0x122   : > { %v5061_v39 = vadd.f32 %v3526_v37, %v3525_v34  ;;  %v5063_v40 = vadd.f32 %v3502_v38, %v3501_v36 }
 0x126   : > { %v3544_v43 = vpop.f32.mrb[16].mxu1  ;;  %v3608_v44 = vpop.f32.mrb[16].mxu0 }
 0x127   : > { %v3545_v45 = vpop.f32.mrb[17].mxu1  ;;  %v3609_v46 = vpop.f32.mrb[17].mxu0 }
 0x128   : > { %v3546_v47 = vadd.f32 %v3545_v45, %v3544_v43  ;;  %v3547_v48 = vpop.f32.mrb[18].mxu1  ;;  %v3610_v49 = vadd.f32 %v3609_v46, %v3608_v44  ;;  %v3611_v50 = vpop.f32.mrb[18].mxu0 }
 0x129   : > { %v3548_v51 = vpop.f32.mrb[19].mxu1  ;;  %v3612_v52 = vpop.f32.mrb[19].mxu0 }
 0x12a   : > { %v2166_v53 = vadd.f32 %v3546_v47, %v5037_v58  ;;  %v3549_v54 = vadd.f32 %v3548_v51, %v3547_v48  ;;  %v3613_v55 = vadd.f32 %v3612_v52, %v3611_v50 }
 0x12c   : > { %v2169_v57 = vadd.f32 %v3549_v54, %v3485_v63  ;;  %v5066_v59 = vadd.f32 %v3610_v49, %v2166_v53 }
 0x12e   : > { %v5068_v60 = vadd.f32 %v3613_v55, %v2169_v57  ;;  %v3550_v61 = vpop.f32.mrb[20].mxu1  ;;  %v3614_v0 = vpop.f32.mrb[20].mxu0 }
 0x12f   : > { %v3551_v1 = vpop.f32.mrb[21].mxu1  ;;  %v3615_v2 = vpop.f32.mrb[21].mxu0 }
 0x130   : > { %v3552_v4 = vadd.f32 %v3551_v1, %v3550_v61  ;;  %v3553_v6 = vpop.f32.mrb[22].mxu1  ;;  %v3616_v7 = vadd.f32 %v3615_v2, %v3614_v0  ;;  %v3617_v9 = vpop.f32.mrb[22].mxu0 }
 0x131   : > { %v3554_v10 = vpop.f32.mrb[23].mxu1  ;;  %v3618_v13 = vpop.f32.mrb[23].mxu0 }
 0x132   : > { %v2174_v58 = vadd.f32 %v3552_v4, %v5043_v5  ;;  %v3555_v14 = vadd.f32 %v3554_v10, %v3553_v6  ;;  %v3619_v63 = vadd.f32 %v3618_v13, %v3617_v9 }
 0x134   : > { %v2177_v15 = vadd.f32 %v3555_v14, %v5047_v12  ;;  %v5072_v16 = vadd.f32 %v3616_v7, %v2174_v58 }
 0x136   : > { %v5074_v17 = vadd.f32 %v3619_v63, %v2177_v15  ;;  %v3556_v18 = vpop.f32.mrb[24].mxu1  ;;  %v3620_v19 = vpop.f32.mrb[24].mxu0 }
 0x137   : > { %v3557_v20 = vpop.f32.mrb[25].mxu1  ;;  %v3621_v22 = vpop.f32.mrb[25].mxu0 }
 0x138   : > { %v3558_v24 = vadd.f32 %v3557_v20, %v3556_v18  ;;  %v3559_v25 = vpop.f32.mrb[26].mxu1  ;;  %v3622_v26 = vadd.f32 %v3621_v22, %v3620_v19  ;;  %v3623_v29 = vpop.f32.mrb[26].mxu0 }
 0x139   : > { %v3560_v30 = vpop.f32.mrb[27].mxu1  ;;  %v3624_v31 = vpop.f32.mrb[27].mxu0 }
 0x13a   : > { %v2182_v5 = vadd.f32 %v3558_v24, %v5051_v23  ;;  %v3561_v32 = vadd.f32 %v3560_v30, %v3559_v25  ;;  %v3625_v34 = vadd.f32 %v3624_v31, %v3623_v29 }
 0x13c   : > { %v2185_v12 = vadd.f32 %v3561_v32, %v5055_v28  ;;  %v5078_v36 = vadd.f32 %v3622_v26, %v2182_v5 }
 0x13e   : > { %v5080_v37 = vadd.f32 %v3625_v34, %v2185_v12  ;;  %v3562_v38 = vpop.f32.mrb[28].mxu1  ;;  %v3626_v41 = vpop.f32.mrb[28].mxu0 }
 0x13f   : > { %v3563_v42 = vpop.f32.mrb[29].mxu1  ;;  %v3627_v43 = vpop.f32.mrb[29].mxu0 }
 0x140   : > { %v3564_v44 = vadd.f32 %v3563_v42, %v3562_v38  ;;  %v3565_v45 = vpop.f32.mrb[30].mxu1  ;;  %v3628_v46 = vadd.f32 %v3627_v43, %v3626_v41  ;;  %v3629_v47 = vpop.f32.mrb[30].mxu0  ;;  %v4407_v38 = vmov 0.0|0.0  }
 0x141   : > { %v3566_v48 = vpop.f32.mrb[31].mxu1  ;;  %v3630_v49 = vpop.f32.mrb[31].mxu0  ;;  %3928 = vmatprep.subr.bf16.mxu0 %v4407_v38  ;;  %3952 = vmatprep.subr.bf16.mxu1 %v4407_v38 }
 0x142   : > { %v2190_v23 = vadd.f32 %v3564_v44, %v5059_v35  ;;  %v3567_v50 = vadd.f32 %v3566_v48, %v3565_v45  ;;  %v3631_v51 = vadd.f32 %v3630_v49, %v3629_v47  ;;  %v2942_v44 = vld [vmem:[%s5390_s8 + $0x8] sm:$0xff] }
 0x144   : > { %v2193_v28 = vadd.f32 %v3567_v50, %v5063_v40  ;;  %v5084_v52 = vadd.f32 %v3628_v46, %v2190_v23 }
 0x146   : > { %v5086_v53 = vadd.f32 %v3631_v51, %v2193_v28  ;;  %v3568_v54 = vpop.f32.mrb[32].mxu1  ;;  %v3632_v55 = vpop.f32.mrb[32].mxu0 }
 0x147   : > { %v3569_v57 = vpop.f32.mrb[33].mxu1  ;;  %v3633_v61 = vpop.f32.mrb[33].mxu0 }
 0x148   : > { %v3570_v0 = vadd.f32 %v3569_v57, %v3568_v54  ;;  %v3571_v1 = vpop.f32.mrb[34].mxu1  ;;  %v3634_v2 = vadd.f32 %v3633_v61, %v3632_v55  ;;  %v3635_v8 = vpop.f32.mrb[34].mxu0 }
 0x149   : > { %v3572_v4 = vpop.f32.mrb[35].mxu1  ;;  %v3636_v6 = vpop.f32.mrb[35].mxu0 }
 0x14a   : > { %v2198_v35 = vadd.f32 %v3570_v0, %v5035_v56  ;;  %v3573_v7 = vadd.f32 %v3572_v4, %v3571_v1  ;;  %v3637_v9 = vadd.f32 %v3636_v6, %v3635_v8 }
 0x14c   : > { %v2201_v40 = vadd.f32 %v3573_v7, %v5039_v62  ;;  %v5090_v10 = vadd.f32 %v3634_v2, %v2198_v35 }
 0x14e   : > { %v5092_v13 = vadd.f32 %v3637_v9, %v2201_v40  ;;  %v3574_v58 = vpop.f32.mrb[36].mxu1  ;;  %v3638_v14 = vpop.f32.mrb[36].mxu0 }
 0x14f   : > { %v3575_v63 = vpop.f32.mrb[37].mxu1  ;;  %v3639_v15 = vpop.f32.mrb[37].mxu0 }
 0x150   : > { %v3576_v18 = vadd.f32 %v3575_v63, %v3574_v58  ;;  %v3577_v19 = vpop.f32.mrb[38].mxu1  ;;  %v3640_v20 = vadd.f32 %v3639_v15, %v3638_v14  ;;  %v3641_v22 = vpop.f32.mrb[38].mxu0 }
 0x151   : > { %v3578_v24 = vpop.f32.mrb[39].mxu1  ;;  %v3642_v25 = vpop.f32.mrb[39].mxu0 }
 0x152   : > { %v2206_v56 = vadd.f32 %v3576_v18, %v5041_v3  ;;  %v3579_v26 = vadd.f32 %v3578_v24, %v3577_v19  ;;  %v3643_v29 = vadd.f32 %v3642_v25, %v3641_v22 }
 0x154   : > { %v2209_v62 = vadd.f32 %v3579_v26, %v5045_v11  ;;  %v5096_v30 = vadd.f32 %v3640_v20, %v2206_v56  ;;  %v2941_v11 = vld [vmem:[%s5390_s8] sm:$0xff] }
 0x155   : > { %v3929_v47 = vpack.c.bf16 %v2942_v44, %v2941_v11 }
 0x156   : > { %v5098_v31 = vadd.f32 %v3643_v29, %v2209_v62  ;;  %v3580_v5 = vpop.f32.mrb[40].mxu1  ;;  %v3644_v32 = vpop.f32.mrb[40].mxu0 }
 0x157   : > { %v3581_v34 = vpop.f32.mrb[41].mxu1  ;;  %v3645_v12 = vpop.f32.mrb[41].mxu0  ;;  %3930 = vmatpush3.bf16.msra.mxu0 %v3929_v47 }
 0x158   : > { %v3582_v41 = vadd.f32 %v3581_v34, %v3580_v5  ;;  %v3583_v42 = vpop.f32.mrb[42].mxu1  ;;  %v3646_v3 = vadd.f32 %v3645_v12, %v3644_v32  ;;  %v3647_v43 = vpop.f32.mrb[42].mxu0  ;;  %3931 = vmatprep.subr.bf16.mxu0 %v4407_v38 }
 0x159   : > { %v3584_v45 = vpop.f32.mrb[43].mxu1  ;;  %v3648_v46 = vpop.f32.mrb[43].mxu0 }
 0x15a   : > { %v2214_v48 = vadd.f32 %v3582_v41, %v5049_v21  ;;  %v3585_v49 = vadd.f32 %v3584_v45, %v3583_v42  ;;  %v3649_v23 = vadd.f32 %v3648_v46, %v3647_v43  ;;  %v2943_v21 = vld [vmem:[%s5390_s8 + $0x10] sm:$0xff] }
 0x15c   : > { %v2217_v50 = vadd.f32 %v3585_v49, %v5053_v27  ;;  %v5110_v51 = vadd.f32 %v3646_v3, %v2214_v48  ;;  %v2944_v27 = vld [vmem:[%s5390_s8 + $0x18] sm:$0xff] }
 0x15d   : > { %v3932_v35 = vpack.c.bf16 %v2944_v27, %v2943_v21 }
 0x15e   : > { %v5113_v28 = vadd.f32 %v3649_v23, %v2217_v50  ;;  %v3586_v54 = vpop.f32.mrb[44].mxu1  ;;  %v3650_v55 = vpop.f32.mrb[44].mxu0 }
 0x15f   : > { %v3587_v57 = vpop.f32.mrb[45].mxu1  ;;  %v3651_v61 = vpop.f32.mrb[45].mxu0  ;;  %3933 = vmatpush3.bf16.msra.mxu0 %v3932_v35 }
 0x160   : > { %v3588_v0 = vadd.f32 %v3587_v57, %v3586_v54  ;;  %v3589_v1 = vpop.f32.mrb[46].mxu1  ;;  %v3652_v2 = vadd.f32 %v3651_v61, %v3650_v55  ;;  %v3653_v8 = vpop.f32.mrb[46].mxu0  ;;  %3934 = vmatprep.subr.bf16.mxu0 %v4407_v38  ;;  %v2947_v57 = vld [vmem:[%s5390_s8 + $0x30] sm:$0xff]  ;;  %v2948_v61 = vld [vmem:[%s5390_s8 + $0x38] sm:$0xff] }
 0x161   : > { %v3590_v4 = vpop.f32.mrb[47].mxu1  ;;  %v3654_v6 = vpop.f32.mrb[47].mxu0 }
 0x162   : > { %v2222_v7 = vadd.f32 %v3588_v0, %v5057_v33  ;;  %v3591_v9 = vadd.f32 %v3590_v4, %v3589_v1  ;;  %v3655_v40 = vadd.f32 %v3654_v6, %v3653_v8  ;;  %v2945_v33 = vld [vmem:[%s5390_s8 + $0x20] sm:$0xff]  ;;  %v3938_v0 = vpack.c.bf16 %v2948_v61, %v2947_v57 }
 0x164   : > { %v2225_v58 = vadd.f32 %v3591_v9, %v5061_v39  ;;  %v5123_v14 = vadd.f32 %v3652_v2, %v2222_v7  ;;  %v2946_v39 = vld [vmem:[%s5390_s8 + $0x28] sm:$0xff]  ;;  %v2949_v7 = vld [vmem:[%s5390_s8 + $0x40] sm:$0xff] }
 0x165   : > { %v3935_v62 = vpack.c.bf16 %v2946_v39, %v2945_v33  ;;  %v2950_v9 = vld [vmem:[%s5390_s8 + $0x48] sm:$0xff] }
 0x166   : > { %v5126_v63 = vadd.f32 %v3655_v40, %v2225_v58  ;;  %v3672_v15 = vpop.f32.mrb[48].mxu1  ;;  %v3736_v18 = vpop.f32.mrb[48].mxu0  ;;  %v2954_v39 = vld [vmem:[%s5390_s8 + $0x68] sm:$0xff] }
 0x167   : > { %v3673_v19 = vpop.f32.mrb[49].mxu1  ;;  %v3737_v20 = vpop.f32.mrb[49].mxu0  ;;  %3936 = vmatpush3.bf16.msra.mxu0 %v3935_v62 }
 0x168   : > { %v3674_v22 = vadd.f32 %v3673_v19, %v3672_v15  ;;  %v3675_v24 = vpop.f32.mrb[50].mxu1  ;;  %v3738_v25 = vadd.f32 %v3737_v20, %v3736_v18  ;;  %v3739_v56 = vpop.f32.mrb[50].mxu0  ;;  %3937 = vmatprep.subr.bf16.mxu0 %v4407_v38  ;;  %v3941_v15 = vpack.c.bf16 %v2950_v9, %v2949_v7  ;;  %v3031_v7 = vld [vmem:[%s5392_s10 + $0x10] sm:$0xff] }
 0x169   : > { %v3676_v26 = vpop.f32.mrb[51].mxu1  ;;  %v3740_v29 = vpop.f32.mrb[51].mxu0 }
 0x16a   : > { %v2360_v5 = vadd.f32 %v3674_v22, %v5066_v59  ;;  %v3677_v32 = vadd.f32 %v3676_v26, %v3675_v24  ;;  %v3741_v34 = vadd.f32 %v3740_v29, %v3739_v56  ;;  %v2951_v22 = vld [vmem:[%s5390_s8 + $0x50] sm:$0xff]  ;;  %v2952_v24 = vld [vmem:[%s5390_s8 + $0x58] sm:$0xff] }
 0x16b   : > { %3939 = vmatpush3.bf16.msra.mxu0 %v3938_v0 }
 0x16c   : > { %v2363_v12 = vadd.f32 %v3677_v32, %v5068_v60  ;;  %v5136_v41 = vadd.f32 %v3738_v25, %v2360_v5  ;;  %3940 = vmatprep.subr.bf16.mxu0 %v4407_v38  ;;  %v3944_v25 = vpack.c.bf16 %v2952_v24, %v2951_v22  ;;  %v3033_v24 = vld [vmem:[%s5392_s10 + $0x20] sm:$0xff] }
 0x16e   : > { %v5139_v42 = vadd.f32 %v3741_v34, %v2363_v12  ;;  %v3678_v3 = vpop.f32.mrb[52].mxu1  ;;  %v3742_v43 = vpop.f32.mrb[52].mxu0 }
 0x16f   : > { %v3679_v11 = vpop.f32.mrb[53].mxu1  ;;  %v3743_v44 = vpop.f32.mrb[53].mxu0  ;;  %3942 = vmatpush3.bf16.msra.mxu0 %v3941_v15 }
 0x170   : > { %v3680_v45 = vadd.f32 %v3679_v11, %v3678_v3  ;;  %v3681_v46 = vpop.f32.mrb[54].mxu1  ;;  %v3744_v47 = vadd.f32 %v3743_v44, %v3742_v43  ;;  %v3745_v48 = vpop.f32.mrb[54].mxu0  ;;  %3943 = vmatprep.subr.bf16.mxu0 %v4407_v38  ;;  %v2955_v11 = vld [vmem:[%s5390_s8 + $0x70] sm:$0xff]  ;;  %v2956_v44 = vld [vmem:[%s5390_s8 + $0x78] sm:$0xff] }
 0x171   : > { %v3682_v59 = vpop.f32.mrb[55].mxu1  ;;  %v3746_v49 = vpop.f32.mrb[55].mxu0 }
 0x172   : > { %v2368_v23 = vadd.f32 %v3680_v45, %v5072_v16  ;;  %v3683_v50 = vadd.f32 %v3682_v59, %v3681_v46  ;;  %v3747_v60 = vadd.f32 %v3746_v49, %v3745_v48  ;;  %v4408_v16 = vmov 0.0   ;;  %v5209_v15 = vpop.permute.xlu1 %2804 }
 0x173   : > { %2779 = vst [vmem:[#allocation2] sm:$0x1] %v4408_v16  ;;  %3945 = vmatpush3.bf16.msra.mxu0 %v3944_v25  ;;  %3906 = vmatprep.mubr.msk.f32.mxu0 %vm4409_vm2, %v4408_v16  ;;  %v3950_v49 = vpack.c.bf16 %v2956_v44, %v2955_v11  ;;  %v3036_v11 = vld [vmem:[%s5392_s10 + $0x38] sm:$0xff] }
 0x174   : > { %v2371_v54 = vadd.f32 %v3683_v50, %v5074_v17  ;;  %v5143_v55 = vadd.f32 %v3744_v47, %v2368_v23  ;;  %3946 = vmatprep.subr.bf16.mxu0 %v4407_v38  ;;  %3925 = vmatprep.mubr.msk.f32.mxu1 %vm4409_vm2, %v4408_v16 }
 0x176   : > { %v5151_v1 = vadd.f32 %v3747_v60, %v2371_v54  ;;  %v3684_v2 = vpop.f32.mrb[56].mxu1  ;;  %v3748_v8 = vpop.f32.mrb[56].mxu0 }
 0x177   : > { %v3685_v21 = vpop.f32.mrb[57].mxu1  ;;  %v3749_v27 = vpop.f32.mrb[57].mxu0 }
 0x178   : > { %v3686_v17 = vadd.f32 %v3685_v21, %v3684_v2  ;;  %v3687_v4 = vpop.f32.mrb[58].mxu1  ;;  %v3750_v6 = vadd.f32 %v3749_v27, %v3748_v8  ;;  %v3751_v35 = vpop.f32.mrb[58].mxu0 }
 0x179   : > { %v3688_v40 = vpop.f32.mrb[59].mxu1  ;;  %v3752_v58 = vpop.f32.mrb[59].mxu0 }
 0x17a   : > { %v2376_v18 = vadd.f32 %v3686_v17, %v5078_v36  ;;  %v3689_v19 = vadd.f32 %v3688_v40, %v3687_v4  ;;  %v3753_v20 = vadd.f32 %v3752_v58, %v3751_v35  ;;  %v2953_v36 = vld [vmem:[%s5390_s8 + $0x60] sm:$0xff]  ;;  %v3030_v35 = vld [vmem:[%s5392_s10 + $0x8] sm:$0xff]  ;;  %v3032_v40 = vld [vmem:[%s5392_s10 + $0x18] sm:$0xff] }
 0x17c   : > { %v2379_v56 = vadd.f32 %v3689_v19, %v5080_v37  ;;  %v5168_v33 = vadd.f32 %v3750_v6, %v2376_v18  ;;  %v3947_v37 = vpack.c.bf16 %v2954_v39, %v2953_v36  ;;  %v3029_v6 = vld [vmem:[%s5392_s10] sm:$0xff]  ;;  %v3956_v18 = vpack.c.bf16 %v3032_v40, %v3031_v7 }
 0x17d   : > { %v3953_v9 = vpack.c.bf16 %v3030_v35, %v3029_v6 }
 0x17e   : > { %v5177_v26 = vadd.f32 %v3753_v20, %v2379_v56  ;;  %v3690_v29 = vpop.f32.mrb[60].mxu1  ;;  %v3754_v62 = vpop.f32.mrb[60].mxu0  ;;  %3948 = vmatpush3.bf16.msra.mxu0 %v3947_v37 }
 0x17f   : > { %v3691_v5 = vpop.f32.mrb[61].mxu1  ;;  %v3755_v32 = vpop.f32.mrb[61].mxu0  ;;  %3949 = vmatprep.subr.bf16.mxu0 %v4407_v38  ;;  %3954 = vmatpush3.bf16.msra.mxu1 %v3953_v9 }
 0x180   : > { %v3692_v34 = vadd.f32 %v3691_v5, %v3690_v29  ;;  %v3693_v12 = vpop.f32.mrb[62].mxu1  ;;  %v3756_v3 = vadd.f32 %v3755_v32, %v3754_v62  ;;  %v3757_v43 = vpop.f32.mrb[62].mxu0  ;;  %3955 = vmatprep.subr.bf16.mxu1 %v4407_v38 }
 0x181   : > { %v3694_v45 = vpop.f32.mrb[63].mxu1  ;;  %v3758_v46 = vpop.f32.mrb[63].mxu0 }
 0x182   : > { %v2384_v47 = vadd.f32 %v3692_v34, %v5084_v52  ;;  %v3695_v48 = vadd.f32 %v3694_v45, %v3693_v12  ;;  %v3759_v59 = vadd.f32 %v3758_v46, %v3757_v43  ;;  %3951 = vmatpush3.bf16.msra.mxu0 %v3950_v49  ;;  %v3035_v43 = vld [vmem:[%s5392_s10 + $0x30] sm:$0xff]  ;;  %v5231_v46 = vpop.permute.xlu1 %2809 }
 0x183   : > { %3957 = vmatpush3.bf16.msra.mxu1 %v3956_v18 }
 0x184   : > { %v2387_v23 = vadd.f32 %v3695_v48, %v5086_v53  ;;  %v5188_v50 = vadd.f32 %v3756_v3, %v2384_v47  ;;  %3958 = vmatprep.subr.bf16.mxu1 %v4407_v38 }
 0x186   : > { %v5191_v60 = vadd.f32 %v3759_v59, %v2387_v23  ;;  %v3696_v54 = vpop.f32.mrb[64].mxu1  ;;  %v3760_v57 = vpop.f32.mrb[64].mxu0 }
 0x187   : > { %v3697_v61 = vpop.f32.mrb[65].mxu1  ;;  %v3761_v0 = vpop.f32.mrb[65].mxu0 }
 0x188   : > { %v3698_v2 = vadd.f32 %v3697_v61, %v3696_v54  ;;  %v3699_v8 = vpop.f32.mrb[66].mxu1  ;;  %v3762_v52 = vadd.f32 %v3761_v0, %v3760_v57  ;;  %v3763_v16 = vpop.f32.mrb[66].mxu0 }
 0x189   : > { %v3700_v21 = vpop.f32.mrb[67].mxu1  ;;  %v3764_v27 = vpop.f32.mrb[67].mxu0 }
 0x18a   : > { %v2392_v17 = vadd.f32 %v3698_v2, %v5090_v10  ;;  %v3701_v53 = vadd.f32 %v3700_v21, %v3699_v8  ;;  %v3765_v4 = vadd.f32 %v3764_v27, %v3763_v16 }
 0x18c   : > { %v2395_v10 = vadd.f32 %v3701_v53, %v5092_v13  ;;  %v5207_v58 = vadd.f32 %v3762_v52, %v2392_v17  ;;  %v3034_v13 = vld [vmem:[%s5392_s10 + $0x28] sm:$0xff]  ;;  %v5240_v17 = vpop.permute.xlu1 %2814 }
 0x18d   : > { %v3959_v37 = vpack.c.bf16 %v3034_v13, %v3033_v24 }
 0x18e   : > { %v5211_v19 = vadd.f32 %v3765_v4, %v2395_v10  ;;  %v3702_v20 = vpop.f32.mrb[68].mxu1  ;;  %v3766_v22 = vpop.f32.mrb[68].mxu0 }
 0x18f   : > { %v3703_v25 = vpop.f32.mrb[69].mxu1  ;;  %v3767_v56 = vpop.f32.mrb[69].mxu0  ;;  %3960 = vmatpush3.bf16.msra.mxu1 %v3959_v37 }
 0x190   : > { %v3704_v36 = vadd.f32 %v3703_v25, %v3702_v20  ;;  %v3705_v39 = vpop.f32.mrb[70].mxu1  ;;  %v3768_v29 = vadd.f32 %v3767_v56, %v3766_v22  ;;  %v3769_v62 = vpop.f32.mrb[70].mxu0  ;;  %3961 = vmatprep.subr.bf16.mxu1 %v4407_v38 }
 0x191   : > { %v3706_v5 = vpop.f32.mrb[71].mxu1  ;;  %v3770_v32 = vpop.f32.mrb[71].mxu0 }
 0x192   : > { %v2400_v34 = vadd.f32 %v3704_v36, %v5096_v30  ;;  %v3707_v12 = vadd.f32 %v3706_v5, %v3705_v39  ;;  %v3771_v3 = vadd.f32 %v3770_v32, %v3769_v62  ;;  %v3962_v30 = vpack.c.bf16 %v3036_v11, %v3035_v43  ;;  %v5248_v25 = vpop.permute.xlu1 %2819 }
 0x194   : > { %v2403_v44 = vadd.f32 %v3707_v12, %v5098_v31  ;;  %v5229_v45 = vadd.f32 %v3768_v29, %v2400_v34  ;;  %3963 = vmatpush3.bf16.msra.mxu1 %v3962_v30  ;;  %v5264_v30 = vld [vmem:[%s5385_s3] ss:$0 sm:$0xff] }
 0x196   : > { %v5233_v47 = vadd.f32 %v3771_v3, %v2403_v44  ;;  %v3708_v48 = vpop.f32.mrb[72].mxu1  ;;  %v3772_v59 = vpop.f32.mrb[72].mxu0 }
 0x197   : > { %v3709_v49 = vpop.f32.mrb[73].mxu1  ;;  %v3773_v23 = vpop.f32.mrb[73].mxu0 }
 0x198   : > { %v3710_v54 = vadd.f32 %v3709_v49, %v3708_v48  ;;  %v3711_v57 = vpop.f32.mrb[74].mxu1  ;;  %v3774_v61 = vadd.f32 %v3773_v23, %v3772_v59  ;;  %v3775_v0 = vpop.f32.mrb[74].mxu0 }
 0x199   : > { %v3712_v2 = vpop.f32.mrb[75].mxu1  ;;  %v3776_v31 = vpop.f32.mrb[75].mxu0 }
 0x19a   : > { %v2408_v8 = vadd.f32 %v3710_v54, %v5110_v51  ;;  %v3713_v52 = vadd.f32 %v3712_v2, %v3711_v57  ;;  %v3777_v16 = vadd.f32 %v3776_v31, %v3775_v0  ;;  %v5259_v44 = vpop.permute.xlu1 %2824 }
 0x19c   : > { %v2411_v21 = vadd.f32 %v3713_v52, %v5113_v28  ;;  %v5238_v27 = vadd.f32 %v3774_v61, %v2408_v8 }
 0x19e   : > { %v5242_v38 = vadd.f32 %v3777_v16, %v2411_v21  ;;  %v3714_v53 = vpop.f32.mrb[76].mxu1  ;;  %v3778_v4 = vpop.f32.mrb[76].mxu0 }
 0x19f   : > { %v3715_v6 = vpop.f32.mrb[77].mxu1  ;;  %v3779_v35 = vpop.f32.mrb[77].mxu0 }
 0x1a0   : > { %v3716_v7 = vadd.f32 %v3715_v6, %v3714_v53  ;;  %v3717_v9 = vpop.f32.mrb[78].mxu1  ;;  %v3780_v40 = vadd.f32 %v3779_v35, %v3778_v4  ;;  %v3781_v10 = vpop.f32.mrb[78].mxu0 }
 0x1a1   : > { %v3718_v18 = vpop.f32.mrb[79].mxu1  ;;  %v3782_v51 = vpop.f32.mrb[79].mxu0 }
 0x1a2   : > { %v2416_v20 = vadd.f32 %v3716_v7, %v5123_v14  ;;  %v3719_v22 = vadd.f32 %v3718_v18, %v3717_v9  ;;  %v3783_v28 = vadd.f32 %v3782_v51, %v3781_v10  ;;  %v2800_v4 = vpop.permute.xlu0 %2799  ;;  %v5272_v9 = vpop.permute.xlu1 %2829 }
 0x1a4   : > { %v2419_v24 = vadd.f32 %v3719_v22, %v5126_v63  ;;  %v5246_v13 = vadd.f32 %v3780_v40, %v2416_v20  ;;  %v5256_v63 = vld [vmem:[%s5384_s2] ss:$0 sm:$0xff] }
 0x1a6   : > { %v5250_v56 = vadd.f32 %v3783_v28, %v2419_v24  ;;  %v3800_v36 = vpop.f32.mrb[80].mxu1  ;;  %v2650_v39 = vpop.f32.mrb[80].mxu0 }
 0x1a7   : > { %v3801_v29 = vpop.f32.mrb[81].mxu1  ;;  %v2652_v62 = vpop.f32.mrb[81].mxu0 }
 0x1a8   : > { %v3802_v5 = vadd.f32 %v3801_v29, %v3800_v36  ;;  %v3803_v32 = vpop.f32.mrb[82].mxu1  ;;  %v2653_v37 = vpop.f32.mrb[82].mxu0 }
 0x1a9   : > { %v3804_v34 = vpop.f32.mrb[83].mxu1  ;;  %v2655_v12 = vpop.f32.mrb[83].mxu0 }
 0x1aa   : > { %v3805_v14 = vadd.f32 %v3804_v34, %v3803_v32  ;;  %v2554_v3 = vadd.f32 %v3802_v5, %v5136_v41 }
 0x1ac   : > { %v2651_v43 = vadd.f32 %v2650_v39, %v2554_v3  ;;  %v2557_v11 = vadd.f32 %v3805_v14, %v5139_v42 }
 0x1ae   : > { %v2720_v48 = vmul.f32 %v5256_v63, %v2651_v43  ;;  %v2654_v59 = vadd.f32 %v2653_v37, %v2557_v11  ;;  %v3806_v49 = vpop.f32.mrb[84].mxu1  ;;  %v2658_v41 = vpop.f32.mrb[84].mxu0 }
 0x1af   : > { %v3807_v23 = vpop.f32.mrb[85].mxu1  ;;  %v2660_v54 = vpop.f32.mrb[85].mxu0 }
 0x1b0   : > { %v2721_v57 = vmul.f32 %v5256_v63, %v2654_v59  ;;  %v3808_v61 = vadd.f32 %v3807_v23, %v3806_v49  ;;  %v3809_v0 = vpop.f32.mrb[86].mxu1  ;;  %v2743_v42 = vadd.f32 %v5264_v30, %v2720_v48  ;;  %v2661_v2 = vpop.f32.mrb[86].mxu0 }
 0x1b1   : > { %v3810_v31 = vpop.f32.mrb[87].mxu1  ;;  %v2663_v8 = vpop.f32.mrb[87].mxu0 }
 0x1b2   : > { %v2744_v52 = vadd.f32 %v5264_v30, %v2721_v57  ;;  %v3811_v16 = vadd.f32 %v3810_v31, %v3809_v0  ;;  %v2562_v21 = vadd.f32 %v3808_v61, %v5143_v55  ;;  %v2759_v53 = vmax.f32 %v2743_v42, 0.0  ;;  %v2835_v48 = vpop.permute.xlu1 %2834 }
 0x1b4   : > { %v2760_v6 = vmax.f32 %v2744_v52, 0.0  ;;  %v2659_v35 = vadd.f32 %v2658_v41, %v2562_v21  ;;  %v2565_v7 = vadd.f32 %v3811_v16, %v5151_v1  ;;  %v2877_v10 = vmul.f32 %v2800_v4, %v2759_v53 }
 0x1b6   : > { %v2722_v40 = vmul.f32 %v5256_v63, %v2659_v35  ;;  %v2878_v18 = vmul.f32 %v5209_v15, %v2760_v6  ;;  %v2662_v51 = vadd.f32 %v2661_v2, %v2565_v7  ;;  %v3812_v20 = vpop.f32.mrb[88].mxu1  ;;  %v2666_v22 = vpop.f32.mrb[88].mxu0 }
 0x1b7   : > { %v3813_v28 = vpop.f32.mrb[89].mxu1  ;;  %v2668_v24 = vpop.f32.mrb[89].mxu0 }
 0x1b8   : > { %v2745_v55 = vadd.f32 %v5264_v30, %v2722_v40  ;;  %v2893_v36 = vadd.f32 %v2878_v18, %v2877_v10  ;;  %v2723_v39 = vmul.f32 %v5256_v63, %v2662_v51  ;;  %v3814_v29 = vadd.f32 %v3813_v28, %v3812_v20  ;;  %v3815_v62 = vpop.f32.mrb[90].mxu1  ;;  %v2669_v1 = vpop.f32.mrb[90].mxu0 }
 0x1b9   : > { %v3816_v5 = vpop.f32.mrb[91].mxu1  ;;  %v2671_v32 = vpop.f32.mrb[91].mxu0 }
 0x1ba   : > { %v2761_v37 = vmax.f32 %v2745_v55, 0.0  ;;  %v2746_v34 = vadd.f32 %v5264_v30, %v2723_v39  ;;  %v3817_v12 = vadd.f32 %v3816_v5, %v3815_v62  ;;  %v2570_v15 = vadd.f32 %v3814_v29, %v5168_v33  ;;  %v2840_v40 = vpop.permute.xlu1 %2839 }
 0x1bc   : > { %v2879_v14 = vmul.f32 %v5231_v46, %v2761_v37  ;;  %v2762_v3 = vmax.f32 %v2746_v34, 0.0  ;;  %v2667_v43 = vadd.f32 %v2666_v22, %v2570_v15  ;;  %v2573_v11 = vadd.f32 %v3817_v12, %v5177_v26 }
 0x1be   : > { %v2894_v59 = vadd.f32 %v2893_v36, %v2879_v14  ;;  %v2880_v49 = vmul.f32 %v5240_v17, %v2762_v3  ;;  %v2724_v41 = vmul.f32 %v5256_v63, %v2667_v43  ;;  %v2670_v23 = vadd.f32 %v2669_v1, %v2573_v11  ;;  %v3818_v54 = vpop.f32.mrb[92].mxu1  ;;  %v2674_v57 = vpop.f32.mrb[92].mxu0 }
 0x1bf   : > { %v3819_v61 = vpop.f32.mrb[93].mxu1  ;;  %v2676_v0 = vpop.f32.mrb[93].mxu0 }
 0x1c0   : > { %v2895_v42 = vadd.f32 %v2894_v59, %v2880_v49  ;;  %v2747_v33 = vadd.f32 %v5264_v30, %v2724_v41  ;;  %v2725_v46 = vmul.f32 %v5256_v63, %v2670_v23  ;;  %v3820_v2 = vadd.f32 %v3819_v61, %v3818_v54  ;;  %v3821_v31 = vpop.f32.mrb[94].mxu1  ;;  %v2677_v8 = vpop.f32.mrb[94].mxu0 }
 0x1c1   : > { %v3822_v26 = vpop.f32.mrb[95].mxu1  ;;  %v2679_v52 = vpop.f32.mrb[95].mxu0 }
 0x1c2   : > { %v2763_v16 = vmax.f32 %v2747_v33, 0.0  ;;  %v2748_v17 = vadd.f32 %v5264_v30, %v2725_v46  ;;  %v3823_v21 = vadd.f32 %v3822_v26, %v3821_v31  ;;  %v2578_v53 = vadd.f32 %v3820_v2, %v5188_v50  ;;  %v2845_v3 = vpop.permute.xlu1 %2844 }
 0x1c4   : > { %v2881_v4 = vmul.f32 %v5248_v25, %v2763_v16  ;;  %v2764_v6 = vmax.f32 %v2748_v17, 0.0  ;;  %v2675_v35 = vadd.f32 %v2674_v57, %v2578_v53  ;;  %v2581_v7 = vadd.f32 %v3823_v21, %v5191_v60 }
 0x1c6   : > { %v2896_v10 = vadd.f32 %v2895_v42, %v2881_v4  ;;  %v2882_v18 = vmul.f32 %v5259_v44, %v2764_v6  ;;  %v2726_v51 = vmul.f32 %v5256_v63, %v2675_v35  ;;  %v2678_v20 = vadd.f32 %v2677_v8, %v2581_v7  ;;  %v3824_v22 = vpop.f32.mrb[96].mxu1  ;;  %v2682_v28 = vpop.f32.mrb[96].mxu0 }
 0x1c7   : > { %v3825_v24 = vpop.f32.mrb[97].mxu1  ;;  %v2684_v55 = vpop.f32.mrb[97].mxu0 }
 0x1c8   : > { %v2897_v36 = vadd.f32 %v2896_v10, %v2882_v18  ;;  %v2749_v50 = vadd.f32 %v5264_v30, %v2726_v51  ;;  %v2727_v25 = vmul.f32 %v5256_v63, %v2678_v20  ;;  %v3826_v39 = vadd.f32 %v3825_v24, %v3824_v22  ;;  %v3827_v29 = vpop.f32.mrb[98].mxu1  ;;  %v2685_v62 = vpop.f32.mrb[98].mxu0 }
 0x1c9   : > { %v3828_v60 = vpop.f32.mrb[99].mxu1  ;;  %v2687_v1 = vpop.f32.mrb[99].mxu0 }
 0x1ca   : > { %v2765_v5 = vmax.f32 %v2749_v50, 0.0  ;;  %v2750_v44 = vadd.f32 %v5264_v30, %v2727_v25  ;;  %v3829_v32 = vadd.f32 %v3828_v60, %v3827_v29  ;;  %v2586_v37 = vadd.f32 %v3826_v39, %v5207_v58  ;;  %v2850_v21 = vpop.permute.xlu1 %2849 }
 0x1cc   : > { %v2883_v34 = vmul.f32 %v5272_v9, %v2765_v5  ;;  %v2766_v12 = vmax.f32 %v2750_v44, 0.0  ;;  %v2683_v15 = vadd.f32 %v2682_v28, %v2586_v37  ;;  %v2589_v14 = vadd.f32 %v3829_v32, %v5211_v19 }
 0x1ce   : > { %v2898_v43 = vadd.f32 %v2897_v36, %v2883_v34  ;;  %v2884_v11 = vmul.f32 %v2835_v48, %v2766_v12  ;;  %v2728_v59 = vmul.f32 %v5256_v63, %v2683_v15  ;;  %v2686_v49 = vadd.f32 %v2685_v62, %v2589_v14  ;;  %v3830_v41 = vpop.f32.mrb[100].mxu1  ;;  %v2690_v23 = vpop.f32.mrb[100].mxu0 }
 0x1cf   : > { %v3831_v54 = vpop.f32.mrb[101].mxu1  ;;  %v2692_v57 = vpop.f32.mrb[101].mxu0 }
 0x1d0   : > { %v2899_v61 = vadd.f32 %v2898_v43, %v2884_v11  ;;  %v2751_v0 = vadd.f32 %v5264_v30, %v2728_v59  ;;  %v2729_v58 = vmul.f32 %v5256_v63, %v2686_v49  ;;  %v3832_v9 = vadd.f32 %v3831_v54, %v3830_v41  ;;  %v3833_v42 = vpop.f32.mrb[102].mxu1  ;;  %v2693_v33 = vpop.f32.mrb[102].mxu0 }
 0x1d1   : > { %v3834_v46 = vpop.f32.mrb[103].mxu1  ;;  %v2695_v19 = vpop.f32.mrb[103].mxu0 }
 0x1d2   : > { %v2767_v2 = vmax.f32 %v2751_v0, 0.0  ;;  %v2752_v48 = vadd.f32 %v5264_v30, %v2729_v58  ;;  %v3835_v31 = vadd.f32 %v3834_v46, %v3833_v42  ;;  %v2594_v8 = vadd.f32 %v3832_v9, %v5229_v45  ;;  %v2855_v5 = vpop.permute.xlu1 %2854  ;;  %v2865_v19 = vpop.permute.xlu0 %2864 }
 0x1d4   : > { %v2885_v26 = vmul.f32 %v2840_v40, %v2767_v2  ;;  %v2768_v52 = vmax.f32 %v2752_v48, 0.0  ;;  %v2691_v16 = vadd.f32 %v2690_v23, %v2594_v8  ;;  %v2597_v17 = vadd.f32 %v3835_v31, %v5233_v47 }
 0x1d6   : > { %v2900_v53 = vadd.f32 %v2899_v61, %v2885_v26  ;;  %v2886_v4 = vmul.f32 %v2845_v3, %v2768_v52  ;;  %v2730_v6 = vmul.f32 %v5256_v63, %v2691_v16  ;;  %v2694_v35 = vadd.f32 %v2693_v33, %v2597_v17  ;;  %v3836_v7 = vpop.f32.mrb[104].mxu1  ;;  %v2698_v10 = vpop.f32.mrb[104].mxu0 }
 0x1d7   : > { %v3837_v18 = vpop.f32.mrb[105].mxu1  ;;  %v2700_v51 = vpop.f32.mrb[105].mxu0 }
 0x1d8   : > { %v2901_v20 = vadd.f32 %v2900_v53, %v2886_v4  ;;  %v2753_v22 = vadd.f32 %v5264_v30, %v2730_v6  ;;  %v2731_v45 = vmul.f32 %v5256_v63, %v2694_v35  ;;  %v3838_v40 = vadd.f32 %v3837_v18, %v3836_v7  ;;  %v3839_v28 = vpop.f32.mrb[106].mxu1  ;;  %v2701_v24 = vpop.f32.mrb[106].mxu0 }
 0x1d9   : > { %v3840_v55 = vpop.f32.mrb[107].mxu1  ;;  %v2703_v47 = vpop.f32.mrb[107].mxu0 }
 0x1da   : > { %v2769_v36 = vmax.f32 %v2753_v22, 0.0  ;;  %v2754_v50 = vadd.f32 %v5264_v30, %v2731_v45  ;;  %v3841_v25 = vadd.f32 %v3840_v55, %v3839_v28  ;;  %v2602_v39 = vadd.f32 %v3838_v40, %v5238_v27  ;;  %v2860_v58 = vpop.permute.xlu1 %2859  ;;  %v2875_v6 = vpop.permute.xlu0 %2874  ;;  %v2780_v45 = vld [vmem:[#allocation2] sm:$0x1] }
 0x1dc   : > { %v2887_v29 = vmul.f32 %v2850_v21, %v2769_v36  ;;  %v2770_v62 = vmax.f32 %v2754_v50, 0.0  ;;  %v2699_v60 = vadd.f32 %v2698_v10, %v2602_v39  ;;  %v2605_v1 = vadd.f32 %v3841_v25, %v5242_v38  ;;  %v3037_v39 = vld [vmem:[%s5393_s11] sm:$0x1] }
 0x1de   : > { %v2902_v44 = vadd.f32 %v2901_v20, %v2887_v29  ;;  %v2888_v32 = vmul.f32 %v2855_v5, %v2770_v62  ;;  %v2732_v37 = vmul.f32 %v5256_v63, %v2699_v60  ;;  %v2702_v34 = vadd.f32 %v2701_v24, %v2605_v1  ;;  %v3842_v12 = vpop.f32.mrb[108].mxu1  ;;  %v2706_v15 = vpop.f32.mrb[108].mxu0 }
 0x1df   : > { %v3843_v14 = vpop.f32.mrb[109].mxu1  ;;  %v2708_v3 = vpop.f32.mrb[109].mxu0 }
 0x1e0   : > { %v2903_v43 = vadd.f32 %v2902_v44, %v2888_v32  ;;  %v2755_v11 = vadd.f32 %v5264_v30, %v2732_v37  ;;  %v2733_v27 = vmul.f32 %v5256_v63, %v2702_v34  ;;  %v3844_v59 = vadd.f32 %v3843_v14, %v3842_v12  ;;  %v3845_v49 = vpop.f32.mrb[110].mxu1  ;;  %v2709_v41 = vpop.f32.mrb[110].mxu0 }
 0x1e1   : > { %v3846_v23 = vpop.f32.mrb[111].mxu1  ;;  %v2711_v38 = vpop.f32.mrb[111].mxu0 }
 0x1e2   : > { %v2771_v54 = vmax.f32 %v2755_v11, 0.0  ;;  %v2756_v57 = vadd.f32 %v5264_v30, %v2733_v27  ;;  %v3847_v61 = vadd.f32 %v3846_v23, %v3845_v49  ;;  %v2610_v0 = vadd.f32 %v3844_v59, %v5246_v13  ;;  %v2870_v21 = vpop.permute.xlu1 %2869 }
 0x1e4   : > { %v2889_v9 = vmul.f32 %v2860_v58, %v2771_v54  ;;  %v2772_v42 = vmax.f32 %v2756_v57, 0.0  ;;  %v2707_v33 = vadd.f32 %v2706_v15, %v2610_v0  ;;  %v2613_v46 = vadd.f32 %v3847_v61, %v5250_v56 }
 0x1e6   : > { %v2904_v2 = vadd.f32 %v2903_v43, %v2889_v9  ;;  %v2890_v48 = vmul.f32 %v2865_v19, %v2772_v42  ;;  %v2734_v31 = vmul.f32 %v5256_v63, %v2707_v33  ;;  %v2710_v8 = vadd.f32 %v2709_v41, %v2613_v46 }
 0x1e8   : > { %v2905_v26 = vadd.f32 %v2904_v2, %v2890_v48  ;;  %v2757_v52 = vadd.f32 %v5264_v30, %v2734_v31  ;;  %v2735_v16 = vmul.f32 %v5256_v63, %v2710_v8  ;;  %v2938_v63 = vpop.permute.xlu1 %2937 }
 0x1ea   : > { %v2773_v17 = vmax.f32 %v2757_v52, 0.0  ;;  %v2758_v13 = vadd.f32 %v5264_v30, %v2735_v16  ;;  %v2957_v30 = vld [vmem:[%s5391_s9] sm:$0x1] }
 0x1ec   : > { %v2891_v53 = vmul.f32 %v2870_v21, %v2773_v17  ;;  %v2774_v4 = vmax.f32 %v2758_v13, 0.0 }
 0x1ee   : > { %v2906_v35 = vadd.f32 %v2905_v26, %v2891_v53  ;;  %v2892_v56 = vmul.f32 %v2875_v6, %v2774_v4 }
 0x1f0   : > { %v2907_v7 = vadd.f32 %v2906_v35, %v2892_v56 }
 0x1f2   : > { %v2908_v10 = vrot.slane %v2907_v7, 4 }
 0x1f4   : > { %v2909_v18 = vadd.f32 %v2908_v10, %v2907_v7 }
 0x1f6   : > { %v2910_v51 = vrot.slane %v2909_v18, 2 }
 0x1f8   : > { %v2911_v20 = vadd.f32 %v2910_v51, %v2909_v18 }
 0x1fa   : > { %v2912_v22 = vrot.slane %v2911_v20, 1 }
 0x1fc   : > { %v2913_v40 = vadd.f32 %v2912_v22, %v2911_v20 }
 0x1fe   : > { %v2914_v28 = vadd.f32 %v2913_v40, %v2780_v45 }
 0x200   : > { %2915 = vst [vmem:[#allocation2] sm:$0x1] %v2914_v28 }
 0x207   : > { %v2919_v24 = vld [vmem:[#allocation2] sm:$0x1] }
 0x208   : > { %v2940_v55 = vmul.f32 %v2938_v63, %v2919_v24 }
 0x20a   : > { %3907 = vmatmul.mubr.f32.vlgmr.msra.gmra.mrb[112].mxu0 %v2940_v55 }
 0x2dd   : > { %v3024_v47 = vpop.f32.mrb[112].mxu0 }
 0x2de   : > { %v3025_v36 = vadd.f32 %v3024_v47, %v2957_v30  ;;  %v3908_v50 = vpop.f32.mrb[113].mxu0 }
 0x2e0   : > { %v3028_v25 = vmax.f32 %v3025_v36, 0.0 }
 0x2e2   : > { %3926 = vmatmul.mubr.msk.f32.vlgmr.msra.gmra.mrb[112].mxu1 %vm2009_vm1, %v3028_v25 }
 0x3b5   : > { %v3107_v29 = vpop.f32.mrb[112].mxu1 }
 0x3b6   : > { %v3108_v62 = vadd.f32 %v3107_v29, %v3037_v39  ;;  %v3927_v60 = vpop.f32.mrb[113].mxu1 }
 0x3b8   : > { %v3112_v1 = vsel %vm3111_vm3, %v3108_v62, -inf }
 0x3b9   : > { %3113 = vmax.xlane.f32.xlu0 %v3112_v1 }
 0x446   : > { %v3114_v5 = vpop.xlane.xlu0 %3113 }
 0x447   : > { %v3115_v44 = vsub.f32 %v3108_v62, %v3114_v5 }
 0x449   : > { %v3116_v32 = vmul.f32 1.442695, %v3115_v44 }
 0x44b   : > { %4322 = vpow2.f32 %v3116_v32 }
 0x455   : > { %v4323_v37 = vpop.eup %4322 }
 0x456   : > { %v3118_v34 = vsel %vm3111_vm3, %v4323_v37, 0.0 }
 0x457   : > { %3119 = vadd.xlane.f32.xlu1 %v3118_v34 }
 0x4e4   : > { %v3120_v12 = vpop.xlane.xlu1 %3119 }
 0x4e5   : > { %4324 = vrcp.f32 %v3120_v12 }
 0x4ef   : > { %v4325_v15 = vpop.eup %4324 }
 0x4f0   : > { %v3122_v14 = vmul.f32 %v4325_v15, %v4323_v37 }
 0x4f2   : > { %3123 = vst.msk [vmem:[%s459_s15] sm:$0x1] %vm3111_vm3, %v3122_v14 }
 0x4f3   : > { %4339 = shalt.err (!%p4336_p6)
}
 0x4f4   : > { %s4340_s20 = scalar_lea.hbm %s5334_s27, 16  ;;  %s4344_s22 = scalar_lea.hbm %s5394_s12, 32 }
 0x4f5   : > { %p4341_p7 = scmp.ne.s32.totalorder %s5334_s27, %s4340_s20  ;;  %p4345_p11 = scmp.lt.u32.totalorder %s5334_s27, %s5394_s12 }
 0x4f6   : > { %p4346_p12 = scmp.lt.u32.totalorder %s4344_s22, %s4340_s20  ;;  %p4348_p0 = scmp.lt.u32.totalorder %s4340_s20, %s5334_s27 }
 0x4f7   : > { %p4342_p9 = pnand %p4341_p7, %p4519_p4 }
 0x4f8   : > { %p4347_p13 = por %p4346_p12, %p4345_p11 }
 0x4f9   : > { %p4343_p10 = pneg %p4342_p9 }
 0x4fa   : > { %p4349_p1 = por %p4348_p0, %p4347_p13 }
 0x4fc   : > { %p4350_p2 = pnand %p4349_p1, %p4343_p10 }
 0x4fe   : > { %4353 = shalt.err (!%p4350_p2)
}
 0x4ff   : > { %3981 = dma.vmem_to_hbm [thread:$0]  (%p4519_p4), %s5336_s26, 16, %s5334_s27, %s3125_s17  }
 0x500 PF: > { %p3987_p3 = scmp.ge.s32.totalorder %s4404_s28, 2  ;;  %s3149_s29 = sand.u32 1, %s4384_s23  }
 0x501   : > { %s3150_s13 = scalar_lea.sflag [#allocation5], %s3149_s29 }
 0x502   : > { %p3984_p5 = pnand %p3987_p3, %p4526_p8 }
 0x504   : > { %4379 = dma.done.wait (!%p3984_p5), %s3150_s13, 16  }
 0x505   : > { %4381 = vsyncadd (!%p3984_p5), %s3150_s13, 4294967280  ;;  %s27_s28 = sadd.s32 1, %s4404_s28   ;;  %s5404_s14 = sld [smem:[#allocation9_spill]] }
 0x506   : > { %p24_p6 = scmp.ge.s32.totalorder %s27_s28, 4   ;;  %s5405_s26 = sld [smem:[#allocation7_spill]] }
 0x507   : > { %s5406_s27 = sld [smem:[#allocation8_spill]]  ;;  %s5407_s23 = smov %s4388_s24 }
 0x508   : > { %s5408_s24 = smov %s4392_s25  ;;  %26 = sbr.rel (!%p24_p6) target bundleno = 7 (0x7), region = 117 }
 0x50b   : > { %s5409_s25 = smov %s5404_s14 }
 0x50f   :  { %3154 = vsyncpa [#allocation5], 1 }
 0x510   :  { %3156 = vsyncpa [#allocation5 + $0x1], 1 }

</bundles_post_ra>
